<compile_context>
chip_gen: v7x
topology: tpu7x:2x2x1
jax: 0.10.0
libtpu: 0.0.40
codegen_flags: <defaults>
</compile_context>

<pallas_src>
import numpy as np
import jax
import jax.numpy as jnp
from jax import lax
from jax.experimental import pallas as pl
from jax.experimental.pallas import tpu as pltpu


# ----------------------------------------------------------------------------
# Fixed geometry (dictated by the 28x28 single-channel LeNet-5 architecture)
# ----------------------------------------------------------------------------
K = 5                    # conv kernel size
G1W = 32                 # conv1 grid width  (28 + 2*2 padding)
G1 = G1W * G1W           # 1024 conv1 grid positions per sample
X0L = 1280               # conv1 input lanes >= G1 + 4*G1W + 4 = 1156, 128-aligned
G2W = 16                 # pool1 / conv2 grid width (valid 14x14 / 10x10 inside)
G2 = G2W * G2W           # 256
P1L = 384                # pool1 output lanes >= G2 + 4*G2W + 4 = 324, 128-aligned
C1P = 8                  # conv1 out-channels padded 6 -> 8
C2 = 16                  # conv2 out-channels
FCP = 128                # padded FC lane width (120 / 84 / 10 -> 128)
IM1R = 32                # conv1 im2col rows: 25 taps padded to 32
IM2R = 256               # conv2 im2col rows: 25 taps * 8 channels = 200 -> 256
FLATW = C2 * G2          # 4096-lane flat fc5 input per sample


# ----------------------------------------------------------------------------
# The single fused kernel (grid=(1,): the whole batch is one step)
# ----------------------------------------------------------------------------
def _lenot5_kernel(x_ref, w1_ref, b1_ref, pm1_ref, w2_ref, b2_ref,
                   w5_ref, b5_ref, w6_ref, b6_ref, w7_ref, b7_ref,
                   out_ref, im1_ref, im2_ref, flat_ref):
    f32 = jnp.float32
    N = x_ref.shape[0]

    # Zero only the padded tail rows of the im2col scratches once.  The matching
    # weight columns are zero, but stale VMEM could hold NaN/Inf bit patterns.
    im1_ref[K * K:IM1R, :] = jnp.zeros((IM1R - K * K, N * G1), f32)
    im2_ref[K * K * C1P:IM2R, :] = jnp.zeros((IM2R - K * K * C1P, N * G2), f32)

    # ---- conv1 (1 -> 6, k=5, pad pre-applied): im2col + ONE MXU matmul -------
    # im1[t, n*G1 + p] = padded_image_n[p + dy*32 + dx],  t = dy*5 + dx
    for n in range(N):
        a0 = x_ref[n:n + 1, :]                           # (1, X0L)
        for t in range(K * K):
            dy, dx = divmod(t, K)
            s = dy * G1W + dx
            im1_ref[t:t + 1, n * G1:(n + 1) * G1] = a0[:, s:s + G1]
    c1 = jnp.maximum(
        jnp.dot(w1_ref[...], im1_ref[...], preferred_element_type=f32)
        + b1_ref[...], 0.0)                              # (8, N*1024)

    # ---- pool1 (2x2 avg) + regrid 28x28 -> 16x16 grid, then conv2 im2col -----
    # pm1 also zeroes the invalid / wrap-around lanes and adds conv2's lane pad.
    for n in range(N):
        p1 = jnp.dot(c1[:, n * G1:(n + 1) * G1], pm1_ref[...],
                     preferred_element_type=f32)         # (8, 384)
        for t in range(K * K):
            dy, dx = divmod(t, K)
            s = dy * G2W + dx
            # sublane-aligned (t*8) and lane-aligned (n*256) store
            im2_ref[t * C1P:(t + 1) * C1P, n * G2:(n + 1) * G2] = p1[:, s:s + G2]

    # ---- conv2 (6 -> 16, k=5): ONE (16,256)x(256,N*256) MXU matmul -----------
    c2 = jnp.maximum(
        jnp.dot(w2_ref[...], im2_ref[...], preferred_element_type=f32)
        + b2_ref[...], 0.0)                              # (16, N*256)

    # ---- scatter c2 channels into lane-flat FC rows (pool2 folded into w5) ---
    for n in range(N):
        for c in range(C2):
            flat_ref[n:n + 1, c * G2:(c + 1) * G2] = c2[c:c + 1, n * G2:(n + 1) * G2]

    # ---- batched FC stack: fc5 (pool2+flatten fused), fc6, fc7 (all ReLU) ----
    F = flat_ref[...]                                    # (N, 4096)
    h5 = jnp.maximum(
        jnp.dot(F, w5_ref[...], preferred_element_type=f32) + b5_ref[...], 0.0)
    h6 = jnp.maximum(
        jnp.dot(h5, w6_ref[...], preferred_element_type=f32) + b6_ref[...], 0.0)
    h7 = jnp.maximum(
        jnp.dot(h6, w7_ref[...], preferred_element_type=f32) + b7_ref[...], 0.0)
    out_ref[...] = h7                                    # lane-dense (N, 128)


# ----------------------------------------------------------------------------
# Constant pooling / re-gridding matrices (built once, outside the kernel)
# ----------------------------------------------------------------------------
def _pool_regrid_matrix(in_w, valid_out_hw, out_w, out_cols):
    """0.25-weighted matrix: flattened in_w x in_w grid -> flattened output grid
    of width out_w (only valid_out_hw x valid_out_hw columns non-zero),
    zero-padded to out_cols columns."""
    m = np.zeros((in_w * in_w, out_cols), np.float32)
    for yo in range(valid_out_hw):
        for xo in range(valid_out_hw):
            q = yo * out_w + xo
            for a in range(2):
                for b in range(2):
                    m[(2 * yo + a) * in_w + (2 * xo + b), q] = 0.25
    return m


def prepare_params(params):
    """One-time packing of PyTorch-layout weights into kernel-friendly,
    zero-padded f32 operands (pool2 + NCHW flatten folded into fc5)."""
    f32 = jnp.float32

    # conv1: (6,1,5,5) -> (8, 32); column t = tap dy*5+dx
    w1 = params["w1"].astype(f32).reshape(6, K * K)
    w1c = jnp.zeros((C1P, IM1R), f32).at[:6, :K * K].set(w1)
    b1c = jnp.zeros((C1P, 1), f32).at[:6, 0].set(params["b1"].astype(f32))

    # pool1 + regrid matrix: 32x32 grid (valid 28x28) -> 16x16 grid (valid 14x14)
    pm1 = jnp.asarray(_pool_regrid_matrix(G1W, 14, G2W, P1L))        # (1024, 384)

    # conv2: (16,6,5,5) -> (16, 256); column (dy*5+dx)*8 + cin  (cin 6 -> 8 pad)
    w2 = jnp.transpose(params["w2"].astype(f32), (0, 2, 3, 1))       # (o,dy,dx,i)
    w2p = jnp.zeros((C2, K, K, C1P), f32).at[:, :, :, :6].set(w2)
    w2f = jnp.zeros((C2, IM2R), f32).at[:, :K * K * C1P].set(
        w2p.reshape(C2, K * K * C1P))
    b2c = params["b2"].astype(f32).reshape(C2, 1)

    # pool2 + NCHW flatten folded into fc5:
    #   W5eff[c*G2 + g, j] = sum_q pm2[g, q] * W5_torch[j, c*25 + q]
    pm2 = jnp.asarray(_pool_regrid_matrix(G2W, 5, 5, K * K))         # (256, 25)
    w5 = params["w5"].astype(f32).reshape(120, C2, K * K)            # (j, c, q)
    w5eff = jnp.einsum("gq,jcq->cgj", pm2, w5).reshape(C2 * G2, 120)
    w5e = jnp.zeros((FLATW, FCP), f32).at[:, :120].set(w5eff)        # (4096, 128)
    b5r = jnp.zeros((1, FCP), f32).at[0, :120].set(params["b5"].astype(f32))

    w6p = jnp.zeros((FCP, FCP), f32).at[:120, :84].set(params["w6"].astype(f32).T)
    b6r = jnp.zeros((1, FCP), f32).at[0, :84].set(params["b6"].astype(f32))
    w7p = jnp.zeros((FCP, FCP), f32).at[:84, :10].set(params["w7"].astype(f32).T)
    b7r = jnp.zeros((1, FCP), f32).at[0, :10].set(params["b7"].astype(f32))

    return dict(w1c=w1c, b1c=b1c, pm1=pm1, w2f=w2f, b2c=b2c,
                w5e=w5e, b5r=b5r, w6p=w6p, b6r=b6r, w7p=w7p, b7r=b7r)


# ----------------------------------------------------------------------------
# Forward wrapper: one pallas_call, one grid step, whole batch in the block
# ----------------------------------------------------------------------------
@jax.jit
def lenot5_forward(x_nchw, prep):
    N = x_nchw.shape[0]
    x = x_nchw.astype(jnp.float32)
    # conv1 padding=2, flatten to the 32x32 grid, zero-pad the lane tail so the
    # shifted im2col slices never go out of bounds (layout plumbing only).
    xpad = jnp.pad(x, ((0, 0), (0, 0), (2, 2), (2, 2)))              # (N,1,32,32)
    x0 = jnp.pad(xpad.reshape(N, G1), ((0, 0), (0, X0L - G1)))       # (N, X0L)

    def full(shape):
        return pl.BlockSpec(shape, lambda i, _n=len(shape): (0,) * _n)

    flops = int(N * (2 * C1P * IM1R * G1        # conv1
                     + 2 * C1P * G1 * P1L       # pool1 regrid
                     + 2 * C2 * IM2R * G2       # conv2
                     + 2 * FLATW * FCP          # fc5 (pool2 fused)
                     + 4 * FCP * FCP))          # fc6 + fc7
    n_const = sum(int(np.prod(v.shape)) for v in prep.values())
    bytes_accessed = int(4 * (n_const + x0.size + N * FCP))

    out = pl.pallas_call(
        _lenot5_kernel,
        out_shape=jax.ShapeDtypeStruct((N, FCP), jnp.float32),
        grid=(1,),
        in_specs=[
            full((N, X0L)),          # padded, flattened images (whole batch)
            full((C1P, IM1R)),       # conv1 weights (taps in columns)
            full((C1P, 1)),          # conv1 bias
            full((G1, P1L)),         # pool1 + regrid matrix
            full((C2, IM2R)),        # conv2 weights flattened (tap, cin)
            full((C2, 1)),           # conv2 bias
            full((FLATW, FCP)),      # fc5 weights with pool2+flatten folded in
            full((1, FCP)),          # fc5 bias
            full((FCP, FCP)),        # fc6 weights
            full((1, FCP)),          # fc6 bias
            full((FCP, FCP)),        # fc7 weights
            full((1, FCP)),          # fc7 bias
        ],
        out_specs=full((N, FCP)),
        scratch_shapes=[
            pltpu.VMEM((IM1R, N * G1), jnp.float32),   # conv1 im2col
            pltpu.VMEM((IM2R, N * G2), jnp.float32),   # conv2 im2col
            pltpu.VMEM((N, FLATW), jnp.float32),       # lane-flat fc5 input
        ],
        cost_estimate=pl.CostEstimate(flops=flops, transcendentals=0,
                                      bytes_accessed=bytes_accessed),
    )(x0, prep["w1c"], prep["b1c"], prep["pm1"], prep["w2f"], prep["b2c"],
      prep["w5e"], prep["b5r"], prep["w6p"], prep["b6r"], prep["w7p"],
      prep["b7r"])
    return out[:, :10]


# ----------------------------------------------------------------------------
# Pure-JAX reference (no Pallas) for the correctness check
# ----------------------------------------------------------------------------
def lenot5_reference(x_nchw, params):
    def conv(x, w, b, pad):
        y = lax.conv_general_dilated(
            x, w, (1, 1), ((pad, pad), (pad, pad)),
            dimension_numbers=("NCHW", "OIHW", "NCHW"),
        )
        return jnp.maximum(y + b[None, :, None, None], 0.0)

    def pool(x):
        n, c, h, w = x.shape
        return x.reshape(n, c, h // 2, 2, w // 2, 2).mean(axis=(3, 5))

    y = pool(conv(x_nchw, params["w1"], params["b1"], 2))
    y = pool(conv(y, params["w2"], params["b2"], 0))
    flat = y.reshape(y.shape[0], 16 * 5 * 5)
    h = jnp.maximum(flat @ params["w5"].T + params["b5"], 0.0)
    h = jnp.maximum(h @ params["w6"].T + params["b6"], 0.0)
    h = jnp.maximum(h @ params["w7"].T + params["b7"], 0.0)
    return h


# ----------------------------------------------------------------------------
# Deterministic parameter init (PyTorch shapes)
# ----------------------------------------------------------------------------
def init_params(key):
    ks = jax.random.split(key, 10)
    w = lambda k, shape, s: s * jax.random.normal(k, shape, jnp.float32)
    return {
        "w1": w(ks[0], (6, 1, 5, 5), 0.2),   "b1": w(ks[1], (6,), 0.1),
        "w2": w(ks[2], (16, 6, 5, 5), 0.1),  "b2": w(ks[3], (16,), 0.1),
        "w5": w(ks[4], (120, 400), 0.05),    "b5": w(ks[5], (120,), 0.05),
        "w6": w(ks[6], (84, 120), 0.05),     "b6": w(ks[7], (84,), 0.05),
        "w7": w(ks[8], (10, 84), 0.05),      "b7": w(ks[9], (10,), 0.05),
    }


if __name__ == "__main__":
    key = jax.random.PRNGKey(0)
    kx, kp = jax.random.split(key)
    # LeNet-5 geometry requires 28x28 single-channel input; batch kept small.
    x = jax.random.normal(kx, (2, 1, 28, 28), jnp.float32)
    params = init_params(kp)
    prep = prepare_params(params)   # one-time weight packing (outside forward)

    out = jax.block_until_ready(lenot5_forward(x, prep))
    assert out.shape == (2, 10), out.shape

    ref = jax.block_until_ready(lenot5_reference(x, params))
    assert jnp.allclose(out, ref, rtol=2e-3, atol=2e-3), (out, ref)

    # TODO(synk): nn.LogSoftmax is constructed but never used in forward(); not implemented.
    print("KERNEL_OK")
</pallas_src>

<mosaic_0001>
module attributes {stable_mosaic.version = 11 : i64} {
  func.func @_lenot5_kernel(%arg0: i32, %arg1: memref<2x1280xf32, #tpu.memory_space<vmem>>, %arg2: memref<8x32xf32, #tpu.memory_space<vmem>>, %arg3: memref<8x1xf32, #tpu.memory_space<vmem>>, %arg4: memref<1024x384xf32, #tpu.memory_space<vmem>>, %arg5: memref<16x256xf32, #tpu.memory_space<vmem>>, %arg6: memref<16x1xf32, #tpu.memory_space<vmem>>, %arg7: memref<4096x128xf32, #tpu.memory_space<vmem>>, %arg8: memref<1x128xf32, #tpu.memory_space<vmem>>, %arg9: memref<128x128xf32, #tpu.memory_space<vmem>>, %arg10: memref<1x128xf32, #tpu.memory_space<vmem>>, %arg11: memref<128x128xf32, #tpu.memory_space<vmem>>, %arg12: memref<1x128xf32, #tpu.memory_space<vmem>>, %arg13: memref<2x128xf32, #tpu.memory_space<vmem>>, %arg14: memref<32x2048xf32, #tpu.memory_space<vmem>>, %arg15: memref<256x512xf32, #tpu.memory_space<vmem>>, %arg16: memref<2x4096xf32, #tpu.memory_space<vmem>>) attributes {dimension_semantics = [#tpu.dimension_semantics<arbitrary>], iteration_bounds = array<i64: 1>, scalar_prefetch = 0 : i64, scratch_operands = 3 : i64, tpu.core_type = #tpu.core_type<tc>, window_params = [{pipeline_mode = #tpu.pipeline_mode<synchronous>, transform_indices = @transform_0, window_bounds = array<i64: 2, 1280>}, {pipeline_mode = #tpu.pipeline_mode<synchronous>, transform_indices = @transform_1, window_bounds = array<i64: 8, 32>}, {pipeline_mode = #tpu.pipeline_mode<synchronous>, transform_indices = @transform_2, window_bounds = array<i64: 8, 1>}, {pipeline_mode = #tpu.pipeline_mode<synchronous>, transform_indices = @transform_3, window_bounds = array<i64: 1024, 384>}, {pipeline_mode = #tpu.pipeline_mode<synchronous>, transform_indices = @transform_4, window_bounds = array<i64: 16, 256>}, {pipeline_mode = #tpu.pipeline_mode<synchronous>, transform_indices = @transform_5, window_bounds = array<i64: 16, 1>}, {pipeline_mode = #tpu.pipeline_mode<synchronous>, transform_indices = @transform_6, window_bounds = array<i64: 4096, 128>}, {pipeline_mode = #tpu.pipeline_mode<synchronous>, transform_indices = @transform_7, window_bounds = array<i64: 1, 128>}, {pipeline_mode = #tpu.pipeline_mode<synchronous>, transform_indices = @transform_8, window_bounds = array<i64: 128, 128>}, {pipeline_mode = #tpu.pipeline_mode<synchronous>, transform_indices = @transform_9, window_bounds = array<i64: 1, 128>}, {pipeline_mode = #tpu.pipeline_mode<synchronous>, transform_indices = @transform_10, window_bounds = array<i64: 128, 128>}, {pipeline_mode = #tpu.pipeline_mode<synchronous>, transform_indices = @transform_11, window_bounds = array<i64: 1, 128>}, {pipeline_mode = #tpu.pipeline_mode<synchronous>, transform_indices = @transform_12, window_bounds = array<i64: 2, 128>}]} {
    %cst = arith.constant 0.000000e+00 : f32
    %0 = vector.broadcast %cst : f32 to vector<7x2048xf32>
    %c25 = arith.constant 25 : index
    %c0 = arith.constant 0 : index
    %1 = vector.load %arg14[%c25, %c0] : memref<32x2048xf32, #tpu.memory_space<vmem>>, vector<7x2048xf32>
    tpu.vector_store %arg14[%c25, %c0], %0 {strides = array<i32>} : memref<32x2048xf32, #tpu.memory_space<vmem>>, vector<7x2048xf32>,
    %cst_0 = arith.constant 0.000000e+00 : f32
    %2 = vector.broadcast %cst_0 : f32 to vector<56x512xf32>
    %c200 = arith.constant 200 : index
    %c0_1 = arith.constant 0 : index
    %3 = vector.load %arg15[%c200, %c0_1] : memref<256x512xf32, #tpu.memory_space<vmem>>, vector<56x512xf32>
    tpu.vector_store %arg15[%c200, %c0_1], %2 {strides = array<i32>} : memref<256x512xf32, #tpu.memory_space<vmem>>, vector<56x512xf32>,
    %c0_2 = arith.constant 0 : index
    %c0_3 = arith.constant 0 : index
    %4 = vector.load %arg1[%c0_2, %c0_3] : memref<2x1280xf32, #tpu.memory_space<vmem>>, vector<1x1280xf32>
    %5 = vector.extract_strided_slice %4 {offsets = [0, 0], sizes = [1, 1024], strides = [1, 1]} : vector<1x1280xf32> to vector<1x1024xf32>
    %c0_4 = arith.constant 0 : index
    %c0_5 = arith.constant 0 : index
    %6 = vector.load %arg14[%c0_4, %c0_5] : memref<32x2048xf32, #tpu.memory_space<vmem>>, vector<1x1024xf32>
    tpu.vector_store %arg14[%c0_4, %c0_5], %5 {strides = array<i32>} : memref<32x2048xf32, #tpu.memory_space<vmem>>, vector<1x1024xf32>,
    %7 = vector.extract_strided_slice %4 {offsets = [0, 1], sizes = [1, 1024], strides = [1, 1]} : vector<1x1280xf32> to vector<1x1024xf32>
    %c1 = arith.constant 1 : index
    %c0_6 = arith.constant 0 : index
    %8 = vector.load %arg14[%c1, %c0_6] : memref<32x2048xf32, #tpu.memory_space<vmem>>, vector<1x1024xf32>
    tpu.vector_store %arg14[%c1, %c0_6], %7 {strides = array<i32>} : memref<32x2048xf32, #tpu.memory_space<vmem>>, vector<1x1024xf32>,
    %9 = vector.extract_strided_slice %4 {offsets = [0, 2], sizes = [1, 1024], strides = [1, 1]} : vector<1x1280xf32> to vector<1x1024xf32>
    %c2 = arith.constant 2 : index
    %c0_7 = arith.constant 0 : index
    %10 = vector.load %arg14[%c2, %c0_7] : memref<32x2048xf32, #tpu.memory_space<vmem>>, vector<1x1024xf32>
    tpu.vector_store %arg14[%c2, %c0_7], %9 {strides = array<i32>} : memref<32x2048xf32, #tpu.memory_space<vmem>>, vector<1x1024xf32>,
    %11 = vector.extract_strided_slice %4 {offsets = [0, 3], sizes = [1, 1024], strides = [1, 1]} : vector<1x1280xf32> to vector<1x1024xf32>
    %c3 = arith.constant 3 : index
    %c0_8 = arith.constant 0 : index
    %12 = vector.load %arg14[%c3, %c0_8] : memref<32x2048xf32, #tpu.memory_space<vmem>>, vector<1x1024xf32>
    tpu.vector_store %arg14[%c3, %c0_8], %11 {strides = array<i32>} : memref<32x2048xf32, #tpu.memory_space<vmem>>, vector<1x1024xf32>,
    %13 = vector.extract_strided_slice %4 {offsets = [0, 4], sizes = [1, 1024], strides = [1, 1]} : vector<1x1280xf32> to vector<1x1024xf32>
    %c4 = arith.constant 4 : index
    %c0_9 = arith.constant 0 : index
    %14 = vector.load %arg14[%c4, %c0_9] : memref<32x2048xf32, #tpu.memory_space<vmem>>, vector<1x1024xf32>
    tpu.vector_store %arg14[%c4, %c0_9], %13 {strides = array<i32>} : memref<32x2048xf32, #tpu.memory_space<vmem>>, vector<1x1024xf32>,
    %15 = vector.extract_strided_slice %4 {offsets = [0, 32], sizes = [1, 1024], strides = [1, 1]} : vector<1x1280xf32> to vector<1x1024xf32>
    %c5 = arith.constant 5 : index
    %c0_10 = arith.constant 0 : index
    %16 = vector.load %arg14[%c5, %c0_10] : memref<32x2048xf32, #tpu.memory_space<vmem>>, vector<1x1024xf32>
    tpu.vector_store %arg14[%c5, %c0_10], %15 {strides = array<i32>} : memref<32x2048xf32, #tpu.memory_space<vmem>>, vector<1x1024xf32>,
    %17 = vector.extract_strided_slice %4 {offsets = [0, 33], sizes = [1, 1024], strides = [1, 1]} : vector<1x1280xf32> to vector<1x1024xf32>
    %c6 = arith.constant 6 : index
    %c0_11 = arith.constant 0 : index
    %18 = vector.load %arg14[%c6, %c0_11] : memref<32x2048xf32, #tpu.memory_space<vmem>>, vector<1x1024xf32>
    tpu.vector_store %arg14[%c6, %c0_11], %17 {strides = array<i32>} : memref<32x2048xf32, #tpu.memory_space<vmem>>, vector<1x1024xf32>,
    %19 = vector.extract_strided_slice %4 {offsets = [0, 34], sizes = [1, 1024], strides = [1, 1]} : vector<1x1280xf32> to vector<1x1024xf32>
    %c7 = arith.constant 7 : index
    %c0_12 = arith.constant 0 : index
    %20 = vector.load %arg14[%c7, %c0_12] : memref<32x2048xf32, #tpu.memory_space<vmem>>, vector<1x1024xf32>
    tpu.vector_store %arg14[%c7, %c0_12], %19 {strides = array<i32>} : memref<32x2048xf32, #tpu.memory_space<vmem>>, vector<1x1024xf32>,
    %21 = vector.extract_strided_slice %4 {offsets = [0, 35], sizes = [1, 1024], strides = [1, 1]} : vector<1x1280xf32> to vector<1x1024xf32>
    %c8 = arith.constant 8 : index
    %c0_13 = arith.constant 0 : index
    %22 = vector.load %arg14[%c8, %c0_13] : memref<32x2048xf32, #tpu.memory_space<vmem>>, vector<1x1024xf32>
    tpu.vector_store %arg14[%c8, %c0_13], %21 {strides = array<i32>} : memref<32x2048xf32, #tpu.memory_space<vmem>>, vector<1x1024xf32>,
    %23 = vector.extract_strided_slice %4 {offsets = [0, 36], sizes = [1, 1024], strides = [1, 1]} : vector<1x1280xf32> to vector<1x1024xf32>
    %c9 = arith.constant 9 : index
    %c0_14 = arith.constant 0 : index
    %24 = vector.load %arg14[%c9, %c0_14] : memref<32x2048xf32, #tpu.memory_space<vmem>>, vector<1x1024xf32>
    tpu.vector_store %arg14[%c9, %c0_14], %23 {strides = array<i32>} : memref<32x2048xf32, #tpu.memory_space<vmem>>, vector<1x1024xf32>,
    %25 = vector.extract_strided_slice %4 {offsets = [0, 64], sizes = [1, 1024], strides = [1, 1]} : vector<1x1280xf32> to vector<1x1024xf32>
    %c10 = arith.constant 10 : index
    %c0_15 = arith.constant 0 : index
    %26 = vector.load %arg14[%c10, %c0_15] : memref<32x2048xf32, #tpu.memory_space<vmem>>, vector<1x1024xf32>
    tpu.vector_store %arg14[%c10, %c0_15], %25 {strides = array<i32>} : memref<32x2048xf32, #tpu.memory_space<vmem>>, vector<1x1024xf32>,
    %27 = vector.extract_strided_slice %4 {offsets = [0, 65], sizes = [1, 1024], strides = [1, 1]} : vector<1x1280xf32> to vector<1x1024xf32>
    %c11 = arith.constant 11 : index
    %c0_16 = arith.constant 0 : index
    %28 = vector.load %arg14[%c11, %c0_16] : memref<32x2048xf32, #tpu.memory_space<vmem>>, vector<1x1024xf32>
    tpu.vector_store %arg14[%c11, %c0_16], %27 {strides = array<i32>} : memref<32x2048xf32, #tpu.memory_space<vmem>>, vector<1x1024xf32>,
    %29 = vector.extract_strided_slice %4 {offsets = [0, 66], sizes = [1, 1024], strides = [1, 1]} : vector<1x1280xf32> to vector<1x1024xf32>
    %c12 = arith.constant 12 : index
    %c0_17 = arith.constant 0 : index
    %30 = vector.load %arg14[%c12, %c0_17] : memref<32x2048xf32, #tpu.memory_space<vmem>>, vector<1x1024xf32>
    tpu.vector_store %arg14[%c12, %c0_17], %29 {strides = array<i32>} : memref<32x2048xf32, #tpu.memory_space<vmem>>, vector<1x1024xf32>,
    %31 = vector.extract_strided_slice %4 {offsets = [0, 67], sizes = [1, 1024], strides = [1, 1]} : vector<1x1280xf32> to vector<1x1024xf32>
    %c13 = arith.constant 13 : index
    %c0_18 = arith.constant 0 : index
    %32 = vector.load %arg14[%c13, %c0_18] : memref<32x2048xf32, #tpu.memory_space<vmem>>, vector<1x1024xf32>
    tpu.vector_store %arg14[%c13, %c0_18], %31 {strides = array<i32>} : memref<32x2048xf32, #tpu.memory_space<vmem>>, vector<1x1024xf32>,
    %33 = vector.extract_strided_slice %4 {offsets = [0, 68], sizes = [1, 1024], strides = [1, 1]} : vector<1x1280xf32> to vector<1x1024xf32>
    %c14 = arith.constant 14 : index
    %c0_19 = arith.constant 0 : index
    %34 = vector.load %arg14[%c14, %c0_19] : memref<32x2048xf32, #tpu.memory_space<vmem>>, vector<1x1024xf32>
    tpu.vector_store %arg14[%c14, %c0_19], %33 {strides = array<i32>} : memref<32x2048xf32, #tpu.memory_space<vmem>>, vector<1x1024xf32>,
    %35 = vector.extract_strided_slice %4 {offsets = [0, 96], sizes = [1, 1024], strides = [1, 1]} : vector<1x1280xf32> to vector<1x1024xf32>
    %c15 = arith.constant 15 : index
    %c0_20 = arith.constant 0 : index
    %36 = vector.load %arg14[%c15, %c0_20] : memref<32x2048xf32, #tpu.memory_space<vmem>>, vector<1x1024xf32>
    tpu.vector_store %arg14[%c15, %c0_20], %35 {strides = array<i32>} : memref<32x2048xf32, #tpu.memory_space<vmem>>, vector<1x1024xf32>,
    %37 = vector.extract_strided_slice %4 {offsets = [0, 97], sizes = [1, 1024], strides = [1, 1]} : vector<1x1280xf32> to vector<1x1024xf32>
    %c16 = arith.constant 16 : index
    %c0_21 = arith.constant 0 : index
    %38 = vector.load %arg14[%c16, %c0_21] : memref<32x2048xf32, #tpu.memory_space<vmem>>, vector<1x1024xf32>
    tpu.vector_store %arg14[%c16, %c0_21], %37 {strides = array<i32>} : memref<32x2048xf32, #tpu.memory_space<vmem>>, vector<1x1024xf32>,
    %39 = vector.extract_strided_slice %4 {offsets = [0, 98], sizes = [1, 1024], strides = [1, 1]} : vector<1x1280xf32> to vector<1x1024xf32>
    %c17 = arith.constant 17 : index
    %c0_22 = arith.constant 0 : index
    %40 = vector.load %arg14[%c17, %c0_22] : memref<32x2048xf32, #tpu.memory_space<vmem>>, vector<1x1024xf32>
    tpu.vector_store %arg14[%c17, %c0_22], %39 {strides = array<i32>} : memref<32x2048xf32, #tpu.memory_space<vmem>>, vector<1x1024xf32>,
    %41 = vector.extract_strided_slice %4 {offsets = [0, 99], sizes = [1, 1024], strides = [1, 1]} : vector<1x1280xf32> to vector<1x1024xf32>
    %c18 = arith.constant 18 : index
    %c0_23 = arith.constant 0 : index
    %42 = vector.load %arg14[%c18, %c0_23] : memref<32x2048xf32, #tpu.memory_space<vmem>>, vector<1x1024xf32>
    tpu.vector_store %arg14[%c18, %c0_23], %41 {strides = array<i32>} : memref<32x2048xf32, #tpu.memory_space<vmem>>, vector<1x1024xf32>,
    %43 = vector.extract_strided_slice %4 {offsets = [0, 100], sizes = [1, 1024], strides = [1, 1]} : vector<1x1280xf32> to vector<1x1024xf32>
    %c19 = arith.constant 19 : index
    %c0_24 = arith.constant 0 : index
    %44 = vector.load %arg14[%c19, %c0_24] : memref<32x2048xf32, #tpu.memory_space<vmem>>, vector<1x1024xf32>
    tpu.vector_store %arg14[%c19, %c0_24], %43 {strides = array<i32>} : memref<32x2048xf32, #tpu.memory_space<vmem>>, vector<1x1024xf32>,
    %45 = vector.extract_strided_slice %4 {offsets = [0, 128], sizes = [1, 1024], strides = [1, 1]} : vector<1x1280xf32> to vector<1x1024xf32>
    %c20 = arith.constant 20 : index
    %c0_25 = arith.constant 0 : index
    %46 = vector.load %arg14[%c20, %c0_25] : memref<32x2048xf32, #tpu.memory_space<vmem>>, vector<1x1024xf32>
    tpu.vector_store %arg14[%c20, %c0_25], %45 {strides = array<i32>} : memref<32x2048xf32, #tpu.memory_space<vmem>>, vector<1x1024xf32>,
    %47 = vector.extract_strided_slice %4 {offsets = [0, 129], sizes = [1, 1024], strides = [1, 1]} : vector<1x1280xf32> to vector<1x1024xf32>
    %c21 = arith.constant 21 : index
    %c0_26 = arith.constant 0 : index
    %48 = vector.load %arg14[%c21, %c0_26] : memref<32x2048xf32, #tpu.memory_space<vmem>>, vector<1x1024xf32>
    tpu.vector_store %arg14[%c21, %c0_26], %47 {strides = array<i32>} : memref<32x2048xf32, #tpu.memory_space<vmem>>, vector<1x1024xf32>,
    %49 = vector.extract_strided_slice %4 {offsets = [0, 130], sizes = [1, 1024], strides = [1, 1]} : vector<1x1280xf32> to vector<1x1024xf32>
    %c22 = arith.constant 22 : index
    %c0_27 = arith.constant 0 : index
    %50 = vector.load %arg14[%c22, %c0_27] : memref<32x2048xf32, #tpu.memory_space<vmem>>, vector<1x1024xf32>
    tpu.vector_store %arg14[%c22, %c0_27], %49 {strides = array<i32>} : memref<32x2048xf32, #tpu.memory_space<vmem>>, vector<1x1024xf32>,
    %51 = vector.extract_strided_slice %4 {offsets = [0, 131], sizes = [1, 1024], strides = [1, 1]} : vector<1x1280xf32> to vector<1x1024xf32>
    %c23 = arith.constant 23 : index
    %c0_28 = arith.constant 0 : index
    %52 = vector.load %arg14[%c23, %c0_28] : memref<32x2048xf32, #tpu.memory_space<vmem>>, vector<1x1024xf32>
    tpu.vector_store %arg14[%c23, %c0_28], %51 {strides = array<i32>} : memref<32x2048xf32, #tpu.memory_space<vmem>>, vector<1x1024xf32>,
    %53 = vector.extract_strided_slice %4 {offsets = [0, 132], sizes = [1, 1024], strides = [1, 1]} : vector<1x1280xf32> to vector<1x1024xf32>
    %c24 = arith.constant 24 : index
    %c0_29 = arith.constant 0 : index
    %54 = vector.load %arg14[%c24, %c0_29] : memref<32x2048xf32, #tpu.memory_space<vmem>>, vector<1x1024xf32>
    tpu.vector_store %arg14[%c24, %c0_29], %53 {strides = array<i32>} : memref<32x2048xf32, #tpu.memory_space<vmem>>, vector<1x1024xf32>,
    %c1_30 = arith.constant 1 : index
    %c0_31 = arith.constant 0 : index
    %55 = vector.load %arg1[%c1_30, %c0_31] : memref<2x1280xf32, #tpu.memory_space<vmem>>, vector<1x1280xf32>
    %56 = vector.extract_strided_slice %55 {offsets = [0, 0], sizes = [1, 1024], strides = [1, 1]} : vector<1x1280xf32> to vector<1x1024xf32>
    %c0_32 = arith.constant 0 : index
    %c1024 = arith.constant 1024 : index
    %57 = vector.load %arg14[%c0_32, %c1024] : memref<32x2048xf32, #tpu.memory_space<vmem>>, vector<1x1024xf32>
    tpu.vector_store %arg14[%c0_32, %c1024], %56 {strides = array<i32>} : memref<32x2048xf32, #tpu.memory_space<vmem>>, vector<1x1024xf32>,
    %58 = vector.extract_strided_slice %55 {offsets = [0, 1], sizes = [1, 1024], strides = [1, 1]} : vector<1x1280xf32> to vector<1x1024xf32>
    %c1_33 = arith.constant 1 : index
    %c1024_34 = arith.constant 1024 : index
    %59 = vector.load %arg14[%c1_33, %c1024_34] : memref<32x2048xf32, #tpu.memory_space<vmem>>, vector<1x1024xf32>
    tpu.vector_store %arg14[%c1_33, %c1024_34], %58 {strides = array<i32>} : memref<32x2048xf32, #tpu.memory_space<vmem>>, vector<1x1024xf32>,
    %60 = vector.extract_strided_slice %55 {offsets = [0, 2], sizes = [1, 1024], strides = [1, 1]} : vector<1x1280xf32> to vector<1x1024xf32>
    %c2_35 = arith.constant 2 : index
    %c1024_36 = arith.constant 1024 : index
    %61 = vector.load %arg14[%c2_35, %c1024_36] : memref<32x2048xf32, #tpu.memory_space<vmem>>, vector<1x1024xf32>
    tpu.vector_store %arg14[%c2_35, %c1024_36], %60 {strides = array<i32>} : memref<32x2048xf32, #tpu.memory_space<vmem>>, vector<1x1024xf32>,
    %62 = vector.extract_strided_slice %55 {offsets = [0, 3], sizes = [1, 1024], strides = [1, 1]} : vector<1x1280xf32> to vector<1x1024xf32>
    %c3_37 = arith.constant 3 : index
    %c1024_38 = arith.constant 1024 : index
    %63 = vector.load %arg14[%c3_37, %c1024_38] : memref<32x2048xf32, #tpu.memory_space<vmem>>, vector<1x1024xf32>
    tpu.vector_store %arg14[%c3_37, %c1024_38], %62 {strides = array<i32>} : memref<32x2048xf32, #tpu.memory_space<vmem>>, vector<1x1024xf32>,
    %64 = vector.extract_strided_slice %55 {offsets = [0, 4], sizes = [1, 1024], strides = [1, 1]} : vector<1x1280xf32> to vector<1x1024xf32>
    %c4_39 = arith.constant 4 : index
    %c1024_40 = arith.constant 1024 : index
    %65 = vector.load %arg14[%c4_39, %c1024_40] : memref<32x2048xf32, #tpu.memory_space<vmem>>, vector<1x1024xf32>
    tpu.vector_store %arg14[%c4_39, %c1024_40], %64 {strides = array<i32>} : memref<32x2048xf32, #tpu.memory_space<vmem>>, vector<1x1024xf32>,
    %66 = vector.extract_strided_slice %55 {offsets = [0, 32], sizes = [1, 1024], strides = [1, 1]} : vector<1x1280xf32> to vector<1x1024xf32>
    %c5_41 = arith.constant 5 : index
    %c1024_42 = arith.constant 1024 : index
    %67 = vector.load %arg14[%c5_41, %c1024_42] : memref<32x2048xf32, #tpu.memory_space<vmem>>, vector<1x1024xf32>
    tpu.vector_store %arg14[%c5_41, %c1024_42], %66 {strides = array<i32>} : memref<32x2048xf32, #tpu.memory_space<vmem>>, vector<1x1024xf32>,
    %68 = vector.extract_strided_slice %55 {offsets = [0, 33], sizes = [1, 1024], strides = [1, 1]} : vector<1x1280xf32> to vector<1x1024xf32>
    %c6_43 = arith.constant 6 : index
    %c1024_44 = arith.constant 1024 : index
    %69 = vector.load %arg14[%c6_43, %c1024_44] : memref<32x2048xf32, #tpu.memory_space<vmem>>, vector<1x1024xf32>
    tpu.vector_store %arg14[%c6_43, %c1024_44], %68 {strides = array<i32>} : memref<32x2048xf32, #tpu.memory_space<vmem>>, vector<1x1024xf32>,
    %70 = vector.extract_strided_slice %55 {offsets = [0, 34], sizes = [1, 1024], strides = [1, 1]} : vector<1x1280xf32> to vector<1x1024xf32>
    %c7_45 = arith.constant 7 : index
    %c1024_46 = arith.constant 1024 : index
    %71 = vector.load %arg14[%c7_45, %c1024_46] : memref<32x2048xf32, #tpu.memory_space<vmem>>, vector<1x1024xf32>
    tpu.vector_store %arg14[%c7_45, %c1024_46], %70 {strides = array<i32>} : memref<32x2048xf32, #tpu.memory_space<vmem>>, vector<1x1024xf32>,
    %72 = vector.extract_strided_slice %55 {offsets = [0, 35], sizes = [1, 1024], strides = [1, 1]} : vector<1x1280xf32> to vector<1x1024xf32>
    %c8_47 = arith.constant 8 : index
    %c1024_48 = arith.constant 1024 : index
    %73 = vector.load %arg14[%c8_47, %c1024_48] : memref<32x2048xf32, #tpu.memory_space<vmem>>, vector<1x1024xf32>
    tpu.vector_store %arg14[%c8_47, %c1024_48], %72 {strides = array<i32>} : memref<32x2048xf32, #tpu.memory_space<vmem>>, vector<1x1024xf32>,
    %74 = vector.extract_strided_slice %55 {offsets = [0, 36], sizes = [1, 1024], strides = [1, 1]} : vector<1x1280xf32> to vector<1x1024xf32>
    %c9_49 = arith.constant 9 : index
    %c1024_50 = arith.constant 1024 : index
    %75 = vector.load %arg14[%c9_49, %c1024_50] : memref<32x2048xf32, #tpu.memory_space<vmem>>, vector<1x1024xf32>
    tpu.vector_store %arg14[%c9_49, %c1024_50], %74 {strides = array<i32>} : memref<32x2048xf32, #tpu.memory_space<vmem>>, vector<1x1024xf32>,
    %76 = vector.extract_strided_slice %55 {offsets = [0, 64], sizes = [1, 1024], strides = [1, 1]} : vector<1x1280xf32> to vector<1x1024xf32>
    %c10_51 = arith.constant 10 : index
    %c1024_52 = arith.constant 1024 : index
    %77 = vector.load %arg14[%c10_51, %c1024_52] : memref<32x2048xf32, #tpu.memory_space<vmem>>, vector<1x1024xf32>
    tpu.vector_store %arg14[%c10_51, %c1024_52], %76 {strides = array<i32>} : memref<32x2048xf32, #tpu.memory_space<vmem>>, vector<1x1024xf32>,
    %78 = vector.extract_strided_slice %55 {offsets = [0, 65], sizes = [1, 1024], strides = [1, 1]} : vector<1x1280xf32> to vector<1x1024xf32>
    %c11_53 = arith.constant 11 : index
    %c1024_54 = arith.constant 1024 : index
    %79 = vector.load %arg14[%c11_53, %c1024_54] : memref<32x2048xf32, #tpu.memory_space<vmem>>, vector<1x1024xf32>
    tpu.vector_store %arg14[%c11_53, %c1024_54], %78 {strides = array<i32>} : memref<32x2048xf32, #tpu.memory_space<vmem>>, vector<1x1024xf32>,
    %80 = vector.extract_strided_slice %55 {offsets = [0, 66], sizes = [1, 1024], strides = [1, 1]} : vector<1x1280xf32> to vector<1x1024xf32>
    %c12_55 = arith.constant 12 : index
    %c1024_56 = arith.constant 1024 : index
    %81 = vector.load %arg14[%c12_55, %c1024_56] : memref<32x2048xf32, #tpu.memory_space<vmem>>, vector<1x1024xf32>
    tpu.vector_store %arg14[%c12_55, %c1024_56], %80 {strides = array<i32>} : memref<32x2048xf32, #tpu.memory_space<vmem>>, vector<1x1024xf32>,
    %82 = vector.extract_strided_slice %55 {offsets = [0, 67], sizes = [1, 1024], strides = [1, 1]} : vector<1x1280xf32> to vector<1x1024xf32>
    %c13_57 = arith.constant 13 : index
    %c1024_58 = arith.constant 1024 : index
    %83 = vector.load %arg14[%c13_57, %c1024_58] : memref<32x2048xf32, #tpu.memory_space<vmem>>, vector<1x1024xf32>
    tpu.vector_store %arg14[%c13_57, %c1024_58], %82 {strides = array<i32>} : memref<32x2048xf32, #tpu.memory_space<vmem>>, vector<1x1024xf32>,
    %84 = vector.extract_strided_slice %55 {offsets = [0, 68], sizes = [1, 1024], strides = [1, 1]} : vector<1x1280xf32> to vector<1x1024xf32>
    %c14_59 = arith.constant 14 : index
    %c1024_60 = arith.constant 1024 : index
    %85 = vector.load %arg14[%c14_59, %c1024_60] : memref<32x2048xf32, #tpu.memory_space<vmem>>, vector<1x1024xf32>
    tpu.vector_store %arg14[%c14_59, %c1024_60], %84 {strides = array<i32>} : memref<32x2048xf32, #tpu.memory_space<vmem>>, vector<1x1024xf32>,
    %86 = vector.extract_strided_slice %55 {offsets = [0, 96], sizes = [1, 1024], strides = [1, 1]} : vector<1x1280xf32> to vector<1x1024xf32>
    %c15_61 = arith.constant 15 : index
    %c1024_62 = arith.constant 1024 : index
    %87 = vector.load %arg14[%c15_61, %c1024_62] : memref<32x2048xf32, #tpu.memory_space<vmem>>, vector<1x1024xf32>
    tpu.vector_store %arg14[%c15_61, %c1024_62], %86 {strides = array<i32>} : memref<32x2048xf32, #tpu.memory_space<vmem>>, vector<1x1024xf32>,
    %88 = vector.extract_strided_slice %55 {offsets = [0, 97], sizes = [1, 1024], strides = [1, 1]} : vector<1x1280xf32> to vector<1x1024xf32>
    %c16_63 = arith.constant 16 : index
    %c1024_64 = arith.constant 1024 : index
    %89 = vector.load %arg14[%c16_63, %c1024_64] : memref<32x2048xf32, #tpu.memory_space<vmem>>, vector<1x1024xf32>
    tpu.vector_store %arg14[%c16_63, %c1024_64], %88 {strides = array<i32>} : memref<32x2048xf32, #tpu.memory_space<vmem>>, vector<1x1024xf32>,
    %90 = vector.extract_strided_slice %55 {offsets = [0, 98], sizes = [1, 1024], strides = [1, 1]} : vector<1x1280xf32> to vector<1x1024xf32>
    %c17_65 = arith.constant 17 : index
    %c1024_66 = arith.constant 1024 : index
    %91 = vector.load %arg14[%c17_65, %c1024_66] : memref<32x2048xf32, #tpu.memory_space<vmem>>, vector<1x1024xf32>
    tpu.vector_store %arg14[%c17_65, %c1024_66], %90 {strides = array<i32>} : memref<32x2048xf32, #tpu.memory_space<vmem>>, vector<1x1024xf32>,
    %92 = vector.extract_strided_slice %55 {offsets = [0, 99], sizes = [1, 1024], strides = [1, 1]} : vector<1x1280xf32> to vector<1x1024xf32>
    %c18_67 = arith.constant 18 : index
    %c1024_68 = arith.constant 1024 : index
    %93 = vector.load %arg14[%c18_67, %c1024_68] : memref<32x2048xf32, #tpu.memory_space<vmem>>, vector<1x1024xf32>
    tpu.vector_store %arg14[%c18_67, %c1024_68], %92 {strides = array<i32>} : memref<32x2048xf32, #tpu.memory_space<vmem>>, vector<1x1024xf32>,
    %94 = vector.extract_strided_slice %55 {offsets = [0, 100], sizes = [1, 1024], strides = [1, 1]} : vector<1x1280xf32> to vector<1x1024xf32>
    %c19_69 = arith.constant 19 : index
    %c1024_70 = arith.constant 1024 : index
    %95 = vector.load %arg14[%c19_69, %c1024_70] : memref<32x2048xf32, #tpu.memory_space<vmem>>, vector<1x1024xf32>
    tpu.vector_store %arg14[%c19_69, %c1024_70], %94 {strides = array<i32>} : memref<32x2048xf32, #tpu.memory_space<vmem>>, vector<1x1024xf32>,
    %96 = vector.extract_strided_slice %55 {offsets = [0, 128], sizes = [1, 1024], strides = [1, 1]} : vector<1x1280xf32> to vector<1x1024xf32>
    %c20_71 = arith.constant 20 : index
    %c1024_72 = arith.constant 1024 : index
    %97 = vector.load %arg14[%c20_71, %c1024_72] : memref<32x2048xf32, #tpu.memory_space<vmem>>, vector<1x1024xf32>
    tpu.vector_store %arg14[%c20_71, %c1024_72], %96 {strides = array<i32>} : memref<32x2048xf32, #tpu.memory_space<vmem>>, vector<1x1024xf32>,
    %98 = vector.extract_strided_slice %55 {offsets = [0, 129], sizes = [1, 1024], strides = [1, 1]} : vector<1x1280xf32> to vector<1x1024xf32>
    %c21_73 = arith.constant 21 : index
    %c1024_74 = arith.constant 1024 : index
    %99 = vector.load %arg14[%c21_73, %c1024_74] : memref<32x2048xf32, #tpu.memory_space<vmem>>, vector<1x1024xf32>
    tpu.vector_store %arg14[%c21_73, %c1024_74], %98 {strides = array<i32>} : memref<32x2048xf32, #tpu.memory_space<vmem>>, vector<1x1024xf32>,
    %100 = vector.extract_strided_slice %55 {offsets = [0, 130], sizes = [1, 1024], strides = [1, 1]} : vector<1x1280xf32> to vector<1x1024xf32>
    %c22_75 = arith.constant 22 : index
    %c1024_76 = arith.constant 1024 : index
    %101 = vector.load %arg14[%c22_75, %c1024_76] : memref<32x2048xf32, #tpu.memory_space<vmem>>, vector<1x1024xf32>
    tpu.vector_store %arg14[%c22_75, %c1024_76], %100 {strides = array<i32>} : memref<32x2048xf32, #tpu.memory_space<vmem>>, vector<1x1024xf32>,
    %102 = vector.extract_strided_slice %55 {offsets = [0, 131], sizes = [1, 1024], strides = [1, 1]} : vector<1x1280xf32> to vector<1x1024xf32>
    %c23_77 = arith.constant 23 : index
    %c1024_78 = arith.constant 1024 : index
    %103 = vector.load %arg14[%c23_77, %c1024_78] : memref<32x2048xf32, #tpu.memory_space<vmem>>, vector<1x1024xf32>
    tpu.vector_store %arg14[%c23_77, %c1024_78], %102 {strides = array<i32>} : memref<32x2048xf32, #tpu.memory_space<vmem>>, vector<1x1024xf32>,
    %104 = vector.extract_strided_slice %55 {offsets = [0, 132], sizes = [1, 1024], strides = [1, 1]} : vector<1x1280xf32> to vector<1x1024xf32>
    %c24_79 = arith.constant 24 : index
    %c1024_80 = arith.constant 1024 : index
    %105 = vector.load %arg14[%c24_79, %c1024_80] : memref<32x2048xf32, #tpu.memory_space<vmem>>, vector<1x1024xf32>
    tpu.vector_store %arg14[%c24_79, %c1024_80], %104 {strides = array<i32>} : memref<32x2048xf32, #tpu.memory_space<vmem>>, vector<1x1024xf32>,
    %c0_81 = arith.constant 0 : index
    %c0_82 = arith.constant 0 : index
    %106 = vector.load %arg2[%c0_81, %c0_82] : memref<8x32xf32, #tpu.memory_space<vmem>>, vector<8x32xf32>
    %c0_83 = arith.constant 0 : index
    %c0_84 = arith.constant 0 : index
    %107 = vector.load %arg14[%c0_83, %c0_84] : memref<32x2048xf32, #tpu.memory_space<vmem>>, vector<32x2048xf32>
    %cst_85 = arith.constant dense<0.000000e+00> : vector<8x2048xf32>
    %108 = tpu.matmul %106, %107, %cst_85 {dimension_numbers = #tpu.dot_dimension_numbers<[1], [0], [0], [1], [0, 0, 1, 1], [], []>} : vector<8x32xf32>, vector<32x2048xf32>, vector<8x2048xf32> -> vector<8x2048xf32>
    %c0_86 = arith.constant 0 : index
    %c0_87 = arith.constant 0 : index
    %109 = vector.load %arg3[%c0_86, %c0_87] : memref<8x1xf32, #tpu.memory_space<vmem>>, vector<8x1xf32>
    %110 = vector.broadcast %109 : vector<8x1xf32> to vector<8x2048xf32>
    %111 = arith.addf %108, %110 : vector<8x2048xf32>
    %cst_88 = arith.constant 0.000000e+00 : f32
    %112 = vector.broadcast %cst_88 : f32 to vector<8x2048xf32>
    %113 = arith.maximumf %111, %112 : vector<8x2048xf32>
    %114 = vector.extract_strided_slice %113 {offsets = [0, 0], sizes = [8, 1024], strides = [1, 1]} : vector<8x2048xf32> to vector<8x1024xf32>
    %c0_89 = arith.constant 0 : index
    %c0_90 = arith.constant 0 : index
    %115 = vector.load %arg4[%c0_89, %c0_90] : memref<1024x384xf32, #tpu.memory_space<vmem>>, vector<1024x384xf32>
    %cst_91 = arith.constant dense<0.000000e+00> : vector<8x384xf32>
    %116 = tpu.matmul %114, %115, %cst_91 {dimension_numbers = #tpu.dot_dimension_numbers<[1], [0], [0], [1], [0, 0, 1, 1], [], []>} : vector<8x1024xf32>, vector<1024x384xf32>, vector<8x384xf32> -> vector<8x384xf32>
    %117 = vector.extract_strided_slice %116 {offsets = [0, 0], sizes = [8, 256], strides = [1, 1]} : vector<8x384xf32> to vector<8x256xf32>
    %c0_92 = arith.constant 0 : index
    %c0_93 = arith.constant 0 : index
    %118 = vector.load %arg15[%c0_92, %c0_93] : memref<256x512xf32, #tpu.memory_space<vmem>>, vector<8x256xf32>
    tpu.vector_store %arg15[%c0_92, %c0_93], %117 {strides = array<i32>} : memref<256x512xf32, #tpu.memory_space<vmem>>, vector<8x256xf32>,
    %119 = vector.extract_strided_slice %116 {offsets = [0, 1], sizes = [8, 256], strides = [1, 1]} : vector<8x384xf32> to vector<8x256xf32>
    %c8_94 = arith.constant 8 : index
    %c0_95 = arith.constant 0 : index
    %120 = vector.load %arg15[%c8_94, %c0_95] : memref<256x512xf32, #tpu.memory_space<vmem>>, vector<8x256xf32>
    tpu.vector_store %arg15[%c8_94, %c0_95], %119 {strides = array<i32>} : memref<256x512xf32, #tpu.memory_space<vmem>>, vector<8x256xf32>,
    %121 = vector.extract_strided_slice %116 {offsets = [0, 2], sizes = [8, 256], strides = [1, 1]} : vector<8x384xf32> to vector<8x256xf32>
    %c16_96 = arith.constant 16 : index
    %c0_97 = arith.constant 0 : index
    %122 = vector.load %arg15[%c16_96, %c0_97] : memref<256x512xf32, #tpu.memory_space<vmem>>, vector<8x256xf32>
    tpu.vector_store %arg15[%c16_96, %c0_97], %121 {strides = array<i32>} : memref<256x512xf32, #tpu.memory_space<vmem>>, vector<8x256xf32>,
    %123 = vector.extract_strided_slice %116 {offsets = [0, 3], sizes = [8, 256], strides = [1, 1]} : vector<8x384xf32> to vector<8x256xf32>
    %c24_98 = arith.constant 24 : index
    %c0_99 = arith.constant 0 : index
    %124 = vector.load %arg15[%c24_98, %c0_99] : memref<256x512xf32, #tpu.memory_space<vmem>>, vector<8x256xf32>
    tpu.vector_store %arg15[%c24_98, %c0_99], %123 {strides = array<i32>} : memref<256x512xf32, #tpu.memory_space<vmem>>, vector<8x256xf32>,
    %125 = vector.extract_strided_slice %116 {offsets = [0, 4], sizes = [8, 256], strides = [1, 1]} : vector<8x384xf32> to vector<8x256xf32>
    %c32 = arith.constant 32 : index
    %c0_100 = arith.constant 0 : index
    %126 = vector.load %arg15[%c32, %c0_100] : memref<256x512xf32, #tpu.memory_space<vmem>>, vector<8x256xf32>
    tpu.vector_store %arg15[%c32, %c0_100], %125 {strides = array<i32>} : memref<256x512xf32, #tpu.memory_space<vmem>>, vector<8x256xf32>,
    %127 = vector.extract_strided_slice %116 {offsets = [0, 16], sizes = [8, 256], strides = [1, 1]} : vector<8x384xf32> to vector<8x256xf32>
    %c40 = arith.constant 40 : index
    %c0_101 = arith.constant 0 : index
    %128 = vector.load %arg15[%c40, %c0_101] : memref<256x512xf32, #tpu.memory_space<vmem>>, vector<8x256xf32>
    tpu.vector_store %arg15[%c40, %c0_101], %127 {strides = array<i32>} : memref<256x512xf32, #tpu.memory_space<vmem>>, vector<8x256xf32>,
    %129 = vector.extract_strided_slice %116 {offsets = [0, 17], sizes = [8, 256], strides = [1, 1]} : vector<8x384xf32> to vector<8x256xf32>
    %c48 = arith.constant 48 : index
    %c0_102 = arith.constant 0 : index
    %130 = vector.load %arg15[%c48, %c0_102] : memref<256x512xf32, #tpu.memory_space<vmem>>, vector<8x256xf32>
    tpu.vector_store %arg15[%c48, %c0_102], %129 {strides = array<i32>} : memref<256x512xf32, #tpu.memory_space<vmem>>, vector<8x256xf32>,
    %131 = vector.extract_strided_slice %116 {offsets = [0, 18], sizes = [8, 256], strides = [1, 1]} : vector<8x384xf32> to vector<8x256xf32>
    %c56 = arith.constant 56 : index
    %c0_103 = arith.constant 0 : index
    %132 = vector.load %arg15[%c56, %c0_103] : memref<256x512xf32, #tpu.memory_space<vmem>>, vector<8x256xf32>
    tpu.vector_store %arg15[%c56, %c0_103], %131 {strides = array<i32>} : memref<256x512xf32, #tpu.memory_space<vmem>>, vector<8x256xf32>,
    %133 = vector.extract_strided_slice %116 {offsets = [0, 19], sizes = [8, 256], strides = [1, 1]} : vector<8x384xf32> to vector<8x256xf32>
    %c64 = arith.constant 64 : index
    %c0_104 = arith.constant 0 : index
    %134 = vector.load %arg15[%c64, %c0_104] : memref<256x512xf32, #tpu.memory_space<vmem>>, vector<8x256xf32>
    tpu.vector_store %arg15[%c64, %c0_104], %133 {strides = array<i32>} : memref<256x512xf32, #tpu.memory_space<vmem>>, vector<8x256xf32>,
    %135 = vector.extract_strided_slice %116 {offsets = [0, 20], sizes = [8, 256], strides = [1, 1]} : vector<8x384xf32> to vector<8x256xf32>
    %c72 = arith.constant 72 : index
    %c0_105 = arith.constant 0 : index
    %136 = vector.load %arg15[%c72, %c0_105] : memref<256x512xf32, #tpu.memory_space<vmem>>, vector<8x256xf32>
    tpu.vector_store %arg15[%c72, %c0_105], %135 {strides = array<i32>} : memref<256x512xf32, #tpu.memory_space<vmem>>, vector<8x256xf32>,
    %137 = vector.extract_strided_slice %116 {offsets = [0, 32], sizes = [8, 256], strides = [1, 1]} : vector<8x384xf32> to vector<8x256xf32>
    %c80 = arith.constant 80 : index
    %c0_106 = arith.constant 0 : index
    %138 = vector.load %arg15[%c80, %c0_106] : memref<256x512xf32, #tpu.memory_space<vmem>>, vector<8x256xf32>
    tpu.vector_store %arg15[%c80, %c0_106], %137 {strides = array<i32>} : memref<256x512xf32, #tpu.memory_space<vmem>>, vector<8x256xf32>,
    %139 = vector.extract_strided_slice %116 {offsets = [0, 33], sizes = [8, 256], strides = [1, 1]} : vector<8x384xf32> to vector<8x256xf32>
    %c88 = arith.constant 88 : index
    %c0_107 = arith.constant 0 : index
    %140 = vector.load %arg15[%c88, %c0_107] : memref<256x512xf32, #tpu.memory_space<vmem>>, vector<8x256xf32>
    tpu.vector_store %arg15[%c88, %c0_107], %139 {strides = array<i32>} : memref<256x512xf32, #tpu.memory_space<vmem>>, vector<8x256xf32>,
    %141 = vector.extract_strided_slice %116 {offsets = [0, 34], sizes = [8, 256], strides = [1, 1]} : vector<8x384xf32> to vector<8x256xf32>
    %c96 = arith.constant 96 : index
    %c0_108 = arith.constant 0 : index
    %142 = vector.load %arg15[%c96, %c0_108] : memref<256x512xf32, #tpu.memory_space<vmem>>, vector<8x256xf32>
    tpu.vector_store %arg15[%c96, %c0_108], %141 {strides = array<i32>} : memref<256x512xf32, #tpu.memory_space<vmem>>, vector<8x256xf32>,
    %143 = vector.extract_strided_slice %116 {offsets = [0, 35], sizes = [8, 256], strides = [1, 1]} : vector<8x384xf32> to vector<8x256xf32>
    %c104 = arith.constant 104 : index
    %c0_109 = arith.constant 0 : index
    %144 = vector.load %arg15[%c104, %c0_109] : memref<256x512xf32, #tpu.memory_space<vmem>>, vector<8x256xf32>
    tpu.vector_store %arg15[%c104, %c0_109], %143 {strides = array<i32>} : memref<256x512xf32, #tpu.memory_space<vmem>>, vector<8x256xf32>,
    %145 = vector.extract_strided_slice %116 {offsets = [0, 36], sizes = [8, 256], strides = [1, 1]} : vector<8x384xf32> to vector<8x256xf32>
    %c112 = arith.constant 112 : index
    %c0_110 = arith.constant 0 : index
    %146 = vector.load %arg15[%c112, %c0_110] : memref<256x512xf32, #tpu.memory_space<vmem>>, vector<8x256xf32>
    tpu.vector_store %arg15[%c112, %c0_110], %145 {strides = array<i32>} : memref<256x512xf32, #tpu.memory_space<vmem>>, vector<8x256xf32>,
    %147 = vector.extract_strided_slice %116 {offsets = [0, 48], sizes = [8, 256], strides = [1, 1]} : vector<8x384xf32> to vector<8x256xf32>
    %c120 = arith.constant 120 : index
    %c0_111 = arith.constant 0 : index
    %148 = vector.load %arg15[%c120, %c0_111] : memref<256x512xf32, #tpu.memory_space<vmem>>, vector<8x256xf32>
    tpu.vector_store %arg15[%c120, %c0_111], %147 {strides = array<i32>} : memref<256x512xf32, #tpu.memory_space<vmem>>, vector<8x256xf32>,
    %149 = vector.extract_strided_slice %116 {offsets = [0, 49], sizes = [8, 256], strides = [1, 1]} : vector<8x384xf32> to vector<8x256xf32>
    %c128 = arith.constant 128 : index
    %c0_112 = arith.constant 0 : index
    %150 = vector.load %arg15[%c128, %c0_112] : memref<256x512xf32, #tpu.memory_space<vmem>>, vector<8x256xf32>
    tpu.vector_store %arg15[%c128, %c0_112], %149 {strides = array<i32>} : memref<256x512xf32, #tpu.memory_space<vmem>>, vector<8x256xf32>,
    %151 = vector.extract_strided_slice %116 {offsets = [0, 50], sizes = [8, 256], strides = [1, 1]} : vector<8x384xf32> to vector<8x256xf32>
    %c136 = arith.constant 136 : index
    %c0_113 = arith.constant 0 : index
    %152 = vector.load %arg15[%c136, %c0_113] : memref<256x512xf32, #tpu.memory_space<vmem>>, vector<8x256xf32>
    tpu.vector_store %arg15[%c136, %c0_113], %151 {strides = array<i32>} : memref<256x512xf32, #tpu.memory_space<vmem>>, vector<8x256xf32>,
    %153 = vector.extract_strided_slice %116 {offsets = [0, 51], sizes = [8, 256], strides = [1, 1]} : vector<8x384xf32> to vector<8x256xf32>
    %c144 = arith.constant 144 : index
    %c0_114 = arith.constant 0 : index
    %154 = vector.load %arg15[%c144, %c0_114] : memref<256x512xf32, #tpu.memory_space<vmem>>, vector<8x256xf32>
    tpu.vector_store %arg15[%c144, %c0_114], %153 {strides = array<i32>} : memref<256x512xf32, #tpu.memory_space<vmem>>, vector<8x256xf32>,
    %155 = vector.extract_strided_slice %116 {offsets = [0, 52], sizes = [8, 256], strides = [1, 1]} : vector<8x384xf32> to vector<8x256xf32>
    %c152 = arith.constant 152 : index
    %c0_115 = arith.constant 0 : index
    %156 = vector.load %arg15[%c152, %c0_115] : memref<256x512xf32, #tpu.memory_space<vmem>>, vector<8x256xf32>
    tpu.vector_store %arg15[%c152, %c0_115], %155 {strides = array<i32>} : memref<256x512xf32, #tpu.memory_space<vmem>>, vector<8x256xf32>,
    %157 = vector.extract_strided_slice %116 {offsets = [0, 64], sizes = [8, 256], strides = [1, 1]} : vector<8x384xf32> to vector<8x256xf32>
    %c160 = arith.constant 160 : index
    %c0_116 = arith.constant 0 : index
    %158 = vector.load %arg15[%c160, %c0_116] : memref<256x512xf32, #tpu.memory_space<vmem>>, vector<8x256xf32>
    tpu.vector_store %arg15[%c160, %c0_116], %157 {strides = array<i32>} : memref<256x512xf32, #tpu.memory_space<vmem>>, vector<8x256xf32>,
    %159 = vector.extract_strided_slice %116 {offsets = [0, 65], sizes = [8, 256], strides = [1, 1]} : vector<8x384xf32> to vector<8x256xf32>
    %c168 = arith.constant 168 : index
    %c0_117 = arith.constant 0 : index
    %160 = vector.load %arg15[%c168, %c0_117] : memref<256x512xf32, #tpu.memory_space<vmem>>, vector<8x256xf32>
    tpu.vector_store %arg15[%c168, %c0_117], %159 {strides = array<i32>} : memref<256x512xf32, #tpu.memory_space<vmem>>, vector<8x256xf32>,
    %161 = vector.extract_strided_slice %116 {offsets = [0, 66], sizes = [8, 256], strides = [1, 1]} : vector<8x384xf32> to vector<8x256xf32>
    %c176 = arith.constant 176 : index
    %c0_118 = arith.constant 0 : index
    %162 = vector.load %arg15[%c176, %c0_118] : memref<256x512xf32, #tpu.memory_space<vmem>>, vector<8x256xf32>
    tpu.vector_store %arg15[%c176, %c0_118], %161 {strides = array<i32>} : memref<256x512xf32, #tpu.memory_space<vmem>>, vector<8x256xf32>,
    %163 = vector.extract_strided_slice %116 {offsets = [0, 67], sizes = [8, 256], strides = [1, 1]} : vector<8x384xf32> to vector<8x256xf32>
    %c184 = arith.constant 184 : index
    %c0_119 = arith.constant 0 : index
    %164 = vector.load %arg15[%c184, %c0_119] : memref<256x512xf32, #tpu.memory_space<vmem>>, vector<8x256xf32>
    tpu.vector_store %arg15[%c184, %c0_119], %163 {strides = array<i32>} : memref<256x512xf32, #tpu.memory_space<vmem>>, vector<8x256xf32>,
    %165 = vector.extract_strided_slice %116 {offsets = [0, 68], sizes = [8, 256], strides = [1, 1]} : vector<8x384xf32> to vector<8x256xf32>
    %c192 = arith.constant 192 : index
    %c0_120 = arith.constant 0 : index
    %166 = vector.load %arg15[%c192, %c0_120] : memref<256x512xf32, #tpu.memory_space<vmem>>, vector<8x256xf32>
    tpu.vector_store %arg15[%c192, %c0_120], %165 {strides = array<i32>} : memref<256x512xf32, #tpu.memory_space<vmem>>, vector<8x256xf32>,
    %167 = vector.extract_strided_slice %113 {offsets = [0, 1024], sizes = [8, 1024], strides = [1, 1]} : vector<8x2048xf32> to vector<8x1024xf32>
    %c0_121 = arith.constant 0 : index
    %c0_122 = arith.constant 0 : index
    %168 = vector.load %arg4[%c0_121, %c0_122] : memref<1024x384xf32, #tpu.memory_space<vmem>>, vector<1024x384xf32>
    %cst_123 = arith.constant dense<0.000000e+00> : vector<8x384xf32>
    %169 = tpu.matmul %167, %168, %cst_123 {dimension_numbers = #tpu.dot_dimension_numbers<[1], [0], [0], [1], [0, 0, 1, 1], [], []>} : vector<8x1024xf32>, vector<1024x384xf32>, vector<8x384xf32> -> vector<8x384xf32>
    %170 = vector.extract_strided_slice %169 {offsets = [0, 0], sizes = [8, 256], strides = [1, 1]} : vector<8x384xf32> to vector<8x256xf32>
    %c0_124 = arith.constant 0 : index
    %c256 = arith.constant 256 : index
    %171 = vector.load %arg15[%c0_124, %c256] : memref<256x512xf32, #tpu.memory_space<vmem>>, vector<8x256xf32>
    tpu.vector_store %arg15[%c0_124, %c256], %170 {strides = array<i32>} : memref<256x512xf32, #tpu.memory_space<vmem>>, vector<8x256xf32>,
    %172 = vector.extract_strided_slice %169 {offsets = [0, 1], sizes = [8, 256], strides = [1, 1]} : vector<8x384xf32> to vector<8x256xf32>
    %c8_125 = arith.constant 8 : index
    %c256_126 = arith.constant 256 : index
    %173 = vector.load %arg15[%c8_125, %c256_126] : memref<256x512xf32, #tpu.memory_space<vmem>>, vector<8x256xf32>
    tpu.vector_store %arg15[%c8_125, %c256_126], %172 {strides = array<i32>} : memref<256x512xf32, #tpu.memory_space<vmem>>, vector<8x256xf32>,
    %174 = vector.extract_strided_slice %169 {offsets = [0, 2], sizes = [8, 256], strides = [1, 1]} : vector<8x384xf32> to vector<8x256xf32>
    %c16_127 = arith.constant 16 : index
    %c256_128 = arith.constant 256 : index
    %175 = vector.load %arg15[%c16_127, %c256_128] : memref<256x512xf32, #tpu.memory_space<vmem>>, vector<8x256xf32>
    tpu.vector_store %arg15[%c16_127, %c256_128], %174 {strides = array<i32>} : memref<256x512xf32, #tpu.memory_space<vmem>>, vector<8x256xf32>,
    %176 = vector.extract_strided_slice %169 {offsets = [0, 3], sizes = [8, 256], strides = [1, 1]} : vector<8x384xf32> to vector<8x256xf32>
    %c24_129 = arith.constant 24 : index
    %c256_130 = arith.constant 256 : index
    %177 = vector.load %arg15[%c24_129, %c256_130] : memref<256x512xf32, #tpu.memory_space<vmem>>, vector<8x256xf32>
    tpu.vector_store %arg15[%c24_129, %c256_130], %176 {strides = array<i32>} : memref<256x512xf32, #tpu.memory_space<vmem>>, vector<8x256xf32>,
    %178 = vector.extract_strided_slice %169 {offsets = [0, 4], sizes = [8, 256], strides = [1, 1]} : vector<8x384xf32> to vector<8x256xf32>
    %c32_131 = arith.constant 32 : index
    %c256_132 = arith.constant 256 : index
    %179 = vector.load %arg15[%c32_131, %c256_132] : memref<256x512xf32, #tpu.memory_space<vmem>>, vector<8x256xf32>
    tpu.vector_store %arg15[%c32_131, %c256_132], %178 {strides = array<i32>} : memref<256x512xf32, #tpu.memory_space<vmem>>, vector<8x256xf32>,
    %180 = vector.extract_strided_slice %169 {offsets = [0, 16], sizes = [8, 256], strides = [1, 1]} : vector<8x384xf32> to vector<8x256xf32>
    %c40_133 = arith.constant 40 : index
    %c256_134 = arith.constant 256 : index
    %181 = vector.load %arg15[%c40_133, %c256_134] : memref<256x512xf32, #tpu.memory_space<vmem>>, vector<8x256xf32>
    tpu.vector_store %arg15[%c40_133, %c256_134], %180 {strides = array<i32>} : memref<256x512xf32, #tpu.memory_space<vmem>>, vector<8x256xf32>,
    %182 = vector.extract_strided_slice %169 {offsets = [0, 17], sizes = [8, 256], strides = [1, 1]} : vector<8x384xf32> to vector<8x256xf32>
    %c48_135 = arith.constant 48 : index
    %c256_136 = arith.constant 256 : index
    %183 = vector.load %arg15[%c48_135, %c256_136] : memref<256x512xf32, #tpu.memory_space<vmem>>, vector<8x256xf32>
    tpu.vector_store %arg15[%c48_135, %c256_136], %182 {strides = array<i32>} : memref<256x512xf32, #tpu.memory_space<vmem>>, vector<8x256xf32>,
    %184 = vector.extract_strided_slice %169 {offsets = [0, 18], sizes = [8, 256], strides = [1, 1]} : vector<8x384xf32> to vector<8x256xf32>
    %c56_137 = arith.constant 56 : index
    %c256_138 = arith.constant 256 : index
    %185 = vector.load %arg15[%c56_137, %c256_138] : memref<256x512xf32, #tpu.memory_space<vmem>>, vector<8x256xf32>
    tpu.vector_store %arg15[%c56_137, %c256_138], %184 {strides = array<i32>} : memref<256x512xf32, #tpu.memory_space<vmem>>, vector<8x256xf32>,
    %186 = vector.extract_strided_slice %169 {offsets = [0, 19], sizes = [8, 256], strides = [1, 1]} : vector<8x384xf32> to vector<8x256xf32>
    %c64_139 = arith.constant 64 : index
    %c256_140 = arith.constant 256 : index
    %187 = vector.load %arg15[%c64_139, %c256_140] : memref<256x512xf32, #tpu.memory_space<vmem>>, vector<8x256xf32>
    tpu.vector_store %arg15[%c64_139, %c256_140], %186 {strides = array<i32>} : memref<256x512xf32, #tpu.memory_space<vmem>>, vector<8x256xf32>,
    %188 = vector.extract_strided_slice %169 {offsets = [0, 20], sizes = [8, 256], strides = [1, 1]} : vector<8x384xf32> to vector<8x256xf32>
    %c72_141 = arith.constant 72 : index
    %c256_142 = arith.constant 256 : index
    %189 = vector.load %arg15[%c72_141, %c256_142] : memref<256x512xf32, #tpu.memory_space<vmem>>, vector<8x256xf32>
    tpu.vector_store %arg15[%c72_141, %c256_142], %188 {strides = array<i32>} : memref<256x512xf32, #tpu.memory_space<vmem>>, vector<8x256xf32>,
    %190 = vector.extract_strided_slice %169 {offsets = [0, 32], sizes = [8, 256], strides = [1, 1]} : vector<8x384xf32> to vector<8x256xf32>
    %c80_143 = arith.constant 80 : index
    %c256_144 = arith.constant 256 : index
    %191 = vector.load %arg15[%c80_143, %c256_144] : memref<256x512xf32, #tpu.memory_space<vmem>>, vector<8x256xf32>
    tpu.vector_store %arg15[%c80_143, %c256_144], %190 {strides = array<i32>} : memref<256x512xf32, #tpu.memory_space<vmem>>, vector<8x256xf32>,
    %192 = vector.extract_strided_slice %169 {offsets = [0, 33], sizes = [8, 256], strides = [1, 1]} : vector<8x384xf32> to vector<8x256xf32>
    %c88_145 = arith.constant 88 : index
    %c256_146 = arith.constant 256 : index
    %193 = vector.load %arg15[%c88_145, %c256_146] : memref<256x512xf32, #tpu.memory_space<vmem>>, vector<8x256xf32>
    tpu.vector_store %arg15[%c88_145, %c256_146], %192 {strides = array<i32>} : memref<256x512xf32, #tpu.memory_space<vmem>>, vector<8x256xf32>,
    %194 = vector.extract_strided_slice %169 {offsets = [0, 34], sizes = [8, 256], strides = [1, 1]} : vector<8x384xf32> to vector<8x256xf32>
    %c96_147 = arith.constant 96 : index
    %c256_148 = arith.constant 256 : index
    %195 = vector.load %arg15[%c96_147, %c256_148] : memref<256x512xf32, #tpu.memory_space<vmem>>, vector<8x256xf32>
    tpu.vector_store %arg15[%c96_147, %c256_148], %194 {strides = array<i32>} : memref<256x512xf32, #tpu.memory_space<vmem>>, vector<8x256xf32>,
    %196 = vector.extract_strided_slice %169 {offsets = [0, 35], sizes = [8, 256], strides = [1, 1]} : vector<8x384xf32> to vector<8x256xf32>
    %c104_149 = arith.constant 104 : index
    %c256_150 = arith.constant 256 : index
    %197 = vector.load %arg15[%c104_149, %c256_150] : memref<256x512xf32, #tpu.memory_space<vmem>>, vector<8x256xf32>
    tpu.vector_store %arg15[%c104_149, %c256_150], %196 {strides = array<i32>} : memref<256x512xf32, #tpu.memory_space<vmem>>, vector<8x256xf32>,
    %198 = vector.extract_strided_slice %169 {offsets = [0, 36], sizes = [8, 256], strides = [1, 1]} : vector<8x384xf32> to vector<8x256xf32>
    %c112_151 = arith.constant 112 : index
    %c256_152 = arith.constant 256 : index
    %199 = vector.load %arg15[%c112_151, %c256_152] : memref<256x512xf32, #tpu.memory_space<vmem>>, vector<8x256xf32>
    tpu.vector_store %arg15[%c112_151, %c256_152], %198 {strides = array<i32>} : memref<256x512xf32, #tpu.memory_space<vmem>>, vector<8x256xf32>,
    %200 = vector.extract_strided_slice %169 {offsets = [0, 48], sizes = [8, 256], strides = [1, 1]} : vector<8x384xf32> to vector<8x256xf32>
    %c120_153 = arith.constant 120 : index
    %c256_154 = arith.constant 256 : index
    %201 = vector.load %arg15[%c120_153, %c256_154] : memref<256x512xf32, #tpu.memory_space<vmem>>, vector<8x256xf32>
    tpu.vector_store %arg15[%c120_153, %c256_154], %200 {strides = array<i32>} : memref<256x512xf32, #tpu.memory_space<vmem>>, vector<8x256xf32>,
    %202 = vector.extract_strided_slice %169 {offsets = [0, 49], sizes = [8, 256], strides = [1, 1]} : vector<8x384xf32> to vector<8x256xf32>
    %c128_155 = arith.constant 128 : index
    %c256_156 = arith.constant 256 : index
    %203 = vector.load %arg15[%c128_155, %c256_156] : memref<256x512xf32, #tpu.memory_space<vmem>>, vector<8x256xf32>
    tpu.vector_store %arg15[%c128_155, %c256_156], %202 {strides = array<i32>} : memref<256x512xf32, #tpu.memory_space<vmem>>, vector<8x256xf32>,
    %204 = vector.extract_strided_slice %169 {offsets = [0, 50], sizes = [8, 256], strides = [1, 1]} : vector<8x384xf32> to vector<8x256xf32>
    %c136_157 = arith.constant 136 : index
    %c256_158 = arith.constant 256 : index
    %205 = vector.load %arg15[%c136_157, %c256_158] : memref<256x512xf32, #tpu.memory_space<vmem>>, vector<8x256xf32>
    tpu.vector_store %arg15[%c136_157, %c256_158], %204 {strides = array<i32>} : memref<256x512xf32, #tpu.memory_space<vmem>>, vector<8x256xf32>,
    %206 = vector.extract_strided_slice %169 {offsets = [0, 51], sizes = [8, 256], strides = [1, 1]} : vector<8x384xf32> to vector<8x256xf32>
    %c144_159 = arith.constant 144 : index
    %c256_160 = arith.constant 256 : index
    %207 = vector.load %arg15[%c144_159, %c256_160] : memref<256x512xf32, #tpu.memory_space<vmem>>, vector<8x256xf32>
    tpu.vector_store %arg15[%c144_159, %c256_160], %206 {strides = array<i32>} : memref<256x512xf32, #tpu.memory_space<vmem>>, vector<8x256xf32>,
    %208 = vector.extract_strided_slice %169 {offsets = [0, 52], sizes = [8, 256], strides = [1, 1]} : vector<8x384xf32> to vector<8x256xf32>
    %c152_161 = arith.constant 152 : index
    %c256_162 = arith.constant 256 : index
    %209 = vector.load %arg15[%c152_161, %c256_162] : memref<256x512xf32, #tpu.memory_space<vmem>>, vector<8x256xf32>
    tpu.vector_store %arg15[%c152_161, %c256_162], %208 {strides = array<i32>} : memref<256x512xf32, #tpu.memory_space<vmem>>, vector<8x256xf32>,
    %210 = vector.extract_strided_slice %169 {offsets = [0, 64], sizes = [8, 256], strides = [1, 1]} : vector<8x384xf32> to vector<8x256xf32>
    %c160_163 = arith.constant 160 : index
    %c256_164 = arith.constant 256 : index
    %211 = vector.load %arg15[%c160_163, %c256_164] : memref<256x512xf32, #tpu.memory_space<vmem>>, vector<8x256xf32>
    tpu.vector_store %arg15[%c160_163, %c256_164], %210 {strides = array<i32>} : memref<256x512xf32, #tpu.memory_space<vmem>>, vector<8x256xf32>,
    %212 = vector.extract_strided_slice %169 {offsets = [0, 65], sizes = [8, 256], strides = [1, 1]} : vector<8x384xf32> to vector<8x256xf32>
    %c168_165 = arith.constant 168 : index
    %c256_166 = arith.constant 256 : index
    %213 = vector.load %arg15[%c168_165, %c256_166] : memref<256x512xf32, #tpu.memory_space<vmem>>, vector<8x256xf32>
    tpu.vector_store %arg15[%c168_165, %c256_166], %212 {strides = array<i32>} : memref<256x512xf32, #tpu.memory_space<vmem>>, vector<8x256xf32>,
    %214 = vector.extract_strided_slice %169 {offsets = [0, 66], sizes = [8, 256], strides = [1, 1]} : vector<8x384xf32> to vector<8x256xf32>
    %c176_167 = arith.constant 176 : index
    %c256_168 = arith.constant 256 : index
    %215 = vector.load %arg15[%c176_167, %c256_168] : memref<256x512xf32, #tpu.memory_space<vmem>>, vector<8x256xf32>
    tpu.vector_store %arg15[%c176_167, %c256_168], %214 {strides = array<i32>} : memref<256x512xf32, #tpu.memory_space<vmem>>, vector<8x256xf32>,
    %216 = vector.extract_strided_slice %169 {offsets = [0, 67], sizes = [8, 256], strides = [1, 1]} : vector<8x384xf32> to vector<8x256xf32>
    %c184_169 = arith.constant 184 : index
    %c256_170 = arith.constant 256 : index
    %217 = vector.load %arg15[%c184_169, %c256_170] : memref<256x512xf32, #tpu.memory_space<vmem>>, vector<8x256xf32>
    tpu.vector_store %arg15[%c184_169, %c256_170], %216 {strides = array<i32>} : memref<256x512xf32, #tpu.memory_space<vmem>>, vector<8x256xf32>,
    %218 = vector.extract_strided_slice %169 {offsets = [0, 68], sizes = [8, 256], strides = [1, 1]} : vector<8x384xf32> to vector<8x256xf32>
    %c192_171 = arith.constant 192 : index
    %c256_172 = arith.constant 256 : index
    %219 = vector.load %arg15[%c192_171, %c256_172] : memref<256x512xf32, #tpu.memory_space<vmem>>, vector<8x256xf32>
    tpu.vector_store %arg15[%c192_171, %c256_172], %218 {strides = array<i32>} : memref<256x512xf32, #tpu.memory_space<vmem>>, vector<8x256xf32>,
    %c0_173 = arith.constant 0 : index
    %c0_174 = arith.constant 0 : index
    %220 = vector.load %arg5[%c0_173, %c0_174] : memref<16x256xf32, #tpu.memory_space<vmem>>, vector<16x256xf32>
    %c0_175 = arith.constant 0 : index
    %c0_176 = arith.constant 0 : index
    %221 = vector.load %arg15[%c0_175, %c0_176] : memref<256x512xf32, #tpu.memory_space<vmem>>, vector<256x512xf32>
    %cst_177 = arith.constant dense<0.000000e+00> : vector<16x512xf32>
    %222 = tpu.matmul %220, %221, %cst_177 {dimension_numbers = #tpu.dot_dimension_numbers<[1], [0], [0], [1], [0, 0, 1, 1], [], []>} : vector<16x256xf32>, vector<256x512xf32>, vector<16x512xf32> -> vector<16x512xf32>
    %c0_178 = arith.constant 0 : index
    %c0_179 = arith.constant 0 : index
    %223 = vector.load %arg6[%c0_178, %c0_179] : memref<16x1xf32, #tpu.memory_space<vmem>>, vector<16x1xf32>
    %224 = vector.broadcast %223 : vector<16x1xf32> to vector<16x512xf32>
    %225 = arith.addf %222, %224 : vector<16x512xf32>
    %cst_180 = arith.constant 0.000000e+00 : f32
    %226 = vector.broadcast %cst_180 : f32 to vector<16x512xf32>
    %227 = arith.maximumf %225, %226 : vector<16x512xf32>
    %228 = vector.extract_strided_slice %227 {offsets = [0, 0], sizes = [1, 256], strides = [1, 1]} : vector<16x512xf32> to vector<1x256xf32>
    %c0_181 = arith.constant 0 : index
    %c0_182 = arith.constant 0 : index
    %229 = vector.load %arg16[%c0_181, %c0_182] : memref<2x4096xf32, #tpu.memory_space<vmem>>, vector<1x256xf32>
    tpu.vector_store %arg16[%c0_181, %c0_182], %228 {strides = array<i32>} : memref<2x4096xf32, #tpu.memory_space<vmem>>, vector<1x256xf32>,
    %230 = vector.extract_strided_slice %227 {offsets = [1, 0], sizes = [1, 256], strides = [1, 1]} : vector<16x512xf32> to vector<1x256xf32>
    %c0_183 = arith.constant 0 : index
    %c256_184 = arith.constant 256 : index
    %231 = vector.load %arg16[%c0_183, %c256_184] : memref<2x4096xf32, #tpu.memory_space<vmem>>, vector<1x256xf32>
    tpu.vector_store %arg16[%c0_183, %c256_184], %230 {strides = array<i32>} : memref<2x4096xf32, #tpu.memory_space<vmem>>, vector<1x256xf32>,
    %232 = vector.extract_strided_slice %227 {offsets = [2, 0], sizes = [1, 256], strides = [1, 1]} : vector<16x512xf32> to vector<1x256xf32>
    %c0_185 = arith.constant 0 : index
    %c512 = arith.constant 512 : index
    %233 = vector.load %arg16[%c0_185, %c512] : memref<2x4096xf32, #tpu.memory_space<vmem>>, vector<1x256xf32>
    tpu.vector_store %arg16[%c0_185, %c512], %232 {strides = array<i32>} : memref<2x4096xf32, #tpu.memory_space<vmem>>, vector<1x256xf32>,
    %234 = vector.extract_strided_slice %227 {offsets = [3, 0], sizes = [1, 256], strides = [1, 1]} : vector<16x512xf32> to vector<1x256xf32>
    %c0_186 = arith.constant 0 : index
    %c768 = arith.constant 768 : index
    %235 = vector.load %arg16[%c0_186, %c768] : memref<2x4096xf32, #tpu.memory_space<vmem>>, vector<1x256xf32>
    tpu.vector_store %arg16[%c0_186, %c768], %234 {strides = array<i32>} : memref<2x4096xf32, #tpu.memory_space<vmem>>, vector<1x256xf32>,
    %236 = vector.extract_strided_slice %227 {offsets = [4, 0], sizes = [1, 256], strides = [1, 1]} : vector<16x512xf32> to vector<1x256xf32>
    %c0_187 = arith.constant 0 : index
    %c1024_188 = arith.constant 1024 : index
    %237 = vector.load %arg16[%c0_187, %c1024_188] : memref<2x4096xf32, #tpu.memory_space<vmem>>, vector<1x256xf32>
    tpu.vector_store %arg16[%c0_187, %c1024_188], %236 {strides = array<i32>} : memref<2x4096xf32, #tpu.memory_space<vmem>>, vector<1x256xf32>,
    %238 = vector.extract_strided_slice %227 {offsets = [5, 0], sizes = [1, 256], strides = [1, 1]} : vector<16x512xf32> to vector<1x256xf32>
    %c0_189 = arith.constant 0 : index
    %c1280 = arith.constant 1280 : index
    %239 = vector.load %arg16[%c0_189, %c1280] : memref<2x4096xf32, #tpu.memory_space<vmem>>, vector<1x256xf32>
    tpu.vector_store %arg16[%c0_189, %c1280], %238 {strides = array<i32>} : memref<2x4096xf32, #tpu.memory_space<vmem>>, vector<1x256xf32>,
    %240 = vector.extract_strided_slice %227 {offsets = [6, 0], sizes = [1, 256], strides = [1, 1]} : vector<16x512xf32> to vector<1x256xf32>
    %c0_190 = arith.constant 0 : index
    %c1536 = arith.constant 1536 : index
    %241 = vector.load %arg16[%c0_190, %c1536] : memref<2x4096xf32, #tpu.memory_space<vmem>>, vector<1x256xf32>
    tpu.vector_store %arg16[%c0_190, %c1536], %240 {strides = array<i32>} : memref<2x4096xf32, #tpu.memory_space<vmem>>, vector<1x256xf32>,
    %242 = vector.extract_strided_slice %227 {offsets = [7, 0], sizes = [1, 256], strides = [1, 1]} : vector<16x512xf32> to vector<1x256xf32>
    %c0_191 = arith.constant 0 : index
    %c1792 = arith.constant 1792 : index
    %243 = vector.load %arg16[%c0_191, %c1792] : memref<2x4096xf32, #tpu.memory_space<vmem>>, vector<1x256xf32>
    tpu.vector_store %arg16[%c0_191, %c1792], %242 {strides = array<i32>} : memref<2x4096xf32, #tpu.memory_space<vmem>>, vector<1x256xf32>,
    %244 = vector.extract_strided_slice %227 {offsets = [8, 0], sizes = [1, 256], strides = [1, 1]} : vector<16x512xf32> to vector<1x256xf32>
    %c0_192 = arith.constant 0 : index
    %c2048 = arith.constant 2048 : index
    %245 = vector.load %arg16[%c0_192, %c2048] : memref<2x4096xf32, #tpu.memory_space<vmem>>, vector<1x256xf32>
    tpu.vector_store %arg16[%c0_192, %c2048], %244 {strides = array<i32>} : memref<2x4096xf32, #tpu.memory_space<vmem>>, vector<1x256xf32>,
    %246 = vector.extract_strided_slice %227 {offsets = [9, 0], sizes = [1, 256], strides = [1, 1]} : vector<16x512xf32> to vector<1x256xf32>
    %c0_193 = arith.constant 0 : index
    %c2304 = arith.constant 2304 : index
    %247 = vector.load %arg16[%c0_193, %c2304] : memref<2x4096xf32, #tpu.memory_space<vmem>>, vector<1x256xf32>
    tpu.vector_store %arg16[%c0_193, %c2304], %246 {strides = array<i32>} : memref<2x4096xf32, #tpu.memory_space<vmem>>, vector<1x256xf32>,
    %248 = vector.extract_strided_slice %227 {offsets = [10, 0], sizes = [1, 256], strides = [1, 1]} : vector<16x512xf32> to vector<1x256xf32>
    %c0_194 = arith.constant 0 : index
    %c2560 = arith.constant 2560 : index
    %249 = vector.load %arg16[%c0_194, %c2560] : memref<2x4096xf32, #tpu.memory_space<vmem>>, vector<1x256xf32>
    tpu.vector_store %arg16[%c0_194, %c2560], %248 {strides = array<i32>} : memref<2x4096xf32, #tpu.memory_space<vmem>>, vector<1x256xf32>,
    %250 = vector.extract_strided_slice %227 {offsets = [11, 0], sizes = [1, 256], strides = [1, 1]} : vector<16x512xf32> to vector<1x256xf32>
    %c0_195 = arith.constant 0 : index
    %c2816 = arith.constant 2816 : index
    %251 = vector.load %arg16[%c0_195, %c2816] : memref<2x4096xf32, #tpu.memory_space<vmem>>, vector<1x256xf32>
    tpu.vector_store %arg16[%c0_195, %c2816], %250 {strides = array<i32>} : memref<2x4096xf32, #tpu.memory_space<vmem>>, vector<1x256xf32>,
    %252 = vector.extract_strided_slice %227 {offsets = [12, 0], sizes = [1, 256], strides = [1, 1]} : vector<16x512xf32> to vector<1x256xf32>
    %c0_196 = arith.constant 0 : index
    %c3072 = arith.constant 3072 : index
    %253 = vector.load %arg16[%c0_196, %c3072] : memref<2x4096xf32, #tpu.memory_space<vmem>>, vector<1x256xf32>
    tpu.vector_store %arg16[%c0_196, %c3072], %252 {strides = array<i32>} : memref<2x4096xf32, #tpu.memory_space<vmem>>, vector<1x256xf32>,
    %254 = vector.extract_strided_slice %227 {offsets = [13, 0], sizes = [1, 256], strides = [1, 1]} : vector<16x512xf32> to vector<1x256xf32>
    %c0_197 = arith.constant 0 : index
    %c3328 = arith.constant 3328 : index
    %255 = vector.load %arg16[%c0_197, %c3328] : memref<2x4096xf32, #tpu.memory_space<vmem>>, vector<1x256xf32>
    tpu.vector_store %arg16[%c0_197, %c3328], %254 {strides = array<i32>} : memref<2x4096xf32, #tpu.memory_space<vmem>>, vector<1x256xf32>,
    %256 = vector.extract_strided_slice %227 {offsets = [14, 0], sizes = [1, 256], strides = [1, 1]} : vector<16x512xf32> to vector<1x256xf32>
    %c0_198 = arith.constant 0 : index
    %c3584 = arith.constant 3584 : index
    %257 = vector.load %arg16[%c0_198, %c3584] : memref<2x4096xf32, #tpu.memory_space<vmem>>, vector<1x256xf32>
    tpu.vector_store %arg16[%c0_198, %c3584], %256 {strides = array<i32>} : memref<2x4096xf32, #tpu.memory_space<vmem>>, vector<1x256xf32>,
    %258 = vector.extract_strided_slice %227 {offsets = [15, 0], sizes = [1, 256], strides = [1, 1]} : vector<16x512xf32> to vector<1x256xf32>
    %c0_199 = arith.constant 0 : index
    %c3840 = arith.constant 3840 : index
    %259 = vector.load %arg16[%c0_199, %c3840] : memref<2x4096xf32, #tpu.memory_space<vmem>>, vector<1x256xf32>
    tpu.vector_store %arg16[%c0_199, %c3840], %258 {strides = array<i32>} : memref<2x4096xf32, #tpu.memory_space<vmem>>, vector<1x256xf32>,
    %260 = vector.extract_strided_slice %227 {offsets = [0, 256], sizes = [1, 256], strides = [1, 1]} : vector<16x512xf32> to vector<1x256xf32>
    %c1_200 = arith.constant 1 : index
    %c0_201 = arith.constant 0 : index
    %261 = vector.load %arg16[%c1_200, %c0_201] : memref<2x4096xf32, #tpu.memory_space<vmem>>, vector<1x256xf32>
    tpu.vector_store %arg16[%c1_200, %c0_201], %260 {strides = array<i32>} : memref<2x4096xf32, #tpu.memory_space<vmem>>, vector<1x256xf32>,
    %262 = vector.extract_strided_slice %227 {offsets = [1, 256], sizes = [1, 256], strides = [1, 1]} : vector<16x512xf32> to vector<1x256xf32>
    %c1_202 = arith.constant 1 : index
    %c256_203 = arith.constant 256 : index
    %263 = vector.load %arg16[%c1_202, %c256_203] : memref<2x4096xf32, #tpu.memory_space<vmem>>, vector<1x256xf32>
    tpu.vector_store %arg16[%c1_202, %c256_203], %262 {strides = array<i32>} : memref<2x4096xf32, #tpu.memory_space<vmem>>, vector<1x256xf32>,
    %264 = vector.extract_strided_slice %227 {offsets = [2, 256], sizes = [1, 256], strides = [1, 1]} : vector<16x512xf32> to vector<1x256xf32>
    %c1_204 = arith.constant 1 : index
    %c512_205 = arith.constant 512 : index
    %265 = vector.load %arg16[%c1_204, %c512_205] : memref<2x4096xf32, #tpu.memory_space<vmem>>, vector<1x256xf32>
    tpu.vector_store %arg16[%c1_204, %c512_205], %264 {strides = array<i32>} : memref<2x4096xf32, #tpu.memory_space<vmem>>, vector<1x256xf32>,
    %266 = vector.extract_strided_slice %227 {offsets = [3, 256], sizes = [1, 256], strides = [1, 1]} : vector<16x512xf32> to vector<1x256xf32>
    %c1_206 = arith.constant 1 : index
    %c768_207 = arith.constant 768 : index
    %267 = vector.load %arg16[%c1_206, %c768_207] : memref<2x4096xf32, #tpu.memory_space<vmem>>, vector<1x256xf32>
    tpu.vector_store %arg16[%c1_206, %c768_207], %266 {strides = array<i32>} : memref<2x4096xf32, #tpu.memory_space<vmem>>, vector<1x256xf32>,
    %268 = vector.extract_strided_slice %227 {offsets = [4, 256], sizes = [1, 256], strides = [1, 1]} : vector<16x512xf32> to vector<1x256xf32>
    %c1_208 = arith.constant 1 : index
    %c1024_209 = arith.constant 1024 : index
    %269 = vector.load %arg16[%c1_208, %c1024_209] : memref<2x4096xf32, #tpu.memory_space<vmem>>, vector<1x256xf32>
    tpu.vector_store %arg16[%c1_208, %c1024_209], %268 {strides = array<i32>} : memref<2x4096xf32, #tpu.memory_space<vmem>>, vector<1x256xf32>,
    %270 = vector.extract_strided_slice %227 {offsets = [5, 256], sizes = [1, 256], strides = [1, 1]} : vector<16x512xf32> to vector<1x256xf32>
    %c1_210 = arith.constant 1 : index
    %c1280_211 = arith.constant 1280 : index
    %271 = vector.load %arg16[%c1_210, %c1280_211] : memref<2x4096xf32, #tpu.memory_space<vmem>>, vector<1x256xf32>
    tpu.vector_store %arg16[%c1_210, %c1280_211], %270 {strides = array<i32>} : memref<2x4096xf32, #tpu.memory_space<vmem>>, vector<1x256xf32>,
    %272 = vector.extract_strided_slice %227 {offsets = [6, 256], sizes = [1, 256], strides = [1, 1]} : vector<16x512xf32> to vector<1x256xf32>
    %c1_212 = arith.constant 1 : index
    %c1536_213 = arith.constant 1536 : index
    %273 = vector.load %arg16[%c1_212, %c1536_213] : memref<2x4096xf32, #tpu.memory_space<vmem>>, vector<1x256xf32>
    tpu.vector_store %arg16[%c1_212, %c1536_213], %272 {strides = array<i32>} : memref<2x4096xf32, #tpu.memory_space<vmem>>, vector<1x256xf32>,
    %274 = vector.extract_strided_slice %227 {offsets = [7, 256], sizes = [1, 256], strides = [1, 1]} : vector<16x512xf32> to vector<1x256xf32>
    %c1_214 = arith.constant 1 : index
    %c1792_215 = arith.constant 1792 : index
    %275 = vector.load %arg16[%c1_214, %c1792_215] : memref<2x4096xf32, #tpu.memory_space<vmem>>, vector<1x256xf32>
    tpu.vector_store %arg16[%c1_214, %c1792_215], %274 {strides = array<i32>} : memref<2x4096xf32, #tpu.memory_space<vmem>>, vector<1x256xf32>,
    %276 = vector.extract_strided_slice %227 {offsets = [8, 256], sizes = [1, 256], strides = [1, 1]} : vector<16x512xf32> to vector<1x256xf32>
    %c1_216 = arith.constant 1 : index
    %c2048_217 = arith.constant 2048 : index
    %277 = vector.load %arg16[%c1_216, %c2048_217] : memref<2x4096xf32, #tpu.memory_space<vmem>>, vector<1x256xf32>
    tpu.vector_store %arg16[%c1_216, %c2048_217], %276 {strides = array<i32>} : memref<2x4096xf32, #tpu.memory_space<vmem>>, vector<1x256xf32>,
    %278 = vector.extract_strided_slice %227 {offsets = [9, 256], sizes = [1, 256], strides = [1, 1]} : vector<16x512xf32> to vector<1x256xf32>
    %c1_218 = arith.constant 1 : index
    %c2304_219 = arith.constant 2304 : index
    %279 = vector.load %arg16[%c1_218, %c2304_219] : memref<2x4096xf32, #tpu.memory_space<vmem>>, vector<1x256xf32>
    tpu.vector_store %arg16[%c1_218, %c2304_219], %278 {strides = array<i32>} : memref<2x4096xf32, #tpu.memory_space<vmem>>, vector<1x256xf32>,
    %280 = vector.extract_strided_slice %227 {offsets = [10, 256], sizes = [1, 256], strides = [1, 1]} : vector<16x512xf32> to vector<1x256xf32>
    %c1_220 = arith.constant 1 : index
    %c2560_221 = arith.constant 2560 : index
    %281 = vector.load %arg16[%c1_220, %c2560_221] : memref<2x4096xf32, #tpu.memory_space<vmem>>, vector<1x256xf32>
    tpu.vector_store %arg16[%c1_220, %c2560_221], %280 {strides = array<i32>} : memref<2x4096xf32, #tpu.memory_space<vmem>>, vector<1x256xf32>,
    %282 = vector.extract_strided_slice %227 {offsets = [11, 256], sizes = [1, 256], strides = [1, 1]} : vector<16x512xf32> to vector<1x256xf32>
    %c1_222 = arith.constant 1 : index
    %c2816_223 = arith.constant 2816 : index
    %283 = vector.load %arg16[%c1_222, %c2816_223] : memref<2x4096xf32, #tpu.memory_space<vmem>>, vector<1x256xf32>
    tpu.vector_store %arg16[%c1_222, %c2816_223], %282 {strides = array<i32>} : memref<2x4096xf32, #tpu.memory_space<vmem>>, vector<1x256xf32>,
    %284 = vector.extract_strided_slice %227 {offsets = [12, 256], sizes = [1, 256], strides = [1, 1]} : vector<16x512xf32> to vector<1x256xf32>
    %c1_224 = arith.constant 1 : index
    %c3072_225 = arith.constant 3072 : index
    %285 = vector.load %arg16[%c1_224, %c3072_225] : memref<2x4096xf32, #tpu.memory_space<vmem>>, vector<1x256xf32>
    tpu.vector_store %arg16[%c1_224, %c3072_225], %284 {strides = array<i32>} : memref<2x4096xf32, #tpu.memory_space<vmem>>, vector<1x256xf32>,
    %286 = vector.extract_strided_slice %227 {offsets = [13, 256], sizes = [1, 256], strides = [1, 1]} : vector<16x512xf32> to vector<1x256xf32>
    %c1_226 = arith.constant 1 : index
    %c3328_227 = arith.constant 3328 : index
    %287 = vector.load %arg16[%c1_226, %c3328_227] : memref<2x4096xf32, #tpu.memory_space<vmem>>, vector<1x256xf32>
    tpu.vector_store %arg16[%c1_226, %c3328_227], %286 {strides = array<i32>} : memref<2x4096xf32, #tpu.memory_space<vmem>>, vector<1x256xf32>,
    %288 = vector.extract_strided_slice %227 {offsets = [14, 256], sizes = [1, 256], strides = [1, 1]} : vector<16x512xf32> to vector<1x256xf32>
    %c1_228 = arith.constant 1 : index
    %c3584_229 = arith.constant 3584 : index
    %289 = vector.load %arg16[%c1_228, %c3584_229] : memref<2x4096xf32, #tpu.memory_space<vmem>>, vector<1x256xf32>
    tpu.vector_store %arg16[%c1_228, %c3584_229], %288 {strides = array<i32>} : memref<2x4096xf32, #tpu.memory_space<vmem>>, vector<1x256xf32>,
    %290 = vector.extract_strided_slice %227 {offsets = [15, 256], sizes = [1, 256], strides = [1, 1]} : vector<16x512xf32> to vector<1x256xf32>
    %c1_230 = arith.constant 1 : index
    %c3840_231 = arith.constant 3840 : index
    %291 = vector.load %arg16[%c1_230, %c3840_231] : memref<2x4096xf32, #tpu.memory_space<vmem>>, vector<1x256xf32>
    tpu.vector_store %arg16[%c1_230, %c3840_231], %290 {strides = array<i32>} : memref<2x4096xf32, #tpu.memory_space<vmem>>, vector<1x256xf32>,
    %c0_232 = arith.constant 0 : index
    %c0_233 = arith.constant 0 : index
    %292 = vector.load %arg16[%c0_232, %c0_233] : memref<2x4096xf32, #tpu.memory_space<vmem>>, vector<2x4096xf32>
    %c0_234 = arith.constant 0 : index
    %c0_235 = arith.constant 0 : index
    %293 = vector.load %arg7[%c0_234, %c0_235] : memref<4096x128xf32, #tpu.memory_space<vmem>>, vector<4096x128xf32>
    %cst_236 = arith.constant dense<0.000000e+00> : vector<2x128xf32>
    %294 = tpu.matmul %292, %293, %cst_236 {dimension_numbers = #tpu.dot_dimension_numbers<[1], [0], [0], [1], [0, 0, 1, 1], [], []>} : vector<2x4096xf32>, vector<4096x128xf32>, vector<2x128xf32> -> vector<2x128xf32>
    %c0_237 = arith.constant 0 : index
    %c0_238 = arith.constant 0 : index
    %295 = vector.load %arg8[%c0_237, %c0_238] : memref<1x128xf32, #tpu.memory_space<vmem>>, vector<1x128xf32>
    %296 = vector.broadcast %295 : vector<1x128xf32> to vector<2x128xf32>
    %297 = arith.addf %294, %296 : vector<2x128xf32>
    %cst_239 = arith.constant 0.000000e+00 : f32
    %298 = vector.broadcast %cst_239 : f32 to vector<2x128xf32>
    %299 = arith.maximumf %297, %298 : vector<2x128xf32>
    %c0_240 = arith.constant 0 : index
    %c0_241 = arith.constant 0 : index
    %300 = vector.load %arg9[%c0_240, %c0_241] : memref<128x128xf32, #tpu.memory_space<vmem>>, vector<128x128xf32>
    %cst_242 = arith.constant dense<0.000000e+00> : vector<2x128xf32>
    %301 = tpu.matmul %299, %300, %cst_242 {dimension_numbers = #tpu.dot_dimension_numbers<[1], [0], [0], [1], [0, 0, 1, 1], [], []>} : vector<2x128xf32>, vector<128x128xf32>, vector<2x128xf32> -> vector<2x128xf32>
    %c0_243 = arith.constant 0 : index
    %c0_244 = arith.constant 0 : index
    %302 = vector.load %arg10[%c0_243, %c0_244] : memref<1x128xf32, #tpu.memory_space<vmem>>, vector<1x128xf32>
    %303 = vector.broadcast %302 : vector<1x128xf32> to vector<2x128xf32>
    %304 = arith.addf %301, %303 : vector<2x128xf32>
    %cst_245 = arith.constant 0.000000e+00 : f32
    %305 = vector.broadcast %cst_245 : f32 to vector<2x128xf32>
    %306 = arith.maximumf %304, %305 : vector<2x128xf32>
    %c0_246 = arith.constant 0 : index
    %c0_247 = arith.constant 0 : index
    %307 = vector.load %arg11[%c0_246, %c0_247] : memref<128x128xf32, #tpu.memory_space<vmem>>, vector<128x128xf32>
    %cst_248 = arith.constant dense<0.000000e+00> : vector<2x128xf32>
    %308 = tpu.matmul %306, %307, %cst_248 {dimension_numbers = #tpu.dot_dimension_numbers<[1], [0], [0], [1], [0, 0, 1, 1], [], []>} : vector<2x128xf32>, vector<128x128xf32>, vector<2x128xf32> -> vector<2x128xf32>
    %c0_249 = arith.constant 0 : index
    %c0_250 = arith.constant 0 : index
    %309 = vector.load %arg12[%c0_249, %c0_250] : memref<1x128xf32, #tpu.memory_space<vmem>>, vector<1x128xf32>
    %310 = vector.broadcast %309 : vector<1x128xf32> to vector<2x128xf32>
    %311 = arith.addf %308, %310 : vector<2x128xf32>
    %cst_251 = arith.constant 0.000000e+00 : f32
    %312 = vector.broadcast %cst_251 : f32 to vector<2x128xf32>
    %313 = arith.maximumf %311, %312 : vector<2x128xf32>
    %c0_252 = arith.constant 0 : index
    %c0_253 = arith.constant 0 : index
    %314 = vector.load %arg13[%c0_252, %c0_253] : memref<2x128xf32, #tpu.memory_space<vmem>>, vector<2x128xf32>
    tpu.vector_store %arg13[%c0_252, %c0_253], %313 {strides = array<i32>} : memref<2x128xf32, #tpu.memory_space<vmem>>, vector<2x128xf32>,
    return
  }
  func.func @transform_0(%arg0: i32) -> (i32, i32) {
    %c0_i32 = arith.constant 0 : i32
    %c0_i32_0 = arith.constant 0 : i32
    %c0_i32_1 = arith.constant 0 : i32
    return %c0_i32, %c0_i32_0 : i32, i32
  }
  func.func @transform_1(%arg0: i32) -> (i32, i32) {
    %c0_i32 = arith.constant 0 : i32
    %c0_i32_0 = arith.constant 0 : i32
    %c0_i32_1 = arith.constant 0 : i32
    return %c0_i32, %c0_i32_0 : i32, i32
  }
  func.func @transform_2(%arg0: i32) -> (i32, i32) {
    %c0_i32 = arith.constant 0 : i32
    %c0_i32_0 = arith.constant 0 : i32
    %c0_i32_1 = arith.constant 0 : i32
    return %c0_i32, %c0_i32_0 : i32, i32
  }
  func.func @transform_3(%arg0: i32) -> (i32, i32) {
    %c0_i32 = arith.constant 0 : i32
    %c0_i32_0 = arith.constant 0 : i32
    %c0_i32_1 = arith.constant 0 : i32
    return %c0_i32, %c0_i32_0 : i32, i32
  }
  func.func @transform_4(%arg0: i32) -> (i32, i32) {
    %c0_i32 = arith.constant 0 : i32
    %c0_i32_0 = arith.constant 0 : i32
    %c0_i32_1 = arith.constant 0 : i32
    return %c0_i32, %c0_i32_0 : i32, i32
  }
  func.func @transform_5(%arg0: i32) -> (i32, i32) {
    %c0_i32 = arith.constant 0 : i32
    %c0_i32_0 = arith.constant 0 : i32
    %c0_i32_1 = arith.constant 0 : i32
    return %c0_i32, %c0_i32_0 : i32, i32
  }
  func.func @transform_6(%arg0: i32) -> (i32, i32) {
    %c0_i32 = arith.constant 0 : i32
    %c0_i32_0 = arith.constant 0 : i32
    %c0_i32_1 = arith.constant 0 : i32
    return %c0_i32, %c0_i32_0 : i32, i32
  }
  func.func @transform_7(%arg0: i32) -> (i32, i32) {
    %c0_i32 = arith.constant 0 : i32
    %c0_i32_0 = arith.constant 0 : i32
    %c0_i32_1 = arith.constant 0 : i32
    return %c0_i32, %c0_i32_0 : i32, i32
  }
  func.func @transform_8(%arg0: i32) -> (i32, i32) {
    %c0_i32 = arith.constant 0 : i32
    %c0_i32_0 = arith.constant 0 : i32
    %c0_i32_1 = arith.constant 0 : i32
    return %c0_i32, %c0_i32_0 : i32, i32
  }
  func.func @transform_9(%arg0: i32) -> (i32, i32) {
    %c0_i32 = arith.constant 0 : i32
    %c0_i32_0 = arith.constant 0 : i32
    %c0_i32_1 = arith.constant 0 : i32
    return %c0_i32, %c0_i32_0 : i32, i32
  }
  func.func @transform_10(%arg0: i32) -> (i32, i32) {
    %c0_i32 = arith.constant 0 : i32
    %c0_i32_0 = arith.constant 0 : i32
    %c0_i32_1 = arith.constant 0 : i32
    return %c0_i32, %c0_i32_0 : i32, i32
  }
  func.func @transform_11(%arg0: i32) -> (i32, i32) {
    %c0_i32 = arith.constant 0 : i32
    %c0_i32_0 = arith.constant 0 : i32
    %c0_i32_1 = arith.constant 0 : i32
    return %c0_i32, %c0_i32_0 : i32, i32
  }
  func.func @transform_12(%arg0: i32) -> (i32, i32) {
    %c0_i32 = arith.constant 0 : i32
    %c0_i32_0 = arith.constant 0 : i32
    %c0_i32_1 = arith.constant 0 : i32
    return %c0_i32, %c0_i32_0 : i32, i32
  }
}

</mosaic_0001>

<bundles_post_ra>
// kernel: lenot5_forward.1
= control target key start
LH: loop header
LB: loop body
LE: loop exit
PB: predicated region body
PF: predicated region fallthrough
CT: control target
= control target key end

     0   :  { %17 = vsyncpa [#allocation6], 0  ;;  %s10983_s0 = inlined_call_operand.vmem [shape: f32[2,1280], index: 0, kind: input, shape index: {}]   ;;  %s10984_s1 = inlined_call_operand.hbm [shape: f32[8,32], index: 1, kind: input, shape index: {}]   ;;  %s10985_s2 = inlined_call_operand.vmem [shape: f32[8,1], index: 2, kind: input, shape index: {}]   ;;  %s10986_s3 = inlined_call_operand.hbm [shape: f32[1024,384], index: 3, kind: input, shape index: {}]   ;;  %s10987_s4 = inlined_call_operand.hbm [shape: f32[16,256], index: 4, kind: input, shape index: {}]   ;;  %s10988_s5 = inlined_call_operand.vmem [shape: f32[16,1], index: 5, kind: input, shape index: {}]   ;;  %s10989_s6 = inlined_call_operand.hbm [shape: f32[4096,128], index: 6, kind: input, shape index: {}]   ;;  %s10990_s7 = inlined_call_operand.hbm [shape: f32[1,128], index: 7, kind: input, shape index: {}]   ;;  %s10991_s8 = inlined_call_operand.hbm [shape: f32[128,128], index: 8, kind: input, shape index: {}]   ;;  %s10992_s9 = inlined_call_operand.hbm [shape: f32[1,128], index: 9, kind: input, shape index: {}]   ;;  %s10993_s10 = inlined_call_operand.hbm [shape: f32[128,128], index: 10, kind: input, shape index: {}]   ;;  %s10994_s11 = inlined_call_operand.hbm [shape: f32[1,128], index: 11, kind: input, shape index: {}]   ;;  %s10995_s12 = inlined_call_operand.hbm [shape: f32[2,128], index: 12, kind: output, shape index: {}]  }
   0x1   :  { %18 = vsyncpa [#allocation9], 0 }
   0x2   :  { %19 = vsyncpa [#allocation12], 0 }
   0x3   :  { %20 = vsyncpa [#allocation15], 0 }
   0x4   :  { %21 = vsyncpa [#allocation18], 0 }
   0x5   :  { %22 = vsyncpa [#allocation7], 0  ;;  %s9662_s21 = smov [#allocation8]   ;;  %s9430_s25 = scalar_lea.hbm %s10986_s3, 49152 }
   0x6   :  { %s42_s22 = sshll.u32 %s9662_s21, 4  ;;  %p9431_p0 = scmp.ne.s32.totalorder %s10986_s3, %s9430_s25  ;;  %s43_s22 = int_to_ptr.vmem [resolvable:$true] %s42_s22 }
   0x7   :  { %p9434_p1 = scmp.lt.u32.totalorder %s9430_s25, %s10986_s3 }
   0x9   :  { %p9436_p2 = pnand %p9434_p1, %p9431_p0 }
   0xb   :  { %9439 = shalt.err (!%p9436_p2)
}
   0xc   :  { %s9440_s30 = scalar_lea.vmem %s43_s22, 49152  ;;  %p9445_p4 = scmp.lt.s32.totalorder %s43_s22, %s43_s22 }
   0xd   :  { %p9441_p3 = scmp.ne.s32.totalorder %s43_s22, %s9440_s30  ;;  %p9446_p5 = scmp.lt.s32.totalorder %s9440_s30, %s9440_s30 }
   0xf   :  { %p9447_p6 = por %p9446_p5, %p9445_p4 }
  0x11   :  { %p9448_p7 = pnand %p9447_p6, %p9441_p3 }
  0x13   :  { %9451 = shalt.err (!%p9448_p7)
}
  0x14   :  { %s9663_s13 = smov 384   ;;  %s9664_s14 = smov 24  }
  0x15   :  { %48 = dma.hbm_to_vmem [thread:$0]  %s10986_s3, 49152, %s43_s22, [#allocation9], %s9663_s13, %s9663_s13, %s9664_s14  }
  0x16   :  { %s9665_s17 = smov [#allocation11]   ;;  %s9452_s21 = scalar_lea.hbm %s10989_s6, 65536 }
  0x17   :  { %s68_s18 = sshll.u32 %s9665_s17, 4  ;;  %p9453_p8 = scmp.ne.s32.totalorder %s10989_s6, %s9452_s21  ;;  %s69_s18 = int_to_ptr.vmem [resolvable:$true] %s68_s18 }
  0x18   :  { %p9456_p9 = scmp.lt.u32.totalorder %s9452_s21, %s10989_s6 }
  0x1a   :  { %p9458_p10 = pnand %p9456_p9, %p9453_p8 }
  0x1c   :  { %9461 = shalt.err (!%p9458_p10)
}
  0x1d   :  { %s9462_s27 = scalar_lea.vmem %s69_s18, 65536  ;;  %p9467_p12 = scmp.lt.s32.totalorder %s69_s18, %s69_s18 }
  0x1e   :  { %p9463_p11 = scmp.ne.s32.totalorder %s69_s18, %s9462_s27  ;;  %p9468_p13 = scmp.lt.s32.totalorder %s9462_s27, %s9462_s27 }
  0x20   :  { %p9469_p0 = por %p9468_p13, %p9467_p12 }
  0x22   :  { %p9470_p1 = pnand %p9469_p0, %p9463_p11 }
  0x24   :  { %9473 = shalt.err (!%p9470_p1)
}
  0x25   :  { %s9666_s3 = smov 128   ;;  %s9667_s22 = smov 8  }
  0x26   :  { %74 = dma.hbm_to_vmem [thread:$0]  %s10989_s6, 65536, %s69_s18, [#allocation12], %s9666_s3, %s9666_s3, %s9667_s22  }
  0x27   :  { %s9668_s30 = smov [#allocation14]   ;;  %s9669_s14 = smov [#allocation17]  }
  0x28   :  { %s90_s13 = sshll.u32 %s9668_s30, 4  ;;  %s112_s15 = sshll.u32 %s9669_s14, 4  ;;  %s91_s13 = int_to_ptr.vmem [resolvable:$true] %s90_s13  ;;  %s9805_s15 = int_to_ptr.vmem [resolvable:$true] %s112_s15 }
  0x29   :  { %s9474_s19 = scalar_lea.hbm %s10991_s8, 2048 }
  0x2a   :  { %p9475_p2 = scmp.ne.s32.totalorder %s10991_s8, %s9474_s19  ;;  %p9478_p3 = scmp.lt.u32.totalorder %s9474_s19, %s10991_s8 }
  0x2c   :  { %p9480_p4 = pnand %p9478_p3, %p9475_p2 }
  0x2e   :  { %9483 = shalt.err (!%p9480_p4)
}
  0x2f   :  { %s9484_s6 = scalar_lea.vmem %s91_s13, 2048  ;;  %p9489_p6 = scmp.lt.s32.totalorder %s91_s13, %s91_s13 }
  0x30   :  { %p9485_p5 = scmp.ne.s32.totalorder %s91_s13, %s9484_s6  ;;  %p9490_p7 = scmp.lt.s32.totalorder %s9484_s6, %s9484_s6 }
  0x32   :  { %p9491_p8 = por %p9490_p7, %p9489_p6 }
  0x34   :  { %p9492_p9 = pnand %p9491_p8, %p9485_p5 }
  0x36   :  { %9495 = shalt.err (!%p9492_p9)
}
  0x37   :  { %96 = dma.hbm_to_vmem [thread:$0]  %s10991_s8, 2048, %s91_s13, [#allocation15], %s9666_s3, %s9666_s3, %s9667_s22  }
  0x38   :  { %s9496_s28 = scalar_lea.hbm %s10993_s10, 2048 }
  0x39   :  { %p9497_p10 = scmp.ne.s32.totalorder %s10993_s10, %s9496_s28  ;;  %p9500_p11 = scmp.lt.u32.totalorder %s9496_s28, %s10993_s10 }
  0x3b   :  { %p9502_p12 = pnand %p9500_p11, %p9497_p10 }
  0x3d   :  { %9505 = shalt.err (!%p9502_p12)
}
  0x3e   :  { %s9506_s17 = scalar_lea.vmem %s9805_s15, 2048  ;;  %p9511_p0 = scmp.lt.s32.totalorder %s9805_s15, %s9805_s15 }
  0x3f   :  { %p9507_p13 = scmp.ne.s32.totalorder %s9805_s15, %s9506_s17  ;;  %p9512_p1 = scmp.lt.s32.totalorder %s9506_s17, %s9506_s17 }
  0x41   :  { %p9513_p2 = por %p9512_p1, %p9511_p0 }
  0x43   :  { %p9514_p3 = pnand %p9513_p2, %p9507_p13 }
  0x45   :  { %9517 = shalt.err (!%p9514_p3)
}
  0x46   :  { %118 = dma.hbm_to_vmem [thread:$0]  %s10993_s10, 2048, %s9805_s15, [#allocation18], %s9666_s3, %s9666_s3, %s9667_s22  }
  0x47   :  { %s9670_s19 = smov [#allocation5]   ;;  %s9671_s21 = smov [#allocation10]  }
  0x48   :  { %s31_s20 = sshll.u32 %s9670_s19, 4  ;;  %s54_s23 = sshll.u32 %s9671_s21, 4  ;;  %s32_s20 = int_to_ptr.vmem [resolvable:$true] %s31_s20  ;;  %s9842_s23 = int_to_ptr.vmem [resolvable:$true] %s54_s23 }
  0x49   :  { %s9518_s18 = scalar_lea.hbm %s10984_s1, 128 }
  0x4a   :  { %p9519_p4 = scmp.ne.s32.totalorder %s10984_s1, %s9518_s18  ;;  %p9522_p5 = scmp.lt.u32.totalorder %s9518_s18, %s10984_s1 }
  0x4c   :  { %p9524_p6 = pnand %p9522_p5, %p9519_p4 }
  0x4e   :  { %9527 = shalt.err (!%p9524_p6)
}
  0x4f   :  { %s9528_s10 = scalar_lea.vmem %s32_s20, 128  ;;  %p9533_p8 = scmp.lt.s32.totalorder %s32_s20, %s32_s20 }
  0x50   :  { %p9529_p7 = scmp.ne.s32.totalorder %s32_s20, %s9528_s10  ;;  %p9534_p9 = scmp.lt.s32.totalorder %s9528_s10, %s9528_s10 }
  0x52   :  { %p9535_p10 = por %p9534_p9, %p9533_p8 }
  0x54   :  { %p9536_p11 = pnand %p9535_p10, %p9529_p7 }
  0x56   :  { %9539 = shalt.err (!%p9536_p11)
}
  0x57   :  { %34 = dma.hbm_to_vmem [thread:$0]  %s10984_s1, 128, %s32_s20, [#allocation6]  }
  0x58   :  { %s9540_s30 = scalar_lea.hbm %s10987_s4, 512 }
  0x59   :  { %p9541_p12 = scmp.ne.s32.totalorder %s10987_s4, %s9540_s30  ;;  %p9544_p13 = scmp.lt.u32.totalorder %s9540_s30, %s10987_s4 }
  0x5b   :  { %p9546_p0 = pnand %p9544_p13, %p9541_p12 }
  0x5d   :  { %9549 = shalt.err (!%p9546_p0)
}
  0x5e   :  { %s9550_s13 = scalar_lea.vmem %s9842_s23, 512  ;;  %p9555_p2 = scmp.lt.s32.totalorder %s9842_s23, %s9842_s23 }
  0x5f   :  { %p9551_p1 = scmp.ne.s32.totalorder %s9842_s23, %s9550_s13  ;;  %p9556_p3 = scmp.lt.s32.totalorder %s9550_s13, %s9550_s13 }
  0x61   :  { %p9557_p4 = por %p9556_p3, %p9555_p2 }
  0x63   :  { %p9558_p5 = pnand %p9557_p4, %p9551_p1 }
  0x65   :  { %9561 = shalt.err (!%p9558_p5)
}
  0x66   :  { %s9672_s1 = smov 256   ;;  %s9673_s19 = smov 16  }
  0x67   :  { %60 = dma.hbm_to_vmem [thread:$0]  %s10987_s4, 512, %s9842_s23, [#allocation9], %s9672_s1, %s9672_s1, %s9673_s19  }
  0x68   :  { %s9674_s24 = smov [#allocation13]   ;;  %s9675_s18 = smov [#allocation16]  }
  0x69   :  { %s81_s6 = sshll.u32 %s9674_s24, 4  ;;  %s103_s25 = sshll.u32 %s9675_s18, 4  ;;  %s82_s6 = int_to_ptr.vmem [resolvable:$true] %s81_s6  ;;  %s104_s25 = int_to_ptr.vmem [resolvable:$true] %s103_s25 }
  0x6a   :  { %s9562_s28 = scalar_lea.hbm %s10990_s7, 16 }
  0x6b   :  { %p9563_p6 = scmp.ne.s32.totalorder %s10990_s7, %s9562_s28  ;;  %p9566_p7 = scmp.lt.u32.totalorder %s9562_s28, %s10990_s7 }
  0x6d   :  { %p9568_p8 = pnand %p9566_p7, %p9563_p6 }
  0x6f   :  { %9571 = shalt.err (!%p9568_p8)
}
  0x70   :  { %s9572_s4 = scalar_lea.vmem %s82_s6, 16  ;;  %s9576_s23 = scalar_lea.vmem %s82_s6, 32 }
  0x71   :  { %p9573_p9 = scmp.ne.s32.totalorder %s82_s6, %s9572_s4  ;;  %p9577_p10 = scmp.lt.s32.totalorder %s82_s6, %s82_s6 }
  0x72   :  { %p9578_p11 = scmp.lt.s32.totalorder %s9576_s23, %s9572_s4 }
  0x74   :  { %p9579_p12 = por %p9578_p11, %p9577_p10 }
  0x76   :  { %p9580_p13 = pnand %p9579_p12, %p9573_p9 }
  0x78   :  { %9583 = shalt.err (!%p9580_p13)
}
  0x79   :  { %84 = dma.hbm_to_vmem [thread:$0]  %s10990_s7, 16, %s82_s6, [#allocation12]  }
  0x7a   :  { %s9584_s17 = scalar_lea.hbm %s10992_s9, 16 }
  0x7b   :  { %p9585_p0 = scmp.ne.s32.totalorder %s10992_s9, %s9584_s17  ;;  %p9588_p1 = scmp.lt.u32.totalorder %s9584_s17, %s10992_s9 }
  0x7d   :  { %p9590_p2 = pnand %p9588_p1, %p9585_p0 }
  0x7f   :  { %9593 = shalt.err (!%p9590_p2)
}
  0x80   :  { %s9594_s20 = scalar_lea.vmem %s104_s25, 16  ;;  %s9598_s21 = scalar_lea.vmem %s104_s25, 32 }
  0x81   :  { %p9595_p3 = scmp.ne.s32.totalorder %s104_s25, %s9594_s20  ;;  %p9599_p4 = scmp.lt.s32.totalorder %s104_s25, %s104_s25 }
  0x82   :  { %p9600_p5 = scmp.lt.s32.totalorder %s9598_s21, %s9594_s20 }
  0x84   :  { %p9601_p6 = por %p9600_p5, %p9599_p4 }
  0x86   :  { %p9602_p7 = pnand %p9601_p6, %p9595_p3 }
  0x88   :  { %9605 = shalt.err (!%p9602_p7)
}
  0x89   :  { %106 = dma.hbm_to_vmem [thread:$0]  %s10992_s9, 16, %s104_s25, [#allocation15]  }
  0x8a   :  { %s9676_s6 = smov [#allocation19]   ;;  %s9606_s28 = scalar_lea.hbm %s10994_s11, 16 }
  0x8b   :  { %s125_s18 = sshll.u32 %s9676_s6, 4  ;;  %p9607_p8 = scmp.ne.s32.totalorder %s10994_s11, %s9606_s28  ;;  %s126_s18 = int_to_ptr.vmem [resolvable:$true] %s125_s18 }
  0x8c   :  { %p9610_p9 = scmp.lt.u32.totalorder %s9606_s28, %s10994_s11 }
  0x8e   :  { %p9612_p10 = pnand %p9610_p9, %p9607_p8 }
  0x90   :  { %9615 = shalt.err (!%p9612_p10)
}
  0x91   :  { %s9616_s4 = scalar_lea.vmem %s126_s18, 16  ;;  %s9620_s9 = scalar_lea.vmem %s126_s18, 32 }
  0x92   :  { %p9617_p11 = scmp.ne.s32.totalorder %s126_s18, %s9616_s4  ;;  %p9621_p12 = scmp.lt.s32.totalorder %s126_s18, %s126_s18 }
  0x93   :  { %p9622_p13 = scmp.lt.s32.totalorder %s9620_s9, %s9616_s4 }
  0x95   :  { %p9623_p0 = por %p9622_p13, %p9621_p12 }
  0x97   :  { %p9624_p1 = pnand %p9623_p0, %p9617_p11 }
  0x99   :  { %9627 = shalt.err (!%p9624_p1)
}
  0x9a   :  { %128 = dma.hbm_to_vmem [thread:$0]  %s10994_s11, 16, %s126_s18, [#allocation18]  }
  0x9b   :  { %9650 = dma.done.wait [#allocation6], 128  }
  0x9c   :  { %9651 = vsyncadd [#allocation6], 4294967168 }
  0x9d   :  { %9652 = dma.done.wait [#allocation9], 49664  }
  0x9e   :  { %9653 = vsyncadd [#allocation9], 4294917632 }
  0x9f   :  { %9654 = dma.done.wait [#allocation12], 65552  }
  0xa0   :  { %9655 = vsyncadd [#allocation12], 4294901744 }
  0xa1   :  { %9656 = dma.done.wait [#allocation15], 2064  }
  0xa2   :  { %9657 = vsyncadd [#allocation15], 4294965232 }
  0xa3   :  { %9658 = dma.done.wait [#allocation18], 2064  }
  0xa4   :  { %9659 = vsyncadd [#allocation18], 4294965232  ;;  %v9912_v0 = vld [vmem:[%s10983_s0] ss:$2 sm:$0xff]  ;;  %s9677_s14 = smov 126   ;;  %s9678_s11 = smov 127  }
  0xa5   :  { %221 = vrot.lane.b32.xlu1 %v9912_v0, %s9677_s14  ;;  %203 = vst [vmem:[#allocation2] ss:$8 sm:$0xf] %v9912_v0  ;;  %204 = vst [vmem:[#allocation2] ss:$8 sm:$0xf0] %v9912_v0  ;;  %207 = vrot.lane.b32.xlu0 %v9912_v0, %s9678_s11 }
  0xa6   :  { %v9923_v1 = vld [vmem:[%s10983_s0 + $0x10] ss:$2 sm:$0x3]  ;;  %v9928_v2 = vld [vmem:[%s10983_s0 + $0x1] ss:$2 sm:$0xff]  ;;  %v9679_v3 = vmov 0.0  }
  0xa7   :  { %500 = vst [vmem:[#allocation2 + $0x40] ss:$8 sm:$0xf] %v9928_v2  ;;  %501 = vst [vmem:[#allocation2 + $0x40] ss:$8 sm:$0xf0] %v9928_v2  ;;  %909 = vmatprep.mubr.f32.mxu0 %v9679_v3  ;;  %980 = vmatprep.mubr.f32.mxu1 %v9679_v3 }
  0xa8   :  { %157 = vst [vmem:[#allocation2 + $0x188] sm:$0xfe] %v9679_v3  ;;  %156 = vst [vmem:[#allocation2 + $0x180] sm:$0xfe] %v9679_v3  ;;  %s9680_s1 = smov 125   ;;  %s9681_s19 = smov 124  }
  0xa9   :  { %223 = vrot.lane.b32.xlu1 %v9923_v1, %s9677_s14  ;;  %209 = vrot.lane.b32.xlu0 %v9923_v1, %s9678_s11  ;;  %158 = vst [vmem:[#allocation2 + $0x190] sm:$0xfe] %v9679_v3  ;;  %159 = vst [vmem:[#allocation2 + $0x198] sm:$0xfe] %v9679_v3  ;;  %s9682_s20 = smov 96   ;;  %s9683_s21 = smov 95  }
  0xaa   :  { %160 = vst [vmem:[#allocation2 + $0x1a0] sm:$0xfe] %v9679_v3  ;;  %161 = vst [vmem:[#allocation2 + $0x1a8] sm:$0xfe] %v9679_v3  ;;  %s9684_s7 = smov 94   ;;  %s9685_s24 = smov 93  }
  0xab   :  { %162 = vst [vmem:[#allocation2 + $0x1b0] sm:$0xfe] %v9679_v3  ;;  %163 = vst [vmem:[#allocation2 + $0x1b8] sm:$0xfe] %v9679_v3  ;;  %s9686_s6 = smov 92   ;;  %s9687_s18 = smov 64  }
  0xac   :  { %164 = vst [vmem:[#allocation2 + $0x1c0] sm:$0xfe] %v9679_v3  ;;  %165 = vst [vmem:[#allocation2 + $0x1c8] sm:$0xfe] %v9679_v3  ;;  %s9688_s26 = smov 63   ;;  %s9689_s27 = smov 62  }
  0xad   :  { %166 = vst [vmem:[#allocation2 + $0x1d0] sm:$0xfe] %v9679_v3  ;;  %167 = vst [vmem:[#allocation2 + $0x1d8] sm:$0xfe] %v9679_v3  ;;  %236 = vrot.lane.b32.xlu1 %v9923_v1, %s9680_s1  ;;  %234 = vrot.lane.b32.xlu0 %v9912_v0, %s9680_s1  ;;  %s9690_s28 = smov 61   ;;  %s9691_s10 = smov 60  }
  0xae   :  { %168 = vst [vmem:[#allocation2 + $0x1e0] sm:$0xfe] %v9679_v3  ;;  %169 = vst [vmem:[#allocation2 + $0x1e8] sm:$0xfe] %v9679_v3  ;;  %s9692_s3 = smov 32   ;;  %s9693_s22 = smov 31  }
  0xaf   :  { %170 = vst [vmem:[#allocation2 + $0x1f0] sm:$0xfe] %v9679_v3  ;;  %171 = vst [vmem:[#allocation2 + $0x1f8] sm:$0xfe] %v9679_v3  ;;  %v455_v4 = vrot.slane %v9912_v0, 1  ;;  %v456_v5 = vrot.slane %v9923_v1, 1 }
  0xb0   :  { %vm213_vm0 = vcmask 1046528   ;;  %s9694_s15 = smov 30   ;;  %s9695_s4 = smov 29   ;;  %v10028_v7 = vld [vmem:[%s10983_s0 + $0x11] ss:$2 sm:$0x3] }
  0xb1   :  { %249 = vrot.lane.b32.xlu1 %v9923_v1, %s9681_s19  ;;  %247 = vrot.lane.b32.xlu0 %v9912_v0, %s9681_s19  ;;  %v457_v6 = vsel %vm213_vm0, %v455_v4, %v456_v5  ;;  %s9696_s9 = smov 28   ;;  %vm228_vm1 = vcmask 1031168   ;;  %vm464_vm2 = vcmask 1045504   ;;  %vm215_vm3 = vcmask 1039360   ;;  %s9699_s30 = smov 110  }
  0xb2   :  { %460 = vst [vmem:[#allocation2 + $0x104] ss:$8 sm:$0xf] %v457_v6  ;;  %461 = vst [vmem:[#allocation2 + $0x104] ss:$8 sm:$0xf0] %v457_v6 }
  0xb3   :  { %vm241_vm4 = vcmask 1022976   ;;  %vm254_vm5 = vcmask 1014784   ;;  %vm267_vm6 = vcmask 785408   ;;  %vm280_vm7 = vcmask 777216   ;;  %s9700_s16 = smov 108   ;;  %s9701_s17 = smov 111  }
  0xb4   :  { %vm11003_vm8 = vcmask 769024   ;;  %vm11004_vm9 = vcmask 760832   ;;  %vm11001_vm10 = vcmask 752640   ;;  %vm11002_vm11 = vcmask 523264   ;;  %s9702_s8 = smov 109   ;;  %s9703_s13 = smov 80  }
  0xb5   :  { %262 = vrot.lane.b32.xlu1 %v9923_v1, %s9682_s20  ;;  %260 = vrot.lane.b32.xlu0 %v9912_v0, %s9682_s20  ;;  %vm10999_vm12 = vcmask 515072   ;;  %vm10996_vm13 = vcmask 506880   ;;  %vm10997_vm14 = vcmask 498688   ;;  %vm10998_vm15 = vcmask 490496  }
  0xb9   :  { %275 = vrot.lane.b32.xlu1 %v9923_v1, %s9683_s21  ;;  %273 = vrot.lane.b32.xlu0 %v9912_v0, %s9683_s21 }
  0xbd   :  { %288 = vrot.lane.b32.xlu1 %v9923_v1, %s9684_s7  ;;  %286 = vrot.lane.b32.xlu0 %v9912_v0, %s9684_s7 }
  0xc1   :  { %301 = vrot.lane.b32.xlu1 %v9923_v1, %s9685_s24  ;;  %299 = vrot.lane.b32.xlu0 %v9912_v0, %s9685_s24 }
  0xc5   :  { %314 = vrot.lane.b32.xlu1 %v9923_v1, %s9686_s6  ;;  %312 = vrot.lane.b32.xlu0 %v9912_v0, %s9686_s6 }
  0xc9   :  { %327 = vrot.lane.b32.xlu1 %v9923_v1, %s9687_s18  ;;  %325 = vrot.lane.b32.xlu0 %v9912_v0, %s9687_s18 }
  0xcd   :  { %340 = vrot.lane.b32.xlu1 %v9923_v1, %s9688_s26  ;;  %338 = vrot.lane.b32.xlu0 %v9912_v0, %s9688_s26 }
  0xd1   :  { %353 = vrot.lane.b32.xlu1 %v9923_v1, %s9689_s27  ;;  %351 = vrot.lane.b32.xlu0 %v9912_v0, %s9689_s27 }
  0xd5   :  { %366 = vrot.lane.b32.xlu1 %v9923_v1, %s9690_s28  ;;  %364 = vrot.lane.b32.xlu0 %v9912_v0, %s9690_s28 }
  0xd9   :  { %379 = vrot.lane.b32.xlu1 %v9923_v1, %s9691_s10  ;;  %377 = vrot.lane.b32.xlu0 %v9912_v0, %s9691_s10 }
  0xdd   :  { %392 = vrot.lane.b32.xlu1 %v9923_v1, %s9692_s3  ;;  %390 = vrot.lane.b32.xlu0 %v9912_v0, %s9692_s3 }
  0xe1   :  { %405 = vrot.lane.b32.xlu1 %v9923_v1, %s9693_s22  ;;  %403 = vrot.lane.b32.xlu0 %v9912_v0, %s9693_s22 }
  0xe5   :  { %418 = vrot.lane.b32.xlu1 %v9923_v1, %s9694_s15  ;;  %416 = vrot.lane.b32.xlu0 %v9912_v0, %s9694_s15 }
  0xe9   :  { %431 = vrot.lane.b32.xlu1 %v9923_v1, %s9695_s4  ;;  %429 = vrot.lane.b32.xlu0 %v9912_v0, %s9695_s4 }
  0xed   :  { %444 = vrot.lane.b32.xlu1 %v9923_v1, %s9696_s9  ;;  %442 = vrot.lane.b32.xlu0 %v9912_v0, %s9696_s9  ;;  %v732_v0 = vrot.slane %v9928_v2, 1  ;;  %v733_v1 = vrot.slane %v10028_v7, 1 }
  0xf1   :  { %506 = vrot.lane.b32.xlu1 %v10028_v7, %s9678_s11  ;;  %504 = vrot.lane.b32.xlu0 %v9928_v2, %s9678_s11 }
  0xf5   :  { %518 = vrot.lane.b32.xlu1 %v10028_v7, %s9677_s14  ;;  %516 = vrot.lane.b32.xlu0 %v9928_v2, %s9677_s14 }
  0xf9   :  { %530 = vrot.lane.b32.xlu1 %v10028_v7, %s9680_s1  ;;  %528 = vrot.lane.b32.xlu0 %v9928_v2, %s9680_s1 }
  0xfd   :  { %542 = vrot.lane.b32.xlu1 %v10028_v7, %s9681_s19  ;;  %540 = vrot.lane.b32.xlu0 %v9928_v2, %s9681_s19 }
 0x101   :  { %554 = vrot.lane.b32.xlu1 %v10028_v7, %s9682_s20  ;;  %552 = vrot.lane.b32.xlu0 %v9928_v2, %s9682_s20 }
 0x105   :  { %566 = vrot.lane.b32.xlu1 %v10028_v7, %s9683_s21  ;;  %564 = vrot.lane.b32.xlu0 %v9928_v2, %s9683_s21 }
 0x109   :  { %578 = vrot.lane.b32.xlu1 %v10028_v7, %s9684_s7  ;;  %576 = vrot.lane.b32.xlu0 %v9928_v2, %s9684_s7 }
 0x10d   :  { %590 = vrot.lane.b32.xlu1 %v10028_v7, %s9685_s24  ;;  %588 = vrot.lane.b32.xlu0 %v9928_v2, %s9685_s24 }
 0x111   :  { %602 = vrot.lane.b32.xlu1 %v10028_v7, %s9686_s6  ;;  %600 = vrot.lane.b32.xlu0 %v9928_v2, %s9686_s6 }
 0x115   :  { %614 = vrot.lane.b32.xlu1 %v10028_v7, %s9687_s18  ;;  %612 = vrot.lane.b32.xlu0 %v9928_v2, %s9687_s18 }
 0x117   :  { %v222_v8 = vpop.permute.xlu1 %221  ;;  %v208_v9 = vpop.permute.xlu0 %207 }
 0x118   :  { %v225_v10 = vrot.slane %v222_v8, 1  ;;  %v471_v11 = vrot.slane %v222_v8, 2  ;;  %v211_v12 = vrot.slane %v208_v9, 1  ;;  %v462_v13 = vrot.slane %v208_v9, 2 }
 0x119   :  { %626 = vrot.lane.b32.xlu1 %v10028_v7, %s9688_s26  ;;  %624 = vrot.lane.b32.xlu0 %v9928_v2, %s9688_s26 }
 0x11b   :  { %v224_v14 = vpop.permute.xlu1 %223  ;;  %v210_v15 = vpop.permute.xlu0 %209 }
 0x11c   :  { %v226_v16 = vrot.slane %v224_v14, 1  ;;  %v472_v17 = vrot.slane %v224_v14, 2  ;;  %v212_v18 = vrot.slane %v210_v15, 1  ;;  %v463_v19 = vrot.slane %v210_v15, 2 }
 0x11d   :  { %638 = vrot.lane.b32.xlu1 %v10028_v7, %s9689_s27  ;;  %636 = vrot.lane.b32.xlu0 %v9928_v2, %s9689_s27 }
 0x11e   :  { %v227_v20 = vsel %vm213_vm0, %v225_v10, %v226_v16  ;;  %v473_v21 = vsel %vm464_vm2, %v471_v11, %v472_v17  ;;  %v214_v22 = vsel %vm213_vm0, %v211_v12, %v212_v18  ;;  %v465_v23 = vsel %vm464_vm2, %v462_v13, %v463_v19 }
 0x11f   :  { %v229_v24 = vsel %vm228_vm1, %v222_v8, %v227_v20  ;;  %v474_v25 = vsel %vm228_vm1, %v227_v20, %v473_v21  ;;  %v216_v26 = vsel %vm215_vm3, %v208_v9, %v214_v22  ;;  %v466_v27 = vsel %vm215_vm3, %v214_v22, %v465_v23  ;;  %v237_v28 = vpop.permute.xlu1 %236  ;;  %v235_v29 = vpop.permute.xlu0 %234 }
 0x120   :  { %232 = vst [vmem:[#allocation2 + $0x2] ss:$8 sm:$0xf] %v229_v24  ;;  %233 = vst [vmem:[#allocation2 + $0x2] ss:$8 sm:$0xf0] %v229_v24  ;;  %v734_v9 = vsel %vm213_vm0, %v732_v0, %v733_v1 }
 0x121   :  { %477 = vst [vmem:[#allocation2 + $0x106] ss:$8 sm:$0xf] %v474_v25  ;;  %478 = vst [vmem:[#allocation2 + $0x106] ss:$8 sm:$0xf0] %v474_v25  ;;  %650 = vrot.lane.b32.xlu1 %v10028_v7, %s9690_s28  ;;  %648 = vrot.lane.b32.xlu0 %v9928_v2, %s9690_s28 }
 0x122   :  { %219 = vst [vmem:[#allocation2 + $0x1] ss:$8 sm:$0xf] %v216_v26  ;;  %220 = vst [vmem:[#allocation2 + $0x1] ss:$8 sm:$0xf0] %v216_v26 }
 0x123   :  { %469 = vst [vmem:[#allocation2 + $0x105] ss:$8 sm:$0xf] %v466_v27  ;;  %470 = vst [vmem:[#allocation2 + $0x105] ss:$8 sm:$0xf0] %v466_v27  ;;  %v250_v38 = vpop.permute.xlu1 %249  ;;  %v248_v39 = vpop.permute.xlu0 %247 }
 0x124   :  { %v239_v30 = vrot.slane %v237_v28, 1  ;;  %v480_v31 = vrot.slane %v237_v28, 2  ;;  %v238_v32 = vrot.slane %v235_v29, 1  ;;  %v479_v33 = vrot.slane %v235_v29, 2 }
 0x125   :  { %v252_v40 = vrot.slane %v250_v38, 1  ;;  %v488_v41 = vrot.slane %v250_v38, 2  ;;  %v251_v42 = vrot.slane %v248_v39, 1  ;;  %v487_v43 = vrot.slane %v248_v39, 2  ;;  %662 = vrot.lane.b32.xlu1 %v10028_v7, %s9691_s10  ;;  %660 = vrot.lane.b32.xlu0 %v9928_v2, %s9691_s10 }
 0x126   :  { %v240_v34 = vsel %vm213_vm0, %v238_v32, %v239_v30  ;;  %v481_v35 = vsel %vm464_vm2, %v479_v33, %v480_v31  ;;  %737 = vst [vmem:[#allocation2 + $0x144] ss:$8 sm:$0xf] %v734_v9  ;;  %738 = vst [vmem:[#allocation2 + $0x144] ss:$8 sm:$0xf0] %v734_v9 }
 0x127   :  { %v242_v36 = vsel %vm241_vm4, %v235_v29, %v240_v34  ;;  %v482_v37 = vsel %vm241_vm4, %v240_v34, %v481_v35  ;;  %v253_v44 = vsel %vm213_vm0, %v251_v42, %v252_v40  ;;  %v489_v45 = vsel %vm464_vm2, %v487_v43, %v488_v41  ;;  %v263_v48 = vpop.permute.xlu1 %262  ;;  %v261_v49 = vpop.permute.xlu0 %260  ;;  %v836_v32 = vld [vmem:[%s10985_s2] sm:$0xff]  ;;  %s9698_s2 = smov 112  }
 0x128   :  { %245 = vst [vmem:[#allocation2 + $0x3] ss:$8 sm:$0xf] %v242_v36  ;;  %246 = vst [vmem:[#allocation2 + $0x3] ss:$8 sm:$0xf0] %v242_v36  ;;  %v255_v46 = vsel %vm254_vm5, %v248_v39, %v253_v44  ;;  %v490_v47 = vsel %vm254_vm5, %v253_v44, %v489_v45 }
 0x129   :  { %485 = vst [vmem:[#allocation2 + $0x107] ss:$8 sm:$0xf] %v482_v37  ;;  %486 = vst [vmem:[#allocation2 + $0x107] ss:$8 sm:$0xf0] %v482_v37  ;;  %674 = vrot.lane.b32.xlu1 %v10028_v7, %s9692_s3  ;;  %672 = vrot.lane.b32.xlu0 %v9928_v2, %s9692_s3 }
 0x12a   :  { %258 = vst [vmem:[#allocation2 + $0x4] ss:$8 sm:$0xf] %v255_v46  ;;  %259 = vst [vmem:[#allocation2 + $0x4] ss:$8 sm:$0xf0] %v255_v46 }
 0x12b   :  { %493 = vst [vmem:[#allocation2 + $0x180] ss:$8 sm:$0xf] %v490_v47  ;;  %494 = vst [vmem:[#allocation2 + $0x180] ss:$8 sm:$0xf0] %v490_v47  ;;  %v276_v54 = vpop.permute.xlu1 %275  ;;  %v274_v55 = vpop.permute.xlu0 %273 }
 0x12c   :  { %v265_v50 = vrot.slane %v263_v48, 1  ;;  %v264_v51 = vrot.slane %v261_v49, 1  ;;  %v278_v56 = vrot.slane %v276_v54, 1  ;;  %v277_v57 = vrot.slane %v274_v55, 1  ;;  %s9704_s3 = smov 78  }
 0x12d   :  { %686 = vrot.lane.b32.xlu1 %v10028_v7, %s9693_s22  ;;  %684 = vrot.lane.b32.xlu0 %v9928_v2, %s9693_s22  ;;  %v9697_v35 = vmov 0   ;;  %s9705_s22 = smov 76  }
 0x12e   :  { %v266_v52 = vsel %vm213_vm0, %v264_v51, %v265_v50  ;;  %v279_v58 = vsel %vm213_vm0, %v277_v57, %v278_v56  ;;  %9075 = vset.pattern.permute.xlu0 %v9697_v35  ;;  %9421 = vset.pattern.permute.xlu1 %v9697_v35 }
 0x12f   :  { %v268_v53 = vsel %vm267_vm6, %v261_v49, %v266_v52  ;;  %v281_v59 = vsel %vm280_vm7, %v274_v55, %v279_v58  ;;  %v289_v60 = vpop.permute.xlu1 %288  ;;  %v287_v61 = vpop.permute.xlu0 %286 }
 0x130   :  { %271 = vst [vmem:[#allocation2 + $0x5] ss:$8 sm:$0xf] %v268_v53  ;;  %272 = vst [vmem:[#allocation2 + $0x5] ss:$8 sm:$0xf0] %v268_v53 }
 0x131   :  { %284 = vst [vmem:[#allocation2 + $0x6] ss:$8 sm:$0xf] %v281_v59  ;;  %285 = vst [vmem:[#allocation2 + $0x6] ss:$8 sm:$0xf0] %v281_v59  ;;  %698 = vrot.lane.b32.xlu1 %v10028_v7, %s9694_s15  ;;  %696 = vrot.lane.b32.xlu0 %v9928_v2, %s9694_s15 }
 0x132   :  { %v291_v62 = vrot.slane %v289_v60, 1  ;;  %v290_v63 = vrot.slane %v287_v61, 1  ;;  %s9706_s15 = smov 79  }
 0x133   :  { %v302_v6 = vpop.permute.xlu1 %301  ;;  %v300_v8 = vpop.permute.xlu0 %299 }
 0x134   :  { %v292_v4 = vsel %vm213_vm0, %v290_v63, %v291_v62  ;;  %v304_v10 = vrot.slane %v302_v6, 1  ;;  %v303_v11 = vrot.slane %v300_v8, 1 }
 0x135   :  { %v294_v5 = vsel %vm11003_vm8, %v287_v61, %v292_v4  ;;  %710 = vrot.lane.b32.xlu1 %v10028_v7, %s9695_s4  ;;  %708 = vrot.lane.b32.xlu0 %v9928_v2, %s9695_s4  ;;  %s9707_s4 = smov 77  }
 0x136   :  { %297 = vst [vmem:[#allocation2 + $0x7] ss:$8 sm:$0xf] %v294_v5  ;;  %298 = vst [vmem:[#allocation2 + $0x7] ss:$8 sm:$0xf0] %v294_v5  ;;  %v305_v12 = vsel %vm213_vm0, %v303_v11, %v304_v10 }
 0x137   :  { %v307_v13 = vsel %vm11004_vm9, %v300_v8, %v305_v12  ;;  %v315_v14 = vpop.permute.xlu1 %314  ;;  %v313_v15 = vpop.permute.xlu0 %312 }
 0x138   :  { %310 = vst [vmem:[#allocation2 + $0x80] ss:$8 sm:$0xf] %v307_v13  ;;  %311 = vst [vmem:[#allocation2 + $0x80] ss:$8 sm:$0xf0] %v307_v13 }
 0x139   :  { %v317_v16 = vrot.slane %v315_v14, 1  ;;  %v316_v17 = vrot.slane %v313_v15, 1  ;;  %722 = vrot.lane.b32.xlu1 %v10028_v7, %s9696_s9  ;;  %720 = vrot.lane.b32.xlu0 %v9928_v2, %s9696_s9 }
 0x13b   :  { %v318_v18 = vsel %vm213_vm0, %v316_v17, %v317_v16  ;;  %v328_v20 = vpop.permute.xlu1 %327  ;;  %v326_v21 = vpop.permute.xlu0 %325 }
 0x13c   :  { %v320_v19 = vsel %vm11001_vm10, %v313_v15, %v318_v18  ;;  %v330_v22 = vrot.slane %v328_v20, 1  ;;  %v329_v23 = vrot.slane %v326_v21, 1 }
 0x13d   :  { %323 = vst [vmem:[#allocation2 + $0x81] ss:$8 sm:$0xf] %v320_v19  ;;  %324 = vst [vmem:[#allocation2 + $0x81] ss:$8 sm:$0xf0] %v320_v19  ;;  %839 = vperm.xlu0 %9075, %v836_v32  }
 0x13e   :  { %v331_v24 = vsel %vm213_vm0, %v329_v23, %v330_v22  ;;  %v773_v5 = vld [vmem:[#allocation2 + $0x8] sm:$0xff]  ;;  %v775_v6 = vld [vmem:[#allocation2 + $0x18] sm:$0xff]  ;;  %v772_v18 = vld [vmem:[#allocation2] sm:$0xff] }
 0x13f   :  { %v333_v25 = vsel %vm11002_vm11, %v326_v21, %v331_v24  ;;  %v341_v26 = vpop.permute.xlu1 %340  ;;  %v339_v7 = vpop.permute.xlu0 %338  ;;  %v774_v19 = vld [vmem:[#allocation2 + $0x10] sm:$0xff] }
 0x140   :  { %336 = vst [vmem:[#allocation2 + $0x82] ss:$8 sm:$0xf] %v333_v25  ;;  %337 = vst [vmem:[#allocation2 + $0x82] ss:$8 sm:$0xf0] %v333_v25 }
 0x141   :  { %v343_v2 = vrot.slane %v341_v26, 1  ;;  %v342_v27 = vrot.slane %v339_v7, 1 }
 0x143   :  { %v344_v28 = vsel %vm213_vm0, %v342_v27, %v343_v2  ;;  %v354_v30 = vpop.permute.xlu1 %353  ;;  %v352_v31 = vpop.permute.xlu0 %351 }
 0x144   :  { %v346_v29 = vsel %vm10999_vm12, %v339_v7, %v344_v28  ;;  %v356_v33 = vrot.slane %v354_v30, 1  ;;  %v355_v34 = vrot.slane %v352_v31, 1  ;;  %vm436_vm12 = vcmask 236544  }
 0x145   :  { %349 = vst [vmem:[#allocation2 + $0x83] ss:$8 sm:$0xf] %v346_v29  ;;  %350 = vst [vmem:[#allocation2 + $0x83] ss:$8 sm:$0xf0] %v346_v29 }
 0x146   :  { %v357_v36 = vsel %vm213_vm0, %v355_v34, %v356_v33 }
 0x147   :  { %v359_v37 = vsel %vm10996_vm13, %v352_v31, %v357_v36  ;;  %v367_v38 = vpop.permute.xlu1 %366  ;;  %v365_v39 = vpop.permute.xlu0 %364  ;;  %vm397_vm13 = vcmask 261120  }
 0x148   :  { %362 = vst [vmem:[#allocation2 + $0x84] ss:$8 sm:$0xf] %v359_v37  ;;  %363 = vst [vmem:[#allocation2 + $0x84] ss:$8 sm:$0xf0] %v359_v37 }
 0x149   :  { %v369_v40 = vrot.slane %v367_v38, 1  ;;  %v368_v41 = vrot.slane %v365_v39, 1 }
 0x14b   :  { %v370_v42 = vsel %vm213_vm0, %v368_v41, %v369_v40  ;;  %v380_v44 = vpop.permute.xlu1 %379  ;;  %v378_v45 = vpop.permute.xlu0 %377 }
 0x14c   :  { %v372_v43 = vsel %vm10997_vm14, %v365_v39, %v370_v42  ;;  %v382_v46 = vrot.slane %v380_v44, 1  ;;  %v381_v47 = vrot.slane %v378_v45, 1  ;;  %vm410_vm14 = vcmask 252928  }
 0x14d   :  { %375 = vst [vmem:[#allocation2 + $0x85] ss:$8 sm:$0xf] %v372_v43  ;;  %376 = vst [vmem:[#allocation2 + $0x85] ss:$8 sm:$0xf0] %v372_v43 }
 0x14e   :  { %v383_v48 = vsel %vm213_vm0, %v381_v47, %v382_v46  ;;  %v821_v47 = vld [vmem:[#allocation2 + $0x188] sm:$0xff] }
 0x14f   :  { %v385_v49 = vsel %vm10998_vm15, %v378_v45, %v383_v48  ;;  %v393_v50 = vpop.permute.xlu1 %392  ;;  %v391_v51 = vpop.permute.xlu0 %390  ;;  %vm11000_vm15 = vcmask 244736   ;;  %v823_v48 = vld [vmem:[#allocation2 + $0x198] sm:$0xff] }
 0x150   :  { %388 = vst [vmem:[#allocation2 + $0x86] ss:$8 sm:$0xf] %v385_v49  ;;  %389 = vst [vmem:[#allocation2 + $0x86] ss:$8 sm:$0xf0] %v385_v49 }
 0x151   :  { %v395_v52 = vrot.slane %v393_v50, 1  ;;  %v394_v53 = vrot.slane %v391_v51, 1  ;;  %v820_v49 = vld [vmem:[#allocation2 + $0x180] sm:$0xff]  ;;  %v822_v50 = vld [vmem:[#allocation2 + $0x190] sm:$0xff] }
 0x153   :  { %v396_v54 = vsel %vm213_vm0, %v394_v53, %v395_v52  ;;  %v406_v56 = vpop.permute.xlu1 %405  ;;  %v404_v57 = vpop.permute.xlu0 %403 }
 0x154   :  { %v398_v55 = vsel %vm397_vm13, %v391_v51, %v396_v54  ;;  %v408_v58 = vrot.slane %v406_v56, 1  ;;  %v407_v59 = vrot.slane %v404_v57, 1 }
 0x155   :  { %401 = vst [vmem:[#allocation2 + $0x87] ss:$8 sm:$0xf] %v398_v55  ;;  %402 = vst [vmem:[#allocation2 + $0x87] ss:$8 sm:$0xf0] %v398_v55 }
 0x156   :  { %v409_v60 = vsel %vm213_vm0, %v407_v59, %v408_v58 }
 0x157   :  { %v411_v61 = vsel %vm410_vm14, %v404_v57, %v409_v60  ;;  %v419_v62 = vpop.permute.xlu1 %418  ;;  %v417_v63 = vpop.permute.xlu0 %416 }
 0x158   :  { %414 = vst [vmem:[#allocation2 + $0x100] ss:$8 sm:$0xf] %v411_v61  ;;  %415 = vst [vmem:[#allocation2 + $0x100] ss:$8 sm:$0xf0] %v411_v61 }
 0x159   :  { %v421_v0 = vrot.slane %v419_v62, 1  ;;  %v420_v1 = vrot.slane %v417_v63, 1 }
 0x15b   :  { %v422_v4 = vsel %vm213_vm0, %v420_v1, %v421_v0  ;;  %v432_v9 = vpop.permute.xlu1 %431  ;;  %v430_v10 = vpop.permute.xlu0 %429 }
 0x15c   :  { %v424_v8 = vsel %vm11000_vm15, %v417_v63, %v422_v4  ;;  %v789_v11 = vld [vmem:[#allocation2 + $0x88] sm:$0xff]  ;;  %v791_v12 = vld [vmem:[#allocation2 + $0x98] sm:$0xff]  ;;  %v788_v13 = vld [vmem:[#allocation2 + $0x80] sm:$0xff]  ;;  %v434_v14 = vrot.slane %v432_v9, 1  ;;  %v433_v15 = vrot.slane %v430_v10, 1  ;;  %vm449_vm15 = vcmask 228352  }
 0x15d   :  { %427 = vst [vmem:[#allocation2 + $0x101] ss:$8 sm:$0xf] %v424_v8  ;;  %428 = vst [vmem:[#allocation2 + $0x101] ss:$8 sm:$0xf0] %v424_v8  ;;  %v7524_v16 = vpack.c.bf16 %v789_v11, %v773_v5  ;;  %v7532_v17 = vpack.c.bf16 %v791_v12, %v775_v6  ;;  %v7526_v21 = vpack.c.bf16 %v788_v13, %v772_v18 }
 0x15e   :  { %v790_v20 = vld [vmem:[#allocation2 + $0x90] sm:$0xff]  ;;  %v435_v23 = vsel %vm213_vm0, %v433_v15, %v434_v14  ;;  %v793_v51 = vld [vmem:[#allocation2 + $0xa8] sm:$0xff]  ;;  %v795_v0 = vld [vmem:[#allocation2 + $0xb8] sm:$0xff] }
 0x15f   :  { %v7534_v22 = vpack.c.bf16 %v790_v20, %v774_v19  ;;  %7525 = vmatprep.subr.bf16.mxu0 %v7524_v16  ;;  %7533 = vmatprep.subr.bf16.mxu1 %v7532_v17  ;;  %v437_v24 = vsel %vm436_vm12, %v430_v10, %v435_v23  ;;  %v445_v25 = vpop.permute.xlu1 %444  ;;  %v443_v26 = vpop.permute.xlu0 %442  ;;  %v777_v8 = vld [vmem:[#allocation2 + $0x28] sm:$0xff]  ;;  %v779_v12 = vld [vmem:[#allocation2 + $0x38] sm:$0xff]  ;;  %v792_v13 = vld [vmem:[#allocation2 + $0xa0] sm:$0xff] }
 0x160   :  { %7527 = vmatpush1.bf16.msra.mxu0 %v7526_v21  ;;  %440 = vst [vmem:[#allocation2 + $0x102] ss:$8 sm:$0xf] %v437_v24  ;;  %441 = vst [vmem:[#allocation2 + $0x102] ss:$8 sm:$0xf0] %v437_v24  ;;  %v7540_v11 = vpack.c.bf16 %v793_v51, %v777_v8  ;;  %v7548_v18 = vpack.c.bf16 %v795_v0, %v779_v12 }
 0x161   :  { %7535 = vmatpush1.bf16.msra.mxu1 %v7534_v22  ;;  %v447_v7 = vrot.slane %v445_v25, 1  ;;  %v446_v2 = vrot.slane %v443_v26, 1  ;;  %v10170_v19 = vld [vmem:[#allocation5] sm:$0xff]  ;;  %v794_v20 = vld [vmem:[#allocation2 + $0xb0] sm:$0xff] }
 0x163   :  { %v448_v27 = vsel %vm213_vm0, %v446_v2, %v447_v7  ;;  %v507_v29 = vpop.permute.xlu1 %506  ;;  %v505_v30 = vpop.permute.xlu0 %504 }
 0x164   :  { %v450_v28 = vsel %vm449_vm15, %v443_v26, %v448_v27  ;;  %v509_v31 = vrot.slane %v507_v29, 1  ;;  %v740_v32 = vrot.slane %v507_v29, 2  ;;  %v508_v33 = vrot.slane %v505_v30, 1  ;;  %v776_v26 = vld [vmem:[#allocation2 + $0x20] sm:$0xff]  ;;  %v778_v27 = vld [vmem:[#allocation2 + $0x30] sm:$0xff] }
 0x165   :  { %453 = vst [vmem:[#allocation2 + $0x103] ss:$8 sm:$0xf] %v450_v28  ;;  %454 = vst [vmem:[#allocation2 + $0x103] ss:$8 sm:$0xf0] %v450_v28  ;;  %v7542_v2 = vpack.c.bf16 %v792_v13, %v776_v26 }
 0x166   :  { %v739_v34 = vrot.slane %v505_v30, 2  ;;  %v510_v35 = vsel %vm213_vm0, %v508_v33, %v509_v31  ;;  %v825_v28 = vld [vmem:[#allocation2 + $0x1a8] sm:$0xff]  ;;  %v7550_v31 = vpack.c.bf16 %v794_v20, %v778_v27  ;;  %v827_v33 = vld [vmem:[#allocation2 + $0x1b8] sm:$0xff] }
 0x167   :  { %v511_v37 = vsel %vm215_vm3, %v505_v30, %v510_v35  ;;  %v519_v39 = vpop.permute.xlu1 %518  ;;  %v517_v40 = vpop.permute.xlu0 %516 }
 0x168   :  { %v741_v36 = vsel %vm464_vm2, %v739_v34, %v740_v32  ;;  %514 = vst [vmem:[#allocation2 + $0x41] ss:$8 sm:$0xf] %v511_v37  ;;  %515 = vst [vmem:[#allocation2 + $0x41] ss:$8 sm:$0xf0] %v511_v37 }
 0x169   :  { %v742_v38 = vsel %vm215_vm3, %v510_v35, %v741_v36  ;;  %v521_v41 = vrot.slane %v519_v39, 1  ;;  %v748_v42 = vrot.slane %v519_v39, 2  ;;  %v520_v43 = vrot.slane %v517_v40, 1 }
 0x16a   :  { %745 = vst [vmem:[#allocation2 + $0x145] ss:$8 sm:$0xf] %v742_v38  ;;  %746 = vst [vmem:[#allocation2 + $0x145] ss:$8 sm:$0xf0] %v742_v38 }
 0x16b   :  { %v747_v44 = vrot.slane %v517_v40, 2  ;;  %v522_v45 = vsel %vm213_vm0, %v520_v43, %v521_v41  ;;  %v531_v54 = vpop.permute.xlu1 %530  ;;  %v529_v55 = vpop.permute.xlu0 %528  ;;  %v824_v43 = vld [vmem:[#allocation2 + $0x1a0] sm:$0xff] }
 0x16c   :  { %v523_v52 = vsel %vm228_vm1, %v517_v40, %v522_v45  ;;  %v805_v56 = vld [vmem:[#allocation2 + $0x108] sm:$0xff]  ;;  %v807_v57 = vld [vmem:[#allocation2 + $0x118] sm:$0xff]  ;;  %v804_v58 = vld [vmem:[#allocation2 + $0x100] sm:$0xff]  ;;  %v533_v59 = vrot.slane %v531_v54, 1  ;;  %v756_v60 = vrot.slane %v531_v54, 2  ;;  %v532_v61 = vrot.slane %v529_v55, 1 }
 0x16d   :  { %v749_v46 = vsel %vm464_vm2, %v747_v44, %v748_v42  ;;  %526 = vst [vmem:[#allocation2 + $0x42] ss:$8 sm:$0xf] %v523_v52  ;;  %527 = vst [vmem:[#allocation2 + $0x42] ss:$8 sm:$0xf0] %v523_v52  ;;  %v7528_v1 = vpack.c.bf16 %v821_v47, %v805_v56  ;;  %v7536_v4 = vpack.c.bf16 %v823_v48, %v807_v57 }
 0x16e   :  { %v750_v53 = vsel %vm228_vm1, %v522_v45, %v749_v46  ;;  %v755_v62 = vrot.slane %v529_v55, 2  ;;  %v806_v63 = vld [vmem:[#allocation2 + $0x110] sm:$0xff]  ;;  %v7530_v5 = vpack.c.bf16 %v820_v49, %v804_v58  ;;  %v534_v9 = vsel %vm213_vm0, %v532_v61, %v533_v59  ;;  %v809_v21 = vld [vmem:[#allocation2 + $0x128] sm:$0xff]  ;;  %v811_v7 = vld [vmem:[#allocation2 + $0x138] sm:$0xff] }
 0x16f   :  { %753 = vst [vmem:[#allocation2 + $0x146] ss:$8 sm:$0xf] %v750_v53  ;;  %754 = vst [vmem:[#allocation2 + $0x146] ss:$8 sm:$0xf0] %v750_v53  ;;  %v7538_v6 = vpack.c.bf16 %v822_v50, %v806_v63  ;;  %v535_v14 = vsel %vm241_vm4, %v529_v55, %v534_v9  ;;  %7529 = vmatprep.subr.bf16.mxu0 %v7528_v1  ;;  %7537 = vmatprep.subr.bf16.mxu1 %v7536_v4  ;;  %v543_v16 = vpop.permute.xlu1 %542  ;;  %v541_v17 = vpop.permute.xlu0 %540 }
 0x170   :  { %v757_v10 = vsel %vm464_vm2, %v755_v62, %v756_v60  ;;  %538 = vst [vmem:[#allocation2 + $0x43] ss:$8 sm:$0xf] %v535_v14  ;;  %539 = vst [vmem:[#allocation2 + $0x43] ss:$8 sm:$0xf0] %v535_v14  ;;  %7531 = vmatpush1.bf16.msra.mxu0 %v7530_v5  ;;  %v7544_v32 = vpack.c.bf16 %v825_v28, %v809_v21  ;;  %v7552_v38 = vpack.c.bf16 %v827_v33, %v811_v7 }
 0x171   :  { %v758_v15 = vsel %vm241_vm4, %v534_v9, %v757_v10  ;;  %v545_v22 = vrot.slane %v543_v16, 1  ;;  %v764_v23 = vrot.slane %v543_v16, 2  ;;  %v544_v24 = vrot.slane %v541_v17, 1  ;;  %7539 = vmatpush1.bf16.msra.mxu1 %v7538_v6  ;;  %7541 = vmatprep.subr.bf16.mxu0 %v7540_v11  ;;  %v808_v39 = vld [vmem:[#allocation2 + $0x120] sm:$0xff]  ;;  %v810_v40 = vld [vmem:[#allocation2 + $0x130] sm:$0xff] }
 0x172   :  { %761 = vst [vmem:[#allocation2 + $0x147] ss:$8 sm:$0xf] %v758_v15  ;;  %762 = vst [vmem:[#allocation2 + $0x147] ss:$8 sm:$0xf0] %v758_v15  ;;  %7549 = vmatprep.subr.bf16.mxu1 %v7548_v18  ;;  %v7546_v46 = vpack.c.bf16 %v824_v43, %v808_v39 }
 0x173   :  { %v763_v25 = vrot.slane %v541_v17, 2  ;;  %v546_v29 = vsel %vm213_vm0, %v544_v24, %v545_v22  ;;  %6569 = vmatmul.mubr.msk.f32.vlgmr.msra.gmra.mrb[0].mxu0 %vm397_vm13, %v10170_v19  ;;  %v555_v36 = vpop.permute.xlu1 %554  ;;  %v553_v37 = vpop.permute.xlu0 %552  ;;  %v826_v44 = vld [vmem:[#allocation2 + $0x1b0] sm:$0xff] }
 0x174   :  { %v547_v34 = vsel %vm254_vm5, %v541_v17, %v546_v29  ;;  %6570 = vmatmul.mubr.msk.f32.vlgmr.msra.gmra.mrb[0].mxu1 %vm397_vm13, %v10170_v19  ;;  %v557_v41 = vrot.slane %v555_v36, 1  ;;  %v556_v42 = vrot.slane %v553_v37, 1  ;;  %7543 = vmatpush1.bf16.msra.mxu0 %v7542_v2  ;;  %v7554_v47 = vpack.c.bf16 %v826_v44, %v810_v40 }
 0x175   :  { %v765_v30 = vsel %vm464_vm2, %v763_v25, %v764_v23  ;;  %550 = vst [vmem:[#allocation2 + $0x44] ss:$8 sm:$0xf] %v547_v34  ;;  %551 = vst [vmem:[#allocation2 + $0x44] ss:$8 sm:$0xf0] %v547_v34  ;;  %7551 = vmatpush1.bf16.msra.mxu1 %v7550_v31  ;;  %7545 = vmatprep.subr.bf16.mxu0 %v7544_v32 }
 0x176   :  { %v766_v35 = vsel %vm254_vm5, %v546_v29, %v765_v30  ;;  %7553 = vmatprep.subr.bf16.mxu1 %v7552_v38  ;;  %v558_v45 = vsel %vm213_vm0, %v556_v42, %v557_v41  ;;  %1051 = vmatprep.mubr.f32.mxu0 %v9679_v3  ;;  %vm11010_vm2 = vcmask 515072  }
 0x177   :  { %769 = vst [vmem:[#allocation2 + $0x1c0] ss:$8 sm:$0xf] %v766_v35  ;;  %770 = vst [vmem:[#allocation2 + $0x1c0] ss:$8 sm:$0xf0] %v766_v35  ;;  %1122 = vmatprep.mubr.f32.mxu1 %v9679_v3  ;;  %v559_v48 = vsel %vm267_vm6, %v553_v37, %v558_v45  ;;  %v567_v49 = vpop.permute.xlu1 %566  ;;  %v565_v50 = vpop.permute.xlu0 %564 }
 0x178   :  { %562 = vst [vmem:[#allocation2 + $0x45] ss:$8 sm:$0xf] %v559_v48  ;;  %563 = vst [vmem:[#allocation2 + $0x45] ss:$8 sm:$0xf0] %v559_v48  ;;  %7547 = vmatpush1.bf16.msra.mxu0 %v7546_v46 }
 0x179   :  { %v569_v51 = vrot.slane %v567_v49, 1  ;;  %v568_v52 = vrot.slane %v565_v50, 1  ;;  %7555 = vmatpush1.bf16.msra.mxu1 %v7554_v47 }
 0x17b   :  { %v570_v53 = vsel %vm213_vm0, %v568_v52, %v569_v51  ;;  %6571 = vmatmul.mubr.msk.f32.vlgmr.msra.gmra.mrb[2].mxu0 %vm397_vm13, %v10170_v19  ;;  %v579_v55 = vpop.permute.xlu1 %578  ;;  %v577_v56 = vpop.permute.xlu0 %576 }
 0x17c   :  { %v571_v54 = vsel %vm280_vm7, %v565_v50, %v570_v53  ;;  %6572 = vmatmul.mubr.msk.f32.vlgmr.msra.gmra.mrb[2].mxu1 %vm397_vm13, %v10170_v19  ;;  %v581_v57 = vrot.slane %v579_v55, 1  ;;  %v580_v58 = vrot.slane %v577_v56, 1  ;;  %1193 = vmatprep.mubr.f32.mxu0 %v9679_v3 }
 0x17d   :  { %574 = vst [vmem:[#allocation2 + $0x46] ss:$8 sm:$0xf] %v571_v54  ;;  %575 = vst [vmem:[#allocation2 + $0x46] ss:$8 sm:$0xf0] %v571_v54  ;;  %1264 = vmatprep.mubr.f32.mxu1 %v9679_v3 }
 0x17e   :  { %v582_v59 = vsel %vm213_vm0, %v580_v58, %v581_v57 }
 0x17f   :  { %v583_v60 = vsel %vm11003_vm8, %v577_v56, %v582_v59  ;;  %v591_v61 = vpop.permute.xlu1 %590  ;;  %v589_v62 = vpop.permute.xlu0 %588 }
 0x180   :  { %586 = vst [vmem:[#allocation2 + $0x47] ss:$8 sm:$0xf] %v583_v60  ;;  %587 = vst [vmem:[#allocation2 + $0x47] ss:$8 sm:$0xf0] %v583_v60 }
 0x181   :  { %v593_v63 = vrot.slane %v591_v61, 1  ;;  %v592_v0 = vrot.slane %v589_v62, 1 }
 0x183   :  { %v594_v1 = vsel %vm213_vm0, %v592_v0, %v593_v63  ;;  %v603_v5 = vpop.permute.xlu1 %602  ;;  %v601_v6 = vpop.permute.xlu0 %600 }
 0x184   :  { %v595_v4 = vsel %vm11004_vm9, %v589_v62, %v594_v1  ;;  %v605_v8 = vrot.slane %v603_v5, 1  ;;  %v604_v9 = vrot.slane %v601_v6, 1 }
 0x185   :  { %598 = vst [vmem:[#allocation2 + $0xc0] ss:$8 sm:$0xf] %v595_v4  ;;  %599 = vst [vmem:[#allocation2 + $0xc0] ss:$8 sm:$0xf0] %v595_v4 }
 0x186   :  { %v606_v10 = vsel %vm213_vm0, %v604_v9, %v605_v8 }
 0x187   :  { %v607_v11 = vsel %vm11001_vm10, %v601_v6, %v606_v10  ;;  %v615_v12 = vpop.permute.xlu1 %614  ;;  %v613_v13 = vpop.permute.xlu0 %612  ;;  %vm11011_vm10 = vcmask 506880   ;;  %v781_v57 = vld [vmem:[#allocation2 + $0x48] sm:$0xff]  ;;  %v783_v58 = vld [vmem:[#allocation2 + $0x58] sm:$0xff]  ;;  %v780_v60 = vld [vmem:[#allocation2 + $0x40] sm:$0xff] }
 0x188   :  { %610 = vst [vmem:[#allocation2 + $0xc1] ss:$8 sm:$0xf] %v607_v11  ;;  %611 = vst [vmem:[#allocation2 + $0xc1] ss:$8 sm:$0xf0] %v607_v11 }
 0x189   :  { %v617_v14 = vrot.slane %v615_v12, 1  ;;  %v616_v15 = vrot.slane %v613_v13, 1  ;;  %v782_v61 = vld [vmem:[#allocation2 + $0x50] sm:$0xff] }
 0x18b   :  { %v618_v16 = vsel %vm213_vm0, %v616_v15, %v617_v14  ;;  %v627_v18 = vpop.permute.xlu1 %626  ;;  %v625_v20 = vpop.permute.xlu0 %624 }
 0x18c   :  { %v619_v17 = vsel %vm11002_vm11, %v613_v13, %v618_v16  ;;  %v629_v21 = vrot.slane %v627_v18, 1  ;;  %v628_v22 = vrot.slane %v625_v20, 1  ;;  %vm11012_vm11 = vcmask 498688  }
 0x18d   :  { %622 = vst [vmem:[#allocation2 + $0xc2] ss:$8 sm:$0xf] %v619_v17  ;;  %623 = vst [vmem:[#allocation2 + $0xc2] ss:$8 sm:$0xf0] %v619_v17 }
 0x18e   :  { %v630_v23 = vsel %vm213_vm0, %v628_v22, %v629_v21 }
 0x18f   :  { %v631_v24 = vsel %vm11010_vm2, %v625_v20, %v630_v23  ;;  %v639_v25 = vpop.permute.xlu1 %638  ;;  %v637_v26 = vpop.permute.xlu0 %636  ;;  %vm11013_vm2 = vcmask 490496   ;;  %v829_v23 = vld [vmem:[#allocation2 + $0x1c8] sm:$0xff] }
 0x190   :  { %634 = vst [vmem:[#allocation2 + $0xc3] ss:$8 sm:$0xf] %v631_v24  ;;  %635 = vst [vmem:[#allocation2 + $0xc3] ss:$8 sm:$0xf0] %v631_v24 }
 0x191   :  { %v641_v7 = vrot.slane %v639_v25, 1  ;;  %v640_v2 = vrot.slane %v637_v26, 1  ;;  %v831_v24 = vld [vmem:[#allocation2 + $0x1d8] sm:$0xff]  ;;  %v785_v25 = vld [vmem:[#allocation2 + $0x68] sm:$0xff] }
 0x193   :  { %v642_v27 = vsel %vm213_vm0, %v640_v2, %v641_v7  ;;  %v651_v29 = vpop.permute.xlu1 %650  ;;  %v649_v30 = vpop.permute.xlu0 %648  ;;  %v828_v7 = vld [vmem:[#allocation2 + $0x1c0] sm:$0xff]  ;;  %v787_v2 = vld [vmem:[#allocation2 + $0x78] sm:$0xff] }
 0x194   :  { %v643_v28 = vsel %vm11011_vm10, %v637_v26, %v642_v27  ;;  %v653_v31 = vrot.slane %v651_v29, 1  ;;  %v652_v32 = vrot.slane %v649_v30, 1  ;;  %vm11014_vm10 = vcmask 244736   ;;  %v784_v29 = vld [vmem:[#allocation2 + $0x60] sm:$0xff] }
 0x195   :  { %646 = vst [vmem:[#allocation2 + $0xc4] ss:$8 sm:$0xf] %v643_v28  ;;  %647 = vst [vmem:[#allocation2 + $0xc4] ss:$8 sm:$0xf0] %v643_v28 }
 0x196   :  { %v654_v33 = vsel %vm213_vm0, %v652_v32, %v653_v31  ;;  %v830_v28 = vld [vmem:[#allocation2 + $0x1d0] sm:$0xff] }
 0x197   :  { %v655_v34 = vsel %vm11012_vm11, %v649_v30, %v654_v33  ;;  %v663_v35 = vpop.permute.xlu1 %662  ;;  %v661_v36 = vpop.permute.xlu0 %660  ;;  %v786_v30 = vld [vmem:[#allocation2 + $0x70] sm:$0xff]  ;;  %vm2449_vm11 = vcmask 908288  }
 0x198   :  { %658 = vst [vmem:[#allocation2 + $0xc5] ss:$8 sm:$0xf] %v655_v34  ;;  %659 = vst [vmem:[#allocation2 + $0xc5] ss:$8 sm:$0xf0] %v655_v34 }
 0x199   :  { %v665_v37 = vrot.slane %v663_v35, 1  ;;  %v664_v38 = vrot.slane %v661_v36, 1  ;;  %v833_v35 = vld [vmem:[#allocation2 + $0x1e8] sm:$0xff] }
 0x19b   :  { %v666_v39 = vsel %vm213_vm0, %v664_v38, %v665_v37  ;;  %v675_v41 = vpop.permute.xlu1 %674  ;;  %v673_v42 = vpop.permute.xlu0 %672 }
 0x19c   :  { %v667_v40 = vsel %vm11013_vm2, %v661_v36, %v666_v39  ;;  %v677_v43 = vrot.slane %v675_v41, 1  ;;  %v676_v44 = vrot.slane %v673_v42, 1  ;;  %vm11015_vm2 = vcmask 752640  }
 0x19d   :  { %670 = vst [vmem:[#allocation2 + $0xc6] ss:$8 sm:$0xf] %v667_v40  ;;  %671 = vst [vmem:[#allocation2 + $0xc6] ss:$8 sm:$0xf0] %v667_v40 }
 0x19e   :  { %v678_v45 = vsel %vm213_vm0, %v676_v44, %v677_v43 }
 0x19f   :  { %v679_v46 = vsel %vm397_vm13, %v673_v42, %v678_v45  ;;  %v687_v47 = vpop.permute.xlu1 %686  ;;  %v685_v48 = vpop.permute.xlu0 %684 }
 0x1a0   :  { %682 = vst [vmem:[#allocation2 + $0xc7] ss:$8 sm:$0xf] %v679_v46  ;;  %683 = vst [vmem:[#allocation2 + $0xc7] ss:$8 sm:$0xf0] %v679_v46 }
 0x1a1   :  { %v689_v49 = vrot.slane %v687_v47, 1  ;;  %v688_v50 = vrot.slane %v685_v48, 1  ;;  %v835_v46 = vld [vmem:[#allocation2 + $0x1f8] sm:$0xff] }
 0x1a3   :  { %v690_v51 = vsel %vm213_vm0, %v688_v50, %v689_v49  ;;  %v699_v53 = vpop.permute.xlu1 %698  ;;  %v697_v54 = vpop.permute.xlu0 %696  ;;  %v832_v49 = vld [vmem:[#allocation2 + $0x1e0] sm:$0xff]  ;;  %v1430_v50 = vld [vmem:[#allocation8 + $0x8] sm:$0xff] }
 0x1a4   :  { %v691_v52 = vsel %vm410_vm14, %v685_v48, %v690_v51  ;;  %v701_v55 = vrot.slane %v699_v53, 1  ;;  %v700_v56 = vrot.slane %v697_v54, 1  ;;  %vm2488_vm14 = vcmask 883712  }
 0x1a5   :  { %694 = vst [vmem:[#allocation2 + $0x140] ss:$8 sm:$0xf] %v691_v52  ;;  %695 = vst [vmem:[#allocation2 + $0x140] ss:$8 sm:$0xf0] %v691_v52 }
 0x1a6   :  { %v702_v59 = vsel %vm213_vm0, %v700_v56, %v701_v55  ;;  %v834_v55 = vld [vmem:[#allocation2 + $0x1f0] sm:$0xff]  ;;  %v1433_v56 = vld [vmem:[#allocation8 + $0x20] sm:$0xff] }
 0x1a7   :  { %v703_v62 = vsel %vm11014_vm10, %v697_v54, %v702_v59  ;;  %v711_v63 = vpop.permute.xlu1 %710  ;;  %v709_v0 = vpop.permute.xlu0 %708  ;;  %v797_v1 = vld [vmem:[#allocation2 + $0xc8] sm:$0xff]  ;;  %v799_v4 = vld [vmem:[#allocation2 + $0xd8] sm:$0xff]  ;;  %v796_v5 = vld [vmem:[#allocation2 + $0xc0] sm:$0xff]  ;;  %vm11005_vm10 = vcmask 646144  }
 0x1a8   :  { %706 = vst [vmem:[#allocation2 + $0x141] ss:$8 sm:$0xf] %v703_v62  ;;  %707 = vst [vmem:[#allocation2 + $0x141] ss:$8 sm:$0xf0] %v703_v62  ;;  %v7556_v9 = vpack.c.bf16 %v797_v1, %v781_v57  ;;  %v7564_v10 = vpack.c.bf16 %v799_v4, %v783_v58  ;;  %v7558_v12 = vpack.c.bf16 %v796_v5, %v780_v60 }
 0x1a9   :  { %v713_v6 = vrot.slane %v711_v63, 1  ;;  %v712_v8 = vrot.slane %v709_v0, 1  ;;  %v798_v11 = vld [vmem:[#allocation2 + $0xd0] sm:$0xff]  ;;  %v801_v26 = vld [vmem:[#allocation2 + $0xe8] sm:$0xff]  ;;  %v803_v27 = vld [vmem:[#allocation2 + $0xf8] sm:$0xff]  ;;  %v7588_v63 = vpack.c.bf16 %v1433_v56, %v1430_v50 }
 0x1aa   :  { %v7566_v13 = vpack.c.bf16 %v798_v11, %v782_v61  ;;  %7557 = vmatprep.subr.bf16.mxu0 %v7556_v9  ;;  %7565 = vmatprep.subr.bf16.mxu1 %v7564_v10  ;;  %v7572_v34 = vpack.c.bf16 %v801_v26, %v785_v25  ;;  %v7580_v40 = vpack.c.bf16 %v803_v27, %v787_v2  ;;  %v800_v41 = vld [vmem:[#allocation2 + $0xe0] sm:$0xff]  ;;  %v802_v42 = vld [vmem:[#allocation2 + $0xf0] sm:$0xff]  ;;  %v1479_v57 = vld [vmem:[#allocation8 + $0x190] sm:$0xff] }
 0x1ab   :  { %v714_v14 = vsel %vm213_vm0, %v712_v8, %v713_v6  ;;  %v723_v16 = vpop.permute.xlu1 %722  ;;  %v721_v17 = vpop.permute.xlu0 %720  ;;  %7559 = vmatpush1.bf16.msra.mxu0 %v7558_v12  ;;  %v7574_v47 = vpack.c.bf16 %v800_v41, %v784_v29  ;;  %v7582_v48 = vpack.c.bf16 %v802_v42, %v786_v30  ;;  %v1482_v58 = vld [vmem:[#allocation8 + $0x1a8] sm:$0xff]  ;;  %v1429_v61 = vld [vmem:[#allocation8] sm:$0xff]  ;;  %v1432_v62 = vld [vmem:[#allocation8 + $0x18] sm:$0xff] }
 0x1ac   :  { %v715_v15 = vsel %vm436_vm12, %v709_v0, %v714_v14  ;;  %7567 = vmatpush1.bf16.msra.mxu1 %v7566_v13  ;;  %v725_v18 = vrot.slane %v723_v16, 1  ;;  %v724_v20 = vrot.slane %v721_v17, 1  ;;  %v1436_v0 = vld [vmem:[#allocation8 + $0x38] sm:$0xff]  ;;  %v7844_v1 = vpack.c.bf16 %v1482_v58, %v1479_v57  ;;  %v1431_v4 = vld [vmem:[#allocation8 + $0x10] sm:$0xff]  ;;  %v1434_v5 = vld [vmem:[#allocation8 + $0x28] sm:$0xff] }
 0x1ad   :  { %718 = vst [vmem:[#allocation2 + $0x142] ss:$8 sm:$0xf] %v715_v15  ;;  %719 = vst [vmem:[#allocation2 + $0x142] ss:$8 sm:$0xf0] %v715_v15  ;;  %v7590_v10 = vpack.c.bf16 %v1432_v62, %v1429_v61  ;;  %v7846_v13 = vpack.c.bf16 %v1434_v5, %v1431_v4 }
 0x1ae   :  { %v726_v21 = vsel %vm213_vm0, %v724_v20, %v725_v18  ;;  %v1439_v6 = vld [vmem:[#allocation8 + $0x50] sm:$0xff]  ;;  %v1485_v8 = vld [vmem:[#allocation8 + $0x1c0] sm:$0xff]  ;;  %v1488_v9 = vld [vmem:[#allocation8 + $0x1d8] sm:$0xff]  ;;  %vm2436_vm0 = vcmask 916480   ;;  %vm2462_vm12 = vcmask 900096  }
 0x1af   :  { %v727_v22 = vsel %vm449_vm15, %v721_v17, %v726_v21  ;;  %v1435_v11 = vld [vmem:[#allocation8 + $0x30] sm:$0xff]  ;;  %v1438_v12 = vld [vmem:[#allocation8 + $0x48] sm:$0xff]  ;;  %v7592_v14 = vpack.c.bf16 %v1439_v6, %v1436_v0  ;;  %v7848_v16 = vpack.c.bf16 %v1488_v9, %v1485_v8  ;;  %v1437_v17 = vld [vmem:[#allocation8 + $0x40] sm:$0xff]  ;;  %vm11007_vm15 = vcmask 654336  }
 0x1b0   :  { %730 = vst [vmem:[#allocation2 + $0x143] ss:$8 sm:$0xf] %v727_v22  ;;  %731 = vst [vmem:[#allocation2 + $0x143] ss:$8 sm:$0xf0] %v727_v22 }
 0x1b1   :  { %v1442_v15 = vld [vmem:[#allocation8 + $0x68] sm:$0xff]  ;;  %v1440_v18 = vld [vmem:[#allocation8 + $0x58] sm:$0xff]  ;;  %v1445_v20 = vld [vmem:[#allocation8 + $0x80] sm:$0xff] }
 0x1b2   :  { %v1491_v21 = vld [vmem:[#allocation8 + $0x1f0] sm:$0xff]  ;;  %v1494_v22 = vld [vmem:[#allocation8 + $0x208] sm:$0xff]  ;;  %v1444_v25 = vld [vmem:[#allocation8 + $0x78] sm:$0xff]  ;;  %v7850_v26 = vpack.c.bf16 %v1440_v18, %v1437_v17 }
 0x1b3   :  { %v1448_v2 = vld [vmem:[#allocation8 + $0x98] sm:$0xff]  ;;  %v7852_v27 = vpack.c.bf16 %v1494_v22, %v1491_v21  ;;  %v1446_v29 = vld [vmem:[#allocation8 + $0x88] sm:$0xff]  ;;  %v1451_v30 = vld [vmem:[#allocation8 + $0xb0] sm:$0xff] }
 0x1b4   :  { %v1457_v41 = vld [vmem:[#allocation8 + $0xe0] sm:$0xff]  ;;  %v1503_v42 = vld [vmem:[#allocation8 + $0x250] sm:$0xff]  ;;  %v1462_v58 = vld [vmem:[#allocation8 + $0x108] sm:$0xff] }
 0x1b5   :  { %v1459_v57 = vld [vmem:[#allocation8 + $0xf0] sm:$0xff]  ;;  %v1466_v61 = vld [vmem:[#allocation8 + $0x128] sm:$0xff]  ;;  %v1464_v0 = vld [vmem:[#allocation8 + $0x118] sm:$0xff] }
 0x1b6   :  { %v1515_v4 = vld [vmem:[#allocation8 + $0x2b0] sm:$0xff]  ;;  %v1518_v5 = vld [vmem:[#allocation8 + $0x2c8] sm:$0xff]  ;;  %v7610_v6 = vpack.c.bf16 %v1462_v58, %v1459_v57  ;;  %v1465_v8 = vld [vmem:[#allocation8 + $0x120] sm:$0xff] }
 0x1b7   :  { %v813_v31 = vld [vmem:[#allocation2 + $0x148] sm:$0xff]  ;;  %v815_v32 = vld [vmem:[#allocation2 + $0x158] sm:$0xff]  ;;  %v812_v33 = vld [vmem:[#allocation2 + $0x140] sm:$0xff] }
 0x1b8   :  { %v7560_v36 = vpack.c.bf16 %v829_v23, %v813_v31  ;;  %v7568_v37 = vpack.c.bf16 %v831_v24, %v815_v32  ;;  %v7562_v38 = vpack.c.bf16 %v828_v7, %v812_v33  ;;  %v814_v39 = vld [vmem:[#allocation2 + $0x150] sm:$0xff]  ;;  %v817_v44 = vld [vmem:[#allocation2 + $0x168] sm:$0xff]  ;;  %v819_v45 = vld [vmem:[#allocation2 + $0x178] sm:$0xff]  ;;  %v7594_v23 = vpack.c.bf16 %v1438_v12, %v1435_v11 }
 0x1b9   :  { %v7570_v43 = vpack.c.bf16 %v830_v28, %v814_v39  ;;  %v7576_v51 = vpack.c.bf16 %v833_v35, %v817_v44  ;;  %v7584_v52 = vpack.c.bf16 %v835_v46, %v819_v45  ;;  %v816_v53 = vld [vmem:[#allocation2 + $0x160] sm:$0xff]  ;;  %v818_v54 = vld [vmem:[#allocation2 + $0x170] sm:$0xff]  ;;  %v1441_v24 = vld [vmem:[#allocation8 + $0x60] sm:$0xff]  ;;  %v7596_v7 = vpack.c.bf16 %v1445_v20, %v1442_v15 }
 0x1ba   :  { %7561 = vmatprep.subr.bf16.mxu0 %v7560_v36  ;;  %7569 = vmatprep.subr.bf16.mxu1 %v7568_v37  ;;  %v7578_v59 = vpack.c.bf16 %v832_v49, %v816_v53  ;;  %v7586_v60 = vpack.c.bf16 %v834_v55, %v818_v54  ;;  %v1443_v28 = vld [vmem:[#allocation8 + $0x70] sm:$0xff]  ;;  %v1497_v31 = vld [vmem:[#allocation8 + $0x220] sm:$0xff]  ;;  %v1500_v32 = vld [vmem:[#allocation8 + $0x238] sm:$0xff]  ;;  %v7598_v33 = vpack.c.bf16 %v1444_v25, %v1441_v24 }
 0x1bb   :  { %7563 = vmatpush1.bf16.msra.mxu0 %v7562_v38  ;;  %7571 = vmatpush1.bf16.msra.mxu1 %v7570_v43  ;;  %v7854_v35 = vpack.c.bf16 %v1446_v29, %v1443_v28  ;;  %v7600_v36 = vpack.c.bf16 %v1451_v30, %v1448_v2  ;;  %v1454_v37 = vld [vmem:[#allocation8 + $0xc8] sm:$0xff]  ;;  %v7856_v38 = vpack.c.bf16 %v1500_v32, %v1497_v31  ;;  %v1449_v39 = vld [vmem:[#allocation8 + $0xa0] sm:$0xff]  ;;  %v1456_v46 = vld [vmem:[#allocation8 + $0xd8] sm:$0xff] }
 0x1bc   :  { %7573 = vmatprep.subr.bf16.mxu0 %v7572_v34  ;;  %7581 = vmatprep.subr.bf16.mxu1 %v7580_v40  ;;  %v1447_v34 = vld [vmem:[#allocation8 + $0x90] sm:$0xff]  ;;  %v1452_v40 = vld [vmem:[#allocation8 + $0xb8] sm:$0xff]  ;;  %v1506_v43 = vld [vmem:[#allocation8 + $0x268] sm:$0xff] }
 0x1bd   :  { %v1453_v45 = vld [vmem:[#allocation8 + $0xc0] sm:$0xff]  ;;  %v1460_v49 = vld [vmem:[#allocation8 + $0xf8] sm:$0xff]  ;;  %v7860_v50 = vpack.c.bf16 %v1506_v43, %v1503_v42  ;;  %v1463_v53 = vld [vmem:[#allocation8 + $0x110] sm:$0xff] }
 0x1be   :  { %6573 = vmatmul.mubr.msk.f32.vlgmr.msra.gmra.mrb[4].mxu0 %vm397_vm13, %v10170_v19  ;;  %6574 = vmatmul.mubr.msk.f32.vlgmr.msra.gmra.mrb[4].mxu1 %vm397_vm13, %v10170_v19  ;;  %v1509_v54 = vld [vmem:[#allocation8 + $0x280] sm:$0xff]  ;;  %v1512_v55 = vld [vmem:[#allocation8 + $0x298] sm:$0xff]  ;;  %v7606_v56 = vpack.c.bf16 %v1456_v46, %v1453_v45  ;;  %v1470_v15 = vld [vmem:[#allocation8 + $0x148] sm:$0xff] }
 0x1bf   :  { %7575 = vmatpush1.bf16.msra.mxu0 %v7574_v47  ;;  %7583 = vmatpush1.bf16.msra.mxu1 %v7582_v48  ;;  %v7858_v47 = vpack.c.bf16 %v1452_v40, %v1449_v39  ;;  %v7604_v48 = vpack.c.bf16 %v1457_v41, %v1454_v37  ;;  %v7864_v62 = vpack.c.bf16 %v1512_v55, %v1509_v54  ;;  %v1468_v9 = vld [vmem:[#allocation8 + $0x138] sm:$0xff]  ;;  %v1521_v17 = vld [vmem:[#allocation8 + $0x2e0] sm:$0xff]  ;;  %v1471_v21 = vld [vmem:[#allocation8 + $0x150] sm:$0xff] }
 0x1c0   :  { %7577 = vmatprep.subr.bf16.mxu0 %v7576_v51  ;;  %7585 = vmatprep.subr.bf16.mxu1 %v7584_v52  ;;  %v1455_v51 = vld [vmem:[#allocation8 + $0xd0] sm:$0xff]  ;;  %v1458_v52 = vld [vmem:[#allocation8 + $0xe8] sm:$0xff]  ;;  %v1472_v12 = vld [vmem:[#allocation8 + $0x158] sm:$0xff]  ;;  %v7614_v20 = vpack.c.bf16 %v1468_v9, %v1465_v8 }
 0x1c1   :  { %1335 = vmatprep.mubr.f32.mxu0 %v9679_v3  ;;  %1406 = vmatprep.mubr.f32.mxu1 %v9679_v3  ;;  %v1524_v18 = vld [vmem:[#allocation8 + $0x2f8] sm:$0xff]  ;;  %v1474_v22 = vld [vmem:[#allocation8 + $0x168] sm:$0xff]  ;;  %v1575_v28 = vld [vmem:[#allocation8 + $0x490] sm:$0xff] }
 0x1c2   :  { %v1478_v25 = vld [vmem:[#allocation8 + $0x188] sm:$0xff]  ;;  %v1476_v2 = vld [vmem:[#allocation8 + $0x178] sm:$0xff]  ;;  %v7618_v30 = vpack.c.bf16 %v1474_v22, %v1471_v21  ;;  %v1483_v39 = vld [vmem:[#allocation8 + $0x1b0] sm:$0xff]  ;;  %v10228_v21 = vpop.permute.xlu0 %839 }
 0x1c3   :  { %7579 = vmatpush1.bf16.msra.mxu0 %v7578_v59  ;;  %7587 = vmatpush1.bf16.msra.mxu1 %v7586_v60  ;;  %v7862_v59 = vpack.c.bf16 %v1458_v52, %v1455_v51  ;;  %v7608_v60 = vpack.c.bf16 %v1463_v53, %v1460_v49  ;;  %v1578_v29 = vld [vmem:[#allocation8 + $0x4a8] sm:$0xff]  ;;  %v1493_v42 = vld [vmem:[#allocation8 + $0x200] sm:$0xff]  ;;  %v1492_v46 = vld [vmem:[#allocation8 + $0x1f8] sm:$0xff] }
 0x1c4   :  { %7589 = vmatprep.subr.bf16.mxu0 %v7588_v63  ;;  %7845 = vmatprep.subr.bf16.mxu1 %v7844_v1  ;;  %v1461_v63 = vld [vmem:[#allocation8 + $0x100] sm:$0xff]  ;;  %v1486_v40 = vld [vmem:[#allocation8 + $0x1c8] sm:$0xff]  ;;  %v1495_v51 = vld [vmem:[#allocation8 + $0x210] sm:$0xff] }
 0x1c5   :  { %v1469_v1 = vld [vmem:[#allocation8 + $0x140] sm:$0xff]  ;;  %v1490_v41 = vld [vmem:[#allocation8 + $0x1e8] sm:$0xff]  ;;  %v7626_v43 = vpack.c.bf16 %v1486_v40, %v1483_v39  ;;  %v1504_v58 = vld [vmem:[#allocation8 + $0x258] sm:$0xff] }
 0x1c6   :  { %6575 = vmatmul.mubr.msk.f32.vlgmr.msra.gmra.mrb[6].mxu0 %vm397_vm13, %v10170_v19  ;;  %6576 = vmatmul.mubr.msk.f32.vlgmr.msra.gmra.mrb[6].mxu1 %vm397_vm13, %v10170_v19  ;;  %v1450_v19 = vld [vmem:[#allocation8 + $0xa8] sm:$0xff]  ;;  %v7612_v11 = vpack.c.bf16 %v1469_v1, %v1466_v61  ;;  %v1489_v45 = vld [vmem:[#allocation8 + $0x1e0] sm:$0xff]  ;;  %v1516_v9 = vld [vmem:[#allocation8 + $0x2b8] sm:$0xff]  ;;  %vm2475_vm13 = vcmask 891904  }
 0x1c7   :  { %7591 = vmatpush1.bf16.msra.mxu0 %v7590_v10  ;;  %7847 = vmatpush3.bf16.msra.mxu1 %v7846_v13  ;;  %v7602_v44 = vpack.c.bf16 %v1450_v19, %v1447_v34  ;;  %v7866_v10 = vpack.c.bf16 %v1464_v0, %v1461_v63  ;;  %v7868_v13 = vpack.c.bf16 %v1518_v5, %v1515_v4  ;;  %v1480_v34 = vld [vmem:[#allocation8 + $0x198] sm:$0xff]  ;;  %v1498_v52 = vld [vmem:[#allocation8 + $0x228] sm:$0xff]  ;;  %v1505_v54 = vld [vmem:[#allocation8 + $0x260] sm:$0xff] }
 0x1c8   :  { %7593 = vmatprep.subr.bf16.mxu0 %v7592_v14  ;;  %7849 = vmatprep.subr.bf16.mxu1 %v7848_v16  ;;  %v1467_v14 = vld [vmem:[#allocation8 + $0x130] sm:$0xff]  ;;  %v7876_v19 = vpack.c.bf16 %v1578_v29, %v1575_v28  ;;  %v7630_v49 = vpack.c.bf16 %v1492_v46, %v1489_v45  ;;  %v1502_v53 = vld [vmem:[#allocation8 + $0x248] sm:$0xff]  ;;  %v7634_v55 = vpack.c.bf16 %v1498_v52, %v1495_v51  ;;  %v1501_v57 = vld [vmem:[#allocation8 + $0x240] sm:$0xff] }
 0x1c9   :  { %v1475_v16 = vld [vmem:[#allocation8 + $0x170] sm:$0xff]  ;;  %v7638_v61 = vpack.c.bf16 %v1504_v58, %v1501_v57  ;;  %v1510_v0 = vld [vmem:[#allocation8 + $0x288] sm:$0xff]  ;;  %v1517_v4 = vld [vmem:[#allocation8 + $0x2c0] sm:$0xff] }
 0x1ca   :  { %v7616_v24 = vpack.c.bf16 %v1475_v16, %v1472_v12  ;;  %v1507_v63 = vld [vmem:[#allocation8 + $0x270] sm:$0xff]  ;;  %v1514_v1 = vld [vmem:[#allocation8 + $0x2a8] sm:$0xff]  ;;  %v1513_v8 = vld [vmem:[#allocation8 + $0x2a0] sm:$0xff] }
 0x1cb   :  { %7595 = vmatpush1.bf16.msra.mxu0 %v7594_v23  ;;  %7851 = vmatpush3.bf16.msra.mxu1 %v7850_v26  ;;  %v7870_v23 = vpack.c.bf16 %v1470_v15, %v1467_v14  ;;  %v7872_v26 = vpack.c.bf16 %v1524_v18, %v1521_v17  ;;  %v7642_v5 = vpack.c.bf16 %v1510_v0, %v1507_v63  ;;  %v1519_v14 = vld [vmem:[#allocation8 + $0x2d0] sm:$0xff]  ;;  %v1522_v15 = vld [vmem:[#allocation8 + $0x2e8] sm:$0xff]  ;;  %v1529_v17 = vld [vmem:[#allocation8 + $0x320] sm:$0xff] }
 0x1cc   :  { %7597 = vmatprep.subr.bf16.mxu0 %v7596_v7  ;;  %7853 = vmatprep.subr.bf16.mxu1 %v7852_v27  ;;  %v1473_v7 = vld [vmem:[#allocation8 + $0x160] sm:$0xff]  ;;  %v7646_v12 = vpack.c.bf16 %v1516_v9, %v1513_v8  ;;  %v1526_v16 = vld [vmem:[#allocation8 + $0x308] sm:$0xff]  ;;  %v7650_v18 = vpack.c.bf16 %v1522_v15, %v1519_v14  ;;  %v1587_v46 = vld [vmem:[#allocation8 + $0x4f0] sm:$0xff] }
 0x1cd   :  { %v1481_v27 = vld [vmem:[#allocation8 + $0x1a0] sm:$0xff]  ;;  %v7874_v31 = vpack.c.bf16 %v1476_v2, %v1473_v7  ;;  %v1528_v2 = vld [vmem:[#allocation8 + $0x318] sm:$0xff]  ;;  %v1530_v28 = vld [vmem:[#allocation8 + $0x328] sm:$0xff] }
 0x1ce   :  { %v7620_v32 = vpack.c.bf16 %v1481_v27, %v1478_v25  ;;  %v1527_v27 = vld [vmem:[#allocation8 + $0x310] sm:$0xff]  ;;  %v1533_v40 = vld [vmem:[#allocation8 + $0x340] sm:$0xff]  ;;  %v1596_v0 = vld [vmem:[#allocation8 + $0x538] sm:$0xff] }
 0x1cf   :  { %7599 = vmatpush1.bf16.msra.mxu0 %v7598_v33  ;;  %7855 = vmatpush3.bf16.msra.mxu1 %v7854_v35  ;;  %v1477_v33 = vld [vmem:[#allocation8 + $0x180] sm:$0xff]  ;;  %v1484_v35 = vld [vmem:[#allocation8 + $0x1b8] sm:$0xff]  ;;  %v1599_v14 = vld [vmem:[#allocation8 + $0x550] sm:$0xff] }
 0x1d0   :  { %7601 = vmatprep.subr.bf16.mxu0 %v7600_v36  ;;  %7857 = vmatprep.subr.bf16.mxu1 %v7856_v38  ;;  %v1487_v36 = vld [vmem:[#allocation8 + $0x1d0] sm:$0xff]  ;;  %v7622_v37 = vpack.c.bf16 %v1480_v34, %v1477_v33  ;;  %v1581_v33 = vld [vmem:[#allocation8 + $0x4c0] sm:$0xff]  ;;  %v1584_v34 = vld [vmem:[#allocation8 + $0x4d8] sm:$0xff] }
 0x1d1   :  { %v7624_v38 = vpack.c.bf16 %v1487_v36, %v1484_v35  ;;  %v7878_v36 = vpack.c.bf16 %v1530_v28, %v1527_v27  ;;  %v1541_v45 = vld [vmem:[#allocation8 + $0x380] sm:$0xff]  ;;  %v1602_v15 = vld [vmem:[#allocation8 + $0x568] sm:$0xff]  ;;  %v1608_v28 = vld [vmem:[#allocation8 + $0x598] sm:$0xff] }
 0x1d2   :  { %v1593_v63 = vld [vmem:[#allocation8 + $0x520] sm:$0xff] }
 0x1d3   :  { %7603 = vmatpush1.bf16.msra.mxu0 %v7602_v44  ;;  %7859 = vmatpush3.bf16.msra.mxu1 %v7858_v47  ;;  %v7628_v44 = vpack.c.bf16 %v1493_v42, %v1490_v41  ;;  %v1496_v47 = vld [vmem:[#allocation8 + $0x218] sm:$0xff]  ;;  %v1538_v42 = vld [vmem:[#allocation8 + $0x368] sm:$0xff]  ;;  %v7888_v9 = vpack.c.bf16 %v1596_v0, %v1593_v63  ;;  %v1605_v27 = vld [vmem:[#allocation8 + $0x580] sm:$0xff] }
 0x1d4   :  { %7605 = vmatprep.subr.bf16.mxu0 %v7604_v48  ;;  %7861 = vmatprep.subr.bf16.mxu1 %v7860_v50  ;;  %v1499_v48 = vld [vmem:[#allocation8 + $0x230] sm:$0xff]  ;;  %v1536_v41 = vld [vmem:[#allocation8 + $0x358] sm:$0xff]  ;;  %v7660_v57 = vpack.c.bf16 %v1541_v45, %v1538_v42  ;;  %v1561_v42 = vld [vmem:[#allocation8 + $0x420] sm:$0xff] }
 0x1d5   :  { %v7632_v50 = vpack.c.bf16 %v1499_v48, %v1496_v47  ;;  %v1590_v47 = vld [vmem:[#allocation8 + $0x508] sm:$0xff]  ;;  %v7882_v52 = vpack.c.bf16 %v1536_v41, %v1533_v40  ;;  %v1572_v63 = vld [vmem:[#allocation8 + $0x478] sm:$0xff] }
 0x1d6   :  { %v7884_v58 = vpack.c.bf16 %v1590_v47, %v1587_v46  ;;  %v1563_v46 = vld [vmem:[#allocation8 + $0x430] sm:$0xff]  ;;  %v1566_v47 = vld [vmem:[#allocation8 + $0x448] sm:$0xff] }
 0x1d7   :  { %7607 = vmatpush1.bf16.msra.mxu0 %v7606_v56  ;;  %7863 = vmatpush3.bf16.msra.mxu1 %v7862_v59  ;;  %v7636_v56 = vpack.c.bf16 %v1505_v54, %v1502_v53  ;;  %v1508_v59 = vld [vmem:[#allocation8 + $0x278] sm:$0xff]  ;;  %v1537_v53 = vld [vmem:[#allocation8 + $0x360] sm:$0xff]  ;;  %v1574_v0 = vld [vmem:[#allocation8 + $0x488] sm:$0xff] }
 0x1d8   :  { %7609 = vmatprep.subr.bf16.mxu0 %v7608_v60  ;;  %7865 = vmatprep.subr.bf16.mxu1 %v7864_v62  ;;  %v1511_v60 = vld [vmem:[#allocation8 + $0x290] sm:$0xff]  ;;  %v1540_v54 = vld [vmem:[#allocation8 + $0x378] sm:$0xff] }
 0x1d9   :  { %v7640_v62 = vpack.c.bf16 %v1511_v60, %v1508_v59  ;;  %v1539_v59 = vld [vmem:[#allocation8 + $0x370] sm:$0xff]  ;;  %v1542_v60 = vld [vmem:[#allocation8 + $0x388] sm:$0xff] }
 0x1db   :  { %7611 = vmatpush1.bf16.msra.mxu0 %v7610_v6  ;;  %7867 = vmatpush3.bf16.msra.mxu1 %v7866_v10  ;;  %v7644_v6 = vpack.c.bf16 %v1517_v4, %v1514_v1  ;;  %v1520_v10 = vld [vmem:[#allocation8 + $0x2d8] sm:$0xff]  ;;  %v7662_v1 = vpack.c.bf16 %v1540_v54, %v1537_v53  ;;  %v7886_v4 = vpack.c.bf16 %v1542_v60, %v1539_v59  ;;  %v1570_v59 = vld [vmem:[#allocation8 + $0x468] sm:$0xff] }
 0x1dc   :  { %7613 = vmatprep.subr.bf16.mxu0 %v7612_v11  ;;  %7869 = vmatprep.subr.bf16.mxu1 %v7868_v13  ;;  %v1523_v11 = vld [vmem:[#allocation8 + $0x2f0] sm:$0xff]  ;;  %v1620_v53 = vld [vmem:[#allocation8 + $0x5f8] sm:$0xff] }
 0x1dd   :  { %v7648_v13 = vpack.c.bf16 %v1523_v11, %v1520_v10  ;;  %v1545_v10 = vld [vmem:[#allocation8 + $0x3a0] sm:$0xff]  ;;  %v1548_v11 = vld [vmem:[#allocation8 + $0x3b8] sm:$0xff] }
 0x1df   :  { %7615 = vmatpush1.bf16.msra.mxu0 %v7614_v20  ;;  %7871 = vmatpush3.bf16.msra.mxu1 %v7870_v23  ;;  %v7652_v20 = vpack.c.bf16 %v1529_v17, %v1526_v16  ;;  %v7890_v17 = vpack.c.bf16 %v1548_v11, %v1545_v10 }
 0x1e0   :  { %7617 = vmatprep.subr.bf16.mxu0 %v7616_v24  ;;  %7873 = vmatprep.subr.bf16.mxu1 %v7872_v26  ;;  %v1525_v24 = vld [vmem:[#allocation8 + $0x300] sm:$0xff] }
 0x1e1   :  { %v7654_v35 = vpack.c.bf16 %v1528_v2, %v1525_v24  ;;  %v7892_v24 = vpack.c.bf16 %v1602_v15, %v1599_v14  ;;  %v1559_v2 = vld [vmem:[#allocation8 + $0x410] sm:$0xff]  ;;  %v1626_v15 = vld [vmem:[#allocation8 + $0x628] sm:$0xff] }
 0x1e2   :  { %v1623_v14 = vld [vmem:[#allocation8 + $0x610] sm:$0xff] }
 0x1e3   :  { %7619 = vmatpush1.bf16.msra.mxu0 %v7618_v30  ;;  %7875 = vmatpush3.bf16.msra.mxu1 %v7874_v31  ;;  %v1532_v30 = vld [vmem:[#allocation8 + $0x338] sm:$0xff] }
 0x1e4   :  { %7621 = vmatprep.subr.bf16.mxu0 %v7620_v32  ;;  %7877 = vmatprep.subr.bf16.mxu1 %v7876_v19  ;;  %v1535_v32 = vld [vmem:[#allocation8 + $0x350] sm:$0xff] }
 0x1e7   :  { %7623 = vmatpush1.bf16.msra.mxu0 %v7622_v37  ;;  %v1531_v37 = vld [vmem:[#allocation8 + $0x330] sm:$0xff] }
 0x1e8   :  { %7625 = vmatprep.subr.bf16.mxu0 %v7624_v38  ;;  %v1534_v38 = vld [vmem:[#allocation8 + $0x348] sm:$0xff] }
 0x1e9   :  { %v7658_v51 = vpack.c.bf16 %v1534_v38, %v1531_v37  ;;  %v1565_v37 = vld [vmem:[#allocation8 + $0x440] sm:$0xff]  ;;  %v1611_v38 = vld [vmem:[#allocation8 + $0x5b0] sm:$0xff] }
 0x1eb   :  { %7627 = vmatpush1.bf16.msra.mxu0 %v7626_v43  ;;  %v7656_v43 = vpack.c.bf16 %v1535_v32, %v1532_v30  ;;  %v1558_v32 = vld [vmem:[#allocation8 + $0x408] sm:$0xff] }
 0x1ec   :  { %7629 = vmatprep.subr.bf16.mxu0 %v7628_v44  ;;  %v7880_v44 = vpack.c.bf16 %v1584_v34, %v1581_v33  ;;  %v7896_v34 = vpack.c.bf16 %v1608_v28, %v1605_v27  ;;  %v1629_v27 = vld [vmem:[#allocation8 + $0x640] sm:$0xff]  ;;  %v1632_v28 = vld [vmem:[#allocation8 + $0x658] sm:$0xff] }
 0x1ef   :  { %7631 = vmatpush1.bf16.msra.mxu0 %v7630_v49 }
 0x1f0   :  { %7633 = vmatprep.subr.bf16.mxu0 %v7632_v50 }
 0x1f3   :  { %7635 = vmatpush1.bf16.msra.mxu0 %v7634_v55 }
 0x1f4   :  { %7637 = vmatprep.subr.bf16.mxu0 %v7636_v56 }
 0x1f7   :  { %7639 = vmatpush1.bf16.msra.mxu0 %v7638_v61  ;;  %v1544_v61 = vld [vmem:[#allocation8 + $0x398] sm:$0xff] }
 0x1f8   :  { %7641 = vmatprep.subr.bf16.mxu0 %v7640_v62  ;;  %v1547_v62 = vld [vmem:[#allocation8 + $0x3b0] sm:$0xff] }
 0x1f9   :  { %v7664_v8 = vpack.c.bf16 %v1547_v62, %v1544_v61  ;;  %v1569_v62 = vld [vmem:[#allocation8 + $0x460] sm:$0xff] }
 0x1fb   :  { %7643 = vmatpush1.bf16.msra.mxu0 %v7642_v5  ;;  %v1543_v5 = vld [vmem:[#allocation8 + $0x390] sm:$0xff] }
 0x1fc   :  { %7645 = vmatprep.subr.bf16.mxu0 %v7644_v6  ;;  %v1546_v6 = vld [vmem:[#allocation8 + $0x3a8] sm:$0xff] }
 0x1fd   :  { %v7666_v16 = vpack.c.bf16 %v1546_v6, %v1543_v5  ;;  %v1674_v5 = vld [vmem:[#allocation8 + $0x7a8] sm:$0xff] }
 0x1ff   :  { %7647 = vmatpush1.bf16.msra.mxu0 %v7646_v12  ;;  %v1550_v12 = vld [vmem:[#allocation8 + $0x3c8] sm:$0xff] }
 0x200   :  { %7649 = vmatprep.subr.bf16.mxu0 %v7648_v13  ;;  %v1553_v13 = vld [vmem:[#allocation8 + $0x3e0] sm:$0xff] }
 0x203   :  { %7651 = vmatpush1.bf16.msra.mxu0 %v7650_v18  ;;  %v1549_v18 = vld [vmem:[#allocation8 + $0x3c0] sm:$0xff] }
 0x204   :  { %7653 = vmatprep.subr.bf16.mxu0 %v7652_v20  ;;  %v1552_v20 = vld [vmem:[#allocation8 + $0x3d8] sm:$0xff] }
 0x246   :  { %v911_v22 = vpop.f32.mrb[0].mxu0 }
 0x247   :  { %v10230_v23 = vpop.f32.mrb[0].mxu1  ;;  %v912_v25 = vadd.f32 %v911_v22, %v10228_v21  ;;  %v913_v26 = vpop.f32.mrb[1].mxu0  ;;  %v7668_v22 = vpack.c.bf16 %v1553_v13, %v1550_v12  ;;  %v1576_v13 = vld [vmem:[#allocation8 + $0x498] sm:$0xff] }
 0x248   :  { %v984_v7 = vpop.f32.mrb[1].mxu1  ;;  %v914_v29 = vadd.f32 %v913_v26, %v10228_v21  ;;  %v1554_v26 = vld [vmem:[#allocation8 + $0x3e8] sm:$0xff]  ;;  %v10245_v10 = vadd.f32 %v10230_v23, %v10228_v21  ;;  %v7910_v23 = vpack.c.bf16 %v1626_v15, %v1623_v14  ;;  %v1603_v15 = vld [vmem:[#allocation8 + $0x570] sm:$0xff] }
 0x249   :  { %v985_v31 = vadd.f32 %v984_v7, %v10228_v21  ;;  %v1413_v39 = vmax.f32 %v912_v25, 0.0  ;;  %v1551_v25 = vld [vmem:[#allocation8 + $0x3d0] sm:$0xff]  ;;  %v1556_v7 = vld [vmem:[#allocation8 + $0x3f8] sm:$0xff] }
 0x24a   :  { %v1414_v19 = vmax.f32 %v914_v29, 0.0  ;;  %v7670_v29 = vpack.c.bf16 %v1552_v20, %v1549_v18  ;;  %v7894_v30 = vpack.c.bf16 %v1554_v26, %v1551_v25  ;;  %v7672_v33 = vpack.c.bf16 %v1559_v2, %v1556_v7  ;;  %v1677_v20 = vld [vmem:[#allocation8 + $0x7c0] sm:$0xff]  ;;  %v1579_v25 = vld [vmem:[#allocation8 + $0x4b0] sm:$0xff]  ;;  %v1582_v26 = vld [vmem:[#allocation8 + $0x4c8] sm:$0xff] }
 0x24b   :  { %v1416_v48 = vmax.f32 %v985_v31, 0.0  ;;  %v1555_v31 = vld [vmem:[#allocation8 + $0x3f0] sm:$0xff]  ;;  %v1415_v7 = vmax.f32 %v10245_v10, 0.0 }
 0x24c   :  { %1877 = vmatprep.mubr.f32.mxu0 %v1414_v19  ;;  %2161 = vmatprep.mubr.f32.mxu1 %v1414_v19  ;;  %v1557_v19 = vld [vmem:[#allocation8 + $0x400] sm:$0xff]  ;;  %v7674_v40 = vpack.c.bf16 %v1558_v32, %v1555_v31  ;;  %v1686_v32 = vld [vmem:[#allocation8 + $0x808] sm:$0xff]  ;;  %v1731_v10 = vld [vmem:[#allocation8 + $0x970] sm:$0xff] }
 0x24d   :  { %1878 = vmatmul.mubr.f32.vlgmr.msra.gmra.mrb[8].mxu0 %v1413_v39  ;;  %2162 = vmatmul.mubr.f32.vlgmr.msra.gmra.mrb[8].mxu1 %v1413_v39  ;;  %v1614_v39 = vld [vmem:[#allocation8 + $0x5c8] sm:$0xff]  ;;  %v1589_v31 = vld [vmem:[#allocation8 + $0x500] sm:$0xff] }
 0x24e   :  { %7655 = vmatpush1.bf16.msra.mxu0 %v7654_v35  ;;  %7879 = vmatpush3.bf16.msra.mxu1 %v7878_v36  ;;  %v10235_v49 = vpop.f32.mrb[2].mxu0  ;;  %v1560_v35 = vld [vmem:[#allocation8 + $0x418] sm:$0xff]  ;;  %v1562_v36 = vld [vmem:[#allocation8 + $0x428] sm:$0xff]  ;;  %v7900_v45 = vpack.c.bf16 %v1614_v39, %v1611_v38  ;;  %v1635_v39 = vld [vmem:[#allocation8 + $0x670] sm:$0xff] }
 0x24f   :  { %v10237_v50 = vpop.f32.mrb[2].mxu1  ;;  %1948 = vmatprep.mubr.f32.mxu0 %v1416_v48  ;;  %2231 = vmatprep.mubr.f32.mxu1 %v1416_v48  ;;  %v10239_v55 = vpop.f32.mrb[3].mxu0  ;;  %v7898_v41 = vpack.c.bf16 %v1560_v35, %v1557_v19  ;;  %v1568_v48 = vld [vmem:[#allocation8 + $0x458] sm:$0xff]  ;;  %v7914_v19 = vpack.c.bf16 %v1632_v28, %v1629_v27  ;;  %v1585_v35 = vld [vmem:[#allocation8 + $0x4e0] sm:$0xff] }
 0x250   :  { %v10241_v56 = vpop.f32.mrb[3].mxu1  ;;  %7657 = vmatprep.subr.bf16.mxu0 %v7656_v43  ;;  %7881 = vmatprep.subr.bf16.mxu1 %v7880_v44  ;;  %v1564_v43 = vld [vmem:[#allocation8 + $0x438] sm:$0xff]  ;;  %v7676_v44 = vpack.c.bf16 %v1565_v37, %v1562_v36  ;;  %v10249_v18 = vadd.f32 %v10239_v55, %v10228_v21  ;;  %v1683_v55 = vld [vmem:[#allocation8 + $0x7f0] sm:$0xff] }
 0x251   :  { %v7678_v54 = vpack.c.bf16 %v1564_v43, %v1561_v42  ;;  %v1588_v36 = vld [vmem:[#allocation8 + $0x4f8] sm:$0xff]  ;;  %v7916_v38 = vpack.c.bf16 %v1686_v32, %v1683_v55  ;;  %v1595_v42 = vld [vmem:[#allocation8 + $0x530] sm:$0xff]  ;;  %v1689_v43 = vld [vmem:[#allocation8 + $0x820] sm:$0xff] }
 0x252   :  { %7659 = vmatpush1.bf16.msra.mxu0 %v7658_v51  ;;  %7883 = vmatpush3.bf16.msra.mxu1 %v7882_v52  ;;  %v1571_v51 = vld [vmem:[#allocation8 + $0x470] sm:$0xff]  ;;  %v1617_v52 = vld [vmem:[#allocation8 + $0x5e0] sm:$0xff] }
 0x253   :  { %7661 = vmatprep.subr.bf16.mxu0 %v7660_v57  ;;  %7885 = vmatprep.subr.bf16.mxu1 %v7884_v58  ;;  %v7902_v57 = vpack.c.bf16 %v1566_v47, %v1563_v46  ;;  %v1567_v58 = vld [vmem:[#allocation8 + $0x450] sm:$0xff]  ;;  %v7680_v60 = vpack.c.bf16 %v1571_v51, %v1568_v48  ;;  %v7904_v61 = vpack.c.bf16 %v1620_v53, %v1617_v52  ;;  %v1594_v48 = vld [vmem:[#allocation8 + $0x528] sm:$0xff]  ;;  %v1641_v53 = vld [vmem:[#allocation8 + $0x6a0] sm:$0xff] }
 0x254   :  { %v7682_v6 = vpack.c.bf16 %v1570_v59, %v1567_v58  ;;  %v1591_v47 = vld [vmem:[#allocation8 + $0x510] sm:$0xff]  ;;  %v1601_v58 = vld [vmem:[#allocation8 + $0x560] sm:$0xff] }
 0x255   :  { %v1695_v59 = vld [vmem:[#allocation8 + $0x850] sm:$0xff] }
 0x256   :  { %7663 = vmatpush1.bf16.msra.mxu0 %v7662_v1  ;;  %7887 = vmatpush3.bf16.msra.mxu1 %v7886_v4  ;;  %v1577_v1 = vld [vmem:[#allocation8 + $0x4a0] sm:$0xff]  ;;  %v1671_v4 = vld [vmem:[#allocation8 + $0x790] sm:$0xff] }
 0x257   :  { %7665 = vmatprep.subr.bf16.mxu0 %v7664_v8  ;;  %7889 = vmatprep.subr.bf16.mxu1 %v7888_v9  ;;  %v7906_v8 = vpack.c.bf16 %v1572_v63, %v1569_v62  ;;  %v1573_v9 = vld [vmem:[#allocation8 + $0x480] sm:$0xff]  ;;  %v7684_v11 = vpack.c.bf16 %v1577_v1, %v1574_v0  ;;  %v7908_v12 = vpack.c.bf16 %v1674_v5, %v1671_v4  ;;  %v1600_v0 = vld [vmem:[#allocation8 + $0x558] sm:$0xff]  ;;  %v1647_v5 = vld [vmem:[#allocation8 + $0x6d0] sm:$0xff] }
 0x258   :  { %v1597_v63 = vld [vmem:[#allocation8 + $0x540] sm:$0xff]  ;;  %v1659_v32 = vld [vmem:[#allocation8 + $0x730] sm:$0xff] }
 0x25a   :  { %7667 = vmatpush1.bf16.msra.mxu0 %v7666_v16  ;;  %7891 = vmatpush3.bf16.msra.mxu1 %v7890_v17  ;;  %v1580_v16 = vld [vmem:[#allocation8 + $0x4b8] sm:$0xff]  ;;  %v1583_v17 = vld [vmem:[#allocation8 + $0x4d0] sm:$0xff] }
 0x25b   :  { %7669 = vmatprep.subr.bf16.mxu0 %v7668_v22  ;;  %7893 = vmatprep.subr.bf16.mxu1 %v7892_v24  ;;  %v1680_v22 = vld [vmem:[#allocation8 + $0x7d8] sm:$0xff]  ;;  %v7686_v24 = vpack.c.bf16 %v1576_v13, %v1573_v9  ;;  %v7688_v2 = vpack.c.bf16 %v1583_v17, %v1580_v16  ;;  %v1607_v9 = vld [vmem:[#allocation8 + $0x590] sm:$0xff]  ;;  %v7702_v13 = vpack.c.bf16 %v1600_v0, %v1597_v63  ;;  %v1606_v16 = vld [vmem:[#allocation8 + $0x588] sm:$0xff] }
 0x25c   :  { %v7706_v27 = vpack.c.bf16 %v1606_v16, %v1603_v15  ;;  %v1628_v63 = vld [vmem:[#allocation8 + $0x638] sm:$0xff]  ;;  %v10263_v0 = vadd.f32 %v10241_v56, %v10228_v21  ;;  %v1634_v16 = vld [vmem:[#allocation8 + $0x668] sm:$0xff]  ;;  %v1637_v56 = vld [vmem:[#allocation8 + $0x680] sm:$0xff] }
 0x25d   :  { %v1728_v15 = vld [vmem:[#allocation8 + $0x958] sm:$0xff] }
 0x25e   :  { %7671 = vmatpush1.bf16.msra.mxu0 %v7670_v29  ;;  %7895 = vmatpush3.bf16.msra.mxu1 %v7894_v30  ;;  %v1586_v29 = vld [vmem:[#allocation8 + $0x4e8] sm:$0xff]  ;;  %v7912_v30 = vpack.c.bf16 %v1680_v22, %v1677_v20  ;;  %v1653_v22 = vld [vmem:[#allocation8 + $0x700] sm:$0xff] }
 0x25f   :  { %7673 = vmatprep.subr.bf16.mxu0 %v7672_v33  ;;  %7897 = vmatprep.subr.bf16.mxu1 %v7896_v34  ;;  %v1418_v33 = vmax.f32 %v10249_v18, 0.0  ;;  %v7690_v34 = vpack.c.bf16 %v1582_v26, %v1579_v25  ;;  %v7692_v37 = vpack.c.bf16 %v1589_v31, %v1586_v29  ;;  %v1613_v25 = vld [vmem:[#allocation8 + $0x5c0] sm:$0xff]  ;;  %v1707_v26 = vld [vmem:[#allocation8 + $0x8b0] sm:$0xff] }
 0x260   :  { %v1609_v29 = vld [vmem:[#allocation8 + $0x5a0] sm:$0xff] }
 0x262   :  { %7675 = vmatpush1.bf16.msra.mxu0 %v7674_v40  ;;  %7899 = vmatpush3.bf16.msra.mxu1 %v7898_v41  ;;  %v1638_v40 = vld [vmem:[#allocation8 + $0x688] sm:$0xff]  ;;  %v1592_v41 = vld [vmem:[#allocation8 + $0x518] sm:$0xff] }
 0x263   :  { %7677 = vmatprep.subr.bf16.mxu0 %v7676_v44  ;;  %7901 = vmatprep.subr.bf16.mxu1 %v7900_v45  ;;  %v1692_v44 = vld [vmem:[#allocation8 + $0x838] sm:$0xff]  ;;  %v7694_v45 = vpack.c.bf16 %v1588_v36, %v1585_v35  ;;  %v7918_v46 = vpack.c.bf16 %v1638_v40, %v1635_v39  ;;  %v7696_v51 = vpack.c.bf16 %v1595_v42, %v1592_v41  ;;  %v1619_v35 = vld [vmem:[#allocation8 + $0x5f0] sm:$0xff]  ;;  %v1713_v36 = vld [vmem:[#allocation8 + $0x8e0] sm:$0xff] }
 0x264   :  { %v7920_v52 = vpack.c.bf16 %v1692_v44, %v1689_v43  ;;  %v1615_v40 = vld [vmem:[#allocation8 + $0x5d0] sm:$0xff]  ;;  %v1618_v41 = vld [vmem:[#allocation8 + $0x5e8] sm:$0xff]  ;;  %v1665_v44 = vld [vmem:[#allocation8 + $0x760] sm:$0xff] }
 0x266   :  { %7679 = vmatpush1.bf16.msra.mxu0 %v7678_v54  ;;  %7903 = vmatpush3.bf16.msra.mxu1 %v7902_v57  ;;  %v1644_v54 = vld [vmem:[#allocation8 + $0x6b8] sm:$0xff]  ;;  %v1598_v57 = vld [vmem:[#allocation8 + $0x548] sm:$0xff] }
 0x267   :  { %7681 = vmatprep.subr.bf16.mxu0 %v7680_v60  ;;  %7905 = vmatprep.subr.bf16.mxu1 %v7904_v61  ;;  %v1698_v60 = vld [vmem:[#allocation8 + $0x868] sm:$0xff]  ;;  %v7698_v61 = vpack.c.bf16 %v1594_v48, %v1591_v47  ;;  %v7922_v62 = vpack.c.bf16 %v1644_v54, %v1641_v53  ;;  %v7700_v1 = vpack.c.bf16 %v1601_v58, %v1598_v57  ;;  %v1625_v47 = vld [vmem:[#allocation8 + $0x620] sm:$0xff]  ;;  %v1767_v48 = vld [vmem:[#allocation8 + $0xa90] sm:$0xff] }
 0x268   :  { %v7924_v4 = vpack.c.bf16 %v1698_v60, %v1695_v59  ;;  %v10259_v54 = vadd.f32 %v10235_v49, %v10228_v21  ;;  %v1621_v59 = vld [vmem:[#allocation8 + $0x600] sm:$0xff]  ;;  %v1624_v60 = vld [vmem:[#allocation8 + $0x618] sm:$0xff] }
 0x269   :  { %v7718_v49 = vpack.c.bf16 %v1624_v60, %v1621_v59  ;;  %v1655_v59 = vld [vmem:[#allocation8 + $0x710] sm:$0xff] }
 0x26a   :  { %7683 = vmatpush1.bf16.msra.mxu0 %v7682_v6  ;;  %7907 = vmatpush3.bf16.msra.mxu1 %v7906_v8  ;;  %v1650_v6 = vld [vmem:[#allocation8 + $0x6e8] sm:$0xff]  ;;  %v1604_v8 = vld [vmem:[#allocation8 + $0x578] sm:$0xff] }
 0x26b   :  { %7685 = vmatprep.subr.bf16.mxu0 %v7684_v11  ;;  %7909 = vmatprep.subr.bf16.mxu1 %v7908_v12  ;;  %v1701_v11 = vld [vmem:[#allocation8 + $0x880] sm:$0xff]  ;;  %v1704_v12 = vld [vmem:[#allocation8 + $0x898] sm:$0xff]  ;;  %v7926_v14 = vpack.c.bf16 %v1650_v6, %v1647_v5  ;;  %v7704_v17 = vpack.c.bf16 %v1607_v9, %v1604_v8  ;;  %v1417_v6 = vmax.f32 %v10259_v54, 0.0  ;;  %v1627_v9 = vld [vmem:[#allocation8 + $0x630] sm:$0xff] }
 0x26c   :  { %v7928_v20 = vpack.c.bf16 %v1704_v12, %v1701_v11  ;;  %v1776_v5 = vld [vmem:[#allocation8 + $0xad8] sm:$0xff]  ;;  %v1630_v11 = vld [vmem:[#allocation8 + $0x648] sm:$0xff]  ;;  %v1725_v12 = vld [vmem:[#allocation8 + $0x940] sm:$0xff] }
 0x26d   :  { %2232 = vmatmul.mubr.f32.vlgmr.msra.gmra.mrb[10].mxu1 %v1415_v7  ;;  %v1739_v54 = vld [vmem:[#allocation8 + $0x9b0] sm:$0xff] }
 0x26e   :  { %7687 = vmatpush1.bf16.msra.mxu0 %v7686_v24  ;;  %7911 = vmatpush3.bf16.msra.mxu1 %v7910_v23  ;;  %v1656_v24 = vld [vmem:[#allocation8 + $0x718] sm:$0xff]  ;;  %v1610_v23 = vld [vmem:[#allocation8 + $0x5a8] sm:$0xff] }
 0x26f   :  { %2301 = vmatprep.mubr.f32.mxu1 %v1418_v33  ;;  %7689 = vmatprep.subr.bf16.mxu0 %v7688_v2  ;;  %v1710_v2 = vld [vmem:[#allocation8 + $0x8c8] sm:$0xff]  ;;  %v7930_v28 = vpack.c.bf16 %v1656_v24, %v1653_v22  ;;  %v7708_v31 = vpack.c.bf16 %v1613_v25, %v1610_v23  ;;  %v7722_v24 = vpack.c.bf16 %v1630_v11, %v1627_v9  ;;  %v1651_v9 = vld [vmem:[#allocation8 + $0x6f0] sm:$0xff] }
 0x270   :  { %7913 = vmatprep.subr.bf16.mxu1 %v7912_v30  ;;  %v1612_v30 = vld [vmem:[#allocation8 + $0x5b8] sm:$0xff]  ;;  %v7932_v55 = vpack.c.bf16 %v1710_v2, %v1707_v26  ;;  %v1782_v22 = vld [vmem:[#allocation8 + $0xb08] sm:$0xff]  ;;  %v7946_v23 = vpack.c.bf16 %v1728_v15, %v1725_v12  ;;  %v7724_v25 = vpack.c.bf16 %v1637_v56, %v1634_v16  ;;  %v1633_v26 = vld [vmem:[#allocation8 + $0x660] sm:$0xff] }
 0x271   :  { %v1636_v2 = vld [vmem:[#allocation8 + $0x678] sm:$0xff]  ;;  %v1654_v11 = vld [vmem:[#allocation8 + $0x708] sm:$0xff]  ;;  %v1749_v12 = vld [vmem:[#allocation8 + $0xa00] sm:$0xff] }
 0x272   :  { %7691 = vmatpush1.bf16.msra.mxu0 %v7690_v34  ;;  %7915 = vmatpush3.bf16.msra.mxu1 %v7914_v19  ;;  %v1662_v34 = vld [vmem:[#allocation8 + $0x748] sm:$0xff]  ;;  %v1616_v19 = vld [vmem:[#allocation8 + $0x5d8] sm:$0xff]  ;;  %v1661_v16 = vld [vmem:[#allocation8 + $0x740] sm:$0xff] }
 0x273   :  { %7693 = vmatprep.subr.bf16.mxu0 %v7692_v37  ;;  %7917 = vmatprep.subr.bf16.mxu1 %v7916_v38  ;;  %v1716_v37 = vld [vmem:[#allocation8 + $0x8f8] sm:$0xff]  ;;  %v7710_v38 = vpack.c.bf16 %v1612_v30, %v1609_v29  ;;  %v7934_v39 = vpack.c.bf16 %v1662_v34, %v1659_v32  ;;  %v7712_v42 = vpack.c.bf16 %v1619_v35, %v1616_v19  ;;  %v1643_v29 = vld [vmem:[#allocation8 + $0x6b0] sm:$0xff]  ;;  %v1658_v15 = vld [vmem:[#allocation8 + $0x728] sm:$0xff] }
 0x274   :  { %v7936_v43 = vpack.c.bf16 %v1716_v37, %v1713_v36  ;;  %v7726_v34 = vpack.c.bf16 %v1636_v2, %v1633_v26  ;;  %v1639_v36 = vld [vmem:[#allocation8 + $0x690] sm:$0xff]  ;;  %v1642_v37 = vld [vmem:[#allocation8 + $0x6a8] sm:$0xff]  ;;  %v1660_v26 = vld [vmem:[#allocation8 + $0x738] sm:$0xff] }
 0x275   :  { %v1803_v56 = vld [vmem:[#allocation8 + $0xbb0] sm:$0xff] }
 0x276   :  { %7695 = vmatpush1.bf16.msra.mxu0 %v7694_v45  ;;  %7919 = vmatpush3.bf16.msra.mxu1 %v7918_v46  ;;  %v1668_v45 = vld [vmem:[#allocation8 + $0x778] sm:$0xff]  ;;  %v1622_v46 = vld [vmem:[#allocation8 + $0x608] sm:$0xff]  ;;  %v1755_v2 = vld [vmem:[#allocation8 + $0xa30] sm:$0xff] }
 0x277   :  { %7697 = vmatprep.subr.bf16.mxu0 %v7696_v51  ;;  %7921 = vmatprep.subr.bf16.mxu1 %v7920_v52  ;;  %v1770_v51 = vld [vmem:[#allocation8 + $0xaa8] sm:$0xff]  ;;  %v7714_v52 = vpack.c.bf16 %v1618_v41, %v1615_v40  ;;  %v7938_v53 = vpack.c.bf16 %v1668_v45, %v1665_v44  ;;  %v7716_v57 = vpack.c.bf16 %v1625_v47, %v1622_v46  ;;  %v1740_v40 = vld [vmem:[#allocation8 + $0x9b8] sm:$0xff] }
 0x278   :  { %v7940_v58 = vpack.c.bf16 %v1770_v51, %v1767_v48  ;;  %v1646_v41 = vld [vmem:[#allocation8 + $0x6c8] sm:$0xff]  ;;  %v7730_v45 = vpack.c.bf16 %v1642_v37, %v1639_v36  ;;  %v1645_v48 = vld [vmem:[#allocation8 + $0x6c0] sm:$0xff]  ;;  %v1648_v51 = vld [vmem:[#allocation8 + $0x6d8] sm:$0xff] }
 0x279   :  { %v1794_v44 = vld [vmem:[#allocation8 + $0xb68] sm:$0xff]  ;;  %v1761_v37 = vld [vmem:[#allocation8 + $0xa60] sm:$0xff] }
 0x27a   :  { %7699 = vmatpush1.bf16.msra.mxu0 %v7698_v61  ;;  %7923 = vmatpush3.bf16.msra.mxu1 %v7922_v62  ;;  %v1719_v61 = vld [vmem:[#allocation8 + $0x910] sm:$0xff]  ;;  %v1722_v62 = vld [vmem:[#allocation8 + $0x928] sm:$0xff] }
 0x27b   :  { %7701 = vmatprep.subr.bf16.mxu0 %v7700_v1  ;;  %7925 = vmatprep.subr.bf16.mxu1 %v7924_v4  ;;  %v1631_v1 = vld [vmem:[#allocation8 + $0x650] sm:$0xff]  ;;  %v1773_v4 = vld [vmem:[#allocation8 + $0xac0] sm:$0xff]  ;;  %v7942_v8 = vpack.c.bf16 %v1722_v62, %v1719_v61  ;;  %v1666_v36 = vld [vmem:[#allocation8 + $0x768] sm:$0xff] }
 0x27c   :  { %v1797_v62 = vld [vmem:[#allocation8 + $0xb80] sm:$0xff] }
 0x27e   :  { %7703 = vmatpush1.bf16.msra.mxu0 %v7702_v13  ;;  %7927 = vmatpush3.bf16.msra.mxu1 %v7926_v14  ;;  %v7720_v13 = vpack.c.bf16 %v1631_v1, %v1628_v63  ;;  %v7944_v14 = vpack.c.bf16 %v1776_v5, %v1773_v4  ;;  %v1800_v63 = vld [vmem:[#allocation8 + $0xb98] sm:$0xff]  ;;  %v7734_v5 = vpack.c.bf16 %v1648_v51, %v1645_v48 }
 0x27f   :  { %7705 = vmatprep.subr.bf16.mxu0 %v7704_v17  ;;  %7929 = vmatprep.subr.bf16.mxu1 %v7928_v20  ;;  %v1420_v17 = vmax.f32 %v10263_v0, 0.0  ;;  %v1779_v20 = vld [vmem:[#allocation8 + $0xaf0] sm:$0xff]  ;;  %v1672_v48 = vld [vmem:[#allocation8 + $0x798] sm:$0xff]  ;;  %v10293_v51 = vadd.f32 %v10237_v50, %v10228_v21  ;;  %v1678_v50 = vld [vmem:[#allocation8 + $0x7c8] sm:$0xff] }
 0x282   :  { %7707 = vmatpush1.bf16.msra.mxu0 %v7706_v27  ;;  %7931 = vmatpush3.bf16.msra.mxu1 %v7930_v28  ;;  %v1734_v27 = vld [vmem:[#allocation8 + $0x988] sm:$0xff]  ;;  %v1640_v28 = vld [vmem:[#allocation8 + $0x698] sm:$0xff] }
 0x283   :  { %7709 = vmatprep.subr.bf16.mxu0 %v7708_v31  ;;  %7933 = vmatprep.subr.bf16.mxu1 %v7932_v55  ;;  %v1788_v31 = vld [vmem:[#allocation8 + $0xb38] sm:$0xff]  ;;  %v7950_v19 = vpack.c.bf16 %v1734_v27, %v1731_v10  ;;  %v7728_v35 = vpack.c.bf16 %v1643_v29, %v1640_v28  ;;  %v1667_v28 = vld [vmem:[#allocation8 + $0x770] sm:$0xff]  ;;  %v1809_v29 = vld [vmem:[#allocation8 + $0xbe0] sm:$0xff] }
 0x284   :  { %v1664_v27 = vld [vmem:[#allocation8 + $0x758] sm:$0xff] }
 0x286   :  { %7711 = vmatpush1.bf16.msra.mxu0 %v7710_v38  ;;  %7935 = vmatpush3.bf16.msra.mxu1 %v7934_v39  ;;  %v1737_v38 = vld [vmem:[#allocation8 + $0x9a0] sm:$0xff] }
 0x287   :  { %7713 = vmatprep.subr.bf16.mxu0 %v7712_v42  ;;  %7937 = vmatprep.subr.bf16.mxu1 %v7936_v43  ;;  %v1649_v42 = vld [vmem:[#allocation8 + $0x6e0] sm:$0xff]  ;;  %v1791_v43 = vld [vmem:[#allocation8 + $0xb50] sm:$0xff]  ;;  %v7954_v46 = vpack.c.bf16 %v1740_v40, %v1737_v38  ;;  %v1670_v40 = vld [vmem:[#allocation8 + $0x788] sm:$0xff] }
 0x288   :  { %v7732_v47 = vpack.c.bf16 %v1649_v42, %v1646_v41  ;;  %v1673_v41 = vld [vmem:[#allocation8 + $0x7a0] sm:$0xff]  ;;  %v2681_v42 = vld [vmem:[#allocation8 + $0x8] sm:$0xff] }
 0x28a   :  { %7715 = vmatpush1.bf16.msra.mxu0 %v7714_v52  ;;  %7939 = vmatpush3.bf16.msra.mxu1 %v7938_v53  ;;  %v1743_v52 = vld [vmem:[#allocation8 + $0x9d0] sm:$0xff]  ;;  %v7956_v53 = vpack.c.bf16 %v1794_v44, %v1791_v43  ;;  %v2684_v43 = vld [vmem:[#allocation8 + $0x20] sm:$0xff] }
 0x28b   :  { %7717 = vmatprep.subr.bf16.mxu0 %v7716_v57  ;;  %7941 = vmatprep.subr.bf16.mxu1 %v7940_v58  ;;  %v1746_v57 = vld [vmem:[#allocation8 + $0x9e8] sm:$0xff]  ;;  %v1652_v58 = vld [vmem:[#allocation8 + $0x6f8] sm:$0xff] }
 0x28d   :  { %1949 = vmatmul.mubr.f32.vlgmr.msra.gmra.mrb[8].mxu0 %v1415_v7  ;;  %2302 = vmatmul.mubr.f32.vlgmr.msra.gmra.mrb[12].mxu1 %v1417_v6  ;;  %v7948_v7 = vpack.c.bf16 %v1782_v22, %v1779_v20  ;;  %v1806_v20 = vld [vmem:[#allocation8 + $0xbc8] sm:$0xff]  ;;  %v7738_v22 = vpack.c.bf16 %v1654_v11, %v1651_v9  ;;  %v1675_v9 = vld [vmem:[#allocation8 + $0x7b0] sm:$0xff] }
 0x28e   :  { %7719 = vmatpush1.bf16.msra.mxu0 %v7718_v49  ;;  %2019 = vmatprep.mubr.f32.mxu0 %v1418_v33  ;;  %v1785_v33 = vld [vmem:[#allocation8 + $0xb20] sm:$0xff]  ;;  %v7958_v49 = vpack.c.bf16 %v1746_v57, %v1743_v52  ;;  %v7964_v10 = vpack.c.bf16 %v1806_v20, %v1803_v56  ;;  %v7972_v52 = vpack.c.bf16 %v2684_v43, %v2681_v42  ;;  %v2683_v57 = vld [vmem:[#allocation8 + $0x18] sm:$0xff]  ;;  %v2686_v11 = vld [vmem:[#allocation8 + $0x30] sm:$0xff] }
 0x28f   :  { %7943 = vmatpush3.bf16.msra.mxu1 %v7942_v8  ;;  %2371 = vmatprep.mubr.f32.mxu1 %v1420_v17  ;;  %v7952_v39 = vpack.c.bf16 %v1788_v31, %v1785_v33  ;;  %v7736_v8 = vpack.c.bf16 %v1655_v59, %v1652_v58  ;;  %v1812_v33 = vld [vmem:[#allocation8 + $0xbf8] sm:$0xff]  ;;  %v2693_v20 = vld [vmem:[#allocation8 + $0x68] sm:$0xff]  ;;  %v1697_v42 = vld [vmem:[#allocation8 + $0x860] sm:$0xff] }
 0x290   :  { %7721 = vmatprep.subr.bf16.mxu0 %v7720_v13  ;;  %7945 = vmatprep.subr.bf16.mxu1 %v7944_v14  ;;  %v7960_v13 = vpack.c.bf16 %v1800_v63, %v1797_v62  ;;  %v1752_v14 = vld [vmem:[#allocation8 + $0xa18] sm:$0xff]  ;;  %v7968_v38 = vpack.c.bf16 %v1812_v33, %v1809_v29  ;;  %v1679_v62 = vld [vmem:[#allocation8 + $0x7d0] sm:$0xff]  ;;  %v2705_v43 = vld [vmem:[#allocation8 + $0xc8] sm:$0xff] }
 0x291   :  { %v10275_v30 = vpop.f32.mrb[4].mxu0  ;;  %v10277_v18 = vpop.f32.mrb[4].mxu1  ;;  %v1676_v58 = vld [vmem:[#allocation8 + $0x7b8] sm:$0xff]  ;;  %v1691_v29 = vld [vmem:[#allocation8 + $0x830] sm:$0xff] }
 0x292   :  { %7723 = vmatpush1.bf16.msra.mxu0 %v7722_v24  ;;  %v10279_v55 = vpop.f32.mrb[5].mxu0  ;;  %v10281_v32 = vpop.f32.mrb[5].mxu1  ;;  %v7962_v24 = vpack.c.bf16 %v1752_v14, %v1749_v12  ;;  %v2687_v63 = vld [vmem:[#allocation8 + $0x38] sm:$0xff]  ;;  %v1419_v12 = vmax.f32 %v10293_v51, 0.0 }
 0x293   :  { %7947 = vmatpush3.bf16.msra.mxu1 %v7946_v23  ;;  %7725 = vmatprep.subr.bf16.mxu0 %v7724_v25  ;;  %v7740_v23 = vpack.c.bf16 %v1661_v16, %v1658_v15  ;;  %v1657_v25 = vld [vmem:[#allocation8 + $0x720] sm:$0xff]  ;;  %v10297_v59 = vadd.f32 %v10279_v55, %v10228_v21  ;;  %v2689_v15 = vld [vmem:[#allocation8 + $0x48] sm:$0xff]  ;;  %v2699_v33 = vld [vmem:[#allocation8 + $0x98] sm:$0xff] }
 0x294   :  { %7949 = vmatprep.subr.bf16.mxu1 %v7948_v7  ;;  %v1758_v7 = vld [vmem:[#allocation8 + $0xa48] sm:$0xff]  ;;  %v7742_v31 = vpack.c.bf16 %v1660_v26, %v1657_v25  ;;  %v1685_v55 = vld [vmem:[#allocation8 + $0x800] sm:$0xff]  ;;  %v2751_v51 = vld [vmem:[#allocation8 + $0x238] sm:$0xff] }
 0x295   :  { %v1682_v16 = vld [vmem:[#allocation8 + $0x7e8] sm:$0xff]  ;;  %v1422_v56 = vmax.f32 %v10297_v59, 0.0  ;;  %v1681_v26 = vld [vmem:[#allocation8 + $0x7e0] sm:$0xff] }
 0x296   :  { %7727 = vmatpush1.bf16.msra.mxu0 %v7726_v34  ;;  %v7966_v34 = vpack.c.bf16 %v1758_v7, %v1755_v2  ;;  %v7756_v25 = vpack.c.bf16 %v1685_v55, %v1682_v16  ;;  %v1684_v2 = vld [vmem:[#allocation8 + $0x7f8] sm:$0xff]  ;;  %v2713_v16 = vld [vmem:[#allocation8 + $0x108] sm:$0xff] }
 0x297   :  { %7951 = vmatpush3.bf16.msra.mxu1 %v7950_v19  ;;  %7729 = vmatprep.subr.bf16.mxu0 %v7728_v35  ;;  %v7744_v19 = vpack.c.bf16 %v1667_v28, %v1664_v27  ;;  %v1663_v35 = vld [vmem:[#allocation8 + $0x750] sm:$0xff]  ;;  %v2695_v27 = vld [vmem:[#allocation8 + $0x78] sm:$0xff]  ;;  %v1706_v55 = vld [vmem:[#allocation8 + $0x8a8] sm:$0xff] }
 0x298   :  { %7953 = vmatprep.subr.bf16.mxu1 %v7952_v39  ;;  %v1764_v39 = vld [vmem:[#allocation8 + $0xa78] sm:$0xff]  ;;  %v7746_v44 = vpack.c.bf16 %v1666_v36, %v1663_v35  ;;  %v1687_v36 = vld [vmem:[#allocation8 + $0x810] sm:$0xff] }
 0x299   :  { %v10283_v60 = vpop.f32.mrb[6].mxu0  ;;  %v10285_v61 = vpop.f32.mrb[6].mxu1  ;;  %v1688_v28 = vld [vmem:[#allocation8 + $0x818] sm:$0xff] }
 0x29a   :  { %7731 = vmatpush1.bf16.msra.mxu0 %v7730_v45  ;;  %v10287_v1 = vpop.f32.mrb[7].mxu0  ;;  %v10289_v4 = vpop.f32.mrb[7].mxu1  ;;  %v7970_v45 = vpack.c.bf16 %v1764_v39, %v1761_v37  ;;  %v7760_v35 = vpack.c.bf16 %v1691_v29, %v1688_v28  ;;  %v1690_v37 = vld [vmem:[#allocation8 + $0x828] sm:$0xff]  ;;  %v2719_v28 = vld [vmem:[#allocation8 + $0x138] sm:$0xff] }
 0x29b   :  { %7955 = vmatpush3.bf16.msra.mxu1 %v7954_v46  ;;  %7733 = vmatprep.subr.bf16.mxu0 %v7732_v47  ;;  %v7748_v46 = vpack.c.bf16 %v1673_v41, %v1670_v40  ;;  %v1669_v47 = vld [vmem:[#allocation8 + $0x780] sm:$0xff]  ;;  %v2701_v40 = vld [vmem:[#allocation8 + $0xa8] sm:$0xff]  ;;  %v1712_v29 = vld [vmem:[#allocation8 + $0x8d8] sm:$0xff] }
 0x29c   :  { %7957 = vmatprep.subr.bf16.mxu1 %v7956_v53  ;;  %v2680_v53 = vld [vmem:[#allocation8] sm:$0xff]  ;;  %v1694_v41 = vld [vmem:[#allocation8 + $0x848] sm:$0xff] }
 0x29e   :  { %7735 = vmatpush1.bf16.msra.mxu0 %v7734_v5  ;;  %v2690_v5 = vld [vmem:[#allocation8 + $0x50] sm:$0xff] }
 0x29f   :  { %7959 = vmatpush3.bf16.msra.mxu1 %v7958_v49  ;;  %7737 = vmatprep.subr.bf16.mxu0 %v7736_v8  ;;  %v7750_v49 = vpack.c.bf16 %v1672_v48, %v1669_v47  ;;  %v7974_v8 = vpack.c.bf16 %v2683_v57, %v2680_v53  ;;  %v7976_v14 = vpack.c.bf16 %v2690_v5, %v2687_v63  ;;  %v1693_v48 = vld [vmem:[#allocation8 + $0x840] sm:$0xff]  ;;  %v1703_v63 = vld [vmem:[#allocation8 + $0x890] sm:$0xff]  ;;  %v2711_v5 = vld [vmem:[#allocation8 + $0xf8] sm:$0xff] }
 0x2a0   :  { %7961 = vmatprep.subr.bf16.mxu1 %v7960_v13  ;;  %v7752_v13 = vpack.c.bf16 %v1679_v62, %v1676_v58  ;;  %v7764_v47 = vpack.c.bf16 %v1697_v42, %v1694_v41  ;;  %v2704_v53 = vld [vmem:[#allocation8 + $0xc0] sm:$0xff]  ;;  %v2707_v58 = vld [vmem:[#allocation8 + $0xd8] sm:$0xff]  ;;  %v2725_v41 = vld [vmem:[#allocation8 + $0x168] sm:$0xff] }
 0x2a1   :  { %v1700_v62 = vld [vmem:[#allocation8 + $0x878] sm:$0xff]  ;;  %v1718_v42 = vld [vmem:[#allocation8 + $0x908] sm:$0xff] }
 0x2a2   :  { %7739 = vmatpush1.bf16.msra.mxu0 %v7738_v22  ;;  %v2696_v22 = vld [vmem:[#allocation8 + $0x80] sm:$0xff] }
 0x2a3   :  { %7963 = vmatpush3.bf16.msra.mxu1 %v7962_v24  ;;  %7741 = vmatprep.subr.bf16.mxu0 %v7740_v23  ;;  %v7754_v24 = vpack.c.bf16 %v1678_v50, %v1675_v9  ;;  %v7978_v23 = vpack.c.bf16 %v2689_v15, %v2686_v11  ;;  %v7980_v7 = vpack.c.bf16 %v2696_v22, %v2693_v20  ;;  %v1699_v11 = vld [vmem:[#allocation8 + $0x870] sm:$0xff]  ;;  %v1709_v20 = vld [vmem:[#allocation8 + $0x8c0] sm:$0xff]  ;;  %v2717_v22 = vld [vmem:[#allocation8 + $0x128] sm:$0xff] }
 0x2a4   :  { %7965 = vmatprep.subr.bf16.mxu1 %v7964_v10  ;;  %v2692_v10 = vld [vmem:[#allocation8 + $0x60] sm:$0xff]  ;;  %v7990_v9 = vpack.c.bf16 %v2707_v58, %v2704_v53  ;;  %v7768_v50 = vpack.c.bf16 %v1703_v63, %v1700_v62  ;;  %v1720_v53 = vld [vmem:[#allocation8 + $0x918] sm:$0xff] }
 0x2a5   :  { %v2731_v62 = vld [vmem:[#allocation8 + $0x198] sm:$0xff] }
 0x2a6   :  { %7743 = vmatpush1.bf16.msra.mxu0 %v7742_v31  ;;  %v2702_v31 = vld [vmem:[#allocation8 + $0xb0] sm:$0xff]  ;;  %v1724_v63 = vld [vmem:[#allocation8 + $0x938] sm:$0xff] }
 0x2a7   :  { %7967 = vmatpush3.bf16.msra.mxu1 %v7966_v34  ;;  %7745 = vmatprep.subr.bf16.mxu0 %v7744_v19  ;;  %v7758_v34 = vpack.c.bf16 %v1684_v2, %v1681_v26  ;;  %v7982_v19 = vpack.c.bf16 %v2695_v27, %v2692_v10  ;;  %v7984_v39 = vpack.c.bf16 %v2702_v31, %v2699_v33  ;;  %v1705_v2 = vld [vmem:[#allocation8 + $0x8a0] sm:$0xff]  ;;  %v1708_v10 = vld [vmem:[#allocation8 + $0x8b8] sm:$0xff]  ;;  %v1715_v33 = vld [vmem:[#allocation8 + $0x8f0] sm:$0xff] }
 0x2a8   :  { %7969 = vmatprep.subr.bf16.mxu1 %v7968_v38  ;;  %v2698_v38 = vld [vmem:[#allocation8 + $0x90] sm:$0xff]  ;;  %v7772_v26 = vpack.c.bf16 %v1709_v20, %v1706_v55  ;;  %v2723_v31 = vld [vmem:[#allocation8 + $0x158] sm:$0xff]  ;;  %v2737_v55 = vld [vmem:[#allocation8 + $0x1c8] sm:$0xff] }
 0x2a9   :  { %v1730_v20 = vld [vmem:[#allocation8 + $0x968] sm:$0xff] }
 0x2aa   :  { %7747 = vmatpush1.bf16.msra.mxu0 %v7746_v44  ;;  %v2708_v44 = vld [vmem:[#allocation8 + $0xe0] sm:$0xff] }
 0x2ab   :  { %7971 = vmatpush3.bf16.msra.mxu1 %v7970_v45  ;;  %7749 = vmatprep.subr.bf16.mxu0 %v7748_v46  ;;  %v7762_v45 = vpack.c.bf16 %v1690_v37, %v1687_v36  ;;  %v7986_v46 = vpack.c.bf16 %v2701_v40, %v2698_v38  ;;  %v7988_v57 = vpack.c.bf16 %v2708_v44, %v2705_v43  ;;  %v1711_v37 = vld [vmem:[#allocation8 + $0x8d0] sm:$0xff]  ;;  %v1714_v38 = vld [vmem:[#allocation8 + $0x8e8] sm:$0xff]  ;;  %v1721_v43 = vld [vmem:[#allocation8 + $0x920] sm:$0xff] }
 0x2ac   :  { %7973 = vmatprep.subr.bf16.mxu1 %v7972_v52  ;;  %v1696_v52 = vld [vmem:[#allocation8 + $0x858] sm:$0xff]  ;;  %v7776_v36 = vpack.c.bf16 %v1715_v33, %v1712_v29  ;;  %v2729_v44 = vld [vmem:[#allocation8 + $0x188] sm:$0xff] }
 0x2ad   :  { %v2743_v29 = vld [vmem:[#allocation8 + $0x1f8] sm:$0xff] }
 0x2ae   :  { %2372 = vmatmul.mubr.f32.vlgmr.msra.gmra.mrb[14].mxu1 %v1419_v12  ;;  %7751 = vmatpush1.bf16.msra.mxu0 %v7750_v49  ;;  %v2714_v49 = vld [vmem:[#allocation8 + $0x110] sm:$0xff]  ;;  %v1736_v33 = vld [vmem:[#allocation8 + $0x998] sm:$0xff] }
 0x2af   :  { %7975 = vmatpush1.bf16.msra.mxu1 %v7974_v8  ;;  %3128 = vmatprep.mubr.f32.mxu1 %v1422_v56  ;;  %v7766_v8 = vpack.c.bf16 %v1696_v52, %v1693_v48  ;;  %v7992_v15 = vpack.c.bf16 %v2714_v49, %v2711_v5  ;;  %v7780_v48 = vpack.c.bf16 %v1721_v43, %v1718_v42  ;;  %v1717_v52 = vld [vmem:[#allocation8 + $0x900] sm:$0xff]  ;;  %v1727_v5 = vld [vmem:[#allocation8 + $0x950] sm:$0xff]  ;;  %v2735_v49 = vld [vmem:[#allocation8 + $0x1b8] sm:$0xff] }
 0x2b0   :  { %7753 = vmatprep.subr.bf16.mxu0 %v7752_v13  ;;  %7977 = vmatprep.subr.bf16.mxu1 %v7976_v14  ;;  %v1702_v13 = vld [vmem:[#allocation8 + $0x888] sm:$0xff]  ;;  %v2710_v14 = vld [vmem:[#allocation8 + $0xf0] sm:$0xff]  ;;  %v2756_v42 = vld [vmem:[#allocation8 + $0x260] sm:$0xff] }
 0x2b2   :  { %7755 = vmatpush1.bf16.msra.mxu0 %v7754_v24  ;;  %v2720_v24 = vld [vmem:[#allocation8 + $0x140] sm:$0xff] }
 0x2b3   :  { %7979 = vmatpush1.bf16.msra.mxu1 %v7978_v23  ;;  %7757 = vmatprep.subr.bf16.mxu0 %v7756_v25  ;;  %v7770_v23 = vpack.c.bf16 %v1702_v13, %v1699_v11  ;;  %v7994_v25 = vpack.c.bf16 %v2713_v16, %v2710_v14  ;;  %v7996_v27 = vpack.c.bf16 %v2720_v24, %v2717_v22  ;;  %v1723_v13 = vld [vmem:[#allocation8 + $0x930] sm:$0xff]  ;;  %v1726_v14 = vld [vmem:[#allocation8 + $0x948] sm:$0xff]  ;;  %v1733_v22 = vld [vmem:[#allocation8 + $0x980] sm:$0xff] }
 0x2b4   :  { %7981 = vmatprep.subr.bf16.mxu1 %v7980_v7  ;;  %v2716_v7 = vld [vmem:[#allocation8 + $0x120] sm:$0xff]  ;;  %v7784_v11 = vpack.c.bf16 %v1727_v5, %v1724_v63  ;;  %v2741_v24 = vld [vmem:[#allocation8 + $0x1e8] sm:$0xff]  ;;  %v2762_v63 = vld [vmem:[#allocation8 + $0x290] sm:$0xff] }
 0x2b6   :  { %7759 = vmatpush1.bf16.msra.mxu0 %v7758_v34  ;;  %v2726_v34 = vld [vmem:[#allocation8 + $0x170] sm:$0xff] }
 0x2b7   :  { %7983 = vmatpush1.bf16.msra.mxu1 %v7982_v19  ;;  %7761 = vmatprep.subr.bf16.mxu0 %v7760_v35  ;;  %v7774_v19 = vpack.c.bf16 %v1708_v10, %v1705_v2  ;;  %v7998_v35 = vpack.c.bf16 %v2719_v28, %v2716_v7  ;;  %v8000_v40 = vpack.c.bf16 %v2726_v34, %v2723_v31  ;;  %v1729_v10 = vld [vmem:[#allocation8 + $0x960] sm:$0xff]  ;;  %v1732_v7 = vld [vmem:[#allocation8 + $0x978] sm:$0xff]  ;;  %v2750_v31 = vld [vmem:[#allocation8 + $0x230] sm:$0xff] }
 0x2b8   :  { %7985 = vmatprep.subr.bf16.mxu1 %v7984_v39  ;;  %v2722_v39 = vld [vmem:[#allocation8 + $0x150] sm:$0xff]  ;;  %v7788_v2 = vpack.c.bf16 %v1733_v22, %v1730_v20  ;;  %v7790_v34 = vpack.c.bf16 %v1732_v7, %v1729_v10  ;;  %v2768_v20 = vld [vmem:[#allocation8 + $0x2c0] sm:$0xff]  ;;  %v2767_v7 = vld [vmem:[#allocation8 + $0x2b8] sm:$0xff] }
 0x2ba   :  { %7763 = vmatpush1.bf16.msra.mxu0 %v7762_v45  ;;  %v2732_v45 = vld [vmem:[#allocation8 + $0x1a0] sm:$0xff] }
 0x2bb   :  { %7987 = vmatpush1.bf16.msra.mxu1 %v7986_v46  ;;  %7765 = vmatprep.subr.bf16.mxu0 %v7764_v47  ;;  %v7778_v46 = vpack.c.bf16 %v1714_v38, %v1711_v37  ;;  %v8002_v47 = vpack.c.bf16 %v2725_v41, %v2722_v39  ;;  %v8004_v58 = vpack.c.bf16 %v2732_v45, %v2729_v44  ;;  %v2749_v38 = vld [vmem:[#allocation8 + $0x228] sm:$0xff] }
 0x2bc   :  { %7989 = vmatprep.subr.bf16.mxu1 %v7988_v57  ;;  %v2728_v57 = vld [vmem:[#allocation8 + $0x180] sm:$0xff]  ;;  %v1742_v39 = vld [vmem:[#allocation8 + $0x9c8] sm:$0xff] }
 0x2bd   :  { %v2753_v41 = vld [vmem:[#allocation8 + $0x248] sm:$0xff] }
 0x2be   :  { %7767 = vmatpush1.bf16.msra.mxu0 %v7766_v8  ;;  %v2738_v8 = vld [vmem:[#allocation8 + $0x1d0] sm:$0xff] }
 0x2bf   :  { %7991 = vmatpush1.bf16.msra.mxu1 %v7990_v9  ;;  %7769 = vmatprep.subr.bf16.mxu0 %v7768_v50  ;;  %v7782_v9 = vpack.c.bf16 %v1720_v53, %v1717_v52  ;;  %v8006_v50 = vpack.c.bf16 %v2731_v62, %v2728_v57  ;;  %v8008_v16 = vpack.c.bf16 %v2738_v8, %v2735_v49  ;;  %v2755_v53 = vld [vmem:[#allocation8 + $0x258] sm:$0xff] }
 0x2c0   :  { %7993 = vmatprep.subr.bf16.mxu1 %v7992_v15  ;;  %v2734_v15 = vld [vmem:[#allocation8 + $0x1b0] sm:$0xff]  ;;  %v8020_v52 = vpack.c.bf16 %v2756_v42, %v2753_v41  ;;  %v1748_v57 = vld [vmem:[#allocation8 + $0x9f8] sm:$0xff] }
 0x2c1   :  { %v2759_v62 = vld [vmem:[#allocation8 + $0x278] sm:$0xff] }
 0x2c2   :  { %7771 = vmatpush1.bf16.msra.mxu0 %v7770_v23  ;;  %v2744_v23 = vld [vmem:[#allocation8 + $0x200] sm:$0xff] }
 0x2c3   :  { %7995 = vmatpush1.bf16.msra.mxu1 %v7994_v25  ;;  %7773 = vmatprep.subr.bf16.mxu0 %v7772_v26  ;;  %v7786_v25 = vpack.c.bf16 %v1726_v14, %v1723_v13  ;;  %v8010_v26 = vpack.c.bf16 %v2737_v55, %v2734_v15  ;;  %v8012_v28 = vpack.c.bf16 %v2744_v23, %v2741_v24  ;;  %v2761_v14 = vld [vmem:[#allocation8 + $0x288] sm:$0xff] }
 0x2c4   :  { %7997 = vmatprep.subr.bf16.mxu1 %v7996_v27  ;;  %v2740_v27 = vld [vmem:[#allocation8 + $0x1e0] sm:$0xff]  ;;  %v8024_v13 = vpack.c.bf16 %v2762_v63, %v2759_v62  ;;  %v1754_v15 = vld [vmem:[#allocation8 + $0xa28] sm:$0xff]  ;;  %v2786_v62 = vld [vmem:[#allocation8 + $0x350] sm:$0xff] }
 0x2c5   :  { %v8014_v0 = vpack.c.bf16 %v2743_v29, %v2740_v27  ;;  %v2765_v55 = vld [vmem:[#allocation8 + $0x2a8] sm:$0xff]  ;;  %v1760_v27 = vld [vmem:[#allocation8 + $0xa58] sm:$0xff] }
 0x2c6   :  { %7775 = vmatpush1.bf16.msra.mxu0 %v7774_v19  ;;  %v1735_v19 = vld [vmem:[#allocation8 + $0x990] sm:$0xff]  ;;  %v8028_v10 = vpack.c.bf16 %v2768_v20, %v2765_v55  ;;  %v2771_v29 = vld [vmem:[#allocation8 + $0x2d8] sm:$0xff]  ;;  %v2792_v55 = vld [vmem:[#allocation8 + $0x380] sm:$0xff] }
 0x2c7   :  { %7999 = vmatpush1.bf16.msra.mxu1 %v7998_v35  ;;  %7777 = vmatprep.subr.bf16.mxu0 %v7776_v36  ;;  %v1738_v35 = vld [vmem:[#allocation8 + $0x9a8] sm:$0xff]  ;;  %v2746_v36 = vld [vmem:[#allocation8 + $0x210] sm:$0xff] }
 0x2c8   :  { %8001 = vmatprep.subr.bf16.mxu1 %v8000_v40  ;;  %v1745_v40 = vld [vmem:[#allocation8 + $0x9e0] sm:$0xff]  ;;  %v7794_v43 = vpack.c.bf16 %v1738_v35, %v1735_v19  ;;  %v8018_v44 = vpack.c.bf16 %v2749_v38, %v2746_v36  ;;  %v2773_v35 = vld [vmem:[#allocation8 + $0x2e8] sm:$0xff] }
 0x2c9   :  { %v7796_v45 = vpack.c.bf16 %v1745_v40, %v1742_v39  ;;  %v1766_v36 = vld [vmem:[#allocation8 + $0xa88] sm:$0xff]  ;;  %v2780_v39 = vld [vmem:[#allocation8 + $0x320] sm:$0xff] }
 0x2ca   :  { %7779 = vmatpush1.bf16.msra.mxu0 %v7778_v46  ;;  %v1741_v46 = vld [vmem:[#allocation8 + $0x9c0] sm:$0xff]  ;;  %v2777_v38 = vld [vmem:[#allocation8 + $0x308] sm:$0xff] }
 0x2cb   :  { %8003 = vmatpush1.bf16.msra.mxu1 %v8002_v47  ;;  %7781 = vmatprep.subr.bf16.mxu0 %v7780_v48  ;;  %v1744_v47 = vld [vmem:[#allocation8 + $0x9d8] sm:$0xff]  ;;  %v2752_v48 = vld [vmem:[#allocation8 + $0x240] sm:$0xff] }
 0x2cc   :  { %8005 = vmatprep.subr.bf16.mxu1 %v8004_v58  ;;  %v1751_v58 = vld [vmem:[#allocation8 + $0xa10] sm:$0xff]  ;;  %v7798_v5 = vpack.c.bf16 %v1744_v47, %v1741_v46  ;;  %v8022_v49 = vpack.c.bf16 %v2755_v53, %v2752_v48  ;;  %v8036_v46 = vpack.c.bf16 %v2780_v39, %v2777_v38  ;;  %v2776_v47 = vld [vmem:[#allocation8 + $0x300] sm:$0xff]  ;;  %v2779_v48 = vld [vmem:[#allocation8 + $0x318] sm:$0xff]  ;;  %v10315_v53 = vadd.f32 %v10281_v32, %v10228_v21 }
 0x2cd   :  { %2020 = vmatmul.mubr.f32.vlgmr.msra.gmra.mrb[8].mxu0 %v1417_v6  ;;  %v2747_v6 = vld [vmem:[#allocation8 + $0x218] sm:$0xff]  ;;  %v7800_v8 = vpack.c.bf16 %v1751_v58, %v1748_v57  ;;  %v1775_v57 = vld [vmem:[#allocation8 + $0xad0] sm:$0xff]  ;;  %v1781_v32 = vld [vmem:[#allocation8 + $0xb00] sm:$0xff] }
 0x2ce   :  { %7783 = vmatpush1.bf16.msra.mxu0 %v7782_v9  ;;  %2090 = vmatprep.mubr.f32.mxu0 %v1420_v17  ;;  %v7792_v17 = vpack.c.bf16 %v1739_v54, %v1736_v33  ;;  %v8016_v37 = vpack.c.bf16 %v2750_v31, %v2747_v6  ;;  %v1747_v9 = vld [vmem:[#allocation8 + $0x9f0] sm:$0xff]  ;;  %v2783_v58 = vld [vmem:[#allocation8 + $0x338] sm:$0xff]  ;;  %v2804_v38 = vld [vmem:[#allocation8 + $0x3e0] sm:$0xff] }
 0x2cf   :  { %8007 = vmatpush1.bf16.msra.mxu1 %v8006_v50  ;;  %7785 = vmatprep.subr.bf16.mxu0 %v7784_v11  ;;  %v1750_v50 = vld [vmem:[#allocation8 + $0xa08] sm:$0xff]  ;;  %v2758_v11 = vld [vmem:[#allocation8 + $0x270] sm:$0xff] }
 0x2d0   :  { %8009 = vmatprep.subr.bf16.mxu1 %v8008_v16  ;;  %v1757_v16 = vld [vmem:[#allocation8 + $0xa40] sm:$0xff]  ;;  %v7802_v22 = vpack.c.bf16 %v1750_v50, %v1747_v9  ;;  %v8026_v24 = vpack.c.bf16 %v2761_v14, %v2758_v11  ;;  %v2774_v33 = vld [vmem:[#allocation8 + $0x2f0] sm:$0xff]  ;;  %v8040_v11 = vpack.c.bf16 %v2786_v62, %v2783_v58  ;;  %v1778_v14 = vld [vmem:[#allocation8 + $0xae8] sm:$0xff] }
 0x2d1   :  { %v7804_v23 = vpack.c.bf16 %v1757_v16, %v1754_v15  ;;  %v8032_v19 = vpack.c.bf16 %v2774_v33, %v2771_v29  ;;  %v1424_v15 = vmax.f32 %v10315_v53, 0.0  ;;  %v2789_v16 = vld [vmem:[#allocation8 + $0x368] sm:$0xff]  ;;  %v2798_v29 = vld [vmem:[#allocation8 + $0x3b0] sm:$0xff] }
 0x2d2   :  { %7787 = vmatpush1.bf16.msra.mxu0 %v7786_v25  ;;  %v1753_v25 = vld [vmem:[#allocation8 + $0xa20] sm:$0xff]  ;;  %v2810_v58 = vld [vmem:[#allocation8 + $0x410] sm:$0xff] }
 0x2d3   :  { %8011 = vmatpush1.bf16.msra.mxu1 %v8010_v26  ;;  %7789 = vmatprep.subr.bf16.mxu0 %v7788_v2  ;;  %v1756_v26 = vld [vmem:[#allocation8 + $0xa38] sm:$0xff]  ;;  %v2764_v2 = vld [vmem:[#allocation8 + $0x2a0] sm:$0xff] }
 0x2d4   :  { %8013 = vmatprep.subr.bf16.mxu1 %v8012_v28  ;;  %v1763_v28 = vld [vmem:[#allocation8 + $0xa70] sm:$0xff]  ;;  %v7806_v54 = vpack.c.bf16 %v1756_v26, %v1753_v25  ;;  %v8030_v6 = vpack.c.bf16 %v2767_v7, %v2764_v2  ;;  %v1780_v25 = vld [vmem:[#allocation8 + $0xaf8] sm:$0xff]  ;;  %v2788_v26 = vld [vmem:[#allocation8 + $0x360] sm:$0xff]  ;;  %v8044_v2 = vpack.c.bf16 %v2792_v55, %v2789_v16 }
 0x2d5   :  { %v7808_v31 = vpack.c.bf16 %v1763_v28, %v1760_v27  ;;  %v1784_v7 = vld [vmem:[#allocation8 + $0xb18] sm:$0xff]  ;;  %v1787_v27 = vld [vmem:[#allocation8 + $0xb30] sm:$0xff]  ;;  %v2816_v16 = vld [vmem:[#allocation8 + $0x440] sm:$0xff] }
 0x2d6   :  { %7791 = vmatpush1.bf16.msra.mxu0 %v7790_v34  ;;  %v1759_v34 = vld [vmem:[#allocation8 + $0xa50] sm:$0xff]  ;;  %v2795_v28 = vld [vmem:[#allocation8 + $0x398] sm:$0xff] }
 0x2d7   :  { %8015 = vmatpush1.bf16.msra.mxu1 %v8014_v0  ;;  %7793 = vmatprep.subr.bf16.mxu0 %v7792_v17  ;;  %v1762_v0 = vld [vmem:[#allocation8 + $0xa68] sm:$0xff]  ;;  %v2770_v17 = vld [vmem:[#allocation8 + $0x2d0] sm:$0xff] }
 0x2d8   :  { %8017 = vmatprep.subr.bf16.mxu1 %v8016_v37  ;;  %v1769_v37 = vld [vmem:[#allocation8 + $0xaa0] sm:$0xff]  ;;  %v7810_v40 = vpack.c.bf16 %v1762_v0, %v1759_v34  ;;  %v8034_v41 = vpack.c.bf16 %v2773_v35, %v2770_v17  ;;  %v1786_v34 = vld [vmem:[#allocation8 + $0xb28] sm:$0xff]  ;;  %v2794_v0 = vld [vmem:[#allocation8 + $0x390] sm:$0xff]  ;;  %v8048_v17 = vpack.c.bf16 %v2798_v29, %v2795_v28 }
 0x2d9   :  { %v7812_v42 = vpack.c.bf16 %v1769_v37, %v1766_v36  ;;  %v1790_v35 = vld [vmem:[#allocation8 + $0xb48] sm:$0xff]  ;;  %v1793_v36 = vld [vmem:[#allocation8 + $0xb60] sm:$0xff]  ;;  %v2822_v28 = vld [vmem:[#allocation8 + $0x470] sm:$0xff] }
 0x2da   :  { %7795 = vmatpush1.bf16.msra.mxu0 %v7794_v43  ;;  %v1765_v43 = vld [vmem:[#allocation8 + $0xa80] sm:$0xff]  ;;  %v2801_v37 = vld [vmem:[#allocation8 + $0x3c8] sm:$0xff] }
 0x2db   :  { %8019 = vmatpush1.bf16.msra.mxu1 %v8018_v44  ;;  %7797 = vmatprep.subr.bf16.mxu0 %v7796_v45  ;;  %v1768_v44 = vld [vmem:[#allocation8 + $0xa98] sm:$0xff]  ;;  %v10311_v45 = vadd.f32 %v10275_v30, %v10228_v21  ;;  %v1774_v30 = vld [vmem:[#allocation8 + $0xac8] sm:$0xff] }
 0x2dc   :  { %8021 = vmatprep.subr.bf16.mxu1 %v8020_v52  ;;  %v1772_v52 = vld [vmem:[#allocation8 + $0xab8] sm:$0xff]  ;;  %v7814_v63 = vpack.c.bf16 %v1768_v44, %v1765_v43  ;;  %v2800_v44 = vld [vmem:[#allocation8 + $0x3c0] sm:$0xff] }
 0x2dd   :  { %v1421_v9 = vmax.f32 %v10311_v45, 0.0  ;;  %v7816_v50 = vpack.c.bf16 %v1775_v57, %v1772_v52  ;;  %v1792_v43 = vld [vmem:[#allocation8 + $0xb58] sm:$0xff]  ;;  %v1799_v52 = vld [vmem:[#allocation8 + $0xb90] sm:$0xff] }
 0x2de   :  { %7799 = vmatpush1.bf16.msra.mxu0 %v7798_v5  ;;  %v8038_v5 = vpack.c.bf16 %v2779_v48, %v2776_v47  ;;  %v2803_v47 = vld [vmem:[#allocation8 + $0x3d8] sm:$0xff] }
 0x2df   :  { %8023 = vmatpush1.bf16.msra.mxu1 %v8022_v49  ;;  %7801 = vmatprep.subr.bf16.mxu0 %v7800_v8  ;;  %v1771_v49 = vld [vmem:[#allocation8 + $0xab0] sm:$0xff]  ;;  %v1796_v48 = vld [vmem:[#allocation8 + $0xb78] sm:$0xff] }
 0x2e0   :  { %8025 = vmatprep.subr.bf16.mxu1 %v8024_v13  ;;  %v2782_v8 = vld [vmem:[#allocation8 + $0x330] sm:$0xff]  ;;  %v2785_v13 = vld [vmem:[#allocation8 + $0x348] sm:$0xff]  ;;  %v7818_v20 = vpack.c.bf16 %v1774_v30, %v1771_v49  ;;  %v2807_v57 = vld [vmem:[#allocation8 + $0x3f8] sm:$0xff] }
 0x2e1   :  { %v1795_v49 = vld [vmem:[#allocation8 + $0xb70] sm:$0xff]  ;;  %v1798_v30 = vld [vmem:[#allocation8 + $0xb88] sm:$0xff] }
 0x2e2   :  { %7803 = vmatpush1.bf16.msra.mxu0 %v7802_v22  ;;  %v8042_v22 = vpack.c.bf16 %v2785_v13, %v2782_v8  ;;  %v2806_v8 = vld [vmem:[#allocation8 + $0x3f0] sm:$0xff]  ;;  %v1802_v13 = vld [vmem:[#allocation8 + $0xba8] sm:$0xff]  ;;  %v7834_v55 = vpack.c.bf16 %v1798_v30, %v1795_v49  ;;  %v2688_v49 = vld [vmem:[#allocation8 + $0x40] sm:$0xff] }
 0x2e3   :  { %8027 = vmatpush1.bf16.msra.mxu1 %v8026_v24  ;;  %7805 = vmatprep.subr.bf16.mxu0 %v7804_v23  ;;  %v7820_v24 = vpack.c.bf16 %v1781_v32, %v1778_v14  ;;  %v1777_v23 = vld [vmem:[#allocation8 + $0xae0] sm:$0xff]  ;;  %v2813_v32 = vld [vmem:[#allocation8 + $0x428] sm:$0xff]  ;;  %v2691_v30 = vld [vmem:[#allocation8 + $0x58] sm:$0xff] }
 0x2e4   :  { %8029 = vmatprep.subr.bf16.mxu1 %v8028_v10  ;;  %v2791_v10 = vld [vmem:[#allocation8 + $0x378] sm:$0xff]  ;;  %v7822_v33 = vpack.c.bf16 %v1780_v25, %v1777_v23  ;;  %v1805_v14 = vld [vmem:[#allocation8 + $0xbc0] sm:$0xff] }
 0x2e5   :  { %v1804_v23 = vld [vmem:[#allocation8 + $0xbb8] sm:$0xff]  ;;  %v2812_v25 = vld [vmem:[#allocation8 + $0x420] sm:$0xff] }
 0x2e6   :  { %7807 = vmatpush1.bf16.msra.mxu0 %v7806_v54  ;;  %v8046_v54 = vpack.c.bf16 %v2791_v10, %v2788_v26  ;;  %v8060_v26 = vpack.c.bf16 %v2816_v16, %v2813_v32  ;;  %v1808_v10 = vld [vmem:[#allocation8 + $0xbd8] sm:$0xff]  ;;  %v2840_v32 = vld [vmem:[#allocation8 + $0x500] sm:$0xff]  ;;  %v8234_v16 = vpack.c.bf16 %v2691_v30, %v2688_v49  ;;  %v2769_v49 = vld [vmem:[#allocation8 + $0x2c8] sm:$0xff] }
 0x2e7   :  { %8031 = vmatpush1.bf16.msra.mxu1 %v8030_v6  ;;  %7809 = vmatprep.subr.bf16.mxu0 %v7808_v31  ;;  %v7824_v6 = vpack.c.bf16 %v1787_v27, %v1784_v7  ;;  %v1783_v31 = vld [vmem:[#allocation8 + $0xb10] sm:$0xff]  ;;  %v2819_v27 = vld [vmem:[#allocation8 + $0x458] sm:$0xff]  ;;  %v2861_v30 = vld [vmem:[#allocation8 + $0x5a8] sm:$0xff] }
 0x2e8   :  { %8033 = vmatprep.subr.bf16.mxu1 %v8032_v19  ;;  %v2797_v19 = vld [vmem:[#allocation8 + $0x3a8] sm:$0xff]  ;;  %v7826_v39 = vpack.c.bf16 %v1786_v34, %v1783_v31  ;;  %v1811_v7 = vld [vmem:[#allocation8 + $0xbf0] sm:$0xff] }
 0x2e9   :  { %v1810_v31 = vld [vmem:[#allocation8 + $0xbe8] sm:$0xff]  ;;  %v2818_v34 = vld [vmem:[#allocation8 + $0x450] sm:$0xff] }
 0x2ea   :  { %7811 = vmatpush1.bf16.msra.mxu0 %v7810_v40  ;;  %v8050_v40 = vpack.c.bf16 %v2797_v19, %v2794_v0  ;;  %v8064_v0 = vpack.c.bf16 %v2822_v28, %v2819_v27  ;;  %v2730_v19 = vld [vmem:[#allocation8 + $0x190] sm:$0xff]  ;;  %v2700_v28 = vld [vmem:[#allocation8 + $0xa0] sm:$0xff] }
 0x2eb   :  { %8035 = vmatpush1.bf16.msra.mxu1 %v8034_v41  ;;  %7813 = vmatprep.subr.bf16.mxu0 %v7812_v42  ;;  %v7828_v41 = vpack.c.bf16 %v1793_v36, %v1790_v35  ;;  %v1789_v42 = vld [vmem:[#allocation8 + $0xb40] sm:$0xff]  ;;  %v2733_v35 = vld [vmem:[#allocation8 + $0x1a8] sm:$0xff]  ;;  %v2842_v27 = vld [vmem:[#allocation8 + $0x510] sm:$0xff] }
 0x2ec   :  { %8037 = vmatprep.subr.bf16.mxu1 %v8036_v46  ;;  %v8052_v46 = vpack.c.bf16 %v2804_v38, %v2801_v37  ;;  %v7830_v62 = vpack.c.bf16 %v1792_v43, %v1789_v42  ;;  %v2825_v36 = vld [vmem:[#allocation8 + $0x488] sm:$0xff]  ;;  %v2828_v37 = vld [vmem:[#allocation8 + $0x4a0] sm:$0xff]  ;;  %v2682_v42 = vld [vmem:[#allocation8 + $0x10] sm:$0xff] }
 0x2ed   :  { %v2685_v43 = vld [vmem:[#allocation8 + $0x28] sm:$0xff] }
 0x2ee   :  { %3129 = vmatmul.mubr.f32.vlgmr.msra.gmra.mrb[16].mxu1 %v1421_v9  ;;  %7815 = vmatpush1.bf16.msra.mxu0 %v7814_v63  ;;  %v8054_v63 = vpack.c.bf16 %v2803_v47, %v2800_v44  ;;  %v8068_v44 = vpack.c.bf16 %v2828_v37, %v2825_v36  ;;  %v2736_v47 = vld [vmem:[#allocation8 + $0x1c0] sm:$0xff]  ;;  %v2706_v37 = vld [vmem:[#allocation8 + $0xd0] sm:$0xff] }
 0x2ef   :  { %8039 = vmatpush1.bf16.msra.mxu1 %v8038_v5  ;;  %3199 = vmatprep.mubr.f32.mxu1 %v1424_v15  ;;  %v7832_v5 = vpack.c.bf16 %v1799_v52, %v1796_v48  ;;  %v2739_v48 = vld [vmem:[#allocation8 + $0x1d8] sm:$0xff]  ;;  %v2848_v36 = vld [vmem:[#allocation8 + $0x540] sm:$0xff] }
 0x2f0   :  { %7817 = vmatprep.subr.bf16.mxu0 %v7816_v50  ;;  %8041 = vmatprep.subr.bf16.mxu1 %v8040_v11  ;;  %v8056_v50 = vpack.c.bf16 %v2810_v58, %v2807_v57  ;;  %v2809_v11 = vld [vmem:[#allocation8 + $0x408] sm:$0xff]  ;;  %v2831_v52 = vld [vmem:[#allocation8 + $0x4b8] sm:$0xff]  ;;  %v2834_v57 = vld [vmem:[#allocation8 + $0x4d0] sm:$0xff]  ;;  %v8230_v58 = vpack.c.bf16 %v2685_v43, %v2682_v42 }
 0x2f1   :  { %v2763_v42 = vld [vmem:[#allocation8 + $0x298] sm:$0xff] }
 0x2f2   :  { %7819 = vmatpush1.bf16.msra.mxu0 %v7818_v20  ;;  %v8058_v20 = vpack.c.bf16 %v2809_v11, %v2806_v8  ;;  %v8072_v8 = vpack.c.bf16 %v2834_v57, %v2831_v52  ;;  %v2742_v11 = vld [vmem:[#allocation8 + $0x1f0] sm:$0xff]  ;;  %v2855_v43 = vld [vmem:[#allocation8 + $0x578] sm:$0xff]  ;;  %v2712_v57 = vld [vmem:[#allocation8 + $0x100] sm:$0xff] }
 0x2f3   :  { %8043 = vmatpush1.bf16.msra.mxu1 %v8042_v22  ;;  %7821 = vmatprep.subr.bf16.mxu0 %v7820_v24  ;;  %v7836_v22 = vpack.c.bf16 %v1805_v14, %v1802_v13  ;;  %v1801_v24 = vld [vmem:[#allocation8 + $0xba0] sm:$0xff]  ;;  %v2745_v13 = vld [vmem:[#allocation8 + $0x208] sm:$0xff]  ;;  %v2854_v52 = vld [vmem:[#allocation8 + $0x570] sm:$0xff] }
 0x2f4   :  { %8045 = vmatprep.subr.bf16.mxu1 %v8044_v2  ;;  %v2815_v2 = vld [vmem:[#allocation8 + $0x438] sm:$0xff]  ;;  %v7838_v29 = vpack.c.bf16 %v1804_v23, %v1801_v24  ;;  %v2837_v14 = vld [vmem:[#allocation8 + $0x4e8] sm:$0xff]  ;;  %v2694_v24 = vld [vmem:[#allocation8 + $0x70] sm:$0xff] }
 0x2f5   :  { %v2697_v23 = vld [vmem:[#allocation8 + $0x88] sm:$0xff] }
 0x2f6   :  { %7823 = vmatpush1.bf16.msra.mxu0 %v7822_v33  ;;  %v8062_v33 = vpack.c.bf16 %v2815_v2, %v2812_v25  ;;  %v8076_v25 = vpack.c.bf16 %v2840_v32, %v2837_v14  ;;  %v2748_v2 = vld [vmem:[#allocation8 + $0x220] sm:$0xff]  ;;  %v2718_v32 = vld [vmem:[#allocation8 + $0x130] sm:$0xff] }
 0x2f7   :  { %8047 = vmatpush1.bf16.msra.mxu1 %v8046_v54  ;;  %7825 = vmatprep.subr.bf16.mxu0 %v7824_v6  ;;  %v7840_v54 = vpack.c.bf16 %v1811_v7, %v1808_v10  ;;  %v1807_v6 = vld [vmem:[#allocation8 + $0xbd0] sm:$0xff]  ;;  %v8238_v7 = vpack.c.bf16 %v2697_v23, %v2694_v24  ;;  %v2860_v14 = vld [vmem:[#allocation8 + $0x5a0] sm:$0xff]  ;;  %v2775_v23 = vld [vmem:[#allocation8 + $0x2f8] sm:$0xff] }
 0x2f8   :  { %8049 = vmatprep.subr.bf16.mxu1 %v8048_v17  ;;  %v2821_v17 = vld [vmem:[#allocation8 + $0x468] sm:$0xff]  ;;  %v7842_v38 = vpack.c.bf16 %v1810_v31, %v1807_v6  ;;  %v2846_v10 = vld [vmem:[#allocation8 + $0x530] sm:$0xff]  ;;  %v2772_v24 = vld [vmem:[#allocation8 + $0x2e0] sm:$0xff] }
 0x2f9   :  { %v2754_v6 = vld [vmem:[#allocation8 + $0x250] sm:$0xff]  ;;  %v2757_v31 = vld [vmem:[#allocation8 + $0x268] sm:$0xff] }
 0x2fa   :  { %7827 = vmatpush1.bf16.msra.mxu0 %v7826_v39  ;;  %v8066_v39 = vpack.c.bf16 %v2821_v17, %v2818_v34  ;;  %v2849_v34 = vld [vmem:[#allocation8 + $0x548] sm:$0xff] }
 0x2fb   :  { %8051 = vmatpush1.bf16.msra.mxu1 %v8050_v40  ;;  %7829 = vmatprep.subr.bf16.mxu0 %v7828_v41  ;;  %v8228_v40 = vpack.c.bf16 %v2733_v35, %v2730_v19  ;;  %v2824_v41 = vld [vmem:[#allocation8 + $0x480] sm:$0xff]  ;;  %v8244_v35 = vpack.c.bf16 %v2757_v31, %v2754_v6  ;;  %v2873_v6 = vld [vmem:[#allocation8 + $0x608] sm:$0xff] }
 0x2fc   :  { %8053 = vmatprep.subr.bf16.mxu1 %v8052_v46  ;;  %v2827_v46 = vld [vmem:[#allocation8 + $0x498] sm:$0xff]  ;;  %v2876_v31 = vld [vmem:[#allocation8 + $0x620] sm:$0xff] }
 0x2fe   :  { %7831 = vmatpush1.bf16.msra.mxu0 %v7830_v62  ;;  %v8070_v62 = vpack.c.bf16 %v2827_v46, %v2824_v41  ;;  %v2760_v41 = vld [vmem:[#allocation8 + $0x280] sm:$0xff] }
 0x2ff   :  { %8055 = vmatpush1.bf16.msra.mxu1 %v8054_v63  ;;  %7833 = vmatprep.subr.bf16.mxu0 %v7832_v5  ;;  %v8232_v63 = vpack.c.bf16 %v2739_v48, %v2736_v47  ;;  %v2830_v5 = vld [vmem:[#allocation8 + $0x4b0] sm:$0xff]  ;;  %v8248_v48 = vpack.c.bf16 %v2763_v42, %v2760_v41  ;;  %v2879_v41 = vld [vmem:[#allocation8 + $0x638] sm:$0xff] }
 0x300   :  { %8057 = vmatprep.subr.bf16.mxu1 %v8056_v50  ;;  %v2833_v50 = vld [vmem:[#allocation8 + $0x4c8] sm:$0xff]  ;;  %v2882_v42 = vld [vmem:[#allocation8 + $0x650] sm:$0xff] }
 0x302   :  { %7835 = vmatpush1.bf16.msra.mxu0 %v7834_v55  ;;  %v8074_v55 = vpack.c.bf16 %v2833_v50, %v2830_v5  ;;  %v2766_v5 = vld [vmem:[#allocation8 + $0x2b0] sm:$0xff] }
 0x303   :  { %8059 = vmatpush1.bf16.msra.mxu1 %v8058_v20  ;;  %7837 = vmatprep.subr.bf16.mxu0 %v7836_v22  ;;  %v8236_v20 = vpack.c.bf16 %v2745_v13, %v2742_v11  ;;  %v2836_v22 = vld [vmem:[#allocation8 + $0x4e0] sm:$0xff]  ;;  %v8252_v13 = vpack.c.bf16 %v2769_v49, %v2766_v5 }
 0x304   :  { %8061 = vmatprep.subr.bf16.mxu1 %v8060_v26  ;;  %v2839_v26 = vld [vmem:[#allocation8 + $0x4f8] sm:$0xff] }
 0x305   :  { %v8078_v59 = vpack.c.bf16 %v2839_v26, %v2836_v22  ;;  %v2863_v22 = vld [vmem:[#allocation8 + $0x5b8] sm:$0xff] }
 0x306   :  { %7839 = vmatpush1.bf16.msra.mxu0 %v7838_v29  ;;  %v2703_v29 = vld [vmem:[#allocation8 + $0xb8] sm:$0xff] }
 0x307   :  { %8063 = vmatpush1.bf16.msra.mxu1 %v8062_v33  ;;  %7841 = vmatprep.subr.bf16.mxu0 %v7840_v54  ;;  %v2845_v54 = vld [vmem:[#allocation8 + $0x528] sm:$0xff]  ;;  %v8242_v17 = vpack.c.bf16 %v2703_v29, %v2700_v28  ;;  %v2867_v26 = vld [vmem:[#allocation8 + $0x5d8] sm:$0xff] }
 0x308   :  { %8065 = vmatprep.subr.bf16.mxu1 %v8064_v0  ;;  %v2852_v0 = vld [vmem:[#allocation8 + $0x560] sm:$0xff]  ;;  %v8082_v19 = vpack.c.bf16 %v2845_v54, %v2842_v27  ;;  %v2727_v27 = vld [vmem:[#allocation8 + $0x178] sm:$0xff]  ;;  %v2869_v29 = vld [vmem:[#allocation8 + $0x5e8] sm:$0xff] }
 0x309   :  { %v2829_v54 = vld [vmem:[#allocation8 + $0x4a8] sm:$0xff] }
 0x30a   :  { %7843 = vmatpush1.bf16.msra.mxu0 %v7842_v38  ;;  %v2709_v38 = vld [vmem:[#allocation8 + $0xe8] sm:$0xff] }
 0x30b   :  { %8067 = vmatpush1.bf16.msra.mxu1 %v8066_v39  ;;  %8229 = vmatprep.subr.bf16.mxu0 %v8228_v40  ;;  %v8084_v39 = vpack.c.bf16 %v2852_v0, %v2849_v34  ;;  %v2851_v40 = vld [vmem:[#allocation8 + $0x558] sm:$0xff]  ;;  %v8246_v46 = vpack.c.bf16 %v2709_v38, %v2706_v37  ;;  %v8100_v37 = vpack.c.bf16 %v2876_v31, %v2873_v6  ;;  %v2872_v38 = vld [vmem:[#allocation8 + $0x600] sm:$0xff]  ;;  %v2802_v6 = vld [vmem:[#allocation8 + $0x3d0] sm:$0xff] }
 0x30c   :  { %8069 = vmatprep.subr.bf16.mxu1 %v8068_v44  ;;  %v2858_v44 = vld [vmem:[#allocation8 + $0x590] sm:$0xff]  ;;  %v8086_v47 = vpack.c.bf16 %v2851_v40, %v2848_v36  ;;  %v10331_v36 = vadd.f32 %v10277_v18, %v10228_v21  ;;  %v10335_v40 = vadd.f32 %v10287_v1, %v10228_v21  ;;  %v2784_v18 = vld [vmem:[#allocation8 + $0x340] sm:$0xff]  ;;  %v2841_v1 = vld [vmem:[#allocation8 + $0x508] sm:$0xff] }
 0x30d   :  { %2091 = vmatmul.mubr.f32.vlgmr.msra.gmra.mrb[8].mxu0 %v1419_v12  ;;  %v2843_v12 = vld [vmem:[#allocation8 + $0x518] sm:$0xff]  ;;  %v2805_v31 = vld [vmem:[#allocation8 + $0x3e8] sm:$0xff] }
 0x30e   :  { %8231 = vmatpush3.bf16.msra.mxu0 %v8230_v58  ;;  %3412 = vmatprep.mubr.f32.mxu0 %v1422_v56  ;;  %v8240_v56 = vpack.c.bf16 %v2751_v51, %v2748_v2  ;;  %v8080_v33 = vpack.c.bf16 %v2846_v10, %v2843_v12  ;;  %v2715_v58 = vld [vmem:[#allocation8 + $0x118] sm:$0xff]  ;;  %v2870_v2 = vld [vmem:[#allocation8 + $0x5f0] sm:$0xff]  ;;  %v8094_v10 = vpack.c.bf16 %v2863_v22, %v2860_v14  ;;  %v1426_v5 = vmax.f32 %v10335_v40, 0.0  ;;  %v2884_v14 = vld [vmem:[#allocation8 + $0x660] sm:$0xff] }
 0x30f   :  { %8071 = vmatpush1.bf16.msra.mxu1 %v8070_v62  ;;  %8233 = vmatprep.subr.bf16.mxu0 %v8232_v63  ;;  %v8088_v62 = vpack.c.bf16 %v2858_v44, %v2855_v43  ;;  %v2857_v63 = vld [vmem:[#allocation8 + $0x588] sm:$0xff]  ;;  %v8250_v50 = vpack.c.bf16 %v2715_v58, %v2712_v57  ;;  %v8096_v28 = vpack.c.bf16 %v2870_v2, %v2867_v26  ;;  %v2832_v44 = vld [vmem:[#allocation8 + $0x4c0] sm:$0xff]  ;;  %v1423_v57 = vmax.f32 %v10331_v36, 0.0  ;;  %v2891_v22 = vld [vmem:[#allocation8 + $0x698] sm:$0xff] }
 0x310   :  { %8073 = vmatprep.subr.bf16.mxu1 %v8072_v8  ;;  %v2864_v8 = vld [vmem:[#allocation8 + $0x5c0] sm:$0xff]  ;;  %v8090_v11 = vpack.c.bf16 %v2857_v63, %v2854_v52  ;;  %v2787_v52 = vld [vmem:[#allocation8 + $0x358] sm:$0xff]  ;;  %v8104_v58 = vpack.c.bf16 %v2882_v42, %v2879_v41  ;;  %v2838_v63 = vld [vmem:[#allocation8 + $0x4f0] sm:$0xff] }
 0x311   :  { %v2890_v2 = vld [vmem:[#allocation8 + $0x690] sm:$0xff]  ;;  %v2943_v36 = vld [vmem:[#allocation8 + $0x838] sm:$0xff] }
 0x312   :  { %8235 = vmatpush3.bf16.msra.mxu0 %v8234_v16  ;;  %v2721_v16 = vld [vmem:[#allocation8 + $0x148] sm:$0xff]  ;;  %v2902_v42 = vld [vmem:[#allocation8 + $0x6f0] sm:$0xff] }
 0x313   :  { %8075 = vmatpush1.bf16.msra.mxu1 %v8074_v55  ;;  %8237 = vmatprep.subr.bf16.mxu0 %v8236_v20  ;;  %v8092_v20 = vpack.c.bf16 %v2864_v8, %v2861_v30  ;;  %v8254_v12 = vpack.c.bf16 %v2721_v16, %v2718_v32  ;;  %v2885_v30 = vld [vmem:[#allocation8 + $0x668] sm:$0xff]  ;;  %v2888_v8 = vld [vmem:[#allocation8 + $0x680] sm:$0xff]  ;;  %v2790_v32 = vld [vmem:[#allocation8 + $0x370] sm:$0xff] }
 0x314   :  { %8077 = vmatprep.subr.bf16.mxu1 %v8076_v25  ;;  %v2793_v16 = vld [vmem:[#allocation8 + $0x388] sm:$0xff]  ;;  %v8108_v45 = vpack.c.bf16 %v2888_v8, %v2885_v30  ;;  %v2814_v30 = vld [vmem:[#allocation8 + $0x430] sm:$0xff] }
 0x315   :  { %v2817_v8 = vld [vmem:[#allocation8 + $0x448] sm:$0xff] }
 0x316   :  { %8239 = vmatpush3.bf16.msra.mxu0 %v8238_v7  ;;  %v8256_v7 = vpack.c.bf16 %v2775_v23, %v2772_v24  ;;  %v2894_v24 = vld [vmem:[#allocation8 + $0x6b0] sm:$0xff]  ;;  %v8270_v23 = vpack.c.bf16 %v2793_v16, %v2790_v32  ;;  %v2871_v32 = vld [vmem:[#allocation8 + $0x5f8] sm:$0xff] }
 0x317   :  { %8079 = vmatpush1.bf16.msra.mxu1 %v8078_v59  ;;  %8241 = vmatprep.subr.bf16.mxu0 %v8240_v56  ;;  %v2866_v59 = vld [vmem:[#allocation8 + $0x5d0] sm:$0xff]  ;;  %v2724_v56 = vld [vmem:[#allocation8 + $0x160] sm:$0xff]  ;;  %v8112_v53 = vpack.c.bf16 %v2894_v24, %v2891_v22 }
 0x318   :  { %8081 = vmatprep.subr.bf16.mxu1 %v8080_v33  ;;  %v2826_v33 = vld [vmem:[#allocation8 + $0x490] sm:$0xff]  ;;  %v8258_v34 = vpack.c.bf16 %v2727_v27, %v2724_v56  ;;  %v8098_v0 = vpack.c.bf16 %v2869_v29, %v2866_v59  ;;  %v2853_v59 = vld [vmem:[#allocation8 + $0x568] sm:$0xff]  ;;  %v2900_v27 = vld [vmem:[#allocation8 + $0x6e0] sm:$0xff] }
 0x319   :  { %v2897_v56 = vld [vmem:[#allocation8 + $0x6c8] sm:$0xff] }
 0x31a   :  { %8243 = vmatpush3.bf16.msra.mxu0 %v8242_v17  ;;  %v8260_v17 = vpack.c.bf16 %v2829_v54, %v2826_v33  ;;  %v2896_v54 = vld [vmem:[#allocation8 + $0x6c0] sm:$0xff] }
 0x31b   :  { %8083 = vmatpush1.bf16.msra.mxu1 %v8082_v19  ;;  %8245 = vmatprep.subr.bf16.mxu0 %v8244_v35  ;;  %v2778_v19 = vld [vmem:[#allocation8 + $0x310] sm:$0xff]  ;;  %v2781_v35 = vld [vmem:[#allocation8 + $0x328] sm:$0xff] }
 0x31c   :  { %8085 = vmatprep.subr.bf16.mxu1 %v8084_v39  ;;  %v2875_v39 = vld [vmem:[#allocation8 + $0x618] sm:$0xff]  ;;  %v8262_v43 = vpack.c.bf16 %v2781_v35, %v2778_v19 }
 0x31d   :  { %v2859_v19 = vld [vmem:[#allocation8 + $0x598] sm:$0xff] }
 0x31e   :  { %8247 = vmatpush3.bf16.msra.mxu0 %v8246_v46  ;;  %v2835_v46 = vld [vmem:[#allocation8 + $0x4d8] sm:$0xff] }
 0x31f   :  { %8087 = vmatpush1.bf16.msra.mxu1 %v8086_v47  ;;  %8249 = vmatprep.subr.bf16.mxu0 %v8248_v48  ;;  %v8102_v47 = vpack.c.bf16 %v2875_v39, %v2872_v38  ;;  %v2878_v48 = vld [vmem:[#allocation8 + $0x630] sm:$0xff]  ;;  %v8264_v49 = vpack.c.bf16 %v2835_v46, %v2832_v44  ;;  %v2903_v35 = vld [vmem:[#allocation8 + $0x6f8] sm:$0xff]  ;;  %v8278_v38 = vpack.c.bf16 %v2805_v31, %v2802_v6  ;;  %v2928_v31 = vld [vmem:[#allocation8 + $0x7c0] sm:$0xff] }
 0x320   :  { %v6612_v55 = vpop.f32.mrb[8].mxu1  ;;  %8089 = vmatprep.subr.bf16.mxu1 %v8088_v62  ;;  %v2881_v62 = vld [vmem:[#allocation8 + $0x648] sm:$0xff]  ;;  %v2811_v44 = vld [vmem:[#allocation8 + $0x418] sm:$0xff] }
 0x321   :  { %v6613_v25 = vpop.f32.mrb[9].mxu1 }
 0x322   :  { %v10327_v51 = vadd.f32 %v6613_v25, %v6612_v55  ;;  %8251 = vmatpush3.bf16.msra.mxu0 %v8250_v50  ;;  %v8266_v50 = vpack.c.bf16 %v2787_v52, %v2784_v18  ;;  %v2844_v55 = vld [vmem:[#allocation8 + $0x520] sm:$0xff]  ;;  %v2865_v18 = vld [vmem:[#allocation8 + $0x5c8] sm:$0xff] }
 0x323   :  { %8091 = vmatpush1.bf16.msra.mxu1 %v8090_v11  ;;  %8253 = vmatprep.subr.bf16.mxu0 %v8252_v13  ;;  %v8106_v11 = vpack.c.bf16 %v2881_v62, %v2878_v48  ;;  %v8268_v13 = vpack.c.bf16 %v2841_v1, %v2838_v63  ;;  %v2862_v48 = vld [vmem:[#allocation8 + $0x5b0] sm:$0xff]  ;;  %v2909_v52 = vld [vmem:[#allocation8 + $0x728] sm:$0xff] }
 0x324   :  { %8093 = vmatprep.subr.bf16.mxu1 %v8092_v20  ;;  %v2847_v20 = vld [vmem:[#allocation8 + $0x538] sm:$0xff]  ;;  %v8284_v1 = vpack.c.bf16 %v2865_v18, %v2862_v48  ;;  %v2936_v48 = vld [vmem:[#allocation8 + $0x800] sm:$0xff] }
 0x325   :  { %v8272_v26 = vpack.c.bf16 %v2847_v20, %v2844_v55  ;;  %v8286_v20 = vpack.c.bf16 %v2817_v8, %v2814_v30  ;;  %v2935_v30 = vld [vmem:[#allocation8 + $0x7f8] sm:$0xff]  ;;  %v2940_v8 = vld [vmem:[#allocation8 + $0x820] sm:$0xff] }
 0x326   :  { %8255 = vmatpush3.bf16.msra.mxu0 %v8254_v12  ;;  %v2796_v12 = vld [vmem:[#allocation8 + $0x3a0] sm:$0xff] }
 0x327   :  { %8095 = vmatpush1.bf16.msra.mxu1 %v8094_v10  ;;  %8257 = vmatprep.subr.bf16.mxu0 %v8256_v7  ;;  %v2799_v10 = vld [vmem:[#allocation8 + $0x3b8] sm:$0xff]  ;;  %v2850_v7 = vld [vmem:[#allocation8 + $0x550] sm:$0xff] }
 0x328   :  { %8097 = vmatprep.subr.bf16.mxu1 %v8096_v28  ;;  %v8274_v28 = vpack.c.bf16 %v2799_v10, %v2796_v12  ;;  %v8276_v33 = vpack.c.bf16 %v2853_v59, %v2850_v7  ;;  %v2917_v10 = vld [vmem:[#allocation8 + $0x768] sm:$0xff]  ;;  %v2924_v59 = vld [vmem:[#allocation8 + $0x7a0] sm:$0xff] }
 0x329   :  { %v2921_v7 = vld [vmem:[#allocation8 + $0x788] sm:$0xff] }
 0x32a   :  { %8259 = vmatpush3.bf16.msra.mxu0 %v8258_v34  ;;  %v8116_v34 = vpack.c.bf16 %v2900_v27, %v2897_v56  ;;  %v8132_v6 = vpack.c.bf16 %v2924_v59, %v2921_v7  ;;  %v2952_v7 = vld [vmem:[#allocation8 + $0x880] sm:$0xff]  ;;  %v2955_v59 = vld [vmem:[#allocation8 + $0x898] sm:$0xff] }
 0x32b   :  { %8099 = vmatpush1.bf16.msra.mxu1 %v8098_v0  ;;  %8261 = vmatprep.subr.bf16.mxu0 %v8260_v17  ;;  %v2899_v0 = vld [vmem:[#allocation8 + $0x6d8] sm:$0xff]  ;;  %v2856_v17 = vld [vmem:[#allocation8 + $0x580] sm:$0xff] }
 0x32c   :  { %8101 = vmatprep.subr.bf16.mxu1 %v8100_v37  ;;  %v2906_v37 = vld [vmem:[#allocation8 + $0x710] sm:$0xff]  ;;  %v8118_v39 = vpack.c.bf16 %v2899_v0, %v2896_v54  ;;  %v8280_v41 = vpack.c.bf16 %v2859_v19, %v2856_v17  ;;  %v2877_v54 = vld [vmem:[#allocation8 + $0x628] sm:$0xff]  ;;  %v2927_v0 = vld [vmem:[#allocation8 + $0x7b8] sm:$0xff] }
 0x32d   :  { %3413 = vmatmul.mubr.f32.vlgmr.msra.gmra.mrb[10].mxu0 %v1421_v9  ;;  %v2887_v9 = vld [vmem:[#allocation8 + $0x678] sm:$0xff]  ;;  %v8120_v46 = vpack.c.bf16 %v2906_v37, %v2903_v35  ;;  %v2930_v17 = vld [vmem:[#allocation8 + $0x7d0] sm:$0xff] }
 0x32e   :  { %3200 = vmatmul.mubr.f32.vlgmr.msra.gmra.mrb[16].mxu1 %v1423_v57  ;;  %8263 = vmatpush3.bf16.msra.mxu0 %v8262_v43  ;;  %v8110_v25 = vpack.c.bf16 %v2887_v9, %v2884_v14  ;;  %v2808_v43 = vld [vmem:[#allocation8 + $0x400] sm:$0xff]  ;;  %v2918_v9 = vld [vmem:[#allocation8 + $0x770] sm:$0xff] }
 0x32f   :  { %8103 = vmatpush1.bf16.msra.mxu1 %v8102_v47  ;;  %3270 = vmatprep.mubr.f32.mxu1 %v1426_v5  ;;  %v2905_v47 = vld [vmem:[#allocation8 + $0x708] sm:$0xff]  ;;  %v8282_v62 = vpack.c.bf16 %v2811_v44, %v2808_v43  ;;  %v2868_v14 = vld [vmem:[#allocation8 + $0x5e0] sm:$0xff]  ;;  %v2934_v44 = vld [vmem:[#allocation8 + $0x7f0] sm:$0xff] }
 0x330   :  { %3482 = vmatprep.mubr.f32.mxu0 %v1424_v15  ;;  %8105 = vmatprep.subr.bf16.mxu1 %v8104_v58  ;;  %v2893_v15 = vld [vmem:[#allocation8 + $0x6a8] sm:$0xff]  ;;  %v2912_v58 = vld [vmem:[#allocation8 + $0x740] sm:$0xff]  ;;  %v8122_v63 = vpack.c.bf16 %v2905_v47, %v2902_v42  ;;  %v8288_v24 = vpack.c.bf16 %v2871_v32, %v2868_v14  ;;  %v8136_v42 = vpack.c.bf16 %v2930_v17, %v2927_v0  ;;  %v2895_v32 = vld [vmem:[#allocation8 + $0x6b8] sm:$0xff] }
 0x331   :  { %8265 = vmatprep.subr.bf16.mxu0 %v8264_v49  ;;  %v8114_v29 = vpack.c.bf16 %v2893_v15, %v2890_v2  ;;  %v2908_v49 = vld [vmem:[#allocation8 + $0x720] sm:$0xff]  ;;  %v2925_v15 = vld [vmem:[#allocation8 + $0x7a8] sm:$0xff]  ;;  %v2958_v0 = vld [vmem:[#allocation8 + $0x8b0] sm:$0xff] }
 0x332   :  { %8267 = vmatpush3.bf16.msra.mxu0 %v8266_v50  ;;  %v2929_v43 = vld [vmem:[#allocation8 + $0x7c8] sm:$0xff]  ;;  %v2892_v14 = vld [vmem:[#allocation8 + $0x6a0] sm:$0xff] }
 0x333   :  { %8107 = vmatpush1.bf16.msra.mxu1 %v8106_v11  ;;  %8269 = vmatprep.subr.bf16.mxu0 %v8268_v13  ;;  %v8124_v11 = vpack.c.bf16 %v2912_v58, %v2909_v52  ;;  %v2911_v13 = vld [vmem:[#allocation8 + $0x738] sm:$0xff]  ;;  %v2933_v47 = vld [vmem:[#allocation8 + $0x7e8] sm:$0xff] }
 0x334   :  { %8109 = vmatprep.subr.bf16.mxu1 %v8108_v45  ;;  %v2915_v45 = vld [vmem:[#allocation8 + $0x758] sm:$0xff]  ;;  %v8126_v22 = vpack.c.bf16 %v2911_v13, %v2908_v49  ;;  %v8140_v49 = vpack.c.bf16 %v2936_v48, %v2933_v47  ;;  %v2938_v13 = vld [vmem:[#allocation8 + $0x810] sm:$0xff]  ;;  %v2961_v17 = vld [vmem:[#allocation8 + $0x8c8] sm:$0xff] }
 0x335   :  { %v8128_v12 = vpack.c.bf16 %v2918_v9, %v2915_v45  ;;  %v2941_v45 = vld [vmem:[#allocation8 + $0x828] sm:$0xff]  ;;  %v2946_v9 = vld [vmem:[#allocation8 + $0x850] sm:$0xff]  ;;  %v2959_v47 = vld [vmem:[#allocation8 + $0x8b8] sm:$0xff] }
 0x336   :  { %8271 = vmatpush3.bf16.msra.mxu0 %v8270_v23  ;;  %v2914_v23 = vld [vmem:[#allocation8 + $0x750] sm:$0xff]  ;;  %v2964_v48 = vld [vmem:[#allocation8 + $0x8e0] sm:$0xff] }
 0x337   :  { %8111 = vmatpush1.bf16.msra.mxu1 %v8110_v25  ;;  %8273 = vmatprep.subr.bf16.mxu0 %v8272_v26  ;;  %v2820_v25 = vld [vmem:[#allocation8 + $0x460] sm:$0xff]  ;;  %v2823_v26 = vld [vmem:[#allocation8 + $0x478] sm:$0xff]  ;;  %v8130_v27 = vpack.c.bf16 %v2917_v10, %v2914_v23  ;;  %v8146_v23 = vpack.c.bf16 %v2941_v45, %v2938_v13  ;;  %v2901_v10 = vld [vmem:[#allocation8 + $0x6e8] sm:$0xff]  ;;  %v1338_v45 = vadd.f32 %v10283_v60, %v10228_v21 }
 0x338   :  { %8113 = vmatprep.subr.bf16.mxu1 %v8112_v53  ;;  %v2922_v53 = vld [vmem:[#allocation8 + $0x790] sm:$0xff]  ;;  %v8290_v56 = vpack.c.bf16 %v2823_v26, %v2820_v25  ;;  %v2944_v26 = vld [vmem:[#allocation8 + $0x840] sm:$0xff]  ;;  %v3021_v13 = vld [vmem:[#allocation8 + $0xaa8] sm:$0xff] }
 0x339   :  { %v1425_v60 = vmax.f32 %v1338_v45, 0.0  ;;  %v3051_v45 = vld [vmem:[#allocation8 + $0xb98] sm:$0xff] }
 0x33a   :  { %8275 = vmatpush3.bf16.msra.mxu0 %v8274_v28  ;;  %v8292_v28 = vpack.c.bf16 %v2925_v15, %v2922_v53  ;;  %v2947_v15 = vld [vmem:[#allocation8 + $0x858] sm:$0xff] }
 0x33b   :  { %8115 = vmatpush1.bf16.msra.mxu1 %v8114_v29  ;;  %8277 = vmatprep.subr.bf16.mxu0 %v8276_v33  ;;  %v2920_v29 = vld [vmem:[#allocation8 + $0x780] sm:$0xff]  ;;  %v2874_v33 = vld [vmem:[#allocation8 + $0x610] sm:$0xff] }
 0x33c   :  { %8117 = vmatprep.subr.bf16.mxu1 %v8116_v34  ;;  %v2931_v34 = vld [vmem:[#allocation8 + $0x7d8] sm:$0xff]  ;;  %v8294_v19 = vpack.c.bf16 %v2877_v54, %v2874_v33  ;;  %v8312_v33 = vpack.c.bf16 %v2955_v59, %v2952_v7  ;;  %v2950_v54 = vld [vmem:[#allocation8 + $0x870] sm:$0xff] }
 0x33d   :  { %v8296_v37 = vpack.c.bf16 %v2931_v34, %v2928_v31  ;;  %v2953_v34 = vld [vmem:[#allocation8 + $0x888] sm:$0xff]  ;;  %v2974_v59 = vld [vmem:[#allocation8 + $0x930] sm:$0xff] }
 0x33e   :  { %8279 = vmatpush3.bf16.msra.mxu0 %v8278_v38  ;;  %v2926_v38 = vld [vmem:[#allocation8 + $0x7b0] sm:$0xff] }
 0x33f   :  { %8119 = vmatpush1.bf16.msra.mxu1 %v8118_v39  ;;  %8281 = vmatprep.subr.bf16.mxu0 %v8280_v41  ;;  %v2880_v39 = vld [vmem:[#allocation8 + $0x640] sm:$0xff]  ;;  %v2883_v41 = vld [vmem:[#allocation8 + $0x658] sm:$0xff]  ;;  %v8138_v52 = vpack.c.bf16 %v2929_v43, %v2926_v38  ;;  %v8154_v38 = vpack.c.bf16 %v2953_v34, %v2950_v54  ;;  %v2913_v43 = vld [vmem:[#allocation8 + $0x748] sm:$0xff] }
 0x340   :  { %v6647_v50 = vpop.f32.mrb[10].mxu1  ;;  %8121 = vmatprep.subr.bf16.mxu1 %v8120_v46  ;;  %v2937_v46 = vld [vmem:[#allocation8 + $0x808] sm:$0xff]  ;;  %v8298_v18 = vpack.c.bf16 %v2883_v41, %v2880_v39  ;;  %v8316_v39 = vpack.c.bf16 %v2961_v17, %v2958_v0  ;;  %v2956_v41 = vld [vmem:[#allocation8 + $0x8a0] sm:$0xff] }
 0x341   :  { %v6648_v16 = vpop.f32.mrb[11].mxu1  ;;  %v8300_v58 = vpack.c.bf16 %v2937_v46, %v2934_v44  ;;  %v3033_v54 = vld [vmem:[#allocation8 + $0xb08] sm:$0xff] }
 0x342   :  { %v6649_v55 = vadd.f32 %v6648_v16, %v6647_v50  ;;  %8283 = vmatpush3.bf16.msra.mxu0 %v8282_v62  ;;  %v2932_v62 = vld [vmem:[#allocation8 + $0x7e0] sm:$0xff]  ;;  %v2942_v50 = vld [vmem:[#allocation8 + $0x830] sm:$0xff] }
 0x343   :  { %8123 = vmatpush1.bf16.msra.mxu1 %v8122_v63  ;;  %8285 = vmatprep.subr.bf16.mxu0 %v8284_v1  ;;  %v2886_v63 = vld [vmem:[#allocation8 + $0x670] sm:$0xff]  ;;  %v2889_v1 = vld [vmem:[#allocation8 + $0x688] sm:$0xff]  ;;  %v8142_v40 = vpack.c.bf16 %v2935_v30, %v2932_v62 }
 0x344   :  { %v10348_v2 = vadd.f32 %v6649_v55, %v10327_v51  ;;  %8125 = vmatprep.subr.bf16.mxu1 %v8124_v11  ;;  %v2923_v51 = vld [vmem:[#allocation8 + $0x798] sm:$0xff]  ;;  %v8302_v11 = vpack.c.bf16 %v2889_v1, %v2886_v63  ;;  %v2949_v55 = vld [vmem:[#allocation8 + $0x868] sm:$0xff]  ;;  %v2966_v62 = vld [vmem:[#allocation8 + $0x8f0] sm:$0xff] }
 0x345   :  { %v8134_v35 = vpack.c.bf16 %v2923_v51, %v2920_v29  ;;  %v8308_v25 = vpack.c.bf16 %v2949_v55, %v2946_v9  ;;  %v8150_v29 = vpack.c.bf16 %v2947_v15, %v2944_v26  ;;  %v2907_v51 = vld [vmem:[#allocation8 + $0x718] sm:$0xff] }
 0x346   :  { %8287 = vmatpush3.bf16.msra.mxu0 %v8286_v20  ;;  %v2945_v20 = vld [vmem:[#allocation8 + $0x848] sm:$0xff]  ;;  %v2975_v26 = vld [vmem:[#allocation8 + $0x938] sm:$0xff] }
 0x347   :  { %8127 = vmatpush1.bf16.msra.mxu1 %v8126_v22  ;;  %8289 = vmatprep.subr.bf16.mxu0 %v8288_v24  ;;  %v2948_v22 = vld [vmem:[#allocation8 + $0x860] sm:$0xff]  ;;  %v8306_v24 = vpack.c.bf16 %v2895_v32, %v2892_v14  ;;  %v2969_v14 = vld [vmem:[#allocation8 + $0x908] sm:$0xff]  ;;  %v3027_v15 = vld [vmem:[#allocation8 + $0xad8] sm:$0xff] }
 0x348   :  { %8129 = vmatprep.subr.bf16.mxu1 %v8128_v12  ;;  %v2898_v12 = vld [vmem:[#allocation8 + $0x6d0] sm:$0xff]  ;;  %v8148_v53 = vpack.c.bf16 %v2948_v22, %v2945_v20  ;;  %v2972_v32 = vld [vmem:[#allocation8 + $0x920] sm:$0xff]  ;;  %v2973_v22 = vld [vmem:[#allocation8 + $0x928] sm:$0xff] }
 0x349   :  { %v2970_v20 = vld [vmem:[#allocation8 + $0x910] sm:$0xff] }
 0x34a   :  { %8291 = vmatpush3.bf16.msra.mxu0 %v8290_v56  ;;  %v2951_v56 = vld [vmem:[#allocation8 + $0x878] sm:$0xff] }
 0x34b   :  { %8131 = vmatpush1.bf16.msra.mxu1 %v8130_v27  ;;  %8293 = vmatprep.subr.bf16.mxu0 %v8292_v28  ;;  %v2954_v27 = vld [vmem:[#allocation8 + $0x890] sm:$0xff]  ;;  %v8310_v28 = vpack.c.bf16 %v2901_v10, %v2898_v12  ;;  %v8326_v10 = vpack.c.bf16 %v2973_v22, %v2970_v20 }
 0x34c   :  { %8133 = vmatprep.subr.bf16.mxu1 %v8132_v6  ;;  %v2904_v6 = vld [vmem:[#allocation8 + $0x700] sm:$0xff]  ;;  %v8152_v31 = vpack.c.bf16 %v2954_v27, %v2951_v56  ;;  %v2978_v12 = vld [vmem:[#allocation8 + $0x950] sm:$0xff]  ;;  %v2979_v27 = vld [vmem:[#allocation8 + $0x958] sm:$0xff] }
 0x34d   :  { %3483 = vmatmul.mubr.f32.vlgmr.msra.gmra.mrb[12].mxu0 %v1423_v57  ;;  %v2939_v57 = vld [vmem:[#allocation8 + $0x818] sm:$0xff]  ;;  %v2976_v56 = vld [vmem:[#allocation8 + $0x940] sm:$0xff] }
 0x34e   :  { %8295 = vmatpush3.bf16.msra.mxu0 %v8294_v19  ;;  %3552 = vmatprep.mubr.f32.mxu0 %v1426_v5  ;;  %v8304_v5 = vpack.c.bf16 %v2943_v36, %v2940_v8  ;;  %v8144_v16 = vpack.c.bf16 %v2942_v50, %v2939_v57  ;;  %v2957_v19 = vld [vmem:[#allocation8 + $0x8a8] sm:$0xff]  ;;  %v2962_v8 = vld [vmem:[#allocation8 + $0x8d0] sm:$0xff]  ;;  %v2916_v36 = vld [vmem:[#allocation8 + $0x760] sm:$0xff]  ;;  %v8330_v34 = vpack.c.bf16 %v2979_v27, %v2976_v56 }
 0x34f   :  { %8135 = vmatpush1.bf16.msra.mxu1 %v8134_v35  ;;  %8297 = vmatprep.subr.bf16.mxu0 %v8296_v37  ;;  %v2960_v35 = vld [vmem:[#allocation8 + $0x8c0] sm:$0xff]  ;;  %v8314_v37 = vpack.c.bf16 %v2907_v51, %v2904_v6  ;;  %v2919_v57 = vld [vmem:[#allocation8 + $0x778] sm:$0xff]  ;;  %v2981_v51 = vld [vmem:[#allocation8 + $0x968] sm:$0xff] }
 0x350   :  { %8137 = vmatprep.subr.bf16.mxu1 %v8136_v42  ;;  %v2910_v42 = vld [vmem:[#allocation8 + $0x730] sm:$0xff]  ;;  %v8156_v46 = vpack.c.bf16 %v2960_v35, %v2957_v19  ;;  %v2980_v19 = vld [vmem:[#allocation8 + $0x960] sm:$0xff] }
 0x351   :  { %v8318_v1 = vpack.c.bf16 %v2913_v43, %v2910_v42  ;;  %v2982_v35 = vld [vmem:[#allocation8 + $0x970] sm:$0xff]  ;;  %v3039_v42 = vld [vmem:[#allocation8 + $0xb38] sm:$0xff] }
 0x352   :  { %8299 = vmatpush3.bf16.msra.mxu0 %v8298_v18  ;;  %v2967_v18 = vld [vmem:[#allocation8 + $0x8f8] sm:$0xff]  ;;  %v3006_v27 = vld [vmem:[#allocation8 + $0xa30] sm:$0xff] }
 0x353   :  { %8139 = vmatpush1.bf16.msra.mxu1 %v8138_v52  ;;  %8301 = vmatprep.subr.bf16.mxu0 %v8300_v58  ;;  %v2963_v58 = vld [vmem:[#allocation8 + $0x8d8] sm:$0xff]  ;;  %v8320_v30 = vpack.c.bf16 %v2967_v18, %v2964_v48  ;;  %v2986_v18 = vld [vmem:[#allocation8 + $0x990] sm:$0xff] }
 0x354   :  { %8141 = vmatprep.subr.bf16.mxu1 %v8140_v49  ;;  %v8158_v49 = vpack.c.bf16 %v2959_v47, %v2956_v41  ;;  %v3036_v41 = vld [vmem:[#allocation8 + $0xb20] sm:$0xff]  ;;  %v2987_v43 = vld [vmem:[#allocation8 + $0x998] sm:$0xff] }
 0x355   :  { %v8336_v48 = vpack.c.bf16 %v3039_v42, %v3036_v41  ;;  %v3010_v42 = vld [vmem:[#allocation8 + $0xa50] sm:$0xff] }
 0x356   :  { %8303 = vmatpush3.bf16.msra.mxu0 %v8302_v11  ;;  %v8160_v11 = vpack.c.bf16 %v2966_v62, %v2963_v58  ;;  %v2991_v58 = vld [vmem:[#allocation8 + $0x9b8] sm:$0xff] }
 0x357   :  { %8143 = vmatpush1.bf16.msra.mxu1 %v8142_v40  ;;  %8305 = vmatprep.subr.bf16.mxu0 %v8304_v5  ;;  %v2965_v40 = vld [vmem:[#allocation8 + $0x8e8] sm:$0xff]  ;;  %v3018_v5 = vld [vmem:[#allocation8 + $0xa90] sm:$0xff] }
 0x358   :  { %8145 = vmatprep.subr.bf16.mxu1 %v8144_v16  ;;  %v8322_v16 = vpack.c.bf16 %v2919_v57, %v2916_v36  ;;  %v8162_v9 = vpack.c.bf16 %v2965_v40, %v2962_v8  ;;  %v8324_v55 = vpack.c.bf16 %v3021_v13, %v3018_v5  ;;  %v2996_v8 = vld [vmem:[#allocation8 + $0x9e0] sm:$0xff]  ;;  %v2994_v5 = vld [vmem:[#allocation8 + $0x9d0] sm:$0xff]  ;;  %v2997_v13 = vld [vmem:[#allocation8 + $0x9e8] sm:$0xff] }
 0x359   :  { %v2992_v40 = vld [vmem:[#allocation8 + $0x9c0] sm:$0xff]  ;;  %v8342_v20 = vpack.c.bf16 %v2997_v13, %v2994_v5  ;;  %v3031_v13 = vld [vmem:[#allocation8 + $0xaf8] sm:$0xff] }
 0x35a   :  { %8307 = vmatpush3.bf16.msra.mxu0 %v8306_v24  ;;  %v2968_v24 = vld [vmem:[#allocation8 + $0x900] sm:$0xff] }
 0x35b   :  { %8147 = vmatpush1.bf16.msra.mxu1 %v8146_v23  ;;  %8309 = vmatprep.subr.bf16.mxu0 %v8308_v25  ;;  %v2971_v23 = vld [vmem:[#allocation8 + $0x918] sm:$0xff]  ;;  %v1411_v25 = vadd.f32 %v10289_v4, %v10228_v21  ;;  %v3028_v5 = vld [vmem:[#allocation8 + $0xae0] sm:$0xff] }
 0x35c   :  { %8149 = vmatprep.subr.bf16.mxu1 %v8148_v53  ;;  %v3024_v53 = vld [vmem:[#allocation8 + $0xac0] sm:$0xff]  ;;  %v8166_v7 = vpack.c.bf16 %v2971_v23, %v2968_v24  ;;  %v2998_v24 = vld [vmem:[#allocation8 + $0x9f0] sm:$0xff] }
 0x35d   :  { %v1428_v6 = vmax.f32 %v1411_v25, 0.0  ;;  %v8328_v4 = vpack.c.bf16 %v3027_v15, %v3024_v53  ;;  %v3000_v23 = vld [vmem:[#allocation8 + $0xa00] sm:$0xff]  ;;  %v3003_v25 = vld [vmem:[#allocation8 + $0xa18] sm:$0xff]  ;;  %v3057_v53 = vld [vmem:[#allocation8 + $0xbc8] sm:$0xff] }
 0x35e   :  { %8311 = vmatpush3.bf16.msra.mxu0 %v8310_v28  ;;  %v8168_v28 = vpack.c.bf16 %v2978_v12, %v2975_v26  ;;  %v3001_v12 = vld [vmem:[#allocation8 + $0xa08] sm:$0xff] }
 0x35f   :  { %8151 = vmatpush1.bf16.msra.mxu1 %v8150_v29  ;;  %8313 = vmatprep.subr.bf16.mxu0 %v8312_v33  ;;  %v2977_v29 = vld [vmem:[#allocation8 + $0x948] sm:$0xff]  ;;  %v3030_v33 = vld [vmem:[#allocation8 + $0xaf0] sm:$0xff] }
 0x360   :  { %v6682_v44 = vpop.f32.mrb[12].mxu1  ;;  %8153 = vmatprep.subr.bf16.mxu1 %v8152_v31  ;;  %v2984_v31 = vld [vmem:[#allocation8 + $0x980] sm:$0xff]  ;;  %v8170_v0 = vpack.c.bf16 %v2977_v29, %v2974_v59  ;;  %v8332_v17 = vpack.c.bf16 %v3033_v54, %v3030_v33  ;;  %v3005_v15 = vld [vmem:[#allocation8 + $0xa28] sm:$0xff]  ;;  %v8186_v59 = vpack.c.bf16 %v3001_v12, %v2998_v24  ;;  %v3007_v54 = vld [vmem:[#allocation8 + $0xa38] sm:$0xff] }
 0x361   :  { %v6683_v52 = vpop.f32.mrb[13].mxu1  ;;  %v3004_v33 = vld [vmem:[#allocation8 + $0xa20] sm:$0xff]  ;;  %v3050_v12 = vld [vmem:[#allocation8 + $0xb90] sm:$0xff] }
 0x362   :  { %v6684_v63 = vadd.f32 %v6683_v52, %v6682_v44  ;;  %8315 = vmatpush3.bf16.msra.mxu0 %v8314_v37  ;;  %v2985_v37 = vld [vmem:[#allocation8 + $0x988] sm:$0xff]  ;;  %v2990_v44 = vld [vmem:[#allocation8 + $0x9b0] sm:$0xff]  ;;  %v2988_v52 = vld [vmem:[#allocation8 + $0x9a0] sm:$0xff] }
 0x363   :  { %8155 = vmatpush1.bf16.msra.mxu1 %v8154_v38  ;;  %8317 = vmatprep.subr.bf16.mxu0 %v8316_v39  ;;  %v8172_v38 = vpack.c.bf16 %v2984_v31, %v2981_v51  ;;  %v2983_v39 = vld [vmem:[#allocation8 + $0x978] sm:$0xff]  ;;  %v8176_v62 = vpack.c.bf16 %v2990_v44, %v2987_v43  ;;  %v8338_v36 = vpack.c.bf16 %v2991_v58, %v2988_v52  ;;  %v3014_v51 = vld [vmem:[#allocation8 + $0xa70] sm:$0xff]  ;;  %v3060_v31 = vld [vmem:[#allocation8 + $0xbe0] sm:$0xff] }
 0x364   :  { %v10355_v50 = vadd.f32 %v6684_v63, %v10348_v2  ;;  %8157 = vmatprep.subr.bf16.mxu1 %v8156_v46  ;;  %v8164_v2 = vpack.c.bf16 %v2972_v32, %v2969_v14  ;;  %v8334_v46 = vpack.c.bf16 %v2985_v37, %v2982_v35  ;;  %v8174_v47 = vpack.c.bf16 %v2983_v39, %v2980_v19  ;;  %v2989_v63 = vld [vmem:[#allocation8 + $0x9a8] sm:$0xff]  ;;  %v2995_v32 = vld [vmem:[#allocation8 + $0x9d8] sm:$0xff]  ;;  %v3012_v37 = vld [vmem:[#allocation8 + $0xa60] sm:$0xff] }
 0x365   :  { %v8178_v57 = vpack.c.bf16 %v2989_v63, %v2986_v18  ;;  %v8182_v22 = vpack.c.bf16 %v2995_v32, %v2992_v40  ;;  %v8190_v35 = vpack.c.bf16 %v3007_v54, %v3004_v33  ;;  %v3013_v43 = vld [vmem:[#allocation8 + $0xa68] sm:$0xff]  ;;  %v10366_v18 = vadd.f32 %v10285_v61, %v10228_v21  ;;  %v3019_v63 = vld [vmem:[#allocation8 + $0xa98] sm:$0xff]  ;;  %v3022_v61 = vld [vmem:[#allocation8 + $0xab0] sm:$0xff] }
 0x366   :  { %8319 = vmatpush3.bf16.msra.mxu0 %v8318_v1  ;;  %v3042_v1 = vld [vmem:[#allocation8 + $0xb50] sm:$0xff]  ;;  %v8194_v52 = vpack.c.bf16 %v3013_v43, %v3010_v42  ;;  %v3059_v33 = vld [vmem:[#allocation8 + $0xbd8] sm:$0xff] }
 0x367   :  { %8159 = vmatpush1.bf16.msra.mxu1 %v8158_v49  ;;  %8321 = vmatprep.subr.bf16.mxu0 %v8320_v30  ;;  %v3045_v49 = vld [vmem:[#allocation8 + $0xb68] sm:$0xff]  ;;  %v3038_v32 = vld [vmem:[#allocation8 + $0xb30] sm:$0xff] }
 0x368   :  { %8161 = vmatprep.subr.bf16.mxu1 %v8160_v11  ;;  %v2993_v30 = vld [vmem:[#allocation8 + $0x9c8] sm:$0xff]  ;;  %v8340_v11 = vpack.c.bf16 %v3045_v49, %v3042_v1  ;;  %v3026_v1 = vld [vmem:[#allocation8 + $0xad0] sm:$0xff]  ;;  %v1427_v49 = vmax.f32 %v10366_v18, 0.0 }
 0x369   :  { %v8180_v14 = vpack.c.bf16 %v2996_v8, %v2993_v30  ;;  %v3025_v8 = vld [vmem:[#allocation8 + $0xac8] sm:$0xff]  ;;  %v3062_v54 = vld [vmem:[#allocation8 + $0xbf0] sm:$0xff] }
 0x36a   :  { %8323 = vmatpush3.bf16.msra.mxu0 %v8322_v16  ;;  %v3048_v16 = vld [vmem:[#allocation8 + $0xb80] sm:$0xff] }
 0x36b   :  { %8163 = vmatpush1.bf16.msra.mxu1 %v8162_v9  ;;  %8325 = vmatprep.subr.bf16.mxu0 %v8324_v55  ;;  %v2999_v9 = vld [vmem:[#allocation8 + $0x9f8] sm:$0xff]  ;;  %v3002_v55 = vld [vmem:[#allocation8 + $0xa10] sm:$0xff] }
 0x36c   :  { %8165 = vmatprep.subr.bf16.mxu1 %v8164_v2  ;;  %v8344_v2 = vpack.c.bf16 %v3051_v45, %v3048_v16  ;;  %v8184_v26 = vpack.c.bf16 %v3002_v55, %v2999_v9  ;;  %v8206_v16 = vpack.c.bf16 %v3031_v13, %v3028_v5  ;;  %v3034_v9 = vld [vmem:[#allocation8 + $0xb10] sm:$0xff]  ;;  %v3037_v55 = vld [vmem:[#allocation8 + $0xb28] sm:$0xff] }
 0x36d   :  { %3553 = vmatmul.mubr.f32.vlgmr.msra.gmra.mrb[14].mxu0 %v1425_v60 }
 0x36e   :  { %3271 = vmatmul.mubr.f32.vlgmr.msra.gmra.mrb[16].mxu1 %v1425_v60  ;;  %8327 = vmatpush3.bf16.msra.mxu0 %v8326_v10  ;;  %v3054_v10 = vld [vmem:[#allocation8 + $0xbb0] sm:$0xff]  ;;  %v3008_v60 = vld [vmem:[#allocation8 + $0xa40] sm:$0xff] }
 0x36f   :  { %8167 = vmatpush1.bf16.msra.mxu1 %v8166_v7  ;;  %3341 = vmatprep.mubr.f32.mxu1 %v1428_v6  ;;  %v8346_v7 = vpack.c.bf16 %v3003_v25, %v3000_v23  ;;  %v8348_v56 = vpack.c.bf16 %v3057_v53, %v3054_v10  ;;  %v8188_v29 = vpack.c.bf16 %v3008_v60, %v3005_v15  ;;  %v3040_v23 = vld [vmem:[#allocation8 + $0xb40] sm:$0xff]  ;;  %v3043_v25 = vld [vmem:[#allocation8 + $0xb58] sm:$0xff]  ;;  %v3046_v15 = vld [vmem:[#allocation8 + $0xb70] sm:$0xff] }
 0x370   :  { %3622 = vmatprep.mubr.f32.mxu0 %v1428_v6  ;;  %8169 = vmatprep.subr.bf16.mxu1 %v8168_v28  ;;  %v3009_v28 = vld [vmem:[#allocation8 + $0xa48] sm:$0xff]  ;;  %v3011_v6 = vld [vmem:[#allocation8 + $0xa58] sm:$0xff]  ;;  %v8214_v10 = vpack.c.bf16 %v3043_v25, %v3040_v23 }
 0x371   :  { %8329 = vmatprep.subr.bf16.mxu0 %v8328_v4  ;;  %v8192_v39 = vpack.c.bf16 %v3014_v51, %v3011_v6  ;;  %v3049_v60 = vld [vmem:[#allocation8 + $0xb88] sm:$0xff]  ;;  %v3058_v51 = vld [vmem:[#allocation8 + $0xbd0] sm:$0xff] }
 0x372   :  { %8331 = vmatpush3.bf16.msra.mxu0 %v8330_v34  ;;  %v3063_v34 = vld [vmem:[#allocation8 + $0xbf8] sm:$0xff] }
 0x373   :  { %8171 = vmatpush1.bf16.msra.mxu1 %v8170_v0  ;;  %8333 = vmatprep.subr.bf16.mxu0 %v8332_v17  ;;  %v8350_v17 = vpack.c.bf16 %v3009_v28, %v3006_v27  ;;  %v8352_v41 = vpack.c.bf16 %v3063_v34, %v3060_v31  ;;  %v3052_v28 = vld [vmem:[#allocation8 + $0xba0] sm:$0xff]  ;;  %v3061_v31 = vld [vmem:[#allocation8 + $0xbe8] sm:$0xff] }
 0x374   :  { %8173 = vmatprep.subr.bf16.mxu1 %v8172_v38  ;;  %v3015_v38 = vld [vmem:[#allocation8 + $0xa78] sm:$0xff]  ;;  %v8226_v34 = vpack.c.bf16 %v3061_v31, %v3058_v51 }
 0x376   :  { %8335 = vmatpush3.bf16.msra.mxu0 %v8334_v46  ;;  %v3017_v46 = vld [vmem:[#allocation8 + $0xa88] sm:$0xff] }
 0x377   :  { %8175 = vmatpush1.bf16.msra.mxu1 %v8174_v47  ;;  %8337 = vmatprep.subr.bf16.mxu0 %v8336_v48  ;;  %v3020_v47 = vld [vmem:[#allocation8 + $0xaa0] sm:$0xff]  ;;  %v8354_v48 = vpack.c.bf16 %v3015_v38, %v3012_v37 }
 0x378   :  { %8177 = vmatprep.subr.bf16.mxu1 %v8176_v62  ;;  %v8196_v58 = vpack.c.bf16 %v3020_v47, %v3017_v46  ;;  %v3016_v62 = vld [vmem:[#allocation8 + $0xa80] sm:$0xff] }
 0x379   :  { %v8198_v30 = vpack.c.bf16 %v3019_v63, %v3016_v62 }
 0x37a   :  { %8339 = vmatpush3.bf16.msra.mxu0 %v8338_v36  ;;  %v3029_v36 = vld [vmem:[#allocation8 + $0xae8] sm:$0xff] }
 0x37b   :  { %8179 = vmatpush1.bf16.msra.mxu1 %v8178_v57  ;;  %8341 = vmatprep.subr.bf16.mxu0 %v8340_v11  ;;  %v3032_v57 = vld [vmem:[#allocation8 + $0xb00] sm:$0xff]  ;;  %v8202_v11 = vpack.c.bf16 %v3025_v8, %v3022_v61 }
 0x37c   :  { %8181 = vmatprep.subr.bf16.mxu1 %v8180_v14  ;;  %v8204_v40 = vpack.c.bf16 %v3032_v57, %v3029_v36  ;;  %v3035_v14 = vld [vmem:[#allocation8 + $0xb18] sm:$0xff] }
 0x37d   :  { %v8208_v45 = vpack.c.bf16 %v3038_v32, %v3035_v14 }
 0x37e   :  { %8343 = vmatpush3.bf16.msra.mxu0 %v8342_v20  ;;  %v3041_v20 = vld [vmem:[#allocation8 + $0xb48] sm:$0xff] }
 0x37f   :  { %8183 = vmatpush1.bf16.msra.mxu1 %v8182_v22  ;;  %8345 = vmatprep.subr.bf16.mxu0 %v8344_v2  ;;  %v3044_v22 = vld [vmem:[#allocation8 + $0xb60] sm:$0xff]  ;;  %v8210_v2 = vpack.c.bf16 %v3037_v55, %v3034_v9 }
 0x380   :  { %8185 = vmatprep.subr.bf16.mxu1 %v8184_v26  ;;  %v8212_v24 = vpack.c.bf16 %v3044_v22, %v3041_v20  ;;  %v3047_v26 = vld [vmem:[#allocation8 + $0xb78] sm:$0xff] }
 0x381   :  { %v6717_v4 = vpop.f32.mrb[14].mxu1  ;;  %v8216_v53 = vpack.c.bf16 %v3050_v12, %v3047_v26 }
 0x382   :  { %v6718_v0 = vpop.f32.mrb[15].mxu1  ;;  %8347 = vmatpush3.bf16.msra.mxu0 %v8346_v7  ;;  %v3053_v7 = vld [vmem:[#allocation8 + $0xba8] sm:$0xff] }
 0x383   :  { %v6719_v19 = vadd.f32 %v6718_v0, %v6717_v4  ;;  %8187 = vmatpush1.bf16.msra.mxu1 %v8186_v59  ;;  %8349 = vmatprep.subr.bf16.mxu0 %v8348_v56  ;;  %v3056_v59 = vld [vmem:[#allocation8 + $0xbc0] sm:$0xff]  ;;  %v8218_v56 = vpack.c.bf16 %v3049_v60, %v3046_v15  ;;  %v8224_v4 = vpack.c.bf16 %v3062_v54, %v3059_v33  ;;  %v4053_v60 = vld [vmem:[%s10988_s5] sm:$0xff] }
 0x384   :  { %8189 = vmatprep.subr.bf16.mxu1 %v8188_v29  ;;  %v8220_v27 = vpack.c.bf16 %v3056_v59, %v3053_v7  ;;  %v3055_v29 = vld [vmem:[#allocation8 + $0xbb8] sm:$0xff] }
 0x385   :  { %v10362_v44 = vadd.f32 %v6719_v19, %v10355_v50  ;;  %v3023_v50 = vld [vmem:[#allocation8 + $0xab8] sm:$0xff]  ;;  %v8222_v6 = vpack.c.bf16 %v3055_v29, %v3052_v28 }
 0x386   :  { %8351 = vmatpush3.bf16.msra.mxu0 %v8350_v17  ;;  %v8200_v21 = vpack.c.bf16 %v3026_v1, %v3023_v50 }
 0x387   :  { %8191 = vmatpush1.bf16.msra.mxu1 %v8190_v35  ;;  %2672 = vrot.lane.b32.xlu0 %v10362_v44, %s9691_s10 }
 0x388   :  { %8193 = vmatprep.subr.bf16.mxu1 %v8192_v39  ;;  %8353 = vmatprep.subr.bf16.mxu0 %v8352_v41 }
 0x38a   :  { %8355 = vmatpush3.bf16.msra.mxu0 %v8354_v48 }
 0x38b   :  { %8195 = vmatpush1.bf16.msra.mxu1 %v8194_v52 }
 0x38c   :  { %8197 = vmatprep.subr.bf16.mxu1 %v8196_v58 }
 0x38d   :  { %3623 = vmatmul.mubr.f32.vlgmr.msra.gmra.mrb[16].mxu0 %v1427_v49 }
 0x38f   :  { %8199 = vmatpush1.bf16.msra.mxu1 %v8198_v30 }
 0x390   :  { %8201 = vmatprep.subr.bf16.mxu1 %v8200_v21 }
 0x393   :  { %8203 = vmatpush1.bf16.msra.mxu1 %v8202_v11 }
 0x394   :  { %8205 = vmatprep.subr.bf16.mxu1 %v8204_v40 }
 0x397   :  { %8207 = vmatpush1.bf16.msra.mxu1 %v8206_v16 }
 0x398   :  { %8209 = vmatprep.subr.bf16.mxu1 %v8208_v45 }
 0x39b   :  { %8211 = vmatpush1.bf16.msra.mxu1 %v8210_v2 }
 0x39c   :  { %8213 = vmatprep.subr.bf16.mxu1 %v8212_v24  ;;  %v3922_v24 = vld [vmem:[#allocation10 + $0x8] sm:$0xff] }
 0x39d   :  { %4129 = vmatprep.mubr.f32.mxu0 %v3922_v24 }
 0x39f   :  { %8215 = vmatpush1.bf16.msra.mxu1 %v8214_v10  ;;  %v4054_v10 = vld [vmem:[%s10988_s5 + $0x8] sm:$0xff]  ;;  %s9712_s5 = smov [#allocation20]  }
 0x3a0   :  { %8217 = vmatprep.subr.bf16.mxu1 %v8216_v53 }
 0x3a3   :  { %8219 = vmatpush1.bf16.msra.mxu1 %v8218_v56 }
 0x3a4   :  { %8221 = vmatprep.subr.bf16.mxu1 %v8220_v27 }
 0x3a7   :  { %8223 = vmatpush1.bf16.msra.mxu1 %v8222_v6 }
 0x3a8   :  { %8225 = vmatprep.subr.bf16.mxu1 %v8224_v4 }
 0x3ab   :  { %8227 = vmatpush1.bf16.msra.mxu1 %v8226_v34 }
 0x3ae   :  { %3342 = vmatmul.mubr.f32.vlgmr.msra.gmra.mrb[16].mxu1 %v1427_v49 }
 0x3af   :  { %4206 = vmatprep.mubr.f32.mxu1 %v3922_v24 }
 0x3e0   :  { %v10371_v0 = vpop.f32.mrb[8].mxu0 }
 0x3e1   :  { %v2094_v17 = vpop.f32.mrb[9].mxu0 }
 0x3e2   :  { %v9086_v19 = vpack.i.bf16 %v10362_v44, %v2094_v17 }
 0x3e4   :  { %9087 = vrot.lane.b32.xlu0 %v9086_v19, %s9680_s1  ;;  %9077 = vrot.lane.b32.xlu1 %v9086_v19, %s9678_s11 }
 0x3e8   :  { %9097 = vrot.lane.b32.xlu0 %v9086_v19, %s9698_s2  ;;  %9082 = vrot.lane.b32.xlu1 %v9086_v19, %s9677_s14 }
 0x3ec   :  { %9107 = vrot.lane.b32.xlu0 %v9086_v19, %s9699_s30  ;;  %9092 = vrot.lane.b32.xlu1 %v9086_v19, %s9681_s19 }
 0x3f0   :  { %9117 = vrot.lane.b32.xlu0 %v9086_v19, %s9700_s16  ;;  %9102 = vrot.lane.b32.xlu1 %v9086_v19, %s9701_s17 }
 0x3f4   :  { %9127 = vrot.lane.b32.xlu0 %v9086_v19, %s9683_s21  ;;  %9112 = vrot.lane.b32.xlu1 %v9086_v19, %s9702_s8 }
 0x3f8   :  { %9137 = vrot.lane.b32.xlu0 %v9086_v19, %s9685_s24  ;;  %9122 = vrot.lane.b32.xlu1 %v9086_v19, %s9682_s20 }
 0x3f9   :  { %v10441_v11 = vpop.permute.xlu0 %2672 }
 0x3fc   :  { %9147 = vrot.lane.b32.xlu0 %v9086_v19, %s9703_s13  ;;  %9132 = vrot.lane.b32.xlu1 %v9086_v19, %s9684_s7 }
 0x400   :  { %9157 = vrot.lane.b32.xlu0 %v9086_v19, %s9704_s3  ;;  %9142 = vrot.lane.b32.xlu1 %v9086_v19, %s9686_s6  ;;  %v6752_v35 = vpop.f32.mrb[10].mxu0 }
 0x401   :  { %v6753_v37 = vpop.f32.mrb[11].mxu0 }
 0x402   :  { %v6754_v38 = vadd.f32 %v6753_v37, %v6752_v35 }
 0x404   :  { %9167 = vrot.lane.b32.xlu0 %v9086_v19, %s9705_s22  ;;  %9152 = vrot.lane.b32.xlu1 %v9086_v19, %s9706_s15 }
 0x408   :  { %9177 = vrot.lane.b32.xlu0 %v9086_v19, %s9688_s26  ;;  %9162 = vrot.lane.b32.xlu1 %v9086_v19, %s9707_s4 }
 0x40c   :  { %9187 = vrot.lane.b32.xlu0 %v9086_v19, %s9690_s28  ;;  %9172 = vrot.lane.b32.xlu1 %v9086_v19, %s9687_s18 }
 0x410   :  { %9182 = vrot.lane.b32.xlu1 %v9086_v19, %s9689_s27 }
 0x414   :  { %2670 = vrot.lane.b32.xlu1 %v2094_v17, %s9691_s10 }
 0x420   :  { %v6787_v39 = vpop.f32.mrb[12].mxu0 }
 0x421   :  { %v6788_v41 = vpop.f32.mrb[13].mxu0 }
 0x422   :  { %v6789_v42 = vadd.f32 %v6788_v41, %v6787_v39 }
 0x424   :  { %v3485_v43 = vadd.f32 %v6789_v42, %v6754_v38 }
 0x440   :  { %v6822_v44 = vpop.f32.mrb[14].mxu0 }
 0x441   :  { %v6823_v46 = vpop.f32.mrb[15].mxu0 }
 0x442   :  { %v6824_v47 = vadd.f32 %v6823_v46, %v6822_v44 }
 0x444   :  { %v3555_v48 = vadd.f32 %v6824_v47, %v3485_v43 }
 0x456   :  { %v10398_v18 = vpop.permute.xlu1 %9077  ;;  %v10445_v40 = vpop.permute.xlu0 %9087 }
 0x457   :  { %v9080_v52 = vunpack.i.h.bf16 %v10398_v18  ;;  %v9079_v58 = vunpack.i.l.bf16 %v10398_v18  ;;  %v9090_v33 = vunpack.i.h.bf16 %v10445_v40  ;;  %v9089_v54 = vunpack.i.l.bf16 %v10445_v40 }
 0x459   :  { %v2389_v62 = vsel %vm215_vm3, %v9079_v58, %v9080_v52  ;;  %v2413_v43 = vsel %vm241_vm4, %v9089_v54, %v9090_v33 }
 0x45a   :  { %v8356_v63 = vpack.c.bf16 %v2389_v62, %v2094_v17  ;;  %v10437_v57 = vpop.permute.xlu1 %9082  ;;  %v10451_v13 = vpop.permute.xlu0 %9097 }
 0x45b   :  { %v9085_v28 = vunpack.i.h.bf16 %v10437_v57  ;;  %v9084_v29 = vunpack.i.l.bf16 %v10437_v57  ;;  %v9100_v37 = vunpack.i.h.bf16 %v10451_v13  ;;  %v9099_v38 = vunpack.i.l.bf16 %v10451_v13 }
 0x45c   :  { %8357 = vmatprep.subr.bf16.mxu0 %v8356_v63 }
 0x45d   :  { %v2401_v17 = vsel %vm228_vm1, %v9084_v29, %v9085_v28 }
 0x45e   :  { %v10447_v5 = vpop.permute.xlu1 %9092  ;;  %v10459_v32 = vpop.permute.xlu0 %9107  ;;  %v8360_v46 = vpack.c.bf16 %v2413_v43, %v2401_v17 }
 0x45f   :  { %v9095_v31 = vunpack.i.h.bf16 %v10447_v5  ;;  %v9094_v34 = vunpack.i.l.bf16 %v10447_v5  ;;  %v9110_v62 = vunpack.i.h.bf16 %v10459_v32  ;;  %v9109_v63 = vunpack.i.l.bf16 %v10459_v32 }
 0x460   :  { %v6857_v50 = vpop.f32.mrb[16].mxu0 }
 0x461   :  { %v6858_v1 = vpop.f32.mrb[17].mxu0  ;;  %v2425_v18 = vsel %vm254_vm5, %v9094_v34, %v9095_v31 }
 0x462   :  { %v6859_v49 = vadd.f32 %v6858_v1, %v6857_v50  ;;  %v10453_v14 = vpop.permute.xlu1 %9102  ;;  %v10465_v45 = vpop.permute.xlu0 %9117 }
 0x463   :  { %v9105_v47 = vunpack.i.h.bf16 %v10453_v14  ;;  %v9120_v24 = vunpack.i.h.bf16 %v10465_v45 }
 0x464   :  { %v10405_v30 = vadd.f32 %v6859_v49, %v3555_v48  ;;  %v9104_v48 = vunpack.i.l.bf16 %v10453_v14 }
 0x466   :  { %v10461_v16 = vpop.permute.xlu1 %9112  ;;  %v10473_v55 = vpop.permute.xlu0 %9127  ;;  %v2451_v5 = vsel %vm2449_vm11, %v9104_v48, %v9105_v47 }
 0x467   :  { %v9115_v57 = vunpack.i.h.bf16 %v10461_v16  ;;  %v9114_v40 = vunpack.i.l.bf16 %v10461_v16  ;;  %v2464_v16 = vsel %vm2462_vm12, %v9109_v63, %v9110_v62 }
 0x46a   :  { %v10467_v9 = vpop.permute.xlu1 %9122  ;;  %v10479_v22 = vpop.permute.xlu0 %9137 }
 0x46b   :  { %v9124_v31 = vunpack.i.l.bf16 %v10467_v9  ;;  %v9139_v62 = vunpack.i.l.bf16 %v10479_v22 }
 0x46e   :  { %v10475_v20 = vpop.permute.xlu1 %9132  ;;  %v10487_v23 = vpop.permute.xlu0 %9147 }
 0x46f   :  { %v9135_v47 = vunpack.i.h.bf16 %v10475_v20 }
 0x472   :  { %v10481_v2 = vpop.permute.xlu1 %9142  ;;  %v10493_v26 = vpop.permute.xlu0 %9157 }
 0x476   :  { %v10489_v25 = vpop.permute.xlu1 %9152  ;;  %v10508_v53 = vpop.permute.xlu0 %9167 }
 0x47a   :  { %v10495_v12 = vpop.permute.xlu1 %9162  ;;  %v10515_v7 = vpop.permute.xlu0 %9177 }
 0x47e   :  { %v10510_v15 = vpop.permute.xlu1 %9172  ;;  %v10519_v56 = vpop.permute.xlu0 %9187 }
 0x481   :  { %v10407_v21 = vpop.f32.mrb[16].mxu1 }
 0x482   :  { %v10409_v61 = vpop.f32.mrb[17].mxu1  ;;  %v9191_v8 = vpack.i.bf16 %v10407_v21, %v10371_v0  ;;  %v10517_v59 = vpop.permute.xlu1 %9182 }
 0x483   :  { %v9306_v36 = vpack.i.bf16 %v10405_v30, %v10409_v61 }
 0x484   :  { %9192 = vrot.lane.b32.xlu0 %v9191_v8, %s9678_s11  ;;  %9197 = vrot.lane.b32.xlu1 %v9191_v8, %s9677_s14 }
 0x486   :  { %v10521_v27 = vpop.permute.xlu1 %2670 }
 0x488   :  { %9202 = vrot.lane.b32.xlu0 %v9191_v8, %s9680_s1  ;;  %9207 = vrot.lane.b32.xlu1 %v9191_v8, %s9681_s19 }
 0x48c   :  { %9212 = vrot.lane.b32.xlu0 %v9191_v8, %s9698_s2  ;;  %9217 = vrot.lane.b32.xlu1 %v9191_v8, %s9701_s17 }
 0x490   :  { %9222 = vrot.lane.b32.xlu0 %v9191_v8, %s9699_s30  ;;  %9227 = vrot.lane.b32.xlu1 %v9191_v8, %s9702_s8 }
 0x494   :  { %9232 = vrot.lane.b32.xlu0 %v9191_v8, %s9700_s16  ;;  %9237 = vrot.lane.b32.xlu1 %v9191_v8, %s9682_s20 }
 0x498   :  { %9242 = vrot.lane.b32.xlu0 %v9191_v8, %s9683_s21  ;;  %9247 = vrot.lane.b32.xlu1 %v9191_v8, %s9684_s7 }
 0x49c   :  { %9252 = vrot.lane.b32.xlu0 %v9191_v8, %s9685_s24  ;;  %9257 = vrot.lane.b32.xlu1 %v9191_v8, %s9686_s6 }
 0x4a0   :  { %9262 = vrot.lane.b32.xlu0 %v9191_v8, %s9703_s13  ;;  %9267 = vrot.lane.b32.xlu1 %v9191_v8, %s9706_s15 }
 0x4a4   :  { %9272 = vrot.lane.b32.xlu0 %v9191_v8, %s9704_s3  ;;  %9277 = vrot.lane.b32.xlu1 %v9191_v8, %s9707_s4 }
 0x4a8   :  { %9282 = vrot.lane.b32.xlu0 %v9191_v8, %s9705_s22  ;;  %9287 = vrot.lane.b32.xlu1 %v9191_v8, %s9687_s18 }
 0x4ac   :  { %9292 = vrot.lane.b32.xlu0 %v9191_v8, %s9688_s26  ;;  %9297 = vrot.lane.b32.xlu1 %v9191_v8, %s9689_s27 }
 0x4b0   :  { %9302 = vrot.lane.b32.xlu0 %v9191_v8, %s9690_s28  ;;  %9307 = vrot.lane.b32.xlu1 %v9306_v36, %s9678_s11 }
 0x4b4   :  { %9317 = vrot.lane.b32.xlu0 %v9306_v36, %s9680_s1  ;;  %9312 = vrot.lane.b32.xlu1 %v9306_v36, %s9677_s14 }
 0x4b8   :  { %9327 = vrot.lane.b32.xlu0 %v9306_v36, %s9698_s2  ;;  %9322 = vrot.lane.b32.xlu1 %v9306_v36, %s9681_s19 }
 0x4bc   :  { %9337 = vrot.lane.b32.xlu0 %v9306_v36, %s9699_s30  ;;  %9332 = vrot.lane.b32.xlu1 %v9306_v36, %s9701_s17 }
 0x4c0   :  { %9347 = vrot.lane.b32.xlu0 %v9306_v36, %s9700_s16  ;;  %9342 = vrot.lane.b32.xlu1 %v9306_v36, %s9702_s8 }
 0x4c4   :  { %9357 = vrot.lane.b32.xlu0 %v9306_v36, %s9683_s21  ;;  %9352 = vrot.lane.b32.xlu1 %v9306_v36, %s9682_s20  ;;  %s6553_s20 = sshll.u32 %s9712_s5, 4  ;;  %s6554_s20 = int_to_ptr.vmem [resolvable:$true] %s6553_s20 }
 0x4c5   :  { %s9628_s21 = scalar_lea.vmem %s6554_s20, 32  ;;  %p9633_p3 = scmp.lt.s32.totalorder %s6554_s20, %s6554_s20 }
 0x4c6   :  { %p9629_p2 = scmp.ne.s32.totalorder %s6554_s20, %s9628_s21  ;;  %p9634_p4 = scmp.lt.s32.totalorder %s9628_s21, %s9628_s21 }
 0x4c8   :  { %9367 = vrot.lane.b32.xlu0 %v9306_v36, %s9685_s24  ;;  %9362 = vrot.lane.b32.xlu1 %v9306_v36, %s9684_s7  ;;  %p9635_p5 = por %p9634_p4, %p9633_p3 }
 0x4ca   :  { %p9636_p6 = pnand %p9635_p5, %p9629_p2 }
 0x4cc   :  { %9377 = vrot.lane.b32.xlu0 %v9306_v36, %s9703_s13  ;;  %9372 = vrot.lane.b32.xlu1 %v9306_v36, %s9686_s6 }
 0x4d0   :  { %9387 = vrot.lane.b32.xlu0 %v9306_v36, %s9704_s3  ;;  %9382 = vrot.lane.b32.xlu1 %v9306_v36, %s9706_s15 }
 0x4d4   :  { %9397 = vrot.lane.b32.xlu0 %v9306_v36, %s9705_s22  ;;  %9392 = vrot.lane.b32.xlu1 %v9306_v36, %s9707_s4 }
 0x4d8   :  { %9407 = vrot.lane.b32.xlu0 %v9306_v36, %s9688_s26  ;;  %9402 = vrot.lane.b32.xlu1 %v9306_v36, %s9687_s18 }
 0x4dc   :  { %9417 = vrot.lane.b32.xlu0 %v9306_v36, %s9690_s28  ;;  %9412 = vrot.lane.b32.xlu1 %v9306_v36, %s9689_s27 }
 0x4e0   :  { %3913 = vrot.lane.b32.xlu0 %v10405_v30, %s9691_s10  ;;  %3911 = vrot.lane.b32.xlu1 %v10409_v61, %s9691_s10  ;;  %v2438_v30 = vsel %vm2436_vm0, %v9099_v38, %v9100_v37  ;;  %v9129_v37 = vunpack.i.l.bf16 %v10473_v55 }
 0x4e1   :  { %v8364_v36 = vpack.c.bf16 %v2438_v30, %v2425_v18 }
 0x4e4   :  { %3909 = vrot.lane.b32.xlu0 %v10407_v21, %s9691_s10  ;;  %2668 = vrot.lane.b32.xlu1 %v10371_v0, %s9691_s10 }
 0x4e8   :  { %4062 = vperm.xlu0 %9075, %v4054_v10   ;;  %4057 = vperm.xlu1 %9421, %v4053_v60   ;;  %v9119_v10 = vunpack.i.l.bf16 %v10465_v45 }
 0x4f6   :  { %v10527_v6 = vpop.permute.xlu0 %9192  ;;  %v10529_v4 = vpop.permute.xlu1 %9197 }
 0x4f7   :  { %v9194_v51 = vunpack.i.l.bf16 %v10527_v6  ;;  %v9199_v35 = vunpack.i.l.bf16 %v10529_v4 }
 0x4f9   :  { %v2388_v19 = vsel %vm215_vm3, %v9194_v51, %v9079_v58  ;;  %v2400_v52 = vsel %vm228_vm1, %v9199_v35, %v9084_v29  ;;  %v9125_v51 = vunpack.i.h.bf16 %v10467_v9  ;;  %v9130_v35 = vunpack.i.h.bf16 %v10473_v55 }
 0x4fa   :  { %v8358_v39 = vpack.c.bf16 %v2388_v19, %v10371_v0  ;;  %v10542_v41 = vpop.permute.xlu0 %9202  ;;  %v10544_v42 = vpop.permute.xlu1 %9207  ;;  %v2490_v9 = vsel %vm2488_vm14, %v9119_v10, %v9120_v24  ;;  %v9149_v24 = vunpack.i.l.bf16 %v10487_v23 }
 0x4fb   :  { %v9204_v44 = vunpack.i.l.bf16 %v10542_v41  ;;  %v9209_v58 = vunpack.i.l.bf16 %v10544_v42  ;;  %v2502_v18 = vsel %vm267_vm6, %v9124_v31, %v9125_v51  ;;  %v9155_v51 = vunpack.i.h.bf16 %v10489_v25 }
 0x4fc   :  { %8359 = vmatpush1.bf16.msra.mxu0 %v8358_v39 }
 0x4fd   :  { %v2412_v0 = vsel %vm241_vm4, %v9204_v44, %v9089_v54  ;;  %8361 = vmatprep.subr.bf16.mxu0 %v8360_v46  ;;  %v2424_v13 = vsel %vm254_vm5, %v9209_v58, %v9094_v34  ;;  %v8368_v54 = vpack.c.bf16 %v2464_v16, %v2451_v5  ;;  %v2477_v34 = vsel %vm2475_vm13, %v9114_v40, %v9115_v57 }
 0x4fe   :  { %v8362_v50 = vpack.c.bf16 %v2412_v0, %v2400_v52  ;;  %v10556_v1 = vpop.permute.xlu0 %9212  ;;  %v10558_v49 = vpop.permute.xlu1 %9217  ;;  %v8372_v46 = vpack.c.bf16 %v2490_v9, %v2477_v34  ;;  %v9140_v58 = vunpack.i.h.bf16 %v10479_v22  ;;  %v9145_v57 = vunpack.i.h.bf16 %v10481_v2 }
 0x4ff   :  { %v9214_v8 = vunpack.i.l.bf16 %v10556_v1  ;;  %v9219_v32 = vunpack.i.l.bf16 %v10558_v49 }
 0x500   :  { %8363 = vmatpush1.bf16.msra.mxu0 %v8362_v50 }
 0x501   :  { %v2437_v14 = vsel %vm2436_vm0, %v9214_v8, %v9099_v38  ;;  %8365 = vmatprep.subr.bf16.mxu0 %v8364_v36  ;;  %v2450_v45 = vsel %vm2449_vm11, %v9219_v32, %v9104_v48  ;;  %v9134_v48 = vunpack.i.l.bf16 %v10475_v20  ;;  %v2514_v20 = vsel %vm280_vm7, %v9129_v37, %v9130_v35 }
 0x502   :  { %v8366_v60 = vpack.c.bf16 %v2437_v14, %v2424_v13  ;;  %v10570_v28 = vpop.permute.xlu0 %9222  ;;  %v10572_v29 = vpop.permute.xlu1 %9227  ;;  %v8376_v36 = vpack.c.bf16 %v2514_v20, %v2502_v18  ;;  %v9150_v32 = vunpack.i.h.bf16 %v10487_v23  ;;  %v9159_v35 = vunpack.i.l.bf16 %v10493_v26 }
 0x503   :  { %v9224_v33 = vunpack.i.l.bf16 %v10570_v28  ;;  %v9229_v19 = vunpack.i.l.bf16 %v10572_v29  ;;  %v2526_v5 = vsel %vm11003_vm8, %v9134_v48, %v9135_v47  ;;  %v9165_v47 = vunpack.i.h.bf16 %v10495_v12 }
 0x504   :  { %8367 = vmatpush1.bf16.msra.mxu0 %v8366_v60 }
 0x505   :  { %v2463_v17 = vsel %vm2462_vm12, %v9224_v33, %v9109_v63  ;;  %8369 = vmatprep.subr.bf16.mxu0 %v8368_v54  ;;  %v2476_v52 = vsel %vm2475_vm13, %v9229_v19, %v9114_v40  ;;  %v9144_v40 = vunpack.i.l.bf16 %v10481_v2  ;;  %v2538_v2 = vsel %vm11004_vm9, %v9139_v62, %v9140_v58 }
 0x506   :  { %v8370_v38 = vpack.c.bf16 %v2463_v17, %v2450_v45  ;;  %v10584_v39 = vpop.permute.xlu0 %9232  ;;  %v10586_v43 = vpop.permute.xlu1 %9237  ;;  %v8380_v54 = vpack.c.bf16 %v2538_v2, %v2526_v5  ;;  %v9160_v19 = vunpack.i.h.bf16 %v10493_v26  ;;  %v9169_v58 = vunpack.i.l.bf16 %v10508_v53 }
 0x507   :  { %v9234_v44 = vunpack.i.l.bf16 %v10584_v39  ;;  %v9239_v0 = vunpack.i.l.bf16 %v10586_v43  ;;  %v2550_v34 = vsel %vm11015_vm2, %v9144_v40, %v9145_v57  ;;  %vm11006_vm2 = vcmask 637952  }
 0x508   :  { %8371 = vmatpush1.bf16.msra.mxu0 %v8370_v38  ;;  %v9175_v57 = vunpack.i.h.bf16 %v10510_v15 }
 0x509   :  { %v2489_v55 = vsel %vm2488_vm14, %v9234_v44, %v9119_v10  ;;  %8373 = vmatprep.subr.bf16.mxu0 %v8372_v46  ;;  %v2501_v13 = vsel %vm267_vm6, %v9239_v0, %v9124_v31  ;;  %v9154_v31 = vunpack.i.l.bf16 %v10489_v25  ;;  %v2563_v25 = vsel %vm11007_vm15, %v9149_v24, %v9150_v32 }
 0x50a   :  { %v8374_v63 = vpack.c.bf16 %v2489_v55, %v2476_v52  ;;  %v10598_v50 = vpop.permute.xlu0 %9242  ;;  %v10600_v30 = vpop.permute.xlu1 %9247  ;;  %v8384_v46 = vpack.c.bf16 %v2563_v25, %v2550_v34  ;;  %v9170_v0 = vunpack.i.h.bf16 %v10508_v53  ;;  %v9179_v32 = vunpack.i.l.bf16 %v10515_v7 }
 0x50b   :  { %v9244_v8 = vunpack.i.l.bf16 %v10598_v50  ;;  %v9249_v14 = vunpack.i.l.bf16 %v10600_v30  ;;  %v2576_v18 = vsel %vm11005_vm10, %v9154_v31, %v9155_v51  ;;  %v9190_v34 = vunpack.i.h.bf16 %v10519_v56 }
 0x50c   :  { %8375 = vmatpush1.bf16.msra.mxu0 %v8374_v63 }
 0x50d   :  { %v2513_v22 = vsel %vm280_vm7, %v9244_v8, %v9129_v37  ;;  %8377 = vmatprep.subr.bf16.mxu0 %v8376_v36  ;;  %v2525_v23 = vsel %vm11003_vm8, %v9249_v14, %v9134_v48  ;;  %v9164_v48 = vunpack.i.l.bf16 %v10495_v12  ;;  %vm11016_vm8 = vcmask 752640  }
 0x50e   :  { %v8378_v10 = vpack.c.bf16 %v2513_v22, %v2501_v13  ;;  %v10612_v60 = vpop.permute.xlu0 %9252  ;;  %v10614_v16 = vpop.permute.xlu1 %9257  ;;  %v2589_v12 = vsel %vm11006_vm2, %v9159_v35, %v9160_v19  ;;  %v9180_v14 = vunpack.i.h.bf16 %v10515_v7  ;;  %v9189_v7 = vunpack.i.l.bf16 %v10519_v56 }
 0x50f   :  { %v9254_v33 = vunpack.i.l.bf16 %v10612_v60  ;;  %v9259_v17 = vunpack.i.l.bf16 %v10614_v16  ;;  %v8388_v36 = vpack.c.bf16 %v2589_v12, %v2576_v18 }
 0x510   :  { %8379 = vmatpush1.bf16.msra.mxu0 %v8378_v10 }
 0x511   :  { %v2537_v45 = vsel %vm11004_vm9, %v9254_v33, %v9139_v62  ;;  %8381 = vmatprep.subr.bf16.mxu0 %v8380_v54  ;;  %v2549_v26 = vsel %vm11016_vm8, %v9259_v17, %v9144_v40  ;;  %vm11008_vm9 = vcmask 629760   ;;  %vm11009_vm8 = vcmask 621568  }
 0x512   :  { %v8382_v37 = vpack.c.bf16 %v2537_v45, %v2525_v23  ;;  %v10626_v38 = vpop.permute.xlu0 %9262  ;;  %v10628_v9 = vpop.permute.xlu1 %9267  ;;  %v9174_v40 = vunpack.i.l.bf16 %v10510_v15  ;;  %v2602_v5 = vsel %vm11008_vm9, %v9164_v48, %v9165_v47  ;;  %v2615_v15 = vsel %vm11009_vm8, %v9169_v58, %v9170_v0 }
 0x513   :  { %v9264_v44 = vunpack.i.l.bf16 %v10626_v38  ;;  %v9269_v55 = vunpack.i.l.bf16 %v10628_v9  ;;  %v9185_v33 = vunpack.i.h.bf16 %v10517_v59  ;;  %v9184_v54 = vunpack.i.l.bf16 %v10517_v59 }
 0x514   :  { %8383 = vmatpush1.bf16.msra.mxu0 %v8382_v37 }
 0x515   :  { %v2562_v52 = vsel %vm11007_vm15, %v9264_v44, %v9149_v24  ;;  %8385 = vmatprep.subr.bf16.mxu0 %v8384_v46  ;;  %v2575_v53 = vsel %vm11005_vm10, %v9269_v55, %v9154_v31  ;;  %v8392_v31 = vpack.c.bf16 %v2615_v15, %v2602_v5  ;;  %vm11017_vm10 = vcmask 523264  }
 0x516   :  { %v8386_v62 = vpack.c.bf16 %v2562_v52, %v2549_v26  ;;  %v10640_v63 = vpop.permute.xlu0 %9272  ;;  %v10642_v20 = vpop.permute.xlu1 %9277  ;;  %v2627_v23 = vsel %vm11017_vm10, %v9174_v40, %v9175_v57  ;;  %vm11019_vm10 = vcmask 506880   ;;  %vm11020_vm15 = vcmask 523264  }
 0x517   :  { %v9274_v8 = vunpack.i.l.bf16 %v10640_v63  ;;  %v9279_v22 = vunpack.i.l.bf16 %v10642_v20  ;;  %v2651_v47 = vsel %vm11019_vm10, %v9184_v54, %v9185_v33  ;;  %v9200_v57 = vunpack.i.h.bf16 %v10529_v4 }
 0x518   :  { %8387 = vmatpush1.bf16.msra.mxu0 %v8386_v62  ;;  %v9195_v62 = vunpack.i.h.bf16 %v10527_v6 }
 0x519   :  { %v2588_v13 = vsel %vm11006_vm2, %v9274_v8, %v9159_v35  ;;  %8389 = vmatprep.subr.bf16.mxu0 %v8388_v36  ;;  %v2601_v45 = vsel %vm11008_vm9, %v9279_v22, %v9164_v48  ;;  %vm11018_vm2 = vcmask 515072   ;;  %v9205_v22 = vunpack.i.h.bf16 %v10542_v41 }
 0x51a   :  { %v8390_v24 = vpack.c.bf16 %v2588_v13, %v2575_v53  ;;  %v10654_v10 = vpop.permute.xlu0 %9282  ;;  %v10656_v2 = vpop.permute.xlu1 %9287  ;;  %v2639_v25 = vsel %vm11018_vm2, %v9179_v32, %v9180_v14  ;;  %vm11021_vm9 = vmmov %vm11018_vm2  ;;  %vm11025_vm2 = vcmask 490496  }
 0x51b   :  { %v9284_v51 = vunpack.i.l.bf16 %v10654_v10  ;;  %v9289_v19 = vunpack.i.l.bf16 %v10656_v2  ;;  %v8396_v46 = vpack.c.bf16 %v2639_v25, %v2627_v23  ;;  %v9215_v23 = vunpack.i.h.bf16 %v10556_v1 }
 0x51c   :  { %8391 = vmatpush1.bf16.msra.mxu0 %v8390_v24  ;;  %v9220_v1 = vunpack.i.h.bf16 %v10558_v49 }
 0x51d   :  { %v2614_v17 = vsel %vm11009_vm8, %v9284_v51, %v9169_v58  ;;  %8393 = vmatprep.subr.bf16.mxu0 %v8392_v31  ;;  %v2626_v56 = vsel %vm11020_vm15, %v9289_v19, %v9174_v40  ;;  %vm11022_vm8 = vcmask 498688   ;;  %v2675_v31 = vsel %vm11025_vm2, %v10521_v27, %v10441_v11 }
 0x51e   :  { %v8394_v35 = vpack.c.bf16 %v2614_v17, %v2601_v45  ;;  %v10668_v37 = vpop.permute.xlu0 %9292  ;;  %v10670_v59 = vpop.permute.xlu1 %9297  ;;  %v2663_v26 = vsel %vm11022_vm8, %v9189_v7, %v9190_v34  ;;  %vm11024_vm15 = vmmov %vm11022_vm8 }
 0x51f   :  { %v9294_v44 = vunpack.i.l.bf16 %v10668_v37  ;;  %v9299_v18 = vunpack.i.l.bf16 %v10670_v59  ;;  %v8400_v58 = vpack.c.bf16 %v2663_v26, %v2651_v47 }
 0x520   :  { %8395 = vmatpush1.bf16.msra.mxu0 %v8394_v35 }
 0x521   :  { %v2638_v48 = vsel %vm11021_vm9, %v9294_v44, %v9179_v32  ;;  %8397 = vmatprep.subr.bf16.mxu0 %v8396_v46  ;;  %vm11023_vm9 = vmmov %vm11019_vm10  ;;  %vm11038_vm10 = vcmask 621568  }
 0x522   :  { %v8398_v52 = vpack.c.bf16 %v2638_v48, %v2626_v56  ;;  %v10679_v55 = vpop.permute.xlu0 %9302  ;;  %v9308_v0 = vpop.permute.xlu1 %9307  ;;  %v2650_v40 = vsel %vm11023_vm9, %v9299_v18, %v9184_v54  ;;  %v9225_v18 = vunpack.i.h.bf16 %v10570_v28  ;;  %v9230_v28 = vunpack.i.h.bf16 %v10572_v29  ;;  %vm11041_vm2 = vmmov %vm11038_vm10 }
 0x523   :  { %v9304_v12 = vunpack.i.l.bf16 %v10679_v55  ;;  %v9310_v8 = vunpack.i.h.bf16 %v9308_v0  ;;  %v9309_v36 = vunpack.i.l.bf16 %v9308_v0  ;;  %vm11039_vm9 = vcmask 629760  }
 0x524   :  { %8399 = vmatpush1.bf16.msra.mxu0 %v8398_v52 }
 0x525   :  { %v2662_v5 = vsel %vm11024_vm15, %v9304_v12, %v9189_v7  ;;  %v3639_v53 = vsel %vm215_vm3, %v9195_v62, %v9309_v36  ;;  %8401 = vmatprep.subr.bf16.mxu0 %v8400_v58  ;;  %v3640_v13 = vsel %vm215_vm3, %v9309_v36, %v9310_v8  ;;  %vm11027_vm3 = vcmask 769024   ;;  %vm11040_vm15 = vmmov %vm11039_vm9 }
 0x526   :  { %v8402_v14 = vpack.c.bf16 %v2662_v5, %v2650_v40  ;;  %v8406_v6 = vpack.c.bf16 %v3639_v53, %v10407_v21  ;;  %v9318_v32 = vpop.permute.xlu0 %9317  ;;  %v9313_v24 = vpop.permute.xlu1 %9312  ;;  %v8404_v15 = vpack.c.bf16 %v3640_v13, %v10409_v61  ;;  %v9210_v61 = vunpack.i.h.bf16 %v10544_v42 }
 0x527   :  { %v9320_v4 = vunpack.i.h.bf16 %v9318_v32  ;;  %v9319_v33 = vunpack.i.l.bf16 %v9318_v32  ;;  %v9315_v51 = vunpack.i.h.bf16 %v9313_v24  ;;  %v9314_v54 = vunpack.i.l.bf16 %v9313_v24 }
 0x528   :  { %8403 = vmatpush1.bf16.msra.mxu0 %v8402_v14  ;;  %8405 = vmatprep.subr.bf16.mxu1 %v8404_v15  ;;  %v9235_v53 = vunpack.i.h.bf16 %v10584_v39  ;;  %v9240_v39 = vunpack.i.h.bf16 %v10586_v43 }
 0x529   :  { %v3663_v34 = vsel %vm241_vm4, %v9205_v22, %v9319_v33  ;;  %v3651_v41 = vsel %vm228_vm1, %v9200_v57, %v9314_v54  ;;  %4113 = vmatprep.subr.mxu0 %v2675_v31  ;;  %8407 = vmatpush1.bf16.msra.mxu1 %v8406_v6  ;;  %v3652_v21 = vsel %vm228_vm1, %v9314_v54, %v9315_v51  ;;  %v9245_v31 = vunpack.i.h.bf16 %v10598_v50 }
 0x52a   :  { %v8410_v7 = vpack.c.bf16 %v3663_v34, %v3651_v41  ;;  %v9328_v45 = vpop.permute.xlu0 %9327  ;;  %v9323_v17 = vpop.permute.xlu1 %9322  ;;  %v3664_v19 = vsel %vm241_vm4, %v9319_v33, %v9320_v4  ;;  %v9250_v50 = vunpack.i.h.bf16 %v10600_v30  ;;  %vm11026_vm1 = vcmask 760832   ;;  %vm11028_vm4 = vmmov %vm11027_vm3 }
 0x52b   :  { %v9330_v35 = vunpack.i.h.bf16 %v9328_v45  ;;  %v9329_v25 = vunpack.i.l.bf16 %v9328_v45  ;;  %v9325_v11 = vunpack.i.h.bf16 %v9323_v17  ;;  %v9324_v44 = vunpack.i.l.bf16 %v9323_v17 }
 0x52c   :  { %v8408_v46 = vpack.c.bf16 %v3664_v19, %v3652_v21 }
 0x52d   :  { %v3687_v47 = vsel %vm2436_vm0, %v9215_v23, %v9329_v25  ;;  %v3675_v56 = vsel %vm254_vm5, %v9210_v61, %v9324_v44  ;;  %v3676_v48 = vsel %vm254_vm5, %v9324_v44, %v9325_v11  ;;  %v3688_v42 = vsel %vm2436_vm0, %v9329_v25, %v9330_v35  ;;  %vm11029_vm5 = vmmov %vm11026_vm1 }
 0x52e   :  { %v8414_v26 = vpack.c.bf16 %v3687_v47, %v3675_v56  ;;  %8409 = vmatprep.subr.bf16.mxu1 %v8408_v46  ;;  %v9338_v52 = vpop.permute.xlu0 %9337  ;;  %v9333_v0 = vpop.permute.xlu1 %9332  ;;  %v8412_v58 = vpack.c.bf16 %v3688_v42, %v3676_v48  ;;  %v9255_v11 = vunpack.i.h.bf16 %v10612_v60  ;;  %v9260_v60 = vunpack.i.h.bf16 %v10614_v16 }
 0x52f   :  { %8411 = vmatpush1.bf16.msra.mxu1 %v8410_v7  ;;  %v9340_v62 = vunpack.i.h.bf16 %v9338_v52  ;;  %v9339_v12 = vunpack.i.l.bf16 %v9338_v52  ;;  %v9335_v8 = vunpack.i.h.bf16 %v9333_v0  ;;  %v9334_v36 = vunpack.i.l.bf16 %v9333_v0 }
 0x530   :  { %8413 = vmatprep.subr.bf16.mxu1 %v8412_v58  ;;  %v9265_v58 = vunpack.i.h.bf16 %v10626_v38  ;;  %v9270_v38 = vunpack.i.h.bf16 %v10628_v9 }
 0x531   :  { %v3711_v57 = vsel %vm2462_vm12, %v9225_v18, %v9339_v12  ;;  %v3699_v40 = vsel %vm2449_vm11, %v9220_v1, %v9334_v36  ;;  %v3700_v5 = vsel %vm2449_vm11, %v9334_v36, %v9335_v8  ;;  %v3712_v49 = vsel %vm2462_vm12, %v9339_v12, %v9340_v62 }
 0x532   :  { %v8418_v13 = vpack.c.bf16 %v3711_v57, %v3699_v40  ;;  %v9348_v22 = vpop.permute.xlu0 %9347  ;;  %v9343_v14 = vpop.permute.xlu1 %9342  ;;  %v8416_v6 = vpack.c.bf16 %v3712_v49, %v3700_v5  ;;  %vm11034_vm12 = vcmask 637952  }
 0x533   :  { %8415 = vmatpush1.bf16.msra.mxu1 %v8414_v26  ;;  %v9350_v32 = vunpack.i.h.bf16 %v9348_v22  ;;  %v9349_v24 = vunpack.i.l.bf16 %v9348_v22  ;;  %v9345_v15 = vunpack.i.h.bf16 %v9343_v14  ;;  %v9344_v4 = vunpack.i.l.bf16 %v9343_v14  ;;  %vm11037_vm8 = vmmov %vm11034_vm12 }
 0x534   :  { %8417 = vmatprep.subr.bf16.mxu1 %v8416_v6  ;;  %v9275_v22 = vunpack.i.h.bf16 %v10640_v63  ;;  %v9280_v63 = vunpack.i.h.bf16 %v10642_v20 }
 0x535   :  { %v3735_v33 = vsel %vm2488_vm14, %v9235_v53, %v9349_v24  ;;  %v3723_v51 = vsel %vm2475_vm13, %v9230_v28, %v9344_v4  ;;  %v3724_v54 = vsel %vm2475_vm13, %v9344_v4, %v9345_v15  ;;  %v3736_v29 = vsel %vm2488_vm14, %v9349_v24, %v9350_v32 }
 0x536   :  { %v8422_v34 = vpack.c.bf16 %v3735_v33, %v3723_v51  ;;  %v9358_v41 = vpop.permute.xlu0 %9357  ;;  %v9353_v21 = vpop.permute.xlu1 %9352  ;;  %v8420_v61 = vpack.c.bf16 %v3736_v29, %v3724_v54  ;;  %vm11035_vm13 = vcmask 646144  }
 0x537   :  { %8419 = vmatpush1.bf16.msra.mxu1 %v8418_v13  ;;  %v9360_v23 = vunpack.i.h.bf16 %v9358_v41  ;;  %v9359_v7 = vunpack.i.l.bf16 %v9358_v41  ;;  %v9355_v45 = vunpack.i.h.bf16 %v9353_v21  ;;  %v9354_v17 = vunpack.i.l.bf16 %v9353_v21  ;;  %vm11036_vm14 = vmmov %vm11035_vm13 }
 0x538   :  { %8421 = vmatprep.subr.bf16.mxu1 %v8420_v61 }
 0x539   :  { %v3759_v19 = vsel %vm280_vm7, %v9245_v31, %v9359_v7  ;;  %v3747_v35 = vsel %vm267_vm6, %v9240_v39, %v9354_v17  ;;  %v3748_v25 = vsel %vm267_vm6, %v9354_v17, %v9355_v45  ;;  %v3760_v43 = vsel %vm280_vm7, %v9359_v7, %v9360_v23 }
 0x53a   :  { %v8426_v44 = vpack.c.bf16 %v3759_v19, %v3747_v35  ;;  %v9368_v46 = vpop.permute.xlu0 %9367  ;;  %v9363_v47 = vpop.permute.xlu1 %9362  ;;  %v8424_v56 = vpack.c.bf16 %v3760_v43, %v3748_v25  ;;  %vm11030_vm6 = vcmask 654336   ;;  %vm11031_vm7 = vcmask 752640  }
 0x53b   :  { %8423 = vmatpush1.bf16.msra.mxu1 %v8422_v34  ;;  %v9370_v48 = vunpack.i.h.bf16 %v9368_v46  ;;  %v9369_v42 = vunpack.i.l.bf16 %v9368_v46  ;;  %v9365_v1 = vunpack.i.h.bf16 %v9363_v47  ;;  %v9364_v18 = vunpack.i.l.bf16 %v9363_v47  ;;  %vm11032_vm0 = vmmov %vm11031_vm7 }
 0x53c   :  { %8425 = vmatprep.subr.bf16.mxu1 %v8424_v56  ;;  %vm11033_vm11 = vmmov %vm11030_vm6  ;;  %v9285_v31 = vunpack.i.h.bf16 %v10654_v10  ;;  %v9290_v10 = vunpack.i.h.bf16 %v10656_v2  ;;  %v9295_v43 = vunpack.i.h.bf16 %v10668_v37  ;;  %v9300_v37 = vunpack.i.h.bf16 %v10670_v59 }
 0x53d   :  { %v3783_v26 = vsel %vm11026_vm1, %v9255_v11, %v9369_v42  ;;  %v3771_v52 = vsel %vm11027_vm3, %v9250_v50, %v9364_v18  ;;  %v3772_v0 = vsel %vm11028_vm4, %v9364_v18, %v9365_v1  ;;  %v3784_v30 = vsel %vm11029_vm5, %v9369_v42, %v9370_v48 }
 0x53e   :  { %v8430_v62 = vpack.c.bf16 %v3783_v26, %v3771_v52  ;;  %v9378_v12 = vpop.permute.xlu0 %9377  ;;  %v9373_v8 = vpop.permute.xlu1 %9372  ;;  %v8428_v36 = vpack.c.bf16 %v3784_v30, %v3772_v0  ;;  %vm11042_vm1 = vcmask 515072   ;;  %vm11043_vm3 = vcmask 523264  }
 0x53f   :  { %8427 = vmatpush1.bf16.msra.mxu1 %v8426_v44  ;;  %v9380_v57 = vunpack.i.h.bf16 %v9378_v12  ;;  %v9379_v40 = vunpack.i.l.bf16 %v9378_v12  ;;  %v9375_v5 = vunpack.i.h.bf16 %v9373_v8  ;;  %v9374_v49 = vunpack.i.l.bf16 %v9373_v8  ;;  %vm11044_vm4 = vmmov %vm11043_vm3 }
 0x540   :  { %8429 = vmatprep.subr.bf16.mxu1 %v8428_v36  ;;  %vm11045_vm5 = vmmov %vm11042_vm1  ;;  %v9305_v52 = vunpack.i.h.bf16 %v10679_v55 }
 0x541   :  { %v3807_v28 = vsel %vm11030_vm6, %v9265_v58, %v9379_v40  ;;  %v3795_v53 = vsel %vm11031_vm7, %v9260_v60, %v9374_v49  ;;  %v3796_v13 = vsel %vm11032_vm0, %v9374_v49, %v9375_v5  ;;  %v3808_v16 = vsel %vm11033_vm11, %v9379_v40, %v9380_v57 }
 0x542   :  { %v8434_v14 = vpack.c.bf16 %v3807_v28, %v3795_v53  ;;  %v9388_v6 = vpop.permute.xlu0 %9387  ;;  %v9383_v32 = vpop.permute.xlu1 %9382  ;;  %v8432_v24 = vpack.c.bf16 %v3808_v16, %v3796_v13  ;;  %vm11046_vm6 = vcmask 498688   ;;  %vm11047_vm7 = vcmask 506880   ;;  %v4558_v53 = vld [vmem:[#allocation11 + $0x80] sm:$0xff]  ;;  %v4559_v13 = vld [vmem:[#allocation11 + $0x88] sm:$0xff] }
 0x543   :  { %8431 = vmatpush1.bf16.msra.mxu1 %v8430_v62  ;;  %v9390_v15 = vunpack.i.h.bf16 %v9388_v6  ;;  %v9389_v4 = vunpack.i.l.bf16 %v9388_v6  ;;  %v9385_v33 = vunpack.i.h.bf16 %v9383_v32  ;;  %v9384_v51 = vunpack.i.l.bf16 %v9383_v32  ;;  %vm11048_vm0 = vmmov %vm11047_vm7  ;;  %v4561_v6 = vld [vmem:[#allocation11 + $0x98] sm:$0xff] }
 0x544   :  { %8433 = vmatprep.subr.bf16.mxu1 %v8432_v24  ;;  %vm11049_vm11 = vmmov %vm11046_vm6  ;;  %v8452_v32 = vpack.c.bf16 %v4559_v13, %v4558_v53  ;;  %v4590_v24 = vld [vmem:[#allocation11 + $0x180] sm:$0xff]  ;;  %v4599_v13 = vld [vmem:[#allocation11 + $0x1c8] sm:$0xff] }
 0x545   :  { %v3831_v54 = vsel %vm11034_vm12, %v9275_v22, %v9389_v4  ;;  %v3819_v29 = vsel %vm11035_vm13, %v9270_v38, %v9384_v51  ;;  %v3820_v39 = vsel %vm11036_vm14, %v9384_v51, %v9385_v33  ;;  %v3832_v9 = vsel %vm11037_vm8, %v9389_v4, %v9390_v15  ;;  %v4542_v38 = vld [vmem:[#allocation11] sm:$0xff]  ;;  %v4543_v22 = vld [vmem:[#allocation11 + $0x8] sm:$0xff] }
 0x546   :  { %v8438_v34 = vpack.c.bf16 %v3831_v54, %v3819_v29  ;;  %v9398_v41 = vpop.permute.xlu0 %9397  ;;  %v9393_v21 = vpop.permute.xlu1 %9392  ;;  %v8436_v61 = vpack.c.bf16 %v3832_v9, %v3820_v39  ;;  %v4591_v15 = vld [vmem:[#allocation11 + $0x188] sm:$0xff]  ;;  %v3921_v51 = vld [vmem:[#allocation10] sm:$0xff]  ;;  %v8454_v54 = vpack.c.bf16 %v4543_v22, %v4542_v38  ;;  %vm11050_vm12 = vcmask 490496   ;;  %v3924_v9 = vld [vmem:[#allocation10 + $0x18] sm:$0xff] }
 0x547   :  { %8435 = vmatpush1.bf16.msra.mxu1 %v8434_v14  ;;  %v9400_v23 = vunpack.i.h.bf16 %v9398_v41  ;;  %v9399_v7 = vunpack.i.l.bf16 %v9398_v41  ;;  %v9395_v45 = vunpack.i.h.bf16 %v9393_v21  ;;  %v9394_v17 = vunpack.i.l.bf16 %v9393_v21  ;;  %v4560_v14 = vld [vmem:[#allocation11 + $0x90] sm:$0xff]  ;;  %vm11051_vm13 = vmmov %vm11050_vm12  ;;  %v4598_v53 = vld [vmem:[#allocation11 + $0x1c0] sm:$0xff] }
 0x548   :  { %8437 = vmatprep.subr.bf16.mxu1 %v8436_v61  ;;  %vm11052_vm14 = vmmov %vm11050_vm12  ;;  %v8484_v21 = vpack.c.bf16 %v4591_v15, %v4590_v24  ;;  %v3923_v61 = vld [vmem:[#allocation10 + $0x10] sm:$0xff]  ;;  %v4582_v38 = vld [vmem:[#allocation11 + $0x140] sm:$0xff] }
 0x549   :  { %v3855_v19 = vsel %vm11038_vm10, %v9285_v31, %v9399_v7  ;;  %v3843_v35 = vsel %vm11039_vm9, %v9280_v63, %v9394_v17  ;;  %v3844_v25 = vsel %vm11040_vm15, %v9394_v17, %v9395_v45  ;;  %v3856_v20 = vsel %vm11041_vm2, %v9399_v7, %v9400_v23  ;;  %v4574_v63 = vld [vmem:[#allocation11 + $0x100] sm:$0xff]  ;;  %v4575_v31 = vld [vmem:[#allocation11 + $0x108] sm:$0xff]  ;;  %v4545_v7 = vld [vmem:[#allocation11 + $0x18] sm:$0xff] }
 0x54a   :  { %v8442_v50 = vpack.c.bf16 %v3855_v19, %v3843_v35  ;;  %v9408_v11 = vpop.permute.xlu0 %9407  ;;  %v9403_v44 = vpop.permute.xlu1 %9402  ;;  %v8440_v46 = vpack.c.bf16 %v3856_v20, %v3844_v25  ;;  %v8486_v23 = vpack.c.bf16 %v4575_v31, %v4574_v63  ;;  %v4592_v17 = vld [vmem:[#allocation11 + $0x190] sm:$0xff]  ;;  %v4593_v19 = vld [vmem:[#allocation11 + $0x198] sm:$0xff]  ;;  %v4583_v22 = vld [vmem:[#allocation11 + $0x148] sm:$0xff]  ;;  %vm9711_vm10 = vmmov 0  }
 0x54b   :  { %8439 = vmatpush1.bf16.msra.mxu1 %v8438_v34  ;;  %v9410_v47 = vunpack.i.h.bf16 %v9408_v11  ;;  %v9409_v56 = vunpack.i.l.bf16 %v9408_v11  ;;  %v9405_v48 = vunpack.i.h.bf16 %v9403_v44  ;;  %v9404_v42 = vunpack.i.l.bf16 %v9403_v44  ;;  %v4576_v25 = vld [vmem:[#allocation11 + $0x110] sm:$0xff]  ;;  %v4577_v20 = vld [vmem:[#allocation11 + $0x118] sm:$0xff]  ;;  %v4546_v44 = vld [vmem:[#allocation11 + $0x20] sm:$0xff] }
 0x54c   :  { %8441 = vmatprep.subr.bf16.mxu1 %v8440_v46  ;;  %v8456_v34 = vpack.c.bf16 %v4561_v6, %v4560_v14  ;;  %v8488_v35 = vpack.c.bf16 %v4593_v19, %v4592_v17  ;;  %v4547_v46 = vld [vmem:[#allocation11 + $0x28] sm:$0xff]  ;;  %v8502_v14 = vpack.c.bf16 %v4583_v22, %v4582_v38  ;;  %v4568_v6 = vld [vmem:[#allocation11 + $0xd0] sm:$0xff]  ;;  %v4570_v31 = vld [vmem:[#allocation11 + $0xe0] sm:$0xff]  ;;  %v9709_v38 = vmov 1983009808  }
 0x54d   :  { %v3879_v1 = vsel %vm11042_vm1, %v9295_v43, %v9409_v56  ;;  %v3867_v18 = vsel %vm11043_vm3, %v9290_v10, %v9404_v42  ;;  %v3868_v26 = vsel %vm11044_vm4, %v9404_v42, %v9405_v48  ;;  %v3880_v2 = vsel %vm11045_vm5, %v9409_v56, %v9410_v47  ;;  %v4562_v43 = vld [vmem:[#allocation11 + $0xa0] sm:$0xff]  ;;  %v4595_v48 = vld [vmem:[#allocation11 + $0x1a8] sm:$0xff]  ;;  %v4552_v15 = vld [vmem:[#allocation11 + $0x50] sm:$0xff] }
 0x54e   :  { %v8446_v0 = vpack.c.bf16 %v3879_v1, %v3867_v18  ;;  %v9418_v30 = vpop.permute.xlu0 %9417  ;;  %v9413_v60 = vpop.permute.xlu1 %9412  ;;  %v8444_v58 = vpack.c.bf16 %v3880_v2, %v3868_v26  ;;  %v8490_v10 = vpack.c.bf16 %v4577_v20, %v4576_v25  ;;  %v8462_v47 = vpack.c.bf16 %v4547_v46, %v4546_v44  ;;  %v4594_v56 = vld [vmem:[#allocation11 + $0x1a0] sm:$0xff]  ;;  %v4579_v18 = vld [vmem:[#allocation11 + $0x128] sm:$0xff]  ;;  %v4564_v2 = vld [vmem:[#allocation11 + $0xb0] sm:$0xff] }
 0x54f   :  { %8443 = vmatpush1.bf16.msra.mxu1 %v8442_v50  ;;  %v9420_v62 = vunpack.i.h.bf16 %v9418_v30  ;;  %v9419_v12 = vunpack.i.l.bf16 %v9418_v30  ;;  %v9415_v8 = vunpack.i.h.bf16 %v9413_v60  ;;  %v9414_v36 = vunpack.i.l.bf16 %v9413_v60  ;;  %v4563_v50 = vld [vmem:[#allocation11 + $0xa8] sm:$0xff]  ;;  %v4578_v1 = vld [vmem:[#allocation11 + $0x120] sm:$0xff]  ;;  %v4549_v30 = vld [vmem:[#allocation11 + $0x38] sm:$0xff] }
 0x550   :  { %8445 = vmatprep.subr.bf16.mxu1 %v8444_v58  ;;  %v8460_v11 = vpack.c.bf16 %v4563_v50, %v4562_v43  ;;  %v8492_v42 = vpack.c.bf16 %v4595_v48, %v4594_v56  ;;  %v8494_v26 = vpack.c.bf16 %v4579_v18, %v4578_v1  ;;  %v4596_v58 = vld [vmem:[#allocation11 + $0x1b0] sm:$0xff]  ;;  %v4587_v19 = vld [vmem:[#allocation11 + $0x168] sm:$0xff]  ;;  %v4573_v25 = vld [vmem:[#allocation11 + $0xf8] sm:$0xff]  ;;  %v10767_v22 = vunpack.c.l.s4 %v9709_v38 }
 0x551   :  { %v3903_v57 = vsel %vm11046_vm6, %v9305_v52, %v9419_v12  ;;  %v3891_v40 = vsel %vm11047_vm7, %v9300_v37, %v9414_v36  ;;  %v3892_v5 = vsel %vm11048_vm0, %v9414_v36, %v9415_v8  ;;  %v3904_v59 = vsel %vm11049_vm11, %v9419_v12, %v9420_v62  ;;  %v4565_v37 = vld [vmem:[#allocation11 + $0xb8] sm:$0xff]  ;;  %v4580_v8 = vld [vmem:[#allocation11 + $0x130] sm:$0xff]  ;;  %v4622_v1 = vld [vmem:[#allocation11 + $0x280] sm:$0xff] }
 0x552   :  { %v3914_v49 = vpop.permute.xlu0 %3913  ;;  %v3912_v55 = vpop.permute.xlu1 %3911  ;;  %v8448_v28 = vpack.c.bf16 %v3904_v59, %v3892_v5  ;;  %v8450_v16 = vpack.c.bf16 %v3903_v57, %v3891_v40  ;;  %v8464_v52 = vpack.c.bf16 %v4565_v37, %v4564_v2  ;;  %v4597_v62 = vld [vmem:[#allocation11 + $0x1b8] sm:$0xff]  ;;  %v4566_v40 = vld [vmem:[#allocation11 + $0xc0] sm:$0xff]  ;;  %v4567_v5 = vld [vmem:[#allocation11 + $0xc8] sm:$0xff] }
 0x553   :  { %8447 = vmatpush1.bf16.msra.mxu1 %v8446_v0  ;;  %v3916_v39 = vsel %vm11051_vm13, %v3912_v55, %v3914_v49  ;;  %v4548_v0 = vld [vmem:[#allocation11 + $0x30] sm:$0xff]  ;;  %v8496_v12 = vpack.c.bf16 %v4597_v62, %v4596_v58  ;;  %v4581_v36 = vld [vmem:[#allocation11 + $0x138] sm:$0xff]  ;;  %v8468_v59 = vpack.c.bf16 %v4567_v5, %v4566_v40  ;;  %v4550_v49 = vld [vmem:[#allocation11 + $0x40] sm:$0xff] }
 0x554   :  { %8449 = vmatprep.subr.bf16.mxu1 %v8448_v28  ;;  %v8466_v60 = vpack.c.bf16 %v4549_v30, %v4548_v0  ;;  %v8498_v57 = vpack.c.bf16 %v4581_v36, %v4580_v8  ;;  %v4556_v43 = vld [vmem:[#allocation11 + $0x70] sm:$0xff]  ;;  %v4557_v50 = vld [vmem:[#allocation11 + $0x78] sm:$0xff]  ;;  %v4623_v18 = vld [vmem:[#allocation11 + $0x288] sm:$0xff]  ;;  %v9708_v0 = vmov 1966171168  }
 0x555   :  { %v8482_v44 = vpack.c.bf16 %v4557_v50, %v4556_v43  ;;  %v4605_v46 = vld [vmem:[#allocation11 + $0x1f8] sm:$0xff]  ;;  %v4654_v2 = vld [vmem:[#allocation11 + $0x380] sm:$0xff]  ;;  %v4655_v37 = vld [vmem:[#allocation11 + $0x388] sm:$0xff]  ;;  %v4231_v30 = vunpack.c.l.s4 %v9708_v0 }
 0x556   :  { %v3910_v4 = vpop.permute.xlu0 %3909  ;;  %v2669_v33 = vpop.permute.xlu1 %2668  ;;  %v4589_v56 = vld [vmem:[#allocation11 + $0x178] sm:$0xff] }
 0x557   :  { %8451 = vmatpush1.bf16.msra.mxu1 %v8450_v16  ;;  %v2674_v29 = vsel %vm11050_vm12, %v2669_v33, %v10521_v27  ;;  %v3915_v41 = vsel %vm11052_vm14, %v3910_v4, %v3912_v55  ;;  %v4544_v27 = vld [vmem:[#allocation11 + $0x10] sm:$0xff]  ;;  %v4551_v55 = vld [vmem:[#allocation11 + $0x48] sm:$0xff]  ;;  %v8500_v16 = vpack.c.bf16 %v4599_v13, %v4598_v53  ;;  %v4553_v4 = vld [vmem:[#allocation11 + $0x58] sm:$0xff] }
 0x558   :  { %4190 = vmatprep.subr.mxu1 %v3916_v39  ;;  %4114 = vmatpush1.msra.mxu0 %v2674_v29  ;;  %v8458_v45 = vpack.c.bf16 %v4545_v7, %v4544_v27  ;;  %v8470_v28 = vpack.c.bf16 %v4551_v55, %v4550_v49  ;;  %v8474_v33 = vpack.c.bf16 %v4553_v4, %v4552_v15  ;;  %v4584_v39 = vld [vmem:[#allocation11 + $0x150] sm:$0xff]  ;;  %v4602_v27 = vld [vmem:[#allocation11 + $0x1e0] sm:$0xff]  ;;  %v4603_v7 = vld [vmem:[#allocation11 + $0x1e8] sm:$0xff] }
 0x559   :  { %4130 = vmatmul.mubr.f32.vlgmr.msra.gmra.mrb[18].mxu0 %v3921_v51  ;;  %8453 = vmatprep.subr.bf16.mxu0 %v8452_v32  ;;  %v4569_v32 = vld [vmem:[#allocation11 + $0xd8] sm:$0xff]  ;;  %v8508_v17 = vpack.c.bf16 %v4603_v7, %v4602_v27 }
 0x55a   :  { %4135 = vmatprep.mubr.f32.mxu0 %v3924_v9  ;;  %8455 = vmatpush3.bf16.msra.mxu0 %v8454_v54  ;;  %v8472_v24 = vpack.c.bf16 %v4569_v32, %v4568_v6  ;;  %v4601_v54 = vld [vmem:[#allocation11 + $0x1d8] sm:$0xff] }
 0x55b   :  { %4191 = vmatpush1.msra.mxu1 %v3915_v41  ;;  %8457 = vmatprep.subr.bf16.mxu0 %v8456_v34  ;;  %v4571_v34 = vld [vmem:[#allocation11 + $0xe8] sm:$0xff] }
 0x55c   :  { %4207 = vmatmul.mubr.f32.vlgmr.msra.gmra.mrb[18].mxu1 %v3921_v51  ;;  %8485 = vmatprep.subr.bf16.mxu1 %v8484_v21  ;;  %v4600_v51 = vld [vmem:[#allocation11 + $0x1d0] sm:$0xff]  ;;  %v8476_v41 = vpack.c.bf16 %v4571_v34, %v4570_v31  ;;  %v4554_v21 = vld [vmem:[#allocation11 + $0x60] sm:$0xff] }
 0x55d   :  { %4136 = vmatmul.mubr.f32.gmra.mrb[20].mxu0 %v3923_v61  ;;  %4212 = vmatprep.mubr.f32.mxu1 %v3924_v9  ;;  %v8504_v29 = vpack.c.bf16 %v4601_v54, %v4600_v51  ;;  %v4585_v9 = vld [vmem:[#allocation11 + $0x158] sm:$0xff] }
 0x55e   :  { %8487 = vmatpush3.bf16.msra.mxu1 %v8486_v23  ;;  %8459 = vmatpush3.bf16.msra.mxu0 %v8458_v45  ;;  %v8506_v63 = vpack.c.bf16 %v4585_v9, %v4584_v39  ;;  %v4586_v45 = vld [vmem:[#allocation11 + $0x160] sm:$0xff] }
 0x55f   :  { %8489 = vmatprep.subr.bf16.mxu1 %v8488_v35  ;;  %8461 = vmatprep.subr.bf16.mxu0 %v8460_v11  ;;  %v4572_v35 = vld [vmem:[#allocation11 + $0xf0] sm:$0xff]  ;;  %v8510_v20 = vpack.c.bf16 %v4587_v19, %v4586_v45 }
 0x560   :  { %4213 = vmatmul.mubr.f32.gmra.mrb[20].mxu1 %v3923_v61  ;;  %v4555_v61 = vld [vmem:[#allocation11 + $0x68] sm:$0xff]  ;;  %v4604_v11 = vld [vmem:[#allocation11 + $0x1f0] sm:$0xff] }
 0x561   :  { %v8478_v23 = vpack.c.bf16 %v4555_v61, %v4554_v21  ;;  %v8512_v48 = vpack.c.bf16 %v4605_v46, %v4604_v11 }
 0x562   :  { %8491 = vmatpush3.bf16.msra.mxu1 %v8490_v10  ;;  %8463 = vmatpush3.bf16.msra.mxu0 %v8462_v47  ;;  %v8480_v10 = vpack.c.bf16 %v4573_v25, %v4572_v35  ;;  %v4588_v47 = vld [vmem:[#allocation11 + $0x170] sm:$0xff] }
 0x563   :  { %8493 = vmatprep.subr.bf16.mxu1 %v8492_v42  ;;  %8465 = vmatprep.subr.bf16.mxu0 %v8464_v52  ;;  %v8514_v42 = vpack.c.bf16 %v4589_v56, %v4588_v47  ;;  %v8548_v52 = vpack.c.bf16 %v4655_v37, %v4654_v2 }
 0x566   :  { %8495 = vmatpush3.bf16.msra.mxu1 %v8494_v26  ;;  %8467 = vmatpush3.bf16.msra.mxu0 %v8466_v60  ;;  %v8516_v26 = vpack.c.bf16 %v4623_v18, %v4622_v1  ;;  %v4233_v60 = vlaneseq }
 0x567   :  { %8497 = vmatprep.subr.bf16.mxu1 %v8496_v12  ;;  %8469 = vmatprep.subr.bf16.mxu0 %v8468_v59  ;;  %v4058_v58 = vpop.permute.xlu1 %4057  ;;  %v4232_v12 = vunpack.c.0.s8 %v4231_v30  ;;  %v4063_v5 = vpop.permute.xlu0 %4062 }
 0x568   :  { %v10762_v8 = vshrl.u32 %v4233_v60, 7  ;;  %vm10769_vm8 = vcmp.lt.s32.totalorder %v4233_v60, 256 }
 0x56a   :  { %8499 = vmatpush3.bf16.msra.mxu1 %v8498_v57  ;;  %8471 = vmatpush3.bf16.msra.mxu0 %v8470_v28  ;;  %v10765_v55 = vsub.s32 %v4232_v12, %v10762_v8 }
 0x56b   :  { %8501 = vmatprep.subr.bf16.mxu1 %v8500_v16  ;;  %8473 = vmatprep.subr.bf16.mxu0 %v8472_v24 }
 0x56e   :  { %8503 = vmatpush3.bf16.msra.mxu1 %v8502_v14  ;;  %8475 = vmatpush3.bf16.msra.mxu0 %v8474_v33 }
 0x56f   :  { %8505 = vmatprep.subr.bf16.mxu1 %v8504_v29  ;;  %8477 = vmatprep.subr.bf16.mxu0 %v8476_v41  ;;  %v5072_v41 = vunpack.c.0.s8 %v10767_v22 }
 0x572   :  { %8507 = vmatpush3.bf16.msra.mxu1 %v8506_v63  ;;  %8479 = vmatpush3.bf16.msra.mxu0 %v8478_v23 }
 0x573   :  { %8509 = vmatprep.subr.bf16.mxu1 %v8508_v17  ;;  %8481 = vmatprep.subr.bf16.mxu0 %v8480_v10 }
 0x576   :  { %8511 = vmatpush3.bf16.msra.mxu1 %v8510_v20  ;;  %8483 = vmatpush3.bf16.msra.mxu0 %v8482_v44 }
 0x577   :  { %8513 = vmatprep.subr.bf16.mxu1 %v8512_v48  ;;  %8517 = vmatprep.subr.bf16.mxu0 %v8516_v26 }
 0x57a   :  { %8515 = vmatpush3.bf16.msra.mxu1 %v8514_v42 }
 0x57b   :  { %8549 = vmatprep.subr.bf16.mxu1 %v8548_v52 }
 0x62c   :  { %v4131_v62 = vpop.f32.mrb[18].mxu0 }
 0x62d   :  { %v4133_v36 = vpop.f32.mrb[19].mxu0  ;;  %v4132_v57 = vadd.f32 %v4131_v62, %v4058_v58 }
 0x62e   :  { %v4134_v40 = vadd.f32 %v4133_v36, %v4058_v58 }
 0x62f   :  { %v4219_v59 = vmax.f32 %v4132_v57, 0.0  ;;  %v4208_v49 = vpop.f32.mrb[18].mxu1 }
 0x630   :  { %v4220_v28 = vmax.f32 %v4134_v40, 0.0  ;;  %v4209_v53 = vadd.f32 %v4208_v49, %v4058_v58  ;;  %v4210_v13 = vpop.f32.mrb[19].mxu1  ;;  %v4137_v16 = vpop.f32.mrb[20].mxu0 }
 0x631   :  { %v4211_v14 = vadd.f32 %v4210_v13, %v4058_v58  ;;  %v4138_v6 = vadd.f32 %v4137_v16, %v4063_v5  ;;  %v4139_v32 = vpop.f32.mrb[21].mxu0 }
 0x632   :  { %v4229_v24 = vcombine.low %v4219_v59, %v4220_v28  ;;  %v4269_v15 = vcombine.high %v4219_v59, %v4220_v28  ;;  %v4221_v4 = vmax.f32 %v4209_v53, 0.0  ;;  %v4140_v33 = vadd.f32 %v4139_v32, %v4063_v5 }
 0x633   :  { %v4222_v54 = vmax.f32 %v4211_v14, 0.0  ;;  %v4223_v29 = vmax.f32 %v4138_v6, 0.0  ;;  %v4214_v39 = vpop.f32.mrb[20].mxu1  ;;  %v10845_v32 = vsub.s32 %v5072_v41, %v10762_v8 }
 0x634   :  { %v4236_v9 = vrot.slane %v4229_v24, %v10765_v55  ;;  %v4276_v63 = vrot.slane %v4269_v15, %v10765_v55  ;;  %v4224_v31 = vmax.f32 %v4140_v33, 0.0  ;;  %v4216_v34 = vpop.f32.mrb[21].mxu1  ;;  %v4215_v23 = vadd.f32 %v4214_v39, %v4063_v5 }
 0x635   :  { %v4384_v21 = vcombine.low %v4221_v4, %v4222_v54  ;;  %v4421_v61 = vcombine.high %v4221_v4, %v4222_v54  ;;  %v4217_v27 = vadd.f32 %v4216_v34, %v4063_v5 }
 0x636   :  { %v4243_v7 = vrot.slane %v4236_v9, %v10765_v55  ;;  %v4250_v45 = vcombine.high %v4236_v9, %v4236_v9  ;;  %v4283_v17 = vrot.slane %v4276_v63, %v10765_v55  ;;  %v4287_v19 = vcombine.high %v4276_v63, %v4276_v63  ;;  %v4606_v9 = vld [vmem:[#allocation11 + $0x200] sm:$0xff]  ;;  %v4607_v63 = vld [vmem:[#allocation11 + $0x208] sm:$0xff] }
 0x637   :  { %v4391_v35 = vrot.slane %v4384_v21, %v10765_v55  ;;  %v4428_v25 = vrot.slane %v4421_v61, %v10765_v55  ;;  %v4308_v20 = vcombine.low %v4223_v29, %v4224_v31  ;;  %v4345_v10 = vcombine.high %v4223_v29, %v4224_v31  ;;  %v4638_v21 = vld [vmem:[#allocation11 + $0x300] sm:$0xff] }
 0x638   :  { %4249 = vst.msk [vmem:[#allocation4] ss:$2 sm:$0x3] %vm10769_vm8, %v4243_v7  ;;  %v4257_v43 = vrot.slane %v4250_v45, %v10765_v55  ;;  %v4261_v50 = vcombine.high %v4243_v7, %v4243_v7  ;;  %4286 = vst.msk [vmem:[#allocation4 + $0x10] ss:$2 sm:$0x3] %vm10769_vm8, %v4283_v17  ;;  %v4294_v11 = vrot.slane %v4287_v19, %v10765_v55 }
 0x639   :  { %v4298_v44 = vcombine.high %v4283_v17, %v4283_v17  ;;  %v4398_v46 = vrot.slane %v4391_v35, %v10765_v55  ;;  %v4402_v47 = vcombine.high %v4391_v35, %v4391_v35  ;;  %v4435_v56 = vrot.slane %v4428_v25, %v10765_v55  ;;  %v4624_v7 = vld [vmem:[#allocation11 + $0x290] sm:$0xff]  ;;  %v4625_v45 = vld [vmem:[#allocation11 + $0x298] sm:$0xff] }
 0x63a   :  { %v4439_v48 = vcombine.high %v4428_v25, %v4428_v25  ;;  %4260 = vst.msk [vmem:[#allocation4 + $0x4] ss:$2 sm:$0x3] %vm10769_vm8, %v4257_v43  ;;  %4264 = vst.msk [vmem:[#allocation4 + $0x8] ss:$2 sm:$0x3] %vm10769_vm8, %v4261_v50  ;;  %v4265_v42 = vcombine.high %v4257_v43, %v4257_v43  ;;  %v4302_v1 = vcombine.high %v4294_v11, %v4294_v11 }
 0x63b   :  { %4297 = vst.msk [vmem:[#allocation4 + $0x14] ss:$2 sm:$0x3] %vm10769_vm8, %v4294_v11  ;;  %4301 = vst.msk [vmem:[#allocation4 + $0x18] ss:$2 sm:$0x3] %vm10769_vm8, %v4298_v44  ;;  %v4315_v18 = vrot.slane %v4308_v20, %v10765_v55  ;;  %v4352_v26 = vrot.slane %v4345_v10, %v10765_v55  ;;  %v4409_v2 = vrot.slane %v4402_v47, %v10765_v55 }
 0x63c   :  { %4401 = vst.msk [vmem:[#allocation4 + $0x1] ss:$2 sm:$0x3] %vm10769_vm8, %v4398_v46  ;;  %v4413_v37 = vcombine.high %v4398_v46, %v4398_v46  ;;  %4438 = vst.msk [vmem:[#allocation4 + $0x11] ss:$2 sm:$0x3] %vm10769_vm8, %v4435_v56  ;;  %v4446_v52 = vrot.slane %v4439_v48, %v10765_v55  ;;  %v4450_v0 = vcombine.high %v4435_v56, %v4435_v56 }
 0x63d   :  { %4268 = vst.msk [vmem:[#allocation4 + $0xc] ss:$2 sm:$0x3] %vm10769_vm8, %v4265_v42  ;;  %4305 = vst.msk [vmem:[#allocation4 + $0x1c] ss:$2 sm:$0x3] %vm10769_vm8, %v4302_v1  ;;  %v4322_v30 = vrot.slane %v4315_v18, %v10765_v55  ;;  %v4326_v60 = vcombine.high %v4315_v18, %v4315_v18  ;;  %v4359_v58 = vrot.slane %v4352_v26, %v10765_v55 }
 0x63e   :  { %v4363_v62 = vcombine.high %v4352_v26, %v4352_v26  ;;  %4412 = vst.msk [vmem:[#allocation4 + $0x5] ss:$2 sm:$0x3] %vm10769_vm8, %v4409_v2  ;;  %4416 = vst.msk [vmem:[#allocation4 + $0x9] ss:$2 sm:$0x3] %vm10769_vm8, %v4413_v37  ;;  %v4417_v12 = vcombine.high %v4409_v2, %v4409_v2  ;;  %v4454_v36 = vcombine.high %v4446_v52, %v4446_v52 }
 0x63f   :  { %4449 = vst.msk [vmem:[#allocation4 + $0x15] ss:$2 sm:$0x3] %vm10769_vm8, %v4446_v52  ;;  %4453 = vst.msk [vmem:[#allocation4 + $0x19] ss:$2 sm:$0x3] %vm10769_vm8, %v4450_v0  ;;  %v4333_v5 = vrot.slane %v4326_v60, %v10765_v55  ;;  %v4337_v59 = vcombine.high %v4322_v30, %v4322_v30  ;;  %v4374_v28 = vcombine.high %v4359_v58, %v4359_v58 }
 0x640   :  { %v4225_v57 = vmax.f32 %v4215_v23, 0.0  ;;  %v4226_v40 = vmax.f32 %v4217_v27, 0.0  ;;  %4325 = vst.msk [vmem:[#allocation4 + $0x20] ss:$2 sm:$0x3] %vm10769_vm8, %v4322_v30  ;;  %v4370_v49 = vrot.slane %v4363_v62, %v10765_v55  ;;  %v4639_v27 = vld [vmem:[#allocation11 + $0x308] sm:$0xff]  ;;  %v8518_v35 = vpack.c.bf16 %v4607_v63, %v4606_v9 }
 0x641   :  { %4362 = vst.msk [vmem:[#allocation4 + $0x30] ss:$2 sm:$0x3] %vm10769_vm8, %v4359_v58  ;;  %4420 = vst.msk [vmem:[#allocation4 + $0xd] ss:$2 sm:$0x3] %vm10769_vm8, %v4417_v12  ;;  %v4341_v16 = vcombine.high %v4333_v5, %v4333_v5  ;;  %v8550_v47 = vpack.c.bf16 %v4639_v27, %v4638_v21  ;;  %v8520_v56 = vpack.c.bf16 %v4625_v45, %v4624_v7 }
 0x642   :  { %4457 = vst.msk [vmem:[#allocation4 + $0x1d] ss:$2 sm:$0x3] %vm10769_vm8, %v4454_v36  ;;  %v4460_v53 = vcombine.low %v4225_v57, %v4226_v40  ;;  %v4497_v13 = vcombine.high %v4225_v57, %v4226_v40  ;;  %4336 = vst.msk [vmem:[#allocation4 + $0x24] ss:$2 sm:$0x3] %vm10769_vm8, %v4333_v5  ;;  %v4378_v38 = vcombine.high %v4370_v49, %v4370_v49 }
 0x643   :  { %4340 = vst.msk [vmem:[#allocation4 + $0x28] ss:$2 sm:$0x3] %vm10769_vm8, %v4337_v59  ;;  %4373 = vst.msk [vmem:[#allocation4 + $0x34] ss:$2 sm:$0x3] %vm10769_vm8, %v4370_v49 }
 0x644   :  { %4377 = vst.msk [vmem:[#allocation4 + $0x38] ss:$2 sm:$0x3] %vm10769_vm8, %v4374_v28  ;;  %v4467_v14 = vrot.slane %v4460_v53, %v10765_v55  ;;  %v4504_v6 = vrot.slane %v4497_v13, %v10765_v55  ;;  %4344 = vst.msk [vmem:[#allocation4 + $0x2c] ss:$2 sm:$0x3] %vm10769_vm8, %v4341_v16 }
 0x645   :  { %4381 = vst.msk [vmem:[#allocation4 + $0x3c] ss:$2 sm:$0x3] %vm10769_vm8, %v4378_v38  ;;  %v4534_v54 = vld [vmem:[#allocation4] sm:$0xff]  ;;  %v4656_v20 = vld [vmem:[#allocation11 + $0x390] sm:$0xff]  ;;  %v4626_v48 = vld [vmem:[#allocation11 + $0x2a0] sm:$0xff] }
 0x646   :  { %v4474_v24 = vrot.slane %v4467_v14, %v10765_v55  ;;  %v4478_v15 = vcombine.high %v4467_v14, %v4467_v14  ;;  %v4511_v4 = vrot.slane %v4504_v6, %v10765_v55  ;;  %v4515_v33 = vcombine.high %v4504_v6, %v4504_v6  ;;  %v4657_v10 = vld [vmem:[#allocation11 + $0x398] sm:$0xff]  ;;  %v4608_v11 = vld [vmem:[#allocation11 + $0x210] sm:$0xff]  ;;  %v4627_v42 = vld [vmem:[#allocation11 + $0x2a8] sm:$0xff] }
 0x647   :  { %v5076_v31 = vrot.slane %v4534_v54, %v10845_v32  ;;  %v5069_v34 = vcombine.high %v4534_v54, %v4534_v54  ;;  %v4609_v44 = vld [vmem:[#allocation11 + $0x218] sm:$0xff]  ;;  %v8552_v51 = vpack.c.bf16 %v4657_v10, %v4656_v20  ;;  %v4640_v18 = vld [vmem:[#allocation11 + $0x310] sm:$0xff]  ;;  %v4658_v37 = vld [vmem:[#allocation11 + $0x3a0] sm:$0xff]  ;;  %v8524_v0 = vpack.c.bf16 %v4627_v42, %v4626_v48 }
 0x648   :  { %4477 = vst.msk [vmem:[#allocation4 + $0x21] ss:$2 sm:$0x3] %vm10769_vm8, %v4474_v24  ;;  %v4485_v29 = vrot.slane %v4478_v15, %v10765_v55  ;;  %v4489_v39 = vcombine.high %v4474_v24, %v4474_v24  ;;  %4514 = vst.msk [vmem:[#allocation4 + $0x31] ss:$2 sm:$0x3] %vm10769_vm8, %v4511_v4  ;;  %v4522_v22 = vrot.slane %v4515_v33, %v10765_v55 }
 0x649   :  { %v4526_v8 = vcombine.high %v4511_v4, %v4511_v4  ;;  %v4535_v41 = vld [vmem:[#allocation4 + $0x8] sm:$0xff]  ;;  %v5084_v19 = vcombine.high %v5076_v31, %v5076_v31  ;;  %v5083_v25 = vrot.slane %v5069_v34, %v10845_v32  ;;  %v4641_v26 = vld [vmem:[#allocation11 + $0x318] sm:$0xff]  ;;  %v8522_v2 = vpack.c.bf16 %v4609_v44, %v4608_v11  ;;  %v4659_v52 = vld [vmem:[#allocation11 + $0x3a8] sm:$0xff] }
 0x64a   :  { %4488 = vst.msk [vmem:[#allocation4 + $0x25] ss:$2 sm:$0x3] %vm10769_vm8, %v4485_v29  ;;  %4492 = vst.msk [vmem:[#allocation4 + $0x29] ss:$2 sm:$0x3] %vm10769_vm8, %v4489_v39  ;;  %v4493_v61 = vcombine.high %v4485_v29, %v4485_v29  ;;  %v4530_v55 = vcombine.high %v4522_v22, %v4522_v22  ;;  %v10865_v23 = vrot.slane %v4535_v41, %v10845_v32 }
 0x64b   :  { %4525 = vst.msk [vmem:[#allocation4 + $0x35] ss:$2 sm:$0x3] %vm10769_vm8, %v4522_v22  ;;  %4529 = vst.msk [vmem:[#allocation4 + $0x39] ss:$2 sm:$0x3] %vm10769_vm8, %v4526_v8  ;;  %v5086_v17 = vcombine.high %v4535_v41, %v4535_v41  ;;  %5301 = vmatprep.mubr.f32.mxu0 %v5084_v19  ;;  %v5085_v46 = vcombine.high %v5083_v25, %v5083_v25  ;;  %v8554_v58 = vpack.c.bf16 %v4641_v26, %v4640_v18 }
 0x64c   :  { %4496 = vst.msk [vmem:[#allocation4 + $0x2d] ss:$2 sm:$0x3] %vm10769_vm8, %v4493_v61  ;;  %4533 = vst.msk [vmem:[#allocation4 + $0x3d] ss:$2 sm:$0x3] %vm10769_vm8, %v4530_v55  ;;  %v5101_v43 = vcombine.high %v10865_v23, %v10865_v23  ;;  %5302 = vmatmul.mubr.f32.vlgmr.msra.gmra.mrb[22].mxu0 %v5076_v31  ;;  %v8556_v36 = vpack.c.bf16 %v4659_v52, %v4658_v37 }
 0x64d   :  { %v10875_v50 = vrot.slane %v5086_v17, %v10845_v32  ;;  %8519 = vmatpush3.bf16.msra.mxu0 %v8518_v35  ;;  %5371 = vmatprep.mubr.f32.mxu1 %v5085_v46  ;;  %v4610_v30 = vld [vmem:[#allocation11 + $0x220] sm:$0xff]  ;;  %v4611_v60 = vld [vmem:[#allocation11 + $0x228] sm:$0xff]  ;;  %v4628_v62 = vld [vmem:[#allocation11 + $0x2b0] sm:$0xff] }
 0x64e   :  { %5441 = vmatprep.mubr.f32.mxu0 %v5101_v43  ;;  %5372 = vmatmul.mubr.f32.vlgmr.msra.gmra.mrb[22].mxu1 %v5083_v25  ;;  %v4629_v12 = vld [vmem:[#allocation11 + $0x2b8] sm:$0xff]  ;;  %v4642_v57 = vld [vmem:[#allocation11 + $0x320] sm:$0xff]  ;;  %v4643_v40 = vld [vmem:[#allocation11 + $0x328] sm:$0xff]  ;;  %v8526_v5 = vpack.c.bf16 %v4611_v60, %v4610_v30 }
 0x64f   :  { %v5102_v1 = vcombine.high %v10875_v50, %v10875_v50  ;;  %8551 = vmatpush3.bf16.msra.mxu1 %v8550_v47  ;;  %8521 = vmatprep.subr.bf16.mxu0 %v8520_v56  ;;  %v4660_v59 = vld [vmem:[#allocation11 + $0x3b0] sm:$0xff]  ;;  %v4661_v49 = vld [vmem:[#allocation11 + $0x3b8] sm:$0xff]  ;;  %v8528_v28 = vpack.c.bf16 %v4629_v12, %v4628_v62  ;;  %v8558_v16 = vpack.c.bf16 %v4643_v40, %v4642_v57  ;;  %v4630_v38 = vld [vmem:[#allocation11 + $0x2c0] sm:$0xff] }
 0x650   :  { %8553 = vmatprep.subr.bf16.mxu1 %v8552_v51  ;;  %v4612_v53 = vld [vmem:[#allocation11 + $0x230] sm:$0xff]  ;;  %v4613_v13 = vld [vmem:[#allocation11 + $0x238] sm:$0xff]  ;;  %v4631_v14 = vld [vmem:[#allocation11 + $0x2c8] sm:$0xff]  ;;  %v8560_v6 = vpack.c.bf16 %v4661_v49, %v4660_v59 }
 0x651   :  { %5511 = vmatprep.mubr.f32.mxu1 %v5102_v1  ;;  %8523 = vmatpush3.bf16.msra.mxu0 %v8522_v2  ;;  %v4644_v24 = vld [vmem:[#allocation11 + $0x330] sm:$0xff]  ;;  %v4645_v15 = vld [vmem:[#allocation11 + $0x338] sm:$0xff]  ;;  %v8530_v4 = vpack.c.bf16 %v4613_v13, %v4612_v53  ;;  %v4662_v33 = vld [vmem:[#allocation11 + $0x3c0] sm:$0xff]  ;;  %v8532_v29 = vpack.c.bf16 %v4631_v14, %v4630_v38 }
 0x652   :  { %8525 = vmatprep.subr.bf16.mxu0 %v8524_v0  ;;  %v4663_v54 = vld [vmem:[#allocation11 + $0x3c8] sm:$0xff]  ;;  %v4614_v39 = vld [vmem:[#allocation11 + $0x240] sm:$0xff]  ;;  %v8562_v8 = vpack.c.bf16 %v4645_v15, %v4644_v24  ;;  %v4632_v9 = vld [vmem:[#allocation11 + $0x2d0] sm:$0xff] }
 0x653   :  { %8555 = vmatpush3.bf16.msra.mxu1 %v8554_v58  ;;  %v4615_v22 = vld [vmem:[#allocation11 + $0x248] sm:$0xff]  ;;  %v4633_v63 = vld [vmem:[#allocation11 + $0x2d8] sm:$0xff]  ;;  %v8564_v31 = vpack.c.bf16 %v4663_v54, %v4662_v33  ;;  %v4646_v34 = vld [vmem:[#allocation11 + $0x340] sm:$0xff] }
 0x654   :  { %8557 = vmatprep.subr.bf16.mxu1 %v8556_v36  ;;  %v4647_v41 = vld [vmem:[#allocation11 + $0x348] sm:$0xff]  ;;  %v8534_v21 = vpack.c.bf16 %v4615_v22, %v4614_v39  ;;  %v4664_v61 = vld [vmem:[#allocation11 + $0x3d0] sm:$0xff]  ;;  %v4665_v55 = vld [vmem:[#allocation11 + $0x3d8] sm:$0xff]  ;;  %v8536_v27 = vpack.c.bf16 %v4633_v63, %v4632_v9 }
 0x655   :  { %8527 = vmatpush3.bf16.msra.mxu0 %v8526_v5  ;;  %v4616_v7 = vld [vmem:[#allocation11 + $0x250] sm:$0xff]  ;;  %v4617_v45 = vld [vmem:[#allocation11 + $0x258] sm:$0xff]  ;;  %v8566_v17 = vpack.c.bf16 %v4647_v41, %v4646_v34  ;;  %v4634_v19 = vld [vmem:[#allocation11 + $0x2e0] sm:$0xff]  ;;  %v8568_v25 = vpack.c.bf16 %v4665_v55, %v4664_v61 }
 0x656   :  { %8529 = vmatprep.subr.bf16.mxu0 %v8528_v28  ;;  %v4635_v35 = vld [vmem:[#allocation11 + $0x2e8] sm:$0xff]  ;;  %v4648_v20 = vld [vmem:[#allocation11 + $0x350] sm:$0xff]  ;;  %v4649_v10 = vld [vmem:[#allocation11 + $0x358] sm:$0xff]  ;;  %v8538_v43 = vpack.c.bf16 %v4617_v45, %v4616_v7 }
 0x657   :  { %8559 = vmatpush3.bf16.msra.mxu1 %v8558_v16  ;;  %v4666_v11 = vld [vmem:[#allocation11 + $0x3e0] sm:$0xff]  ;;  %v4667_v44 = vld [vmem:[#allocation11 + $0x3e8] sm:$0xff]  ;;  %v8540_v46 = vpack.c.bf16 %v4635_v35, %v4634_v19  ;;  %v8570_v48 = vpack.c.bf16 %v4649_v10, %v4648_v20  ;;  %v4636_v42 = vld [vmem:[#allocation11 + $0x2f0] sm:$0xff] }
 0x658   :  { %8561 = vmatprep.subr.bf16.mxu1 %v8560_v6  ;;  %v4618_v47 = vld [vmem:[#allocation11 + $0x260] sm:$0xff]  ;;  %v4619_v56 = vld [vmem:[#allocation11 + $0x268] sm:$0xff]  ;;  %v4637_v1 = vld [vmem:[#allocation11 + $0x2f8] sm:$0xff]  ;;  %v8572_v51 = vpack.c.bf16 %v4667_v44, %v4666_v11 }
 0x659   :  { %8531 = vmatpush3.bf16.msra.mxu0 %v8530_v4  ;;  %v4650_v18 = vld [vmem:[#allocation11 + $0x360] sm:$0xff]  ;;  %v4651_v26 = vld [vmem:[#allocation11 + $0x368] sm:$0xff]  ;;  %v8542_v2 = vpack.c.bf16 %v4619_v56, %v4618_v47  ;;  %v4668_v37 = vld [vmem:[#allocation11 + $0x3f0] sm:$0xff]  ;;  %v8544_v0 = vpack.c.bf16 %v4637_v1, %v4636_v42 }
 0x65a   :  { %8533 = vmatprep.subr.bf16.mxu0 %v8532_v29  ;;  %v4669_v52 = vld [vmem:[#allocation11 + $0x3f8] sm:$0xff]  ;;  %v4620_v30 = vld [vmem:[#allocation11 + $0x270] sm:$0xff]  ;;  %v4536_v58 = vld [vmem:[#allocation4 + $0x10] sm:$0xff]  ;;  %v8574_v62 = vpack.c.bf16 %v4651_v26, %v4650_v18 }
 0x65b   :  { %8563 = vmatpush3.bf16.msra.mxu1 %v8562_v8  ;;  %v4621_v60 = vld [vmem:[#allocation11 + $0x278] sm:$0xff]  ;;  %v4686_v12 = vld [vmem:[#allocation11 + $0x480] sm:$0xff]  ;;  %v4687_v36 = vld [vmem:[#allocation11 + $0x488] sm:$0xff]  ;;  %v8576_v57 = vpack.c.bf16 %v4669_v52, %v4668_v37  ;;  %v5103_v53 = vcombine.high %v4536_v58, %v4536_v58  ;;  %v10880_v6 = vrot.slane %v4536_v58, %v10845_v32 }
 0x65c   :  { %8565 = vmatprep.subr.bf16.mxu1 %v8564_v31  ;;  %v4652_v40 = vld [vmem:[#allocation11 + $0x370] sm:$0xff]  ;;  %v4653_v5 = vld [vmem:[#allocation11 + $0x378] sm:$0xff]  ;;  %v8546_v59 = vpack.c.bf16 %v4621_v60, %v4620_v30  ;;  %v4718_v49 = vld [vmem:[#allocation11 + $0x580] sm:$0xff]  ;;  %v8580_v13 = vpack.c.bf16 %v4687_v36, %v4686_v12 }
 0x65d   :  { %8535 = vmatpush3.bf16.msra.mxu0 %v8534_v21  ;;  %v4719_v28 = vld [vmem:[#allocation11 + $0x588] sm:$0xff]  ;;  %v4670_v16 = vld [vmem:[#allocation11 + $0x400] sm:$0xff]  ;;  %v8578_v14 = vpack.c.bf16 %v4653_v5, %v4652_v40  ;;  %v4688_v24 = vld [vmem:[#allocation11 + $0x490] sm:$0xff]  ;;  %v10883_v39 = vrot.slane %v5103_v53, %v10845_v32  ;;  %v5118_v34 = vcombine.high %v10880_v6, %v10880_v6 }
 0x65e   :  { %8537 = vmatprep.subr.bf16.mxu0 %v8536_v27  ;;  %v4671_v38 = vld [vmem:[#allocation11 + $0x408] sm:$0xff]  ;;  %v4689_v15 = vld [vmem:[#allocation11 + $0x498] sm:$0xff]  ;;  %v8612_v4 = vpack.c.bf16 %v4719_v28, %v4718_v49  ;;  %v4702_v33 = vld [vmem:[#allocation11 + $0x500] sm:$0xff] }
 0x65f   :  { %8567 = vmatpush3.bf16.msra.mxu1 %v8566_v17  ;;  %v4703_v54 = vld [vmem:[#allocation11 + $0x508] sm:$0xff]  ;;  %v8582_v29 = vpack.c.bf16 %v4671_v38, %v4670_v16  ;;  %v4720_v22 = vld [vmem:[#allocation11 + $0x590] sm:$0xff]  ;;  %v4721_v8 = vld [vmem:[#allocation11 + $0x598] sm:$0xff]  ;;  %v8584_v9 = vpack.c.bf16 %v4689_v15, %v4688_v24  ;;  %v5119_v45 = vcombine.high %v10883_v39, %v10883_v39 }
 0x660   :  { %8569 = vmatprep.subr.bf16.mxu1 %v8568_v25  ;;  %v4672_v63 = vld [vmem:[#allocation11 + $0x410] sm:$0xff]  ;;  %v4673_v31 = vld [vmem:[#allocation11 + $0x418] sm:$0xff]  ;;  %v8614_v41 = vpack.c.bf16 %v4703_v54, %v4702_v33  ;;  %v4690_v21 = vld [vmem:[#allocation11 + $0x4a0] sm:$0xff]  ;;  %v8616_v55 = vpack.c.bf16 %v4721_v8, %v4720_v22 }
 0x661   :  { %8539 = vmatpush3.bf16.msra.mxu0 %v8538_v43  ;;  %v4691_v61 = vld [vmem:[#allocation11 + $0x4a8] sm:$0xff]  ;;  %v4704_v27 = vld [vmem:[#allocation11 + $0x510] sm:$0xff]  ;;  %v4705_v7 = vld [vmem:[#allocation11 + $0x518] sm:$0xff]  ;;  %v8586_v17 = vpack.c.bf16 %v4673_v31, %v4672_v63 }
 0x662   :  { %8541 = vmatprep.subr.bf16.mxu0 %v8540_v46  ;;  %v4722_v19 = vld [vmem:[#allocation11 + $0x5a0] sm:$0xff]  ;;  %v4723_v35 = vld [vmem:[#allocation11 + $0x5a8] sm:$0xff]  ;;  %v8588_v25 = vpack.c.bf16 %v4691_v61, %v4690_v21  ;;  %v4692_v43 = vld [vmem:[#allocation11 + $0x4b0] sm:$0xff] }
 0x663   :  { %8571 = vmatpush3.bf16.msra.mxu1 %v8570_v48  ;;  %v4674_v20 = vld [vmem:[#allocation11 + $0x420] sm:$0xff]  ;;  %v4675_v10 = vld [vmem:[#allocation11 + $0x428] sm:$0xff]  ;;  %v4693_v11 = vld [vmem:[#allocation11 + $0x4b8] sm:$0xff]  ;;  %v8620_v44 = vpack.c.bf16 %v4723_v35, %v4722_v19 }
 0x664   :  { %8573 = vmatprep.subr.bf16.mxu1 %v8572_v51  ;;  %v4706_v46 = vld [vmem:[#allocation11 + $0x520] sm:$0xff]  ;;  %v4707_v47 = vld [vmem:[#allocation11 + $0x528] sm:$0xff]  ;;  %v8590_v56 = vpack.c.bf16 %v4675_v10, %v4674_v20  ;;  %v4724_v48 = vld [vmem:[#allocation11 + $0x5b0] sm:$0xff]  ;;  %v8592_v1 = vpack.c.bf16 %v4693_v11, %v4692_v43 }
 0x665   :  { %8543 = vmatpush3.bf16.msra.mxu0 %v8542_v2  ;;  %v4725_v42 = vld [vmem:[#allocation11 + $0x5b8] sm:$0xff]  ;;  %v8622_v18 = vpack.c.bf16 %v4707_v47, %v4706_v46  ;;  %v4694_v26 = vld [vmem:[#allocation11 + $0x4c0] sm:$0xff]  ;;  %v4695_v2 = vld [vmem:[#allocation11 + $0x4c8] sm:$0xff] }
 0x666   :  { %8545 = vmatprep.subr.bf16.mxu0 %v8544_v0  ;;  %v4677_v51 = vld [vmem:[#allocation11 + $0x438] sm:$0xff]  ;;  %v8624_v37 = vpack.c.bf16 %v4725_v42, %v4724_v48  ;;  %v4708_v52 = vld [vmem:[#allocation11 + $0x530] sm:$0xff]  ;;  %v4726_v60 = vld [vmem:[#allocation11 + $0x5c0] sm:$0xff] }
 0x667   :  { %8575 = vmatpush3.bf16.msra.mxu1 %v8574_v62  ;;  %v4709_v0 = vld [vmem:[#allocation11 + $0x538] sm:$0xff]  ;;  %v4727_v58 = vld [vmem:[#allocation11 + $0x5c8] sm:$0xff]  ;;  %v8596_v62 = vpack.c.bf16 %v4695_v2, %v4694_v26  ;;  %v4678_v12 = vld [vmem:[#allocation11 + $0x440] sm:$0xff] }
 0x668   :  { %8577 = vmatprep.subr.bf16.mxu1 %v8576_v57  ;;  %v4679_v36 = vld [vmem:[#allocation11 + $0x448] sm:$0xff]  ;;  %v8626_v57 = vpack.c.bf16 %v4709_v0, %v4708_v52  ;;  %v4696_v40 = vld [vmem:[#allocation11 + $0x4d0] sm:$0xff]  ;;  %v4697_v5 = vld [vmem:[#allocation11 + $0x4d8] sm:$0xff] }
 0x669   :  { %8547 = vmatpush3.bf16.msra.mxu0 %v8546_v59  ;;  %v8628_v59 = vpack.c.bf16 %v4727_v58, %v4726_v60  ;;  %v4710_v49 = vld [vmem:[#allocation11 + $0x540] sm:$0xff]  ;;  %v4711_v28 = vld [vmem:[#allocation11 + $0x548] sm:$0xff]  ;;  %v8598_v53 = vpack.c.bf16 %v4679_v36, %v4678_v12  ;;  %v4729_v16 = vld [vmem:[#allocation11 + $0x5d8] sm:$0xff]  ;;  %v8600_v38 = vpack.c.bf16 %v4697_v5, %v4696_v40 }
 0x66a   :  { %8581 = vmatprep.subr.bf16.mxu0 %v8580_v13  ;;  %v4728_v13 = vld [vmem:[#allocation11 + $0x5d0] sm:$0xff]  ;;  %v4681_v24 = vld [vmem:[#allocation11 + $0x458] sm:$0xff]  ;;  %v8630_v15 = vpack.c.bf16 %v4711_v28, %v4710_v49  ;;  %v4699_v33 = vld [vmem:[#allocation11 + $0x4e8] sm:$0xff] }
 0x66b   :  { %8579 = vmatpush3.bf16.msra.mxu1 %v8578_v14  ;;  %v4680_v14 = vld [vmem:[#allocation11 + $0x450] sm:$0xff]  ;;  %v8632_v54 = vpack.c.bf16 %v4729_v16, %v4728_v13  ;;  %v4713_v22 = vld [vmem:[#allocation11 + $0x558] sm:$0xff]  ;;  %v4731_v63 = vld [vmem:[#allocation11 + $0x5e8] sm:$0xff] }
 0x66c   :  { %5442 = vmatmul.mubr.f32.vlgmr.msra.gmra.mrb[24].mxu0 %v10865_v23  ;;  %8613 = vmatprep.subr.bf16.mxu1 %v8612_v4  ;;  %v8618_v23 = vpack.c.bf16 %v4705_v7, %v4704_v27  ;;  %v4698_v4 = vld [vmem:[#allocation11 + $0x4e0] sm:$0xff]  ;;  %v8602_v8 = vpack.c.bf16 %v4681_v24, %v4680_v14  ;;  %v4700_v61 = vld [vmem:[#allocation11 + $0x4f0] sm:$0xff]  ;;  %v4733_v35 = vld [vmem:[#allocation11 + $0x5f8] sm:$0xff] }
 0x66d   :  { %8583 = vmatpush3.bf16.msra.mxu0 %v8582_v29  ;;  %5581 = vmatprep.mubr.f32.mxu0 %v5118_v34  ;;  %v4712_v29 = vld [vmem:[#allocation11 + $0x550] sm:$0xff]  ;;  %v8604_v31 = vpack.c.bf16 %v4699_v33, %v4698_v4  ;;  %v4682_v34 = vld [vmem:[#allocation11 + $0x460] sm:$0xff]  ;;  %v4685_v10 = vld [vmem:[#allocation11 + $0x478] sm:$0xff] }
 0x66e   :  { %5512 = vmatmul.mubr.f32.vlgmr.msra.gmra.mrb[24].mxu1 %v10875_v50  ;;  %8585 = vmatprep.subr.bf16.mxu0 %v8584_v9  ;;  %v4676_v50 = vld [vmem:[#allocation11 + $0x430] sm:$0xff]  ;;  %v4730_v9 = vld [vmem:[#allocation11 + $0x5e0] sm:$0xff]  ;;  %v8634_v21 = vpack.c.bf16 %v4713_v22, %v4712_v29  ;;  %v4735_v26 = vld [vmem:[#allocation11 + $0x608] sm:$0xff] }
 0x66f   :  { %8615 = vmatpush3.bf16.msra.mxu1 %v8614_v41  ;;  %5651 = vmatprep.mubr.f32.mxu1 %v5119_v45  ;;  %v8594_v30 = vpack.c.bf16 %v4677_v51, %v4676_v50  ;;  %v4683_v41 = vld [vmem:[#allocation11 + $0x468] sm:$0xff]  ;;  %v8636_v27 = vpack.c.bf16 %v4731_v63, %v4730_v9  ;;  %v4714_v7 = vld [vmem:[#allocation11 + $0x560] sm:$0xff]  ;;  %v4732_v19 = vld [vmem:[#allocation11 + $0x5f0] sm:$0xff] }
 0x670   :  { %8617 = vmatprep.subr.bf16.mxu1 %v8616_v55  ;;  %v4701_v55 = vld [vmem:[#allocation11 + $0x4f8] sm:$0xff]  ;;  %v4715_v45 = vld [vmem:[#allocation11 + $0x568] sm:$0xff]  ;;  %v4684_v20 = vld [vmem:[#allocation11 + $0x470] sm:$0xff]  ;;  %v8640_v46 = vpack.c.bf16 %v4733_v35, %v4732_v19 }
 0x671   :  { %8587 = vmatpush3.bf16.msra.mxu0 %v8586_v17  ;;  %v8606_v17 = vpack.c.bf16 %v4683_v41, %v4682_v34  ;;  %v8638_v43 = vpack.c.bf16 %v4715_v45, %v4714_v7  ;;  %v4750_v11 = vld [vmem:[#allocation11 + $0x680] sm:$0xff]  ;;  %v4716_v47 = vld [vmem:[#allocation11 + $0x570] sm:$0xff]  ;;  %v8610_v48 = vpack.c.bf16 %v4685_v10, %v4684_v20  ;;  %v4753_v0 = vld [vmem:[#allocation11 + $0x698] sm:$0xff] }
 0x672   :  { %8589 = vmatprep.subr.bf16.mxu0 %v8588_v25  ;;  %v8608_v25 = vpack.c.bf16 %v4701_v55, %v4700_v61  ;;  %v4782_v42 = vld [vmem:[#allocation11 + $0x780] sm:$0xff]  ;;  %v4752_v52 = vld [vmem:[#allocation11 + $0x690] sm:$0xff]  ;;  %v4767_v58 = vld [vmem:[#allocation11 + $0x708] sm:$0xff] }
 0x673   :  { %8619 = vmatpush3.bf16.msra.mxu1 %v8618_v23  ;;  %v4537_v23 = vld [vmem:[#allocation4 + $0x18] sm:$0xff]  ;;  %v4766_v60 = vld [vmem:[#allocation11 + $0x700] sm:$0xff]  ;;  %v8648_v40 = vpack.c.bf16 %v4753_v0, %v4752_v52  ;;  %v4755_v13 = vld [vmem:[#allocation11 + $0x6a8] sm:$0xff] }
 0x674   :  { %8621 = vmatprep.subr.bf16.mxu1 %v8620_v44  ;;  %v4751_v44 = vld [vmem:[#allocation11 + $0x688] sm:$0xff]  ;;  %v5120_v50 = vcombine.high %v4537_v23, %v4537_v23  ;;  %v4784_v36 = vld [vmem:[#allocation11 + $0x790] sm:$0xff]  ;;  %v8678_v28 = vpack.c.bf16 %v4767_v58, %v4766_v60  ;;  %v4769_v14 = vld [vmem:[#allocation11 + $0x718] sm:$0xff] }
 0x675   :  { %8591 = vmatpush3.bf16.msra.mxu0 %v8590_v56  ;;  %v4717_v56 = vld [vmem:[#allocation11 + $0x578] sm:$0xff]  ;;  %v8644_v51 = vpack.c.bf16 %v4751_v44, %v4750_v11  ;;  %v4736_v5 = vld [vmem:[#allocation11 + $0x610] sm:$0xff]  ;;  %v4786_v4 = vld [vmem:[#allocation11 + $0x7a0] sm:$0xff] }
 0x676   :  { %8593 = vmatprep.subr.bf16.mxu0 %v8592_v1  ;;  %v4783_v1 = vld [vmem:[#allocation11 + $0x788] sm:$0xff]  ;;  %v8642_v2 = vpack.c.bf16 %v4717_v56, %v4716_v47  ;;  %v10895_v12 = vrot.slane %v5120_v50, %v10845_v32  ;;  %v4738_v29 = vld [vmem:[#allocation11 + $0x620] sm:$0xff]  ;;  %v4757_v9 = vld [vmem:[#allocation11 + $0x6b8] sm:$0xff] }
 0x677   :  { %8623 = vmatpush3.bf16.msra.mxu1 %v8622_v18  ;;  %v4734_v18 = vld [vmem:[#allocation11 + $0x600] sm:$0xff]  ;;  %v4787_v33 = vld [vmem:[#allocation11 + $0x7a8] sm:$0xff]  ;;  %v4789_v61 = vld [vmem:[#allocation11 + $0x7b8] sm:$0xff] }
 0x678   :  { %8625 = vmatprep.subr.bf16.mxu1 %v8624_v37  ;;  %v10892_v37 = vrot.slane %v4537_v23, %v10845_v32  ;;  %v5136_v24 = vcombine.high %v10895_v12, %v10895_v12  ;;  %v4739_v22 = vld [vmem:[#allocation11 + $0x628] sm:$0xff]  ;;  %v8684_v63 = vpack.c.bf16 %v4787_v33, %v4786_v4  ;;  %v4758_v45 = vld [vmem:[#allocation11 + $0x6c0] sm:$0xff]  ;;  %v4772_v35 = vld [vmem:[#allocation11 + $0x730] sm:$0xff] }
 0x679   :  { %8595 = vmatpush3.bf16.msra.mxu0 %v8594_v30  ;;  %v8676_v30 = vpack.c.bf16 %v4783_v1, %v4782_v42  ;;  %v4771_v34 = vld [vmem:[#allocation11 + $0x728] sm:$0xff]  ;;  %v8654_v41 = vpack.c.bf16 %v4739_v22, %v4738_v29  ;;  %v4790_v10 = vld [vmem:[#allocation11 + $0x7c0] sm:$0xff]  ;;  %v4760_v47 = vld [vmem:[#allocation11 + $0x6d0] sm:$0xff] }
 0x67a   :  { %8597 = vmatprep.subr.bf16.mxu0 %v8596_v62  ;;  %v8646_v62 = vpack.c.bf16 %v4735_v26, %v4734_v18  ;;  %v5135_v49 = vcombine.high %v10892_v37, %v10892_v37  ;;  %v4791_v23 = vld [vmem:[#allocation11 + $0x7c8] sm:$0xff]  ;;  %v4742_v11 = vld [vmem:[#allocation11 + $0x640] sm:$0xff]  ;;  %v4761_v56 = vld [vmem:[#allocation11 + $0x6d8] sm:$0xff] }
 0x67b   :  { %8627 = vmatpush3.bf16.msra.mxu1 %v8626_v57  ;;  %v4785_v57 = vld [vmem:[#allocation11 + $0x798] sm:$0xff]  ;;  %v4743_v44 = vld [vmem:[#allocation11 + $0x648] sm:$0xff]  ;;  %v4774_v42 = vld [vmem:[#allocation11 + $0x740] sm:$0xff]  ;;  %v8664_v26 = vpack.c.bf16 %v4761_v56, %v4760_v47 }
 0x67c   :  { %8629 = vmatprep.subr.bf16.mxu1 %v8628_v59  ;;  %v4737_v59 = vld [vmem:[#allocation11 + $0x618] sm:$0xff]  ;;  %v8680_v16 = vpack.c.bf16 %v4785_v57, %v4784_v36  ;;  %v4775_v1 = vld [vmem:[#allocation11 + $0x748] sm:$0xff]  ;;  %v8662_v50 = vpack.c.bf16 %v4743_v44, %v4742_v11  ;;  %v4796_v4 = vld [vmem:[#allocation11 + $0x7f0] sm:$0xff] }
 0x67d   :  { %8599 = vmatpush3.bf16.msra.mxu0 %v8598_v53  ;;  %v4754_v53 = vld [vmem:[#allocation11 + $0x6a0] sm:$0xff]  ;;  %v4793_v18 = vld [vmem:[#allocation11 + $0x7d8] sm:$0xff]  ;;  %v8694_v0 = vpack.c.bf16 %v4775_v1, %v4774_v42  ;;  %v4763_v60 = vld [vmem:[#allocation11 + $0x6e8] sm:$0xff] }
 0x67e   :  { %8601 = vmatprep.subr.bf16.mxu0 %v8600_v38  ;;  %v4768_v38 = vld [vmem:[#allocation11 + $0x710] sm:$0xff]  ;;  %v4745_v52 = vld [vmem:[#allocation11 + $0x658] sm:$0xff] }
 0x67f   :  { %8631 = vmatpush3.bf16.msra.mxu1 %v8630_v15  ;;  %v8650_v15 = vpack.c.bf16 %v4737_v59, %v4736_v5  ;;  %v4777_v36 = vld [vmem:[#allocation11 + $0x758] sm:$0xff]  ;;  %v4795_v5 = vld [vmem:[#allocation11 + $0x7e8] sm:$0xff]  ;;  %v4748_v29 = vld [vmem:[#allocation11 + $0x670] sm:$0xff] }
 0x680   :  { %8633 = vmatprep.subr.bf16.mxu1 %v8632_v54  ;;  %v8652_v54 = vpack.c.bf16 %v4755_v13, %v4754_v53  ;;  %v4764_v13 = vld [vmem:[#allocation11 + $0x6f0] sm:$0xff]  ;;  %v4797_v33 = vld [vmem:[#allocation11 + $0x7f8] sm:$0xff] }
 0x681   :  { %8603 = vmatpush3.bf16.msra.mxu0 %v8602_v8  ;;  %v4756_v8 = vld [vmem:[#allocation11 + $0x6b0] sm:$0xff]  ;;  %v4749_v22 = vld [vmem:[#allocation11 + $0x678] sm:$0xff] }
 0x682   :  { %8605 = vmatprep.subr.bf16.mxu0 %v8604_v31  ;;  %v4770_v31 = vld [vmem:[#allocation11 + $0x720] sm:$0xff]  ;;  %v8656_v55 = vpack.c.bf16 %v4757_v9, %v4756_v8  ;;  %v4848_v44 = vld [vmem:[#allocation11 + $0x990] sm:$0xff] }
 0x683   :  { %8635 = vmatpush3.bf16.msra.mxu1 %v8634_v21  ;;  %v4788_v21 = vld [vmem:[#allocation11 + $0x7b0] sm:$0xff]  ;;  %v8686_v7 = vpack.c.bf16 %v4771_v34, %v4770_v31  ;;  %v4814_v9 = vld [vmem:[#allocation11 + $0x880] sm:$0xff]  ;;  %v8704_v31 = vpack.c.bf16 %v4797_v33, %v4796_v4 }
 0x684   :  { %8637 = vmatprep.subr.bf16.mxu1 %v8636_v27  ;;  %v4741_v27 = vld [vmem:[#allocation11 + $0x638] sm:$0xff]  ;;  %v8688_v19 = vpack.c.bf16 %v4789_v61, %v4788_v21  ;;  %v4780_v34 = vld [vmem:[#allocation11 + $0x770] sm:$0xff]  ;;  %v8674_v21 = vpack.c.bf16 %v4749_v22, %v4748_v29  ;;  %v4846_v61 = vld [vmem:[#allocation11 + $0x980] sm:$0xff] }
 0x685   :  { %8607 = vmatpush3.bf16.msra.mxu0 %v8606_v17  ;;  %v4759_v17 = vld [vmem:[#allocation11 + $0x6c8] sm:$0xff]  ;;  %v4800_v56 = vld [vmem:[#allocation11 + $0x810] sm:$0xff]  ;;  %v4854_v22 = vld [vmem:[#allocation11 + $0x9c0] sm:$0xff] }
 0x686   :  { %8609 = vmatprep.subr.bf16.mxu0 %v8608_v25  ;;  %v4773_v25 = vld [vmem:[#allocation11 + $0x738] sm:$0xff]  ;;  %v4836_v33 = vld [vmem:[#allocation11 + $0x930] sm:$0xff] }
 0x687   :  { %8639 = vmatpush3.bf16.msra.mxu1 %v8638_v43  ;;  %v8660_v43 = vpack.c.bf16 %v4759_v17, %v4758_v45  ;;  %v4799_v45 = vld [vmem:[#allocation11 + $0x808] sm:$0xff] }
 0x688   :  { %8641 = vmatprep.subr.bf16.mxu1 %v8640_v46  ;;  %v8690_v46 = vpack.c.bf16 %v4773_v25, %v4772_v35  ;;  %v4816_v35 = vld [vmem:[#allocation11 + $0x890] sm:$0xff]  ;;  %v4817_v25 = vld [vmem:[#allocation11 + $0x898] sm:$0xff] }
 0x689   :  { %8611 = vmatpush3.bf16.msra.mxu0 %v8610_v48  ;;  %v8692_v48 = vpack.c.bf16 %v4791_v23, %v4790_v10  ;;  %v4830_v10 = vld [vmem:[#allocation11 + $0x900] sm:$0xff]  ;;  %v4831_v23 = vld [vmem:[#allocation11 + $0x908] sm:$0xff]  ;;  %v8712_v47 = vpack.c.bf16 %v4817_v25, %v4816_v35  ;;  %v4809_v35 = vld [vmem:[#allocation11 + $0x858] sm:$0xff] }
 0x68a   :  { %8645 = vmatprep.subr.bf16.mxu0 %v8644_v51  ;;  %v4792_v51 = vld [vmem:[#allocation11 + $0x7d0] sm:$0xff]  ;;  %v8742_v1 = vpack.c.bf16 %v4831_v23, %v4830_v10  ;;  %v4827_v10 = vld [vmem:[#allocation11 + $0x8e8] sm:$0xff] }
 0x68b   :  { %8643 = vmatpush3.bf16.msra.mxu1 %v8642_v2  ;;  %v4744_v2 = vld [vmem:[#allocation11 + $0x650] sm:$0xff]  ;;  %v8696_v58 = vpack.c.bf16 %v4793_v18, %v4792_v51  ;;  %v4819_v51 = vld [vmem:[#allocation11 + $0x8a8] sm:$0xff] }
 0x68c   :  { %5582 = vmatmul.mubr.f32.vlgmr.msra.gmra.mrb[26].mxu0 %v10880_v6  ;;  %8677 = vmatprep.subr.bf16.mxu1 %v8676_v30  ;;  %v8682_v6 = vpack.c.bf16 %v4769_v14, %v4768_v38  ;;  %v4762_v30 = vld [vmem:[#allocation11 + $0x6e0] sm:$0xff]  ;;  %v8666_v57 = vpack.c.bf16 %v4745_v52, %v4744_v2  ;;  %v4833_v2 = vld [vmem:[#allocation11 + $0x918] sm:$0xff] }
 0x68d   :  { %8647 = vmatpush3.bf16.msra.mxu0 %v8646_v62  ;;  %5721 = vmatprep.mubr.f32.mxu0 %v5135_v49  ;;  %v4776_v62 = vld [vmem:[#allocation11 + $0x750] sm:$0xff]  ;;  %v8668_v59 = vpack.c.bf16 %v4763_v60, %v4762_v30  ;;  %v4746_v49 = vld [vmem:[#allocation11 + $0x660] sm:$0xff]  ;;  %v4851_v60 = vld [vmem:[#allocation11 + $0x9a8] sm:$0xff] }
 0x68e   :  { %5652 = vmatmul.mubr.f32.vlgmr.msra.gmra.mrb[26].mxu1 %v10883_v39  ;;  %8649 = vmatprep.subr.bf16.mxu0 %v8648_v40  ;;  %v4740_v39 = vld [vmem:[#allocation11 + $0x630] sm:$0xff]  ;;  %v4794_v40 = vld [vmem:[#allocation11 + $0x7e0] sm:$0xff]  ;;  %v8698_v53 = vpack.c.bf16 %v4777_v36, %v4776_v62  ;;  %v4803_v36 = vld [vmem:[#allocation11 + $0x828] sm:$0xff] }
 0x68f   :  { %8679 = vmatpush3.bf16.msra.mxu1 %v8678_v28  ;;  %5791 = vmatprep.mubr.f32.mxu1 %v5136_v24  ;;  %v8658_v20 = vpack.c.bf16 %v4741_v27, %v4740_v39  ;;  %v4747_v28 = vld [vmem:[#allocation11 + $0x668] sm:$0xff]  ;;  %v8700_v38 = vpack.c.bf16 %v4795_v5, %v4794_v40  ;;  %v4778_v14 = vld [vmem:[#allocation11 + $0x760] sm:$0xff]  ;;  %v4821_v40 = vld [vmem:[#allocation11 + $0x8b8] sm:$0xff] }
 0x690   :  { %8681 = vmatprep.subr.bf16.mxu1 %v8680_v16  ;;  %v4765_v16 = vld [vmem:[#allocation11 + $0x6f8] sm:$0xff]  ;;  %v4779_v24 = vld [vmem:[#allocation11 + $0x768] sm:$0xff]  ;;  %v4850_v30 = vld [vmem:[#allocation11 + $0x9a0] sm:$0xff] }
 0x691   :  { %8651 = vmatpush3.bf16.msra.mxu0 %v8650_v15  ;;  %v8670_v15 = vpack.c.bf16 %v4747_v28, %v4746_v49  ;;  %v8702_v8 = vpack.c.bf16 %v4779_v24, %v4778_v14  ;;  %v4802_v62 = vld [vmem:[#allocation11 + $0x820] sm:$0xff]  ;;  %v8748_v5 = vpack.c.bf16 %v4851_v60, %v4850_v30  ;;  %v4835_v49 = vld [vmem:[#allocation11 + $0x928] sm:$0xff]  ;;  %v4860_v30 = vld [vmem:[#allocation11 + $0x9f0] sm:$0xff] }
 0x692   :  { %8653 = vmatprep.subr.bf16.mxu0 %v8652_v54  ;;  %v8672_v54 = vpack.c.bf16 %v4765_v16, %v4764_v13  ;;  %v8718_v28 = vpack.c.bf16 %v4803_v36, %v4802_v62  ;;  %v4853_v13 = vld [vmem:[#allocation11 + $0x9b8] sm:$0xff]  ;;  %v4822_v24 = vld [vmem:[#allocation11 + $0x8c0] sm:$0xff]  ;;  %v4812_v62 = vld [vmem:[#allocation11 + $0x870] sm:$0xff] }
 0x693   :  { %8683 = vmatpush3.bf16.msra.mxu1 %v8682_v6  ;;  %v4538_v6 = vld [vmem:[#allocation4 + $0x20] sm:$0xff] }
 0x694   :  { %8685 = vmatprep.subr.bf16.mxu1 %v8684_v63  ;;  %v4815_v63 = vld [vmem:[#allocation11 + $0x888] sm:$0xff]  ;;  %v5137_v39 = vcombine.high %v4538_v6, %v4538_v6  ;;  %v4861_v60 = vld [vmem:[#allocation11 + $0x9f8] sm:$0xff] }
 0x695   :  { %8655 = vmatpush3.bf16.msra.mxu0 %v8654_v41  ;;  %v4781_v41 = vld [vmem:[#allocation11 + $0x778] sm:$0xff]  ;;  %v8708_v27 = vpack.c.bf16 %v4815_v63, %v4814_v9  ;;  %v4806_v9 = vld [vmem:[#allocation11 + $0x840] sm:$0xff]  ;;  %v4807_v63 = vld [vmem:[#allocation11 + $0x848] sm:$0xff] }
 0x696   :  { %8657 = vmatprep.subr.bf16.mxu0 %v8656_v55  ;;  %v4847_v55 = vld [vmem:[#allocation11 + $0x988] sm:$0xff]  ;;  %v8706_v17 = vpack.c.bf16 %v4781_v41, %v4780_v34  ;;  %v10907_v11 = vrot.slane %v5137_v39, %v10845_v32  ;;  %v4824_v34 = vld [vmem:[#allocation11 + $0x8d0] sm:$0xff]  ;;  %v4825_v41 = vld [vmem:[#allocation11 + $0x8d8] sm:$0xff]  ;;  %v8726_v39 = vpack.c.bf16 %v4807_v63, %v4806_v9 }
 0x697   :  { %8687 = vmatpush3.bf16.msra.mxu1 %v8686_v7  ;;  %v4798_v7 = vld [vmem:[#allocation11 + $0x800] sm:$0xff]  ;;  %v4813_v36 = vld [vmem:[#allocation11 + $0x878] sm:$0xff]  ;;  %v4912_v63 = vld [vmem:[#allocation11 + $0xb90] sm:$0xff] }
 0x698   :  { %8689 = vmatprep.subr.bf16.mxu1 %v8688_v19  ;;  %v10904_v19 = vrot.slane %v4538_v6, %v10845_v32  ;;  %v5153_v52 = vcombine.high %v10907_v11, %v10907_v11  ;;  %v4855_v6 = vld [vmem:[#allocation11 + $0x9c8] sm:$0xff] }
 0x699   :  { %8659 = vmatpush3.bf16.msra.mxu0 %v8658_v20  ;;  %v8740_v20 = vpack.c.bf16 %v4847_v55, %v4846_v61  ;;  %v4838_v61 = vld [vmem:[#allocation11 + $0x940] sm:$0xff]  ;;  %v4839_v55 = vld [vmem:[#allocation11 + $0x948] sm:$0xff] }
 0x69a   :  { %8661 = vmatprep.subr.bf16.mxu0 %v8660_v43  ;;  %v8710_v43 = vpack.c.bf16 %v4799_v45, %v4798_v7  ;;  %v5152_v42 = vcombine.high %v10904_v19, %v10904_v19  ;;  %v4857_v7 = vld [vmem:[#allocation11 + $0x9d8] sm:$0xff]  ;;  %v8728_v45 = vpack.c.bf16 %v4825_v41, %v4824_v34  ;;  %v8758_v25 = vpack.c.bf16 %v4839_v55, %v4838_v61  ;;  %v4864_v41 = vld [vmem:[#allocation11 + $0xa10] sm:$0xff] }
 0x69b   :  { %8691 = vmatpush3.bf16.msra.mxu1 %v8690_v46  ;;  %v4849_v46 = vld [vmem:[#allocation11 + $0x998] sm:$0xff] }
 0x69c   :  { %8693 = vmatprep.subr.bf16.mxu1 %v8692_v48  ;;  %v4801_v48 = vld [vmem:[#allocation11 + $0x818] sm:$0xff]  ;;  %v8744_v18 = vpack.c.bf16 %v4849_v46, %v4848_v44 }
 0x69d   :  { %8663 = vmatpush3.bf16.msra.mxu0 %v8662_v50  ;;  %v4818_v50 = vld [vmem:[#allocation11 + $0x8a0] sm:$0xff]  ;;  %v4841_v44 = vld [vmem:[#allocation11 + $0x958] sm:$0xff] }
 0x69e   :  { %8665 = vmatprep.subr.bf16.mxu0 %v8664_v26  ;;  %v4832_v26 = vld [vmem:[#allocation11 + $0x910] sm:$0xff] }
 0x69f   :  { %8695 = vmatpush3.bf16.msra.mxu1 %v8694_v0  ;;  %v8714_v0 = vpack.c.bf16 %v4801_v48, %v4800_v56  ;;  %v4859_v56 = vld [vmem:[#allocation11 + $0x9e8] sm:$0xff] }
 0x6a0   :  { %8697 = vmatprep.subr.bf16.mxu1 %v8696_v58  ;;  %v8716_v58 = vpack.c.bf16 %v4819_v51, %v4818_v50  ;;  %v4828_v51 = vld [vmem:[#allocation11 + $0x8f0] sm:$0xff] }
 0x6a1   :  { %8667 = vmatpush3.bf16.msra.mxu0 %v8666_v57  ;;  %v4820_v57 = vld [vmem:[#allocation11 + $0x8b0] sm:$0xff] }
 0x6a2   :  { %8669 = vmatprep.subr.bf16.mxu0 %v8668_v59  ;;  %v4834_v59 = vld [vmem:[#allocation11 + $0x920] sm:$0xff]  ;;  %v8720_v16 = vpack.c.bf16 %v4821_v40, %v4820_v57 }
 0x6a3   :  { %8699 = vmatpush3.bf16.msra.mxu1 %v8698_v53  ;;  %v4852_v53 = vld [vmem:[#allocation11 + $0x9b0] sm:$0xff]  ;;  %v8750_v14 = vpack.c.bf16 %v4835_v49, %v4834_v59  ;;  %v4878_v40 = vld [vmem:[#allocation11 + $0xa80] sm:$0xff]  ;;  %v8768_v59 = vpack.c.bf16 %v4861_v60, %v4860_v30 }
 0x6a4   :  { %8701 = vmatprep.subr.bf16.mxu1 %v8700_v38  ;;  %v4805_v38 = vld [vmem:[#allocation11 + $0x838] sm:$0xff]  ;;  %v8752_v4 = vpack.c.bf16 %v4853_v13, %v4852_v53  ;;  %v4844_v49 = vld [vmem:[#allocation11 + $0x970] sm:$0xff]  ;;  %v8738_v53 = vpack.c.bf16 %v4813_v36, %v4812_v62  ;;  %v4910_v13 = vld [vmem:[#allocation11 + $0xb80] sm:$0xff] }
 0x6a5   :  { %8671 = vmatpush3.bf16.msra.mxu0 %v8670_v15  ;;  %v4823_v15 = vld [vmem:[#allocation11 + $0x8c8] sm:$0xff]  ;;  %v4900_v60 = vld [vmem:[#allocation11 + $0xb30] sm:$0xff]  ;;  %v4918_v36 = vld [vmem:[#allocation11 + $0xbc0] sm:$0xff] }
 0x6a6   :  { %8673 = vmatprep.subr.bf16.mxu0 %v8672_v54  ;;  %v4837_v54 = vld [vmem:[#allocation11 + $0x938] sm:$0xff] }
 0x6a7   :  { %8703 = vmatpush3.bf16.msra.mxu1 %v8702_v8  ;;  %v8724_v8 = vpack.c.bf16 %v4823_v15, %v4822_v24  ;;  %v4863_v24 = vld [vmem:[#allocation11 + $0xa08] sm:$0xff] }
 0x6a8   :  { %8705 = vmatprep.subr.bf16.mxu1 %v8704_v31  ;;  %v8754_v31 = vpack.c.bf16 %v4837_v54, %v4836_v33  ;;  %v4880_v33 = vld [vmem:[#allocation11 + $0xa90] sm:$0xff]  ;;  %v4881_v54 = vld [vmem:[#allocation11 + $0xa98] sm:$0xff] }
 0x6a9   :  { %8675 = vmatpush3.bf16.msra.mxu0 %v8674_v21  ;;  %v8756_v21 = vpack.c.bf16 %v4855_v6, %v4854_v22  ;;  %v4894_v22 = vld [vmem:[#allocation11 + $0xb00] sm:$0xff]  ;;  %v4895_v6 = vld [vmem:[#allocation11 + $0xb08] sm:$0xff]  ;;  %v8776_v34 = vpack.c.bf16 %v4881_v54, %v4880_v33  ;;  %v4873_v33 = vld [vmem:[#allocation11 + $0xa58] sm:$0xff] }
 0x6aa   :  { %8709 = vmatprep.subr.bf16.mxu0 %v8708_v27  ;;  %v4856_v27 = vld [vmem:[#allocation11 + $0x9d0] sm:$0xff]  ;;  %v8806_v55 = vpack.c.bf16 %v4895_v6, %v4894_v22  ;;  %v4891_v22 = vld [vmem:[#allocation11 + $0xae8] sm:$0xff] }
 0x6ab   :  { %8707 = vmatpush3.bf16.msra.mxu1 %v8706_v17  ;;  %v4808_v17 = vld [vmem:[#allocation11 + $0x850] sm:$0xff]  ;;  %v8760_v23 = vpack.c.bf16 %v4857_v7, %v4856_v27  ;;  %v4883_v27 = vld [vmem:[#allocation11 + $0xaa8] sm:$0xff] }
 0x6ac   :  { %5722 = vmatmul.mubr.f32.vlgmr.msra.gmra.mrb[28].mxu0 %v10892_v37  ;;  %8741 = vmatprep.subr.bf16.mxu1 %v8740_v20  ;;  %v8746_v37 = vpack.c.bf16 %v4833_v2, %v4832_v26  ;;  %v4826_v20 = vld [vmem:[#allocation11 + $0x8e0] sm:$0xff]  ;;  %v8730_v46 = vpack.c.bf16 %v4809_v35, %v4808_v17  ;;  %v4897_v17 = vld [vmem:[#allocation11 + $0xb18] sm:$0xff] }
 0x6ad   :  { %8711 = vmatpush3.bf16.msra.mxu0 %v8710_v43  ;;  %5861 = vmatprep.mubr.f32.mxu0 %v5152_v42  ;;  %v4840_v43 = vld [vmem:[#allocation11 + $0x950] sm:$0xff]  ;;  %v8732_v48 = vpack.c.bf16 %v4827_v10, %v4826_v20  ;;  %v4810_v42 = vld [vmem:[#allocation11 + $0x860] sm:$0xff]  ;;  %v4915_v10 = vld [vmem:[#allocation11 + $0xba8] sm:$0xff] }
 0x6ae   :  { %5792 = vmatmul.mubr.f32.vlgmr.msra.gmra.mrb[28].mxu1 %v10895_v12  ;;  %8713 = vmatprep.subr.bf16.mxu0 %v8712_v47  ;;  %v4804_v12 = vld [vmem:[#allocation11 + $0x830] sm:$0xff]  ;;  %v4858_v47 = vld [vmem:[#allocation11 + $0x9e0] sm:$0xff]  ;;  %v8762_v50 = vpack.c.bf16 %v4841_v44, %v4840_v43  ;;  %v4867_v44 = vld [vmem:[#allocation11 + $0xa28] sm:$0xff] }
 0x6af   :  { %8743 = vmatpush3.bf16.msra.mxu1 %v8742_v1  ;;  %5931 = vmatprep.mubr.f32.mxu1 %v5153_v52  ;;  %v8722_v29 = vpack.c.bf16 %v4805_v38, %v4804_v12  ;;  %v4811_v1 = vld [vmem:[#allocation11 + $0x868] sm:$0xff]  ;;  %v8764_v26 = vpack.c.bf16 %v4859_v56, %v4858_v47  ;;  %v4842_v2 = vld [vmem:[#allocation11 + $0x960] sm:$0xff]  ;;  %v4885_v47 = vld [vmem:[#allocation11 + $0xab8] sm:$0xff] }
 0x6b0   :  { %8745 = vmatprep.subr.bf16.mxu1 %v8744_v18  ;;  %v4829_v18 = vld [vmem:[#allocation11 + $0x8f8] sm:$0xff]  ;;  %v4843_v52 = vld [vmem:[#allocation11 + $0x968] sm:$0xff]  ;;  %v4914_v20 = vld [vmem:[#allocation11 + $0xba0] sm:$0xff] }
 0x6b1   :  { %8715 = vmatpush3.bf16.msra.mxu0 %v8714_v0  ;;  %v8734_v0 = vpack.c.bf16 %v4811_v1, %v4810_v42  ;;  %v8766_v57 = vpack.c.bf16 %v4843_v52, %v4842_v2  ;;  %v4866_v43 = vld [vmem:[#allocation11 + $0xa20] sm:$0xff]  ;;  %v8812_v56 = vpack.c.bf16 %v4915_v10, %v4914_v20  ;;  %v4899_v42 = vld [vmem:[#allocation11 + $0xb28] sm:$0xff]  ;;  %v4924_v20 = vld [vmem:[#allocation11 + $0xbf0] sm:$0xff] }
 0x6b2   :  { %8717 = vmatprep.subr.bf16.mxu0 %v8716_v58  ;;  %v8736_v58 = vpack.c.bf16 %v4829_v18, %v4828_v51  ;;  %v8782_v1 = vpack.c.bf16 %v4867_v44, %v4866_v43  ;;  %v4917_v51 = vld [vmem:[#allocation11 + $0xbb8] sm:$0xff]  ;;  %v4886_v52 = vld [vmem:[#allocation11 + $0xac0] sm:$0xff]  ;;  %v4876_v43 = vld [vmem:[#allocation11 + $0xa70] sm:$0xff] }
 0x6b3   :  { %8747 = vmatpush3.bf16.msra.mxu1 %v8746_v37  ;;  %v4539_v37 = vld [vmem:[#allocation4 + $0x28] sm:$0xff]  ;;  %v4925_v10 = vld [vmem:[#allocation11 + $0xbf8] sm:$0xff] }
 0x6b4   :  { %8749 = vmatprep.subr.bf16.mxu1 %v8748_v5  ;;  %v4879_v5 = vld [vmem:[#allocation11 + $0xa88] sm:$0xff]  ;;  %v5154_v12 = vcombine.high %v4539_v37, %v4539_v37  ;;  %v4877_v44 = vld [vmem:[#allocation11 + $0xa78] sm:$0xff] }
 0x6b5   :  { %8719 = vmatpush3.bf16.msra.mxu0 %v8718_v28  ;;  %v4845_v28 = vld [vmem:[#allocation11 + $0x978] sm:$0xff]  ;;  %v8772_v38 = vpack.c.bf16 %v4879_v5, %v4878_v40  ;;  %v4870_v40 = vld [vmem:[#allocation11 + $0xa40] sm:$0xff]  ;;  %v4871_v5 = vld [vmem:[#allocation11 + $0xa48] sm:$0xff] }
 0x6b6   :  { %8721 = vmatprep.subr.bf16.mxu0 %v8720_v16  ;;  %v4911_v16 = vld [vmem:[#allocation11 + $0xb88] sm:$0xff]  ;;  %v8770_v15 = vpack.c.bf16 %v4845_v28, %v4844_v49  ;;  %v10919_v9 = vrot.slane %v5154_v12, %v10845_v32  ;;  %v4888_v49 = vld [vmem:[#allocation11 + $0xad0] sm:$0xff]  ;;  %v4889_v28 = vld [vmem:[#allocation11 + $0xad8] sm:$0xff]  ;;  %v8790_v12 = vpack.c.bf16 %v4871_v5, %v4870_v40 }
 0x6b7   :  { %8751 = vmatpush3.bf16.msra.mxu1 %v8750_v14  ;;  %v4862_v14 = vld [vmem:[#allocation11 + $0xa00] sm:$0xff]  ;;  %v4976_v5 = vld [vmem:[#allocation11 + $0xd90] sm:$0xff] }
 0x6b8   :  { %8753 = vmatprep.subr.bf16.mxu1 %v8752_v4  ;;  %v10916_v4 = vrot.slane %v4539_v37, %v10845_v32  ;;  %v5170_v35 = vcombine.high %v10919_v9, %v10919_v9  ;;  %v4919_v37 = vld [vmem:[#allocation11 + $0xbc8] sm:$0xff] }
 0x6b9   :  { %8723 = vmatpush3.bf16.msra.mxu0 %v8722_v29  ;;  %v8804_v29 = vpack.c.bf16 %v4911_v16, %v4910_v13  ;;  %v4902_v13 = vld [vmem:[#allocation11 + $0xb40] sm:$0xff]  ;;  %v4903_v16 = vld [vmem:[#allocation11 + $0xb48] sm:$0xff] }
 0x6ba   :  { %8725 = vmatprep.subr.bf16.mxu0 %v8724_v8  ;;  %v8774_v8 = vpack.c.bf16 %v4863_v24, %v4862_v14  ;;  %v5169_v61 = vcombine.high %v10916_v4, %v10916_v4  ;;  %v4921_v14 = vld [vmem:[#allocation11 + $0xbd8] sm:$0xff]  ;;  %v8792_v24 = vpack.c.bf16 %v4889_v28, %v4888_v49  ;;  %v8822_v54 = vpack.c.bf16 %v4903_v16, %v4902_v13  ;;  %v4928_v28 = vld [vmem:[#allocation11 + $0xc10] sm:$0xff] }
 0x6bb   :  { %8755 = vmatpush3.bf16.msra.mxu1 %v8754_v31  ;;  %v4913_v31 = vld [vmem:[#allocation11 + $0xb98] sm:$0xff] }
 0x6bc   :  { %8757 = vmatprep.subr.bf16.mxu1 %v8756_v21  ;;  %v4865_v21 = vld [vmem:[#allocation11 + $0xa18] sm:$0xff]  ;;  %v8808_v7 = vpack.c.bf16 %v4913_v31, %v4912_v63 }
 0x6bd   :  { %8727 = vmatpush3.bf16.msra.mxu0 %v8726_v39  ;;  %v4882_v39 = vld [vmem:[#allocation11 + $0xaa0] sm:$0xff]  ;;  %v4905_v63 = vld [vmem:[#allocation11 + $0xb58] sm:$0xff] }
 0x6be   :  { %8729 = vmatprep.subr.bf16.mxu0 %v8728_v45  ;;  %v4896_v45 = vld [vmem:[#allocation11 + $0xb10] sm:$0xff] }
 0x6bf   :  { %8759 = vmatpush3.bf16.msra.mxu1 %v8758_v25  ;;  %v8778_v25 = vpack.c.bf16 %v4865_v21, %v4864_v41  ;;  %v4923_v41 = vld [vmem:[#allocation11 + $0xbe8] sm:$0xff] }
 0x6c0   :  { %8761 = vmatprep.subr.bf16.mxu1 %v8760_v23  ;;  %v8780_v23 = vpack.c.bf16 %v4883_v27, %v4882_v39  ;;  %v4892_v27 = vld [vmem:[#allocation11 + $0xaf0] sm:$0xff] }
 0x6c1   :  { %8731 = vmatpush3.bf16.msra.mxu0 %v8730_v46  ;;  %v4884_v46 = vld [vmem:[#allocation11 + $0xab0] sm:$0xff] }
 0x6c2   :  { %8733 = vmatprep.subr.bf16.mxu0 %v8732_v48  ;;  %v4898_v48 = vld [vmem:[#allocation11 + $0xb20] sm:$0xff]  ;;  %v8784_v18 = vpack.c.bf16 %v4885_v47, %v4884_v46 }
 0x6c3   :  { %8763 = vmatpush3.bf16.msra.mxu1 %v8762_v50  ;;  %v4916_v50 = vld [vmem:[#allocation11 + $0xbb0] sm:$0xff]  ;;  %v8814_v2 = vpack.c.bf16 %v4899_v42, %v4898_v48  ;;  %v4942_v47 = vld [vmem:[#allocation11 + $0xc80] sm:$0xff]  ;;  %v8832_v48 = vpack.c.bf16 %v4925_v10, %v4924_v20 }
 0x6c4   :  { %8765 = vmatprep.subr.bf16.mxu1 %v8764_v26  ;;  %v4869_v26 = vld [vmem:[#allocation11 + $0xa38] sm:$0xff]  ;;  %v8816_v30 = vpack.c.bf16 %v4917_v51, %v4916_v50  ;;  %v4908_v42 = vld [vmem:[#allocation11 + $0xb70] sm:$0xff]  ;;  %v8802_v50 = vpack.c.bf16 %v4877_v44, %v4876_v43  ;;  %v4974_v51 = vld [vmem:[#allocation11 + $0xd80] sm:$0xff] }
 0x6c5   :  { %8735 = vmatpush3.bf16.msra.mxu0 %v8734_v0  ;;  %v4887_v0 = vld [vmem:[#allocation11 + $0xac8] sm:$0xff]  ;;  %v4964_v10 = vld [vmem:[#allocation11 + $0xd30] sm:$0xff]  ;;  %v4982_v44 = vld [vmem:[#allocation11 + $0xdc0] sm:$0xff] }
 0x6c6   :  { %8737 = vmatprep.subr.bf16.mxu0 %v8736_v58  ;;  %v4901_v58 = vld [vmem:[#allocation11 + $0xb38] sm:$0xff] }
 0x6c7   :  { %8767 = vmatpush3.bf16.msra.mxu1 %v8766_v57  ;;  %v8788_v57 = vpack.c.bf16 %v4887_v0, %v4886_v52  ;;  %v4927_v52 = vld [vmem:[#allocation11 + $0xc08] sm:$0xff] }
 0x6c8   :  { %8769 = vmatprep.subr.bf16.mxu1 %v8768_v59  ;;  %v8818_v59 = vpack.c.bf16 %v4901_v58, %v4900_v60  ;;  %v4944_v60 = vld [vmem:[#allocation11 + $0xc90] sm:$0xff]  ;;  %v4945_v58 = vld [vmem:[#allocation11 + $0xc98] sm:$0xff] }
 0x6c9   :  { %8739 = vmatpush3.bf16.msra.mxu0 %v8738_v53  ;;  %v8820_v53 = vpack.c.bf16 %v4919_v37, %v4918_v36  ;;  %v4958_v36 = vld [vmem:[#allocation11 + $0xd00] sm:$0xff]  ;;  %v4959_v37 = vld [vmem:[#allocation11 + $0xd08] sm:$0xff]  ;;  %v8840_v49 = vpack.c.bf16 %v4945_v58, %v4944_v60  ;;  %v4937_v60 = vld [vmem:[#allocation11 + $0xc58] sm:$0xff] }
 0x6ca   :  { %8773 = vmatprep.subr.bf16.mxu0 %v8772_v38  ;;  %v4920_v38 = vld [vmem:[#allocation11 + $0xbd0] sm:$0xff]  ;;  %v8870_v16 = vpack.c.bf16 %v4959_v37, %v4958_v36  ;;  %v4955_v36 = vld [vmem:[#allocation11 + $0xce8] sm:$0xff] }
 0x6cb   :  { %8771 = vmatpush3.bf16.msra.mxu1 %v8770_v15  ;;  %v4872_v15 = vld [vmem:[#allocation11 + $0xa50] sm:$0xff]  ;;  %v8824_v6 = vpack.c.bf16 %v4921_v14, %v4920_v38  ;;  %v4947_v38 = vld [vmem:[#allocation11 + $0xca8] sm:$0xff] }
 0x6cc   :  { %5862 = vmatmul.mubr.f32.vlgmr.msra.gmra.mrb[30].mxu0 %v10904_v19  ;;  %8805 = vmatprep.subr.bf16.mxu1 %v8804_v29  ;;  %v8810_v19 = vpack.c.bf16 %v4897_v17, %v4896_v45  ;;  %v4890_v29 = vld [vmem:[#allocation11 + $0xae0] sm:$0xff]  ;;  %v8794_v31 = vpack.c.bf16 %v4873_v33, %v4872_v15  ;;  %v4961_v15 = vld [vmem:[#allocation11 + $0xd18] sm:$0xff] }
 0x6cd   :  { %8775 = vmatpush3.bf16.msra.mxu0 %v8774_v8  ;;  %6001 = vmatprep.mubr.f32.mxu0 %v5169_v61  ;;  %v4904_v8 = vld [vmem:[#allocation11 + $0xb50] sm:$0xff]  ;;  %v8796_v21 = vpack.c.bf16 %v4891_v22, %v4890_v29  ;;  %v4874_v61 = vld [vmem:[#allocation11 + $0xa60] sm:$0xff]  ;;  %v4979_v22 = vld [vmem:[#allocation11 + $0xda8] sm:$0xff] }
 0x6ce   :  { %5932 = vmatmul.mubr.f32.vlgmr.msra.gmra.mrb[30].mxu1 %v10907_v11  ;;  %8777 = vmatprep.subr.bf16.mxu0 %v8776_v34  ;;  %v4868_v11 = vld [vmem:[#allocation11 + $0xa30] sm:$0xff]  ;;  %v4922_v34 = vld [vmem:[#allocation11 + $0xbe0] sm:$0xff]  ;;  %v8826_v39 = vpack.c.bf16 %v4905_v63, %v4904_v8  ;;  %v4931_v63 = vld [vmem:[#allocation11 + $0xc28] sm:$0xff] }
 0x6cf   :  { %8807 = vmatpush3.bf16.msra.mxu1 %v8806_v55  ;;  %6071 = vmatprep.mubr.f32.mxu1 %v5170_v35  ;;  %v8786_v62 = vpack.c.bf16 %v4869_v26, %v4868_v11  ;;  %v4875_v55 = vld [vmem:[#allocation11 + $0xa68] sm:$0xff]  ;;  %v8828_v45 = vpack.c.bf16 %v4923_v41, %v4922_v34  ;;  %v4906_v17 = vld [vmem:[#allocation11 + $0xb60] sm:$0xff]  ;;  %v4949_v34 = vld [vmem:[#allocation11 + $0xcb8] sm:$0xff] }
 0x6d0   :  { %8809 = vmatprep.subr.bf16.mxu1 %v8808_v7  ;;  %v4893_v7 = vld [vmem:[#allocation11 + $0xaf8] sm:$0xff]  ;;  %v4907_v35 = vld [vmem:[#allocation11 + $0xb68] sm:$0xff]  ;;  %v4978_v29 = vld [vmem:[#allocation11 + $0xda0] sm:$0xff] }
 0x6d1   :  { %8779 = vmatpush3.bf16.msra.mxu0 %v8778_v25  ;;  %v8798_v25 = vpack.c.bf16 %v4875_v55, %v4874_v61  ;;  %v8830_v46 = vpack.c.bf16 %v4907_v35, %v4906_v17  ;;  %v4930_v8 = vld [vmem:[#allocation11 + $0xc20] sm:$0xff]  ;;  %v8876_v41 = vpack.c.bf16 %v4979_v22, %v4978_v29  ;;  %v4963_v61 = vld [vmem:[#allocation11 + $0xd28] sm:$0xff]  ;;  %v4988_v29 = vld [vmem:[#allocation11 + $0xdf0] sm:$0xff] }
 0x6d2   :  { %8781 = vmatprep.subr.bf16.mxu0 %v8780_v23  ;;  %v8800_v23 = vpack.c.bf16 %v4893_v7, %v4892_v27  ;;  %v8846_v55 = vpack.c.bf16 %v4931_v63, %v4930_v8  ;;  %v4981_v27 = vld [vmem:[#allocation11 + $0xdb8] sm:$0xff]  ;;  %v4950_v35 = vld [vmem:[#allocation11 + $0xcc0] sm:$0xff]  ;;  %v4940_v8 = vld [vmem:[#allocation11 + $0xc70] sm:$0xff] }
 0x6d3   :  { %8811 = vmatpush3.bf16.msra.mxu1 %v8810_v19  ;;  %v4540_v19 = vld [vmem:[#allocation4 + $0x30] sm:$0xff]  ;;  %v4989_v22 = vld [vmem:[#allocation11 + $0xdf8] sm:$0xff] }
 0x6d4   :  { %8813 = vmatprep.subr.bf16.mxu1 %v8812_v56  ;;  %v4943_v56 = vld [vmem:[#allocation11 + $0xc88] sm:$0xff]  ;;  %v5171_v11 = vcombine.high %v4540_v19, %v4540_v19  ;;  %v4941_v63 = vld [vmem:[#allocation11 + $0xc78] sm:$0xff] }
 0x6d5   :  { %8783 = vmatpush3.bf16.msra.mxu0 %v8782_v1  ;;  %v4909_v1 = vld [vmem:[#allocation11 + $0xb78] sm:$0xff]  ;;  %v8836_v26 = vpack.c.bf16 %v4943_v56, %v4942_v47  ;;  %v4934_v47 = vld [vmem:[#allocation11 + $0xc40] sm:$0xff]  ;;  %v4935_v56 = vld [vmem:[#allocation11 + $0xc48] sm:$0xff] }
 0x6d6   :  { %8785 = vmatprep.subr.bf16.mxu0 %v8784_v18  ;;  %v4975_v18 = vld [vmem:[#allocation11 + $0xd88] sm:$0xff]  ;;  %v8834_v0 = vpack.c.bf16 %v4909_v1, %v4908_v42  ;;  %v10931_v40 = vrot.slane %v5171_v11, %v10845_v32  ;;  %v4952_v42 = vld [vmem:[#allocation11 + $0xcd0] sm:$0xff]  ;;  %v4953_v1 = vld [vmem:[#allocation11 + $0xcd8] sm:$0xff]  ;;  %v8854_v11 = vpack.c.bf16 %v4935_v56, %v4934_v47 }
 0x6d7   :  { %8815 = vmatpush3.bf16.msra.mxu1 %v8814_v2  ;;  %v4926_v2 = vld [vmem:[#allocation11 + $0xc00] sm:$0xff]  ;;  %v5040_v56 = vld [vmem:[#allocation11 + $0xf90] sm:$0xff] }
 0x6d8   :  { %8817 = vmatprep.subr.bf16.mxu1 %v8816_v30  ;;  %v10928_v30 = vrot.slane %v4540_v19, %v10845_v32  ;;  %v5187_v33 = vcombine.high %v10931_v40, %v10931_v40  ;;  %v4983_v19 = vld [vmem:[#allocation11 + $0xdc8] sm:$0xff] }
 0x6d9   :  { %8787 = vmatpush3.bf16.msra.mxu0 %v8786_v62  ;;  %v8868_v62 = vpack.c.bf16 %v4975_v18, %v4974_v51  ;;  %v4966_v51 = vld [vmem:[#allocation11 + $0xd40] sm:$0xff]  ;;  %v4967_v18 = vld [vmem:[#allocation11 + $0xd48] sm:$0xff] }
 0x6da   :  { %8789 = vmatprep.subr.bf16.mxu0 %v8788_v57  ;;  %v8838_v57 = vpack.c.bf16 %v4927_v52, %v4926_v2  ;;  %v5186_v13 = vcombine.high %v10928_v30, %v10928_v30  ;;  %v4985_v2 = vld [vmem:[#allocation11 + $0xdd8] sm:$0xff]  ;;  %v8856_v52 = vpack.c.bf16 %v4953_v1, %v4952_v42  ;;  %v8886_v58 = vpack.c.bf16 %v4967_v18, %v4966_v51  ;;  %v4992_v1 = vld [vmem:[#allocation11 + $0xe10] sm:$0xff] }
 0x6db   :  { %8819 = vmatpush3.bf16.msra.mxu1 %v8818_v59  ;;  %v4977_v59 = vld [vmem:[#allocation11 + $0xd98] sm:$0xff] }
 0x6dc   :  { %8821 = vmatprep.subr.bf16.mxu1 %v8820_v53  ;;  %v4929_v53 = vld [vmem:[#allocation11 + $0xc18] sm:$0xff]  ;;  %v8872_v14 = vpack.c.bf16 %v4977_v59, %v4976_v5 }
 0x6dd   :  { %8791 = vmatpush3.bf16.msra.mxu0 %v8790_v12  ;;  %v4946_v12 = vld [vmem:[#allocation11 + $0xca0] sm:$0xff]  ;;  %v4969_v5 = vld [vmem:[#allocation11 + $0xd58] sm:$0xff] }
 0x6de   :  { %8793 = vmatprep.subr.bf16.mxu0 %v8792_v24  ;;  %v4960_v24 = vld [vmem:[#allocation11 + $0xd10] sm:$0xff] }
 0x6df   :  { %8823 = vmatpush3.bf16.msra.mxu1 %v8822_v54  ;;  %v8842_v54 = vpack.c.bf16 %v4929_v53, %v4928_v28  ;;  %v4987_v28 = vld [vmem:[#allocation11 + $0xde8] sm:$0xff] }
 0x6e0   :  { %8825 = vmatprep.subr.bf16.mxu1 %v8824_v6  ;;  %v8844_v6 = vpack.c.bf16 %v4947_v38, %v4946_v12  ;;  %v4956_v38 = vld [vmem:[#allocation11 + $0xcf0] sm:$0xff] }
 0x6e1   :  { %8795 = vmatpush3.bf16.msra.mxu0 %v8794_v31  ;;  %v4948_v31 = vld [vmem:[#allocation11 + $0xcb0] sm:$0xff] }
 0x6e2   :  { %8797 = vmatprep.subr.bf16.mxu0 %v8796_v21  ;;  %v4962_v21 = vld [vmem:[#allocation11 + $0xd20] sm:$0xff]  ;;  %v8848_v7 = vpack.c.bf16 %v4949_v34, %v4948_v31 }
 0x6e3   :  { %8827 = vmatpush3.bf16.msra.mxu1 %v8826_v39  ;;  %v4980_v39 = vld [vmem:[#allocation11 + $0xdb0] sm:$0xff]  ;;  %v8878_v17 = vpack.c.bf16 %v4963_v61, %v4962_v21  ;;  %v5006_v34 = vld [vmem:[#allocation11 + $0xe80] sm:$0xff]  ;;  %v8896_v21 = vpack.c.bf16 %v4989_v22, %v4988_v29  ;;  %v5029_v22 = vld [vmem:[#allocation11 + $0xf38] sm:$0xff] }
 0x6e4   :  { %8829 = vmatprep.subr.bf16.mxu1 %v8828_v45  ;;  %v4933_v45 = vld [vmem:[#allocation11 + $0xc38] sm:$0xff]  ;;  %v8880_v20 = vpack.c.bf16 %v4981_v27, %v4980_v39  ;;  %v4972_v61 = vld [vmem:[#allocation11 + $0xd70] sm:$0xff]  ;;  %v8866_v39 = vpack.c.bf16 %v4941_v63, %v4940_v8  ;;  %v5038_v27 = vld [vmem:[#allocation11 + $0xf80] sm:$0xff] }
 0x6e5   :  { %8799 = vmatpush3.bf16.msra.mxu0 %v8798_v25  ;;  %v4951_v25 = vld [vmem:[#allocation11 + $0xcc8] sm:$0xff]  ;;  %v5028_v29 = vld [vmem:[#allocation11 + $0xf30] sm:$0xff]  ;;  %v5046_v8 = vld [vmem:[#allocation11 + $0xfc0] sm:$0xff] }
 0x6e6   :  { %8801 = vmatprep.subr.bf16.mxu0 %v8800_v23  ;;  %v4965_v23 = vld [vmem:[#allocation11 + $0xd38] sm:$0xff]  ;;  %v5047_v63 = vld [vmem:[#allocation11 + $0xfc8] sm:$0xff] }
 0x6e7   :  { %8831 = vmatpush3.bf16.msra.mxu1 %v8830_v46  ;;  %v8852_v46 = vpack.c.bf16 %v4951_v25, %v4950_v35  ;;  %v4991_v35 = vld [vmem:[#allocation11 + $0xe08] sm:$0xff] }
 0x6e8   :  { %8833 = vmatprep.subr.bf16.mxu1 %v8832_v48  ;;  %v8882_v48 = vpack.c.bf16 %v4965_v23, %v4964_v10  ;;  %v5008_v10 = vld [vmem:[#allocation11 + $0xe90] sm:$0xff]  ;;  %v5009_v23 = vld [vmem:[#allocation11 + $0xe98] sm:$0xff] }
 0x6e9   :  { %8803 = vmatpush3.bf16.msra.mxu0 %v8802_v50  ;;  %v8884_v50 = vpack.c.bf16 %v4983_v19, %v4982_v44  ;;  %v5022_v44 = vld [vmem:[#allocation11 + $0xf00] sm:$0xff]  ;;  %v5023_v19 = vld [vmem:[#allocation11 + $0xf08] sm:$0xff]  ;;  %v8904_v42 = vpack.c.bf16 %v5009_v23, %v5008_v10 }
 0x6ea   :  { %8837 = vmatprep.subr.bf16.mxu0 %v8836_v26  ;;  %v4984_v26 = vld [vmem:[#allocation11 + $0xdd0] sm:$0xff]  ;;  %v8934_v18 = vpack.c.bf16 %v5023_v19, %v5022_v44  ;;  %v5018_v23 = vld [vmem:[#allocation11 + $0xee0] sm:$0xff] }
 0x6eb   :  { %8835 = vmatpush3.bf16.msra.mxu1 %v8834_v0  ;;  %v4936_v0 = vld [vmem:[#allocation11 + $0xc50] sm:$0xff]  ;;  %v8888_v37 = vpack.c.bf16 %v4985_v2, %v4984_v26  ;;  %v5011_v26 = vld [vmem:[#allocation11 + $0xea8] sm:$0xff] }
 0x6ec   :  { %6002 = vmatmul.mubr.f32.vlgmr.msra.gmra.mrb[32].mxu0 %v10916_v4  ;;  %8869 = vmatprep.subr.bf16.mxu1 %v8868_v62  ;;  %v8874_v4 = vpack.c.bf16 %v4961_v15, %v4960_v24  ;;  %v4954_v62 = vld [vmem:[#allocation11 + $0xce0] sm:$0xff]  ;;  %v8858_v59 = vpack.c.bf16 %v4937_v60, %v4936_v0  ;;  %v5032_v19 = vld [vmem:[#allocation11 + $0xf50] sm:$0xff] }
 0x6ed   :  { %8839 = vmatpush3.bf16.msra.mxu0 %v8838_v57  ;;  %6141 = vmatprep.mubr.f32.mxu0 %v5186_v13  ;;  %v4968_v57 = vld [vmem:[#allocation11 + $0xd50] sm:$0xff]  ;;  %v8860_v53 = vpack.c.bf16 %v4955_v36, %v4954_v62  ;;  %v4938_v13 = vld [vmem:[#allocation11 + $0xc60] sm:$0xff]  ;;  %v5043_v62 = vld [vmem:[#allocation11 + $0xfa8] sm:$0xff] }
 0x6ee   :  { %6072 = vmatmul.mubr.f32.vlgmr.msra.gmra.mrb[32].mxu1 %v10919_v9  ;;  %8841 = vmatprep.subr.bf16.mxu0 %v8840_v49  ;;  %v4932_v9 = vld [vmem:[#allocation11 + $0xc30] sm:$0xff]  ;;  %v4986_v49 = vld [vmem:[#allocation11 + $0xde0] sm:$0xff]  ;;  %v8890_v12 = vpack.c.bf16 %v4969_v5, %v4968_v57  ;;  %v4995_v57 = vld [vmem:[#allocation11 + $0xe28] sm:$0xff] }
 0x6ef   :  { %8871 = vmatpush3.bf16.msra.mxu1 %v8870_v16  ;;  %6211 = vmatprep.mubr.f32.mxu1 %v5187_v33  ;;  %v8850_v43 = vpack.c.bf16 %v4933_v45, %v4932_v9  ;;  %v4939_v16 = vld [vmem:[#allocation11 + $0xc68] sm:$0xff]  ;;  %v8892_v24 = vpack.c.bf16 %v4987_v28, %v4986_v49  ;;  %v4970_v15 = vld [vmem:[#allocation11 + $0xd60] sm:$0xff]  ;;  %v5012_v5 = vld [vmem:[#allocation11 + $0xeb0] sm:$0xff] }
 0x6f0   :  { %8873 = vmatprep.subr.bf16.mxu1 %v8872_v14  ;;  %v4957_v14 = vld [vmem:[#allocation11 + $0xcf8] sm:$0xff]  ;;  %v4971_v33 = vld [vmem:[#allocation11 + $0xd68] sm:$0xff]  ;;  %v5026_v28 = vld [vmem:[#allocation11 + $0xf20] sm:$0xff] }
 0x6f1   :  { %8843 = vmatpush3.bf16.msra.mxu0 %v8842_v54  ;;  %v8862_v54 = vpack.c.bf16 %v4939_v16, %v4938_v13  ;;  %v8894_v31 = vpack.c.bf16 %v4971_v33, %v4970_v15  ;;  %v5044_v16 = vld [vmem:[#allocation11 + $0xfb0] sm:$0xff]  ;;  %v5014_v15 = vld [vmem:[#allocation11 + $0xec0] sm:$0xff]  ;;  %v5015_v33 = vld [vmem:[#allocation11 + $0xec8] sm:$0xff] }
 0x6f2   :  { %8845 = vmatprep.subr.bf16.mxu0 %v8844_v6  ;;  %v8864_v6 = vpack.c.bf16 %v4957_v14, %v4956_v38  ;;  %v4997_v14 = vld [vmem:[#allocation11 + $0xe38] sm:$0xff] }
 0x6f3   :  { %8875 = vmatpush3.bf16.msra.mxu1 %v8874_v4  ;;  %v4541_v4 = vld [vmem:[#allocation4 + $0x38] sm:$0xff] }
 0x6f4   :  { %8877 = vmatprep.subr.bf16.mxu1 %v8876_v41  ;;  %v5007_v41 = vld [vmem:[#allocation11 + $0xe88] sm:$0xff]  ;;  %v5188_v9 = vcombine.high %v4541_v4, %v4541_v4 }
 0x6f5   :  { %8847 = vmatpush3.bf16.msra.mxu0 %v8846_v55  ;;  %v4973_v55 = vld [vmem:[#allocation11 + $0xd78] sm:$0xff]  ;;  %v8900_v45 = vpack.c.bf16 %v5007_v41, %v5006_v34  ;;  %v4999_v34 = vld [vmem:[#allocation11 + $0xe48] sm:$0xff]  ;;  %v8946_v41 = vpack.c.bf16 %v5029_v22, %v5028_v29 }
 0x6f6   :  { %8849 = vmatprep.subr.bf16.mxu0 %v8848_v7  ;;  %v5039_v7 = vld [vmem:[#allocation11 + $0xf88] sm:$0xff]  ;;  %v8898_v25 = vpack.c.bf16 %v4973_v55, %v4972_v61  ;;  %v10943_v47 = vrot.slane %v5188_v9, %v10845_v32  ;;  %v5017_v61 = vld [vmem:[#allocation11 + $0xed8] sm:$0xff]  ;;  %v8948_v55 = vpack.c.bf16 %v5047_v63, %v5046_v8  ;;  %v5048_v9 = vld [vmem:[#allocation11 + $0xfd0] sm:$0xff] }
 0x6f7   :  { %8879 = vmatpush3.bf16.msra.mxu1 %v8878_v17  ;;  %v4990_v17 = vld [vmem:[#allocation11 + $0xe00] sm:$0xff] }
 0x6f8   :  { %8881 = vmatprep.subr.bf16.mxu1 %v8880_v20  ;;  %v10940_v20 = vrot.slane %v4541_v4, %v10845_v32  ;;  %v5025_v32 = vld [vmem:[#allocation11 + $0xf18] sm:$0xff]  ;;  %v5204_v0 = vcombine.high %v10943_v47, %v10943_v47  ;;  %v8916_v4 = vpack.c.bf16 %v5015_v33, %v5014_v15 }
 0x6f9   :  { %8851 = vmatpush3.bf16.msra.mxu0 %v8850_v43  ;;  %v8932_v43 = vpack.c.bf16 %v5039_v7, %v5038_v27  ;;  %v5031_v27 = vld [vmem:[#allocation11 + $0xf48] sm:$0xff] }
 0x6fa   :  { %8853 = vmatprep.subr.bf16.mxu0 %v8852_v46  ;;  %v8902_v46 = vpack.c.bf16 %v4991_v35, %v4990_v17  ;;  %v5203_v51 = vcombine.high %v10940_v20, %v10940_v20  ;;  %v5000_v35 = vld [vmem:[#allocation11 + $0xe50] sm:$0xff] }
 0x6fb   :  { %8883 = vmatpush3.bf16.msra.mxu1 %v8882_v48  ;;  %v5041_v48 = vld [vmem:[#allocation11 + $0xf98] sm:$0xff] }
 0x6fc   :  { %8885 = vmatprep.subr.bf16.mxu1 %v8884_v50  ;;  %v4993_v50 = vld [vmem:[#allocation11 + $0xe18] sm:$0xff]  ;;  %v8936_v2 = vpack.c.bf16 %v5041_v48, %v5040_v56  ;;  %v5050_v48 = vld [vmem:[#allocation11 + $0xfe0] sm:$0xff] }
 0x6fd   :  { %8855 = vmatpush3.bf16.msra.mxu0 %v8854_v11  ;;  %v5010_v11 = vld [vmem:[#allocation11 + $0xea0] sm:$0xff]  ;;  %v8906_v60 = vpack.c.bf16 %v4993_v50, %v4992_v1 }
 0x6fe   :  { %8857 = vmatprep.subr.bf16.mxu0 %v8856_v52  ;;  %v5024_v52 = vld [vmem:[#allocation11 + $0xf10] sm:$0xff]  ;;  %v8908_v36 = vpack.c.bf16 %v5011_v26, %v5010_v11  ;;  %v5002_v50 = vld [vmem:[#allocation11 + $0xe60] sm:$0xff] }
 0x6ff   :  { %8887 = vmatpush3.bf16.msra.mxu1 %v8886_v58  ;;  %v5042_v58 = vld [vmem:[#allocation11 + $0xfa0] sm:$0xff]  ;;  %v5020_v26 = vld [vmem:[#allocation11 + $0xef0] sm:$0xff] }
 0x700   :  { %8889 = vmatprep.subr.bf16.mxu1 %v8888_v37  ;;  %v4994_v37 = vld [vmem:[#allocation11 + $0xe20] sm:$0xff]  ;;  %v8940_v49 = vpack.c.bf16 %v5043_v62, %v5042_v58  ;;  %v5035_v58 = vld [vmem:[#allocation11 + $0xf68] sm:$0xff] }
 0x701   :  { %8859 = vmatpush3.bf16.msra.mxu0 %v8858_v59  ;;  %v5013_v59 = vld [vmem:[#allocation11 + $0xeb8] sm:$0xff]  ;;  %v8910_v13 = vpack.c.bf16 %v4995_v57, %v4994_v37  ;;  %v5052_v57 = vld [vmem:[#allocation11 + $0xff0] sm:$0xff] }
 0x702   :  { %8861 = vmatprep.subr.bf16.mxu0 %v8860_v53  ;;  %v5027_v53 = vld [vmem:[#allocation11 + $0xf28] sm:$0xff]  ;;  %v8912_v38 = vpack.c.bf16 %v5013_v59, %v5012_v5 }
 0x703   :  { %8891 = vmatpush3.bf16.msra.mxu1 %v8890_v12  ;;  %v5045_v12 = vld [vmem:[#allocation11 + $0xfb8] sm:$0xff] }
 0x704   :  { %8893 = vmatprep.subr.bf16.mxu1 %v8892_v24  ;;  %v8942_v24 = vpack.c.bf16 %v5027_v53, %v5026_v28  ;;  %v5005_v28 = vld [vmem:[#allocation11 + $0xe78] sm:$0xff] }
 0x705   :  { %8863 = vmatpush3.bf16.msra.mxu0 %v8862_v54  ;;  %v8944_v54 = vpack.c.bf16 %v5045_v12, %v5044_v16 }
 0x706   :  { %8865 = vmatprep.subr.bf16.mxu0 %v8864_v6 }
 0x707   :  { %8895 = vmatpush3.bf16.msra.mxu1 %v8894_v31  ;;  %v4998_v31 = vld [vmem:[#allocation11 + $0xe40] sm:$0xff] }
 0x708   :  { %8897 = vmatprep.subr.bf16.mxu1 %v8896_v21  ;;  %v5016_v21 = vld [vmem:[#allocation11 + $0xed0] sm:$0xff]  ;;  %v8918_v7 = vpack.c.bf16 %v4999_v34, %v4998_v31 }
 0x709   :  { %8867 = vmatpush3.bf16.msra.mxu0 %v8866_v39  ;;  %v5030_v39 = vld [vmem:[#allocation11 + $0xf40] sm:$0xff]  ;;  %v8920_v17 = vpack.c.bf16 %v5017_v61, %v5016_v21 }
 0x70a   :  { %8901 = vmatprep.subr.bf16.mxu0 %v8900_v45  ;;  %v5049_v45 = vld [vmem:[#allocation11 + $0xfd8] sm:$0xff]  ;;  %v8950_v10 = vpack.c.bf16 %v5031_v27, %v5030_v39 }
 0x70b   :  { %8899 = vmatpush3.bf16.msra.mxu1 %v8898_v25  ;;  %v5001_v25 = vld [vmem:[#allocation11 + $0xe58] sm:$0xff]  ;;  %v8952_v44 = vpack.c.bf16 %v5049_v45, %v5048_v9 }
 0x70c   :  { %6142 = vmatmul.mubr.f32.vlgmr.msra.gmra.mrb[34].mxu0 %v10928_v30  ;;  %8933 = vmatprep.subr.bf16.mxu1 %v8932_v43  ;;  %v8938_v30 = vpack.c.bf16 %v5025_v32, %v5024_v52  ;;  %v5019_v43 = vld [vmem:[#allocation11 + $0xee8] sm:$0xff]  ;;  %v8922_v56 = vpack.c.bf16 %v5001_v25, %v5000_v35  ;;  %v6577_v52 = vld [vmem:[#allocation13] ss:$0 sm:$0xff]  ;;  %v6360_v9 = vld [vmem:[#allocation14 + $0x10] sm:$0xff] }
 0x70d   :  { %8903 = vmatpush3.bf16.msra.mxu0 %v8902_v46  ;;  %6281 = vmatprep.mubr.f32.mxu0 %v5203_v51  ;;  %v5033_v46 = vld [vmem:[#allocation11 + $0xf58] sm:$0xff]  ;;  %v8924_v1 = vpack.c.bf16 %v5019_v43, %v5018_v23  ;;  %v5003_v51 = vld [vmem:[#allocation11 + $0xe68] sm:$0xff] }
 0x70e   :  { %6212 = vmatmul.mubr.f32.vlgmr.msra.gmra.mrb[34].mxu1 %v10931_v40  ;;  %8905 = vmatprep.subr.bf16.mxu0 %v8904_v42  ;;  %v4996_v40 = vld [vmem:[#allocation11 + $0xe30] sm:$0xff]  ;;  %v5051_v42 = vld [vmem:[#allocation11 + $0xfe8] sm:$0xff]  ;;  %v8954_v11 = vpack.c.bf16 %v5033_v46, %v5032_v19  ;;  %v8926_v37 = vpack.c.bf16 %v5003_v51, %v5002_v50 }
 0x70f   :  { %8935 = vmatpush3.bf16.msra.mxu1 %v8934_v18  ;;  %6351 = vmatprep.mubr.f32.mxu1 %v5204_v0  ;;  %v8914_v6 = vpack.c.bf16 %v4997_v14, %v4996_v40  ;;  %v8956_v0 = vpack.c.bf16 %v5051_v42, %v5050_v48  ;;  %v5037_v40 = vld [vmem:[#allocation11 + $0xf78] sm:$0xff]  ;;  %v6362_v25 = vld [vmem:[#allocation14 + $0x20] sm:$0xff] }
 0x710   :  { %8937 = vmatprep.subr.bf16.mxu1 %v8936_v2  ;;  %v5021_v2 = vld [vmem:[#allocation11 + $0xef8] sm:$0xff]  ;;  %v6366_v46 = vld [vmem:[#allocation14 + $0x40] sm:$0xff] }
 0x711   :  { %8907 = vmatpush3.bf16.msra.mxu0 %v8906_v60  ;;  %v5034_v60 = vld [vmem:[#allocation11 + $0xf60] sm:$0xff]  ;;  %v8928_v59 = vpack.c.bf16 %v5021_v2, %v5020_v26  ;;  %v6364_v43 = vld [vmem:[#allocation14 + $0x30] sm:$0xff] }
 0x712   :  { %8909 = vmatprep.subr.bf16.mxu0 %v8908_v36  ;;  %v8958_v16 = vpack.c.bf16 %v5035_v58, %v5034_v60  ;;  %v6368_v42 = vld [vmem:[#allocation14 + $0x50] sm:$0xff]  ;;  %v6370_v60 = vld [vmem:[#allocation14 + $0x60] sm:$0xff]  ;;  %v6371_v58 = vld [vmem:[#allocation14 + $0x68] sm:$0xff] }
 0x713   :  { %8939 = vmatpush3.bf16.msra.mxu1 %v8938_v30  ;;  %v5053_v30 = vld [vmem:[#allocation11 + $0xff8] sm:$0xff] }
 0x714   :  { %8941 = vmatprep.subr.bf16.mxu1 %v8940_v49  ;;  %v5004_v49 = vld [vmem:[#allocation11 + $0xe70] sm:$0xff]  ;;  %v8960_v12 = vpack.c.bf16 %v5053_v30, %v5052_v57  ;;  %v6452_v57 = vld [vmem:[#allocation17] sm:$0xff] }
 0x715   :  { %8911 = vmatpush3.bf16.msra.mxu0 %v8910_v13  ;;  %v6453_v30 = vld [vmem:[#allocation17 + $0x8] sm:$0xff] }
 0x716   :  { %8913 = vmatprep.subr.bf16.mxu0 %v8912_v38  ;;  %v5036_v38 = vld [vmem:[#allocation11 + $0xf70] sm:$0xff] }
 0x717   :  { %8943 = vmatpush3.bf16.msra.mxu1 %v8942_v24  ;;  %v8930_v24 = vpack.c.bf16 %v5005_v28, %v5004_v49  ;;  %v8962_v15 = vpack.c.bf16 %v5037_v40, %v5036_v38  ;;  %v8989_v49 = vpack.c.bf16 %v6453_v30, %v6452_v57  ;;  %v6455_v28 = vld [vmem:[#allocation17 + $0x18] sm:$0xff] }
 0x718   :  { %8945 = vmatprep.subr.bf16.mxu1 %v8944_v54  ;;  %v6459_v38 = vld [vmem:[#allocation17 + $0x38] sm:$0xff] }
 0x719   :  { %8915 = vmatpush3.bf16.msra.mxu0 %v8914_v6 }
 0x71a   :  { %8917 = vmatprep.subr.bf16.mxu0 %v8916_v4 }
 0x71b   :  { %8947 = vmatpush3.bf16.msra.mxu1 %v8946_v41 }
 0x71c   :  { %8949 = vmatprep.subr.bf16.mxu1 %v8948_v55 }
 0x71d   :  { %8919 = vmatpush3.bf16.msra.mxu0 %v8918_v7  ;;  %v6358_v7 = vld [vmem:[#allocation14] sm:$0xff] }
 0x71e   :  { %8921 = vmatprep.subr.bf16.mxu0 %v8920_v17  ;;  %v6361_v17 = vld [vmem:[#allocation14 + $0x18] sm:$0xff] }
 0x71f   :  { %8951 = vmatpush3.bf16.msra.mxu1 %v8950_v10  ;;  %v6892_v18 = vpop.f32.mrb[22].mxu0  ;;  %v8968_v35 = vpack.c.bf16 %v6361_v17, %v6360_v9  ;;  %v6363_v10 = vld [vmem:[#allocation14 + $0x28] sm:$0xff] }
 0x720   :  { %v6893_v32 = vpop.f32.mrb[23].mxu0  ;;  %8953 = vmatprep.subr.bf16.mxu1 %v8952_v44  ;;  %v8971_v23 = vpack.c.bf16 %v6363_v10, %v6362_v25  ;;  %v6365_v44 = vld [vmem:[#allocation14 + $0x38] sm:$0xff] }
 0x721   :  { %v6894_v62 = vadd.f32 %v6893_v32, %v6892_v18  ;;  %8923 = vmatpush3.bf16.msra.mxu0 %v8922_v56  ;;  %v6927_v36 = vpop.f32.mrb[22].mxu1  ;;  %v8974_v19 = vpack.c.bf16 %v6365_v44, %v6364_v43  ;;  %v6367_v56 = vld [vmem:[#allocation14 + $0x48] sm:$0xff] }
 0x722   :  { %v6928_v5 = vpop.f32.mrb[23].mxu1  ;;  %8925 = vmatprep.subr.bf16.mxu0 %v8924_v1  ;;  %v8977_v48 = vpack.c.bf16 %v6367_v56, %v6366_v46  ;;  %v6369_v1 = vld [vmem:[#allocation14 + $0x58] sm:$0xff] }
 0x723   :  { %v5304_v53 = vadd.f32 %v6894_v62, %v6577_v52  ;;  %v6929_v13 = vadd.f32 %v6928_v5, %v6927_v36  ;;  %8955 = vmatpush3.bf16.msra.mxu1 %v8954_v11  ;;  %v8980_v50 = vpack.c.bf16 %v6369_v1, %v6368_v42  ;;  %v6372_v62 = vld [vmem:[#allocation14 + $0x70] sm:$0xff]  ;;  %v8983_v36 = vpack.c.bf16 %v6371_v58, %v6370_v60 }
 0x724   :  { %8957 = vmatprep.subr.bf16.mxu1 %v8956_v0  ;;  %v6454_v5 = vld [vmem:[#allocation17 + $0x10] sm:$0xff] }
 0x725   :  { %v5374_v14 = vadd.f32 %v6929_v13, %v5304_v53  ;;  %8927 = vmatpush3.bf16.msra.mxu0 %v8926_v37  ;;  %v6373_v37 = vld [vmem:[#allocation14 + $0x78] sm:$0xff]  ;;  %v8992_v53 = vpack.c.bf16 %v6455_v28, %v6454_v5  ;;  %v6456_v13 = vld [vmem:[#allocation17 + $0x20] sm:$0xff] }
 0x726   :  { %8929 = vmatprep.subr.bf16.mxu0 %v8928_v59  ;;  %v8986_v59 = vpack.c.bf16 %v6373_v37, %v6372_v62  ;;  %v6579_v37 = vld [vmem:[#allocation19] ss:$0 sm:$0xff] }
 0x727   :  { %8959 = vmatpush3.bf16.msra.mxu1 %v8958_v16  ;;  %v6457_v16 = vld [vmem:[#allocation17 + $0x28] sm:$0xff] }
 0x728   :  { %8961 = vmatprep.subr.bf16.mxu1 %v8960_v12  ;;  %v8995_v12 = vpack.c.bf16 %v6457_v16, %v6456_v13 }
 0x729   :  { %8931 = vmatpush3.bf16.msra.mxu0 %v8930_v24  ;;  %v6461_v24 = vld [vmem:[#allocation17 + $0x48] sm:$0xff] }
 0x72b   :  { %8963 = vmatpush3.bf16.msra.mxu1 %v8962_v15 }
 0x72c   :  { %6282 = vmatmul.mubr.f32.vlgmr.msra.gmra.mrb[36].mxu0 %v10940_v20  ;;  %v6359_v20 = vld [vmem:[#allocation14 + $0x8] sm:$0xff] }
 0x72d   :  { %v8965_v45 = vpack.c.bf16 %v6359_v20, %v6358_v7  ;;  %7486 = vmatprep.mubr.msk.f32.mxu0 %vm9711_vm10, %v9679_v3 }
 0x72e   :  { %6352 = vmatmul.mubr.f32.vlgmr.msra.gmra.mrb[36].mxu1 %v10943_v47  ;;  %v9710_v47 = vmov 0.0|0.0  }
 0x72f   :  { %8964 = vmatprep.subr.bf16.mxu0 %v9710_v47  ;;  %8988 = vmatprep.subr.bf16.mxu1 %v9710_v47 }
 0x730   :  { %8966 = vmatpush3.bf16.msra.mxu0 %v8965_v45  ;;  %7521 = vmatprep.mubr.msk.f32.mxu1 %vm9711_vm10, %v9679_v3  ;;  %v6458_v3 = vld [vmem:[#allocation17 + $0x30] sm:$0xff] }
 0x731   :  { %8967 = vmatprep.subr.bf16.mxu0 %v9710_v47  ;;  %8990 = vmatpush3.bf16.msra.mxu1 %v8989_v49  ;;  %v8998_v40 = vpack.c.bf16 %v6459_v38, %v6458_v3 }
 0x732   :  { %8991 = vmatprep.subr.bf16.mxu1 %v9710_v47 }
 0x734   :  { %8969 = vmatpush3.bf16.msra.mxu0 %v8968_v35 }
 0x735   :  { %8970 = vmatprep.subr.bf16.mxu0 %v9710_v47  ;;  %8993 = vmatpush3.bf16.msra.mxu1 %v8992_v53 }
 0x736   :  { %8994 = vmatprep.subr.bf16.mxu1 %v9710_v47 }
 0x738   :  { %8972 = vmatpush3.bf16.msra.mxu0 %v8971_v23 }
 0x739   :  { %8973 = vmatprep.subr.bf16.mxu0 %v9710_v47  ;;  %8996 = vmatpush3.bf16.msra.mxu1 %v8995_v12 }
 0x73a   :  { %8997 = vmatprep.subr.bf16.mxu1 %v9710_v47 }
 0x73c   :  { %8975 = vmatpush3.bf16.msra.mxu0 %v8974_v19 }
 0x73d   :  { %8976 = vmatprep.subr.bf16.mxu0 %v9710_v47  ;;  %8999 = vmatpush3.bf16.msra.mxu1 %v8998_v40 }
 0x73e   :  { %9000 = vmatprep.subr.bf16.mxu1 %v9710_v47 }
 0x73f   :  { %v6962_v33 = vpop.f32.mrb[24].mxu0 }
 0x740   :  { %v6963_v54 = vpop.f32.mrb[25].mxu0  ;;  %8978 = vmatpush3.bf16.msra.mxu0 %v8977_v48 }
 0x741   :  { %v6964_v29 = vadd.f32 %v6963_v54, %v6962_v33  ;;  %v6997_v22 = vpop.f32.mrb[24].mxu1  ;;  %8979 = vmatprep.subr.bf16.mxu0 %v9710_v47  ;;  %v6462_v33 = vld [vmem:[#allocation17 + $0x50] sm:$0xff]  ;;  %v6463_v54 = vld [vmem:[#allocation17 + $0x58] sm:$0xff] }
 0x742   :  { %v6998_v6 = vpop.f32.mrb[25].mxu1 }
 0x743   :  { %v5444_v8 = vadd.f32 %v6964_v29, %v5374_v14  ;;  %v6999_v63 = vadd.f32 %v6998_v6, %v6997_v22  ;;  %v6460_v14 = vld [vmem:[#allocation17 + $0x40] sm:$0xff]  ;;  %v9004_v29 = vpack.c.bf16 %v6463_v54, %v6462_v33  ;;  %v6465_v6 = vld [vmem:[#allocation17 + $0x68] sm:$0xff] }
 0x744   :  { %8981 = vmatpush3.bf16.msra.mxu0 %v8980_v50  ;;  %v9001_v15 = vpack.c.bf16 %v6461_v24, %v6460_v14  ;;  %v6464_v22 = vld [vmem:[#allocation17 + $0x60] sm:$0xff] }
 0x745   :  { %v5514_v4 = vadd.f32 %v6999_v63, %v5444_v8  ;;  %8982 = vmatprep.subr.bf16.mxu0 %v9710_v47 }
 0x746   :  { %9002 = vmatpush3.bf16.msra.mxu1 %v9001_v15 }
 0x747   :  { %9003 = vmatprep.subr.bf16.mxu1 %v9710_v47 }
 0x748   :  { %8984 = vmatpush3.bf16.msra.mxu0 %v8983_v36 }
 0x749   :  { %8985 = vmatprep.subr.bf16.mxu0 %v9710_v47 }
 0x74a   :  { %9005 = vmatpush3.bf16.msra.mxu1 %v9004_v29 }
 0x74b   :  { %9006 = vmatprep.subr.bf16.mxu1 %v9710_v47 }
 0x74c   :  { %8987 = vmatpush3.bf16.msra.mxu0 %v8986_v59 }
 0x75f   :  { %v7032_v31 = vpop.f32.mrb[26].mxu0 }
 0x760   :  { %v7033_v34 = vpop.f32.mrb[27].mxu0 }
 0x761   :  { %v7034_v41 = vadd.f32 %v7033_v34, %v7032_v31  ;;  %v7067_v21 = vpop.f32.mrb[26].mxu1 }
 0x762   :  { %v7068_v61 = vpop.f32.mrb[27].mxu1 }
 0x763   :  { %v5584_v55 = vadd.f32 %v7034_v41, %v5514_v4  ;;  %v7069_v39 = vadd.f32 %v7068_v61, %v7067_v21  ;;  %v9007_v4 = vpack.c.bf16 %v6465_v6, %v6464_v22 }
 0x765   :  { %v5654_v27 = vadd.f32 %v7069_v39, %v5584_v55  ;;  %9008 = vmatpush3.bf16.msra.mxu1 %v9007_v4 }
 0x766   :  { %9009 = vmatprep.subr.bf16.mxu1 %v9710_v47 }
 0x77f   :  { %v7102_v51 = vpop.f32.mrb[28].mxu0 }
 0x780   :  { %v7103_v18 = vpop.f32.mrb[29].mxu0 }
 0x781   :  { %v7104_v11 = vadd.f32 %v7103_v18, %v7102_v51  ;;  %v7137_v26 = vpop.f32.mrb[28].mxu1 }
 0x782   :  { %v7138_v2 = vpop.f32.mrb[29].mxu1 }
 0x783   :  { %v5724_v52 = vadd.f32 %v7104_v11, %v5654_v27  ;;  %v7139_v32 = vadd.f32 %v7138_v2, %v7137_v26  ;;  %v6466_v2 = vld [vmem:[#allocation17 + $0x70] sm:$0xff] }
 0x785   :  { %v5794_v0 = vadd.f32 %v7139_v32, %v5724_v52  ;;  %v6467_v52 = vld [vmem:[#allocation17 + $0x78] sm:$0xff] }
 0x786   :  { %v9010_v32 = vpack.c.bf16 %v6467_v52, %v6466_v2 }
 0x788   :  { %9011 = vmatpush3.bf16.msra.mxu1 %v9010_v32 }
 0x79f   :  { %v7172_v8 = vpop.f32.mrb[30].mxu0 }
 0x7a0   :  { %v7173_v63 = vpop.f32.mrb[31].mxu0 }
 0x7a1   :  { %v7174_v31 = vadd.f32 %v7173_v63, %v7172_v8  ;;  %v7207_v34 = vpop.f32.mrb[30].mxu1 }
 0x7a2   :  { %v7208_v41 = vpop.f32.mrb[31].mxu1 }
 0x7a3   :  { %v5864_v21 = vadd.f32 %v7174_v31, %v5794_v0  ;;  %v7209_v61 = vadd.f32 %v7208_v41, %v7207_v34  ;;  %v6578_v0 = vld [vmem:[#allocation16] ss:$0 sm:$0xff] }
 0x7a5   :  { %v5934_v55 = vadd.f32 %v7209_v61, %v5864_v21 }
 0x7bf   :  { %v7242_v39 = vpop.f32.mrb[32].mxu0 }
 0x7c0   :  { %v7243_v27 = vpop.f32.mrb[33].mxu0 }
 0x7c1   :  { %v7244_v7 = vadd.f32 %v7243_v27, %v7242_v39  ;;  %v7277_v20 = vpop.f32.mrb[32].mxu1 }
 0x7c2   :  { %v7278_v9 = vpop.f32.mrb[33].mxu1 }
 0x7c3   :  { %v6004_v45 = vadd.f32 %v7244_v7, %v5934_v55  ;;  %v7279_v17 = vadd.f32 %v7278_v9, %v7277_v20 }
 0x7c5   :  { %v6074_v35 = vadd.f32 %v7279_v17, %v6004_v45 }
 0x7df   :  { %v7312_v25 = vpop.f32.mrb[34].mxu0 }
 0x7e0   :  { %v7313_v10 = vpop.f32.mrb[35].mxu0 }
 0x7e1   :  { %v7314_v23 = vadd.f32 %v7313_v10, %v7312_v25  ;;  %v7347_v43 = vpop.f32.mrb[34].mxu1 }
 0x7e2   :  { %v7348_v44 = vpop.f32.mrb[35].mxu1 }
 0x7e3   :  { %v6144_v19 = vadd.f32 %v7314_v23, %v6074_v35  ;;  %v7349_v46 = vadd.f32 %v7348_v44, %v7347_v43 }
 0x7e5   :  { %v6214_v56 = vadd.f32 %v7349_v46, %v6144_v19 }
 0x7ff   :  { %v7382_v48 = vpop.f32.mrb[36].mxu0 }
 0x800   :  { %v7383_v42 = vpop.f32.mrb[37].mxu0 }
 0x801   :  { %v7384_v1 = vadd.f32 %v7383_v42, %v7382_v48  ;;  %v7417_v47 = vpop.f32.mrb[36].mxu1 }
 0x802   :  { %v7418_v50 = vpop.f32.mrb[37].mxu1 }
 0x803   :  { %v6284_v51 = vadd.f32 %v7384_v1, %v6214_v56  ;;  %v7419_v18 = vadd.f32 %v7418_v50, %v7417_v47 }
 0x805   :  { %v6354_v11 = vadd.f32 %v7419_v18, %v6284_v51 }
 0x807   :  { %v6357_v26 = vmax.f32 %v6354_v11, 0.0 }
 0x809   :  { %7487 = vmatmul.mubr.f32.vlgmr.msra.gmra.mrb[38].mxu0 %v6357_v26 }
 0x8dc   :  { %v6447_v60 = vpop.f32.mrb[38].mxu0 }
 0x8dd   :  { %v6448_v58 = vadd.f32 %v6578_v0, %v6447_v60  ;;  %v7488_v62 = vpop.f32.mrb[39].mxu0 }
 0x8df   :  { %v6451_v36 = vmax.f32 %v6448_v58, 0.0 }
 0x8e1   :  { %7522 = vmatmul.mubr.f32.vlgmr.msra.gmra.mrb[38].mxu1 %v6451_v36 }
 0x9b4   :  { %v6541_v57 = vpop.f32.mrb[38].mxu1 }
 0x9b5   :  { %v6542_v30 = vadd.f32 %v6579_v37, %v6541_v57  ;;  %v7523_v5 = vpop.f32.mrb[39].mxu1 }
 0x9b7   :  { %v6545_v59 = vmax.f32 %v6542_v30, 0.0 }
 0x9b9   :  { %6546 = vst [vmem:[#allocation20] sm:$0x3] %v6545_v59 }
 0x9ba   :  { %9639 = shalt.err (!%p9636_p6)
}
 0x9bb   :  { %s9640_s6 = scalar_lea.hbm %s10995_s12, 32 }
 0x9bc   :  { %p9641_p7 = scmp.ne.s32.totalorder %s10995_s12, %s9640_s6  ;;  %p9644_p8 = scmp.lt.u32.totalorder %s9640_s6, %s10995_s12 }
 0x9be   :  { %p9646_p9 = pnand %p9644_p8, %p9641_p7 }
 0x9c0   :  { %9649 = shalt.err (!%p9646_p9)
}
 0x9c1   :  { %6556 = dma.vmem_to_hbm [thread:$0]  %s6554_s20, 32, %s10995_s12, [#allocation7]  }
 0x9c2   :  { %9660 = dma.done.wait [#allocation7], 32  }
 0x9c3   :  { %9661 = vsyncadd [#allocation7], 4294967264 }
 0x9c4   :  { %6560 = vsyncpa [#allocation6], 1 }
 0x9c5   :  { %6561 = vsyncpa [#allocation9], 1 }
 0x9c6   :  { %6562 = vsyncpa [#allocation12], 1 }
 0x9c7   :  { %6563 = vsyncpa [#allocation15], 1 }
 0x9c8   :  { %6564 = vsyncpa [#allocation18], 1 }
 0x9c9   :  { %6565 = vsyncpa [#allocation7], 1 }

</bundles_post_ra>
